<compile_context>
chip_gen: v5e
topology: v5e:2x2
jax: 0.10.0
libtpu: 0.0.40
codegen_flags: <defaults>
</compile_context>

<pallas_src>
import functools

import jax
import jax.numpy as jnp
from jax import lax
from jax.experimental import pallas as pl
from jax.experimental.pallas import tpu as pltpu


def _fused_conv_gelu_cross_kernel(x_ref, w_ref, b_ref, o_ref, *, Wp, Cin, Cout, Mq):
    """One grid step = one image.

    x_ref : (1, Cin, L)       padded NCHW image with H,W flattened to L
    w_ref : (2*Cout, 9*Cin)   fused conv1/conv2 weights, columns ordered (kh, kw, ci)
    b_ref : (2*Cout, 1)       fused bias
    o_ref : (1, 2*Cout, Mq)   channels-major output over the width-padded grid
    """
    xf = x_ref[0]                      # (Cin, L)
    wf = w_ref[...]                    # (2*Cout, 9*Cin)

    # In-kernel im2col as 9 shift-matmuls: each (kh, kw) tap is a contiguous
    # lane-slice of the flattened padded image; the fused weight slice computes
    # both convolutions in a single MXU stream with spatial pixels in the lanes.
    acc = jnp.zeros((2 * Cout, Mq), dtype=jnp.float32)
    for kh in range(3):
        for kw in range(3):
            off = kh * Wp + kw
            xs = xf[:, off:off + Mq]                               # (Cin, Mq)
            wk = wf[:, (kh * 3 + kw) * Cin:(kh * 3 + kw + 1) * Cin]  # (2*Cout, Cin)
            acc = acc + jnp.dot(wk, xs, preferred_element_type=jnp.float32)
    acc = acc + b_ref[...]             # (2*Cout, Mq)

    v1 = acc[:Cout, :]                 # conv1 output
    v2 = acc[Cout:, :]                 # conv2 output
    c = 0.7071067811865476
    g1 = lax.erf(v1 * c) + 1.0
    g2 = lax.erf(v2 * c) + 1.0

    # torch.cat([v11, v12], dim=1): channels [0,Cout) = 0.5*v2*g1,
    #                               channels [Cout,2*Cout) = 0.5*v1*g2.
    # Two lane-dense, sublane-aligned stores (8 x Mq each).
    o_ref[0, 0:Cout, :] = (v2 * 0.5) * g1
    o_ref[0, Cout:2 * Cout, :] = (v1 * 0.5) * g2


def model_forward(x_nchw, w1, b1, w2, b2):
    """Pallas implementation of Model.forward.

    x_nchw: (N, Cin, H, W) f32
    w1, w2: (3, 3, Cin, Cout) f32 (HWIO)
    b1, b2: (Cout,) f32
    returns (N, 2*Cout, H, W) f32
    """
    N, Cin, H, W = x_nchw.shape
    Cout = w1.shape[-1]
    K = 9 * Cin
    Wp = W + 2
    Mq = H * Wp                        # columns computed per image (incl. 2 junk cols/row)
    L = (H + 3) * Wp                   # flattened padded length (+1 extra bottom row so
                                       # the largest tap offset never reads out of bounds)

    # SAME padding for a 3x3 kernel, then flatten (H, W) so each 3x3 tap is a
    # contiguous slice of the flat axis.  This is ~1.1x the input bytes instead
    # of the 9x blow-up of a materialized im2col patch array.
    xpad = jnp.pad(x_nchw, ((0, 0), (0, 0), (1, 2), (1, 1)))
    xflat = xpad.reshape(N, Cin, L)

    # Fused weights: rows 0..Cout-1 = conv1, Cout..2*Cout-1 = conv2;
    # columns ordered (kh, kw, ci) to match the tap order in the kernel.
    w1t = jnp.transpose(w1, (3, 0, 1, 2)).reshape(Cout, K)
    w2t = jnp.transpose(w2, (3, 0, 1, 2)).reshape(Cout, K)
    wt = jnp.concatenate([w1t, w2t], axis=0)                 # (2*Cout, K)
    bt = jnp.concatenate([b1, b2], axis=0).reshape(2 * Cout, 1)

    kernel = functools.partial(
        _fused_conv_gelu_cross_kernel, Wp=Wp, Cin=Cin, Cout=Cout, Mq=Mq)

    flops = 2 * N * (2 * Cout) * K * Mq
    bytes_accessed = 4 * (N * Cin * L + 2 * Cout * K + 2 * Cout + N * 2 * Cout * Mq)

    out_flat = pl.pallas_call(
        kernel,
        out_shape=jax.ShapeDtypeStruct((N, 2 * Cout, Mq), jnp.float32),
        grid=(N,),
        in_specs=[
            pl.BlockSpec((1, Cin, L), lambda n: (n, 0, 0)),        # one padded image
            pl.BlockSpec((2 * Cout, K), lambda n: (0, 0)),         # fused weights (resident)
            pl.BlockSpec((2 * Cout, 1), lambda n: (0, 0)),         # fused bias
        ],
        out_specs=pl.BlockSpec((1, 2 * Cout, Mq), lambda n: (n, 0, 0)),
        compiler_params=pltpu.CompilerParams(
            dimension_semantics=("parallel",),
        ),
        cost_estimate=pl.CostEstimate(
            flops=flops,
            transcendentals=N * 2 * Cout * Mq,
            bytes_accessed=bytes_accessed,
        ),
    )(xflat, wt, bt)

    # Drop the 2 junk columns per row and recover NCHW: free reshape + narrow
    # slice (the kernel's stores stayed fully lane-dense, no transpose needed).
    out = out_flat.reshape(N, 2 * Cout, H, Wp)[:, :, :, :W]
    return out


def _reference_forward(x_nchw, w1, b1, w2, b2):
    """Pure-JAX reference for correctness checking."""
    dn = lax.conv_dimension_numbers(x_nchw.shape, w1.shape, ("NCHW", "HWIO", "NCHW"))
    v1 = lax.conv_general_dilated(x_nchw, w1, (1, 1), "SAME", dimension_numbers=dn)
    v2 = lax.conv_general_dilated(x_nchw, w2, (1, 1), "SAME", dimension_numbers=dn)
    v1 = v1 + b1[None, :, None, None]
    v2 = v2 + b2[None, :, None, None]
    c = 0.7071067811865476
    v11 = (v2 * 0.5) * (lax.erf(v1 * c) + 1.0)
    v12 = (v1 * 0.5) * (lax.erf(v2 * c) + 1.0)
    return jnp.concatenate([v11, v12], axis=1)


if __name__ == "__main__":
    key = jax.random.PRNGKey(0)
    kx, k1, k2, kb1, kb2 = jax.random.split(key, 5)

    # Shapes consistent with the module (Conv2d(3, 8, 3), 64x64 spatial);
    # batch=2 so the parallel grid axis has >= 2 iterations.
    N, Cin, H, W, Cout = 2, 3, 64, 64, 8
    x = jax.random.normal(kx, (N, Cin, H, W), dtype=jnp.float32)

    fan_in = Cin * 3 * 3
    bound = 1.0 / (fan_in ** 0.5)
    w1 = jax.random.uniform(k1, (3, 3, Cin, Cout), jnp.float32, -bound, bound)
    w2 = jax.random.uniform(k2, (3, 3, Cin, Cout), jnp.float32, -bound, bound)
    b1 = jax.random.uniform(kb1, (Cout,), jnp.float32, -bound, bound)
    b2 = jax.random.uniform(kb2, (Cout,), jnp.float32, -bound, bound)

    out = jax.jit(model_forward)(x, w1, b1, w2, b2)
    out = jax.block_until_ready(out)

    ref = _reference_forward(x, w1, b1, w2, b2)
    assert out.shape == (N, 2 * Cout, H, W), out.shape
    max_err = float(jnp.max(jnp.abs(out - ref)))
    assert max_err < 1e-4, max_err

    print("KERNEL_OK")
</pallas_src>

<mosaic_0001>
module attributes {stable_mosaic.version = 11 : i64} {
  func.func @_fused_conv_gelu_cross_kernel(%arg0: i32, %arg1: memref<1x3x4422xf32, #tpu.memory_space<vmem>>, %arg2: memref<16x27xf32, #tpu.memory_space<vmem>>, %arg3: memref<16x1xf32, #tpu.memory_space<vmem>>, %arg4: memref<1x16x4224xf32, #tpu.memory_space<vmem>>) attributes {dimension_semantics = [#tpu.dimension_semantics<parallel>], iteration_bounds = array<i64: 2>, scalar_prefetch = 0 : i64, scratch_operands = 0 : i64, tpu.core_type = #tpu.core_type<tc>, window_params = [{transform_indices = @transform_0, window_bounds = array<i64: 1, 3, 4422>}, {pipeline_mode = #tpu.pipeline_mode<synchronous>, transform_indices = @transform_1, window_bounds = array<i64: 16, 27>}, {pipeline_mode = #tpu.pipeline_mode<synchronous>, transform_indices = @transform_2, window_bounds = array<i64: 16, 1>}, {transform_indices = @transform_3, window_bounds = array<i64: 1, 16, 4224>}]} {
    %c0 = arith.constant 0 : index
    %c0_0 = arith.constant 0 : index
    %c0_1 = arith.constant 0 : index
    %0 = vector.load %arg1[%c0, %c0_0, %c0_1] : memref<1x3x4422xf32, #tpu.memory_space<vmem>>, vector<1x3x4422xf32>
    %1 = vector.shape_cast %0 : vector<1x3x4422xf32> to vector<3x4422xf32>
    %c0_2 = arith.constant 0 : index
    %c0_3 = arith.constant 0 : index
    %2 = vector.load %arg2[%c0_2, %c0_3] : memref<16x27xf32, #tpu.memory_space<vmem>>, vector<16x27xf32>
    %cst = arith.constant 0.000000e+00 : f32
    %3 = vector.broadcast %cst : f32 to vector<16x4224xf32>
    %4 = vector.extract_strided_slice %1 {offsets = [0, 0], sizes = [3, 4224], strides = [1, 1]} : vector<3x4422xf32> to vector<3x4224xf32>
    %5 = vector.extract_strided_slice %2 {offsets = [0, 0], sizes = [16, 3], strides = [1, 1]} : vector<16x27xf32> to vector<16x3xf32>
    %cst_4 = arith.constant dense<0.000000e+00> : vector<16x4224xf32>
    %6 = tpu.matmul %5, %4, %cst_4 {dimension_numbers = #tpu.dot_dimension_numbers<[1], [0], [0], [1], [0, 0, 1, 1], [], []>} : vector<16x3xf32>, vector<3x4224xf32>, vector<16x4224xf32> -> vector<16x4224xf32>
    %7 = arith.addf %3, %6 : vector<16x4224xf32>
    %8 = vector.extract_strided_slice %1 {offsets = [0, 1], sizes = [3, 4224], strides = [1, 1]} : vector<3x4422xf32> to vector<3x4224xf32>
    %9 = vector.extract_strided_slice %2 {offsets = [0, 3], sizes = [16, 3], strides = [1, 1]} : vector<16x27xf32> to vector<16x3xf32>
    %cst_5 = arith.constant dense<0.000000e+00> : vector<16x4224xf32>
    %10 = tpu.matmul %9, %8, %cst_5 {dimension_numbers = #tpu.dot_dimension_numbers<[1], [0], [0], [1], [0, 0, 1, 1], [], []>} : vector<16x3xf32>, vector<3x4224xf32>, vector<16x4224xf32> -> vector<16x4224xf32>
    %11 = arith.addf %7, %10 : vector<16x4224xf32>
    %12 = vector.extract_strided_slice %1 {offsets = [0, 2], sizes = [3, 4224], strides = [1, 1]} : vector<3x4422xf32> to vector<3x4224xf32>
    %13 = vector.extract_strided_slice %2 {offsets = [0, 6], sizes = [16, 3], strides = [1, 1]} : vector<16x27xf32> to vector<16x3xf32>
    %cst_6 = arith.constant dense<0.000000e+00> : vector<16x4224xf32>
    %14 = tpu.matmul %13, %12, %cst_6 {dimension_numbers = #tpu.dot_dimension_numbers<[1], [0], [0], [1], [0, 0, 1, 1], [], []>} : vector<16x3xf32>, vector<3x4224xf32>, vector<16x4224xf32> -> vector<16x4224xf32>
    %15 = arith.addf %11, %14 : vector<16x4224xf32>
    %16 = vector.extract_strided_slice %1 {offsets = [0, 66], sizes = [3, 4224], strides = [1, 1]} : vector<3x4422xf32> to vector<3x4224xf32>
    %17 = vector.extract_strided_slice %2 {offsets = [0, 9], sizes = [16, 3], strides = [1, 1]} : vector<16x27xf32> to vector<16x3xf32>
    %cst_7 = arith.constant dense<0.000000e+00> : vector<16x4224xf32>
    %18 = tpu.matmul %17, %16, %cst_7 {dimension_numbers = #tpu.dot_dimension_numbers<[1], [0], [0], [1], [0, 0, 1, 1], [], []>} : vector<16x3xf32>, vector<3x4224xf32>, vector<16x4224xf32> -> vector<16x4224xf32>
    %19 = arith.addf %15, %18 : vector<16x4224xf32>
    %20 = vector.extract_strided_slice %1 {offsets = [0, 67], sizes = [3, 4224], strides = [1, 1]} : vector<3x4422xf32> to vector<3x4224xf32>
    %21 = vector.extract_strided_slice %2 {offsets = [0, 12], sizes = [16, 3], strides = [1, 1]} : vector<16x27xf32> to vector<16x3xf32>
    %cst_8 = arith.constant dense<0.000000e+00> : vector<16x4224xf32>
    %22 = tpu.matmul %21, %20, %cst_8 {dimension_numbers = #tpu.dot_dimension_numbers<[1], [0], [0], [1], [0, 0, 1, 1], [], []>} : vector<16x3xf32>, vector<3x4224xf32>, vector<16x4224xf32> -> vector<16x4224xf32>
    %23 = arith.addf %19, %22 : vector<16x4224xf32>
    %24 = vector.extract_strided_slice %1 {offsets = [0, 68], sizes = [3, 4224], strides = [1, 1]} : vector<3x4422xf32> to vector<3x4224xf32>
    %25 = vector.extract_strided_slice %2 {offsets = [0, 15], sizes = [16, 3], strides = [1, 1]} : vector<16x27xf32> to vector<16x3xf32>
    %cst_9 = arith.constant dense<0.000000e+00> : vector<16x4224xf32>
    %26 = tpu.matmul %25, %24, %cst_9 {dimension_numbers = #tpu.dot_dimension_numbers<[1], [0], [0], [1], [0, 0, 1, 1], [], []>} : vector<16x3xf32>, vector<3x4224xf32>, vector<16x4224xf32> -> vector<16x4224xf32>
    %27 = arith.addf %23, %26 : vector<16x4224xf32>
    %28 = vector.extract_strided_slice %1 {offsets = [0, 132], sizes = [3, 4224], strides = [1, 1]} : vector<3x4422xf32> to vector<3x4224xf32>
    %29 = vector.extract_strided_slice %2 {offsets = [0, 18], sizes = [16, 3], strides = [1, 1]} : vector<16x27xf32> to vector<16x3xf32>
    %cst_10 = arith.constant dense<0.000000e+00> : vector<16x4224xf32>
    %30 = tpu.matmul %29, %28, %cst_10 {dimension_numbers = #tpu.dot_dimension_numbers<[1], [0], [0], [1], [0, 0, 1, 1], [], []>} : vector<16x3xf32>, vector<3x4224xf32>, vector<16x4224xf32> -> vector<16x4224xf32>
    %31 = arith.addf %27, %30 : vector<16x4224xf32>
    %32 = vector.extract_strided_slice %1 {offsets = [0, 133], sizes = [3, 4224], strides = [1, 1]} : vector<3x4422xf32> to vector<3x4224xf32>
    %33 = vector.extract_strided_slice %2 {offsets = [0, 21], sizes = [16, 3], strides = [1, 1]} : vector<16x27xf32> to vector<16x3xf32>
    %cst_11 = arith.constant dense<0.000000e+00> : vector<16x4224xf32>
    %34 = tpu.matmul %33, %32, %cst_11 {dimension_numbers = #tpu.dot_dimension_numbers<[1], [0], [0], [1], [0, 0, 1, 1], [], []>} : vector<16x3xf32>, vector<3x4224xf32>, vector<16x4224xf32> -> vector<16x4224xf32>
    %35 = arith.addf %31, %34 : vector<16x4224xf32>
    %36 = vector.extract_strided_slice %1 {offsets = [0, 134], sizes = [3, 4224], strides = [1, 1]} : vector<3x4422xf32> to vector<3x4224xf32>
    %37 = vector.extract_strided_slice %2 {offsets = [0, 24], sizes = [16, 3], strides = [1, 1]} : vector<16x27xf32> to vector<16x3xf32>
    %cst_12 = arith.constant dense<0.000000e+00> : vector<16x4224xf32>
    %38 = tpu.matmul %37, %36, %cst_12 {dimension_numbers = #tpu.dot_dimension_numbers<[1], [0], [0], [1], [0, 0, 1, 1], [], []>} : vector<16x3xf32>, vector<3x4224xf32>, vector<16x4224xf32> -> vector<16x4224xf32>
    %39 = arith.addf %35, %38 : vector<16x4224xf32>
    %c0_13 = arith.constant 0 : index
    %c0_14 = arith.constant 0 : index
    %40 = vector.load %arg3[%c0_13, %c0_14] : memref<16x1xf32, #tpu.memory_space<vmem>>, vector<16x1xf32>
    %41 = vector.broadcast %40 : vector<16x1xf32> to vector<16x4224xf32>
    %42 = arith.addf %39, %41 : vector<16x4224xf32>
    %43 = vector.extract_strided_slice %42 {offsets = [0, 0], sizes = [8, 4224], strides = [1, 1]} : vector<16x4224xf32> to vector<8x4224xf32>
    %44 = vector.extract_strided_slice %42 {offsets = [8, 0], sizes = [8, 4224], strides = [1, 1]} : vector<16x4224xf32> to vector<8x4224xf32>
    %cst_15 = arith.constant 0.707106769 : f32
    %45 = vector.broadcast %cst_15 : f32 to vector<8x4224xf32>
    %46 = arith.mulf %43, %45 : vector<8x4224xf32>
    %47 = math.erf %46 : vector<8x4224xf32>
    %cst_16 = arith.constant 1.000000e+00 : f32
    %48 = vector.broadcast %cst_16 : f32 to vector<8x4224xf32>
    %49 = arith.addf %47, %48 : vector<8x4224xf32>
    %cst_17 = arith.constant 0.707106769 : f32
    %50 = vector.broadcast %cst_17 : f32 to vector<8x4224xf32>
    %51 = arith.mulf %44, %50 : vector<8x4224xf32>
    %52 = math.erf %51 : vector<8x4224xf32>
    %cst_18 = arith.constant 1.000000e+00 : f32
    %53 = vector.broadcast %cst_18 : f32 to vector<8x4224xf32>
    %54 = arith.addf %52, %53 : vector<8x4224xf32>
    %cst_19 = arith.constant 5.000000e-01 : f32
    %55 = vector.broadcast %cst_19 : f32 to vector<8x4224xf32>
    %56 = arith.mulf %44, %55 : vector<8x4224xf32>
    %57 = arith.mulf %56, %49 : vector<8x4224xf32>
    %c0_20 = arith.constant 0 : index
    %c0_21 = arith.constant 0 : index
    %c0_22 = arith.constant 0 : index
    %58 = vector.load %arg4[%c0_20, %c0_21, %c0_22] : memref<1x16x4224xf32, #tpu.memory_space<vmem>>, vector<1x8x4224xf32>
    %59 = vector.shape_cast %58 : vector<1x8x4224xf32> to vector<8x4224xf32>
    %60 = vector.shape_cast %57 : vector<8x4224xf32> to vector<1x8x4224xf32>
    tpu.vector_store %arg4[%c0_20, %c0_21, %c0_22], %60 {strides = array<i32>} : memref<1x16x4224xf32, #tpu.memory_space<vmem>>, vector<1x8x4224xf32>,
    %cst_23 = arith.constant 5.000000e-01 : f32
    %61 = vector.broadcast %cst_23 : f32 to vector<8x4224xf32>
    %62 = arith.mulf %43, %61 : vector<8x4224xf32>
    %63 = arith.mulf %62, %54 : vector<8x4224xf32>
    %c0_24 = arith.constant 0 : index
    %c8 = arith.constant 8 : index
    %c0_25 = arith.constant 0 : index
    %64 = vector.load %arg4[%c0_24, %c8, %c0_25] : memref<1x16x4224xf32, #tpu.memory_space<vmem>>, vector<1x8x4224xf32>
    %65 = vector.shape_cast %64 : vector<1x8x4224xf32> to vector<8x4224xf32>
    %66 = vector.shape_cast %63 : vector<8x4224xf32> to vector<1x8x4224xf32>
    tpu.vector_store %arg4[%c0_24, %c8, %c0_25], %66 {strides = array<i32>} : memref<1x16x4224xf32, #tpu.memory_space<vmem>>, vector<1x8x4224xf32>,
    return
  }
  func.func @transform_0(%arg0: i32) -> (i32, i32, i32) {
    %c0_i32 = arith.constant 0 : i32
    %c0_i32_0 = arith.constant 0 : i32
    %c0_i32_1 = arith.constant 0 : i32
    return %arg0, %c0_i32, %c0_i32_0 : i32, i32, i32
  }
  func.func @transform_1(%arg0: i32) -> (i32, i32) {
    %c0_i32 = arith.constant 0 : i32
    %c0_i32_0 = arith.constant 0 : i32
    %c0_i32_1 = arith.constant 0 : i32
    return %c0_i32, %c0_i32_0 : i32, i32
  }
  func.func @transform_2(%arg0: i32) -> (i32, i32) {
    %c0_i32 = arith.constant 0 : i32
    %c0_i32_0 = arith.constant 0 : i32
    %c0_i32_1 = arith.constant 0 : i32
    return %c0_i32, %c0_i32_0 : i32, i32
  }
  func.func @transform_3(%arg0: i32) -> (i32, i32, i32) {
    %c0_i32 = arith.constant 0 : i32
    %c0_i32_0 = arith.constant 0 : i32
    %c0_i32_1 = arith.constant 0 : i32
    return %arg0, %c0_i32, %c0_i32_0 : i32, i32, i32
  }
}

</mosaic_0001>

<bundles_post_ra>
// kernel: model_forward.1
= control target key start
LH: loop header
LB: loop body
LE: loop exit
PB: predicated region body
PF: predicated region fallthrough
CT: control target
= control target key end

     0   :  { %s13752_s12 = smov 0   ;;  %s20291_s0 = inlined_call_operand.vmem [shape: f32[2,3,4422], index: 0, kind: input, shape index: {}]   ;;  %s20292_s1 = inlined_call_operand.vmem [shape: f32[16,27], index: 1, kind: input, shape index: {}]   ;;  %s20293_s2 = inlined_call_operand.vmem [shape: f32[16,1], index: 2, kind: input, shape index: {}]   ;;  %s20294_s3 = inlined_call_operand.vmem [shape: f32[2,16,4224], index: 3, kind: output, shape index: {}]  }
   0x1 LB: > { %s12575_s13 = sadd.s32 4294967295, %s13714_s12   ;;  %p12579_p0 = scmp.ge.s32.totalorder %s13714_s12, 1  ;;  %s13714_s12 = sphi %s13752_s12, %s13_s12  }
   0x2   : > { %p137_p1 = scmp.lt.s32.totalorder %s13714_s12, 3 }
   0x4   : > { %p138_p2 = pnand %p12579_p0, %p137_p1 }
   0x6   : > { %141 = sbr.rel (%p138_p2) target bundleno = 2090 (0x82a), region = 32 }
   0xb   : > { %v13763_v0 = vld [vmem:[%s20292_s1] sm:$0xff]  ;;  %p161_p3 = scmp.lt.s32.totalorder %s12575_s13, 1  ;;  %s13716_s16 = smov 125   ;;  %v13777_v1 = vld [vmem:[%s20292_s1 + $0x8] sm:$0xff]  ;;  %vm336_vm0 = vcmask 1039360   ;;  %vm375_vm1 = vcmask 1042432  }
   0xc   : > { %193 = vrot.lane.b32.xlu1 %v13763_v0, %s13716_s16  ;;  %s13717_s23 = smov 127   ;;  %vm370_vm2 = vcmask 23552   ;;  %s13718_s24 = smov 126   ;;  %vm2209_vm3 = vcmask 1031168   ;;  %vm3264_vm4 = vcmask 506880   ;;  %vm4319_vm5 = vcmask 498688  }
   0xd   : > { %s21087_s13 = smov (!%p161_p3, %s12575_s13), 1  ;;  %s13719_s25 = smov 122   ;;  %vm5374_vm6 = vcmask 490496   ;;  %vm6431_vm7 = vcmask 1014784   ;;  %vm7487_vm8 = vcmask 1006592   ;;  %vm8543_vm9 = vcmask 998400  }
   0xe   : > { %s13542_s17 = smul.u32 140, %s21087_s13  ;;  %s13720_s30 = smov 62  }
   0xf   : > { %s13721_s4 = smov 119   ;;  %s13722_s5 = smov 61  }
  0x10   : > { %s13772_s20 = scalar_lea.vmem %s20291_s0, %s13542_s17  ;;  %s13723_s6 = smov 116  }
  0x11   : > { %v13780_v2 = vld [vmem:[%s13772_s20] sm:$0x77]  ;;  %v13783_v3 = vld [vmem:[%s13772_s20 + $0x8] sm:$0x77]  ;;  %v13787_v4 = vld [vmem:[%s13772_s20 + $0x10] sm:$0x77] }
  0x12   : > { %20314 = vst [vmem:[#allocation2_spill] sm:$0xff] %v13780_v2  ;;  %v13790_v5 = vld [vmem:[%s13772_s20 + $0x18] sm:$0x77]  ;;  %v13797_v7 = vld [vmem:[%s13772_s20 + $0x20] sm:$0x77]  ;;  %s13724_s7 = smov 60  }
  0x13   : > { %20315 = vst [vmem:[#allocation3_spill] sm:$0xff] %v13783_v3  ;;  %v13801_v9 = vld [vmem:[%s13772_s20 + $0x28] sm:$0x77]  ;;  %v13808_v14 = vld [vmem:[%s13772_s20 + $0x30] sm:$0x77]  ;;  %s13725_s10 = smov 113  }
  0x14   : > { %214 = vst [vmem:[#allocation1] ss:$2 sm:$0xff] %v13780_v2  ;;  %195 = vrot.lane.b32.xlu1 %v13777_v1, %s13716_s16  ;;  %v13813_v17 = vld [vmem:[%s13772_s20 + $0x38] sm:$0x77]  ;;  %v13816_v18 = vld [vmem:[%s13772_s20 + $0x40] sm:$0x77] }
  0x15   : > { %20316 = vst [vmem:[#allocation4_spill] sm:$0xff] %v13787_v4  ;;  %v13825_v23 = vld [vmem:[%s13772_s20 + $0x48] sm:$0x77]  ;;  %v13831_v27 = vld [vmem:[%s13772_s20 + $0x50] sm:$0x77]  ;;  %s13726_s15 = smov 124  }
  0x16   : > { %20317 = vst [vmem:[#allocation5_spill] sm:$0xff] %v13790_v5  ;;  %v13837_v29 = vld [vmem:[%s13772_s20 + $0x58] sm:$0x77]  ;;  %v13843_v31 = vld [vmem:[%s13772_s20 + $0x60] sm:$0x77]  ;;  %s13727_s16 = smov 110  }
  0x17   : > { %216 = vst [vmem:[#allocation1 + $0x10] ss:$2 sm:$0xff] %v13783_v3  ;;  %v13849_v36 = vld [vmem:[%s13772_s20 + $0x68] sm:$0x77]  ;;  %v13861_v40 = vld [vmem:[%s13772_s20 + $0x70] sm:$0x77] }
  0x18   : > { %218 = vst [vmem:[#allocation1 + $0x20] ss:$2 sm:$0xff] %v13787_v4  ;;  %v13870_v46 = vld [vmem:[%s13772_s20 + $0x78] sm:$0x77]  ;;  %v13875_v47 = vld [vmem:[%s13772_s20 + $0x80] sm:$0x77] }
  0x19   : > { %220 = vst [vmem:[#allocation1 + $0x30] ss:$2 sm:$0xff] %v13790_v5  ;;  %s13728_s17 = smov 123  }
  0x1a   : > { %20318 = vst [vmem:[#allocation6_spill] sm:$0xff] %v13797_v7 }
  0x1b   : > { %v221_v6 = vld.sshfl [vmem:[#allocation1] sm:$0xff pattern:$0x75316420]  ;;  %20319 = vst [vmem:[#allocation7_spill] sm:$0xff] %v13801_v9 }
  0x1c   : > { %268 = vrot.lane.b32.xlu0 %v221_v6, %s13717_s23  ;;  %v222_v10 = vld.sshfl [vmem:[#allocation1 + $0x8] sm:$0xff pattern:$0x75316420]  ;;  %20320 = vst [vmem:[#allocation8_spill] sm:$0xff] %v13843_v31 }
  0x1d   : > { %229 = vst [vmem:[#allocation1] ss:$2 sm:$0xff] %v13797_v7 }
  0x1e   : > { %v223_v8 = vld.sshfl [vmem:[#allocation1 + $0x10] sm:$0xff pattern:$0x75316420]  ;;  %v224_v12 = vld.sshfl [vmem:[#allocation1 + $0x18] sm:$0xff pattern:$0x75316420] }
  0x1f   : > { %272 = vrot.lane.b32.xlu2 %v223_v8, %s13717_s23  ;;  %v226_v11 = vld.sshfl [vmem:[#allocation1 + $0x28] sm:$0xff pattern:$0x75316420]  ;;  %230 = vst [vmem:[#allocation1 + $0x10] ss:$2 sm:$0xff] %v13801_v9 }
  0x20   : > { %278 = vrot.lane.b32.xlu1 %v226_v11, %s13717_s23  ;;  %v225_v13 = vld.sshfl [vmem:[#allocation1 + $0x20] sm:$0xff pattern:$0x75316420]  ;;  %v227_v15 = vld.sshfl [vmem:[#allocation1 + $0x30] sm:$0xff pattern:$0x75316420] }
  0x21   : > { %231 = vst [vmem:[#allocation1 + $0x20] ss:$2 sm:$0xff] %v13808_v14  ;;  %v228_v16 = vld.sshfl [vmem:[#allocation1 + $0x38] sm:$0xff pattern:$0x75316420] }
  0x22   : > { %232 = vst [vmem:[#allocation1 + $0x30] ss:$2 sm:$0xff] %v13813_v17 }
  0x23   : > { %20321 = vst [vmem:[#allocation9_spill] sm:$0xff] %v13849_v36 }
  0x24   : > { %270 = vrot.lane.b32.xlu0 %v222_v10, %s13717_s23  ;;  %v233_v19 = vld.sshfl [vmem:[#allocation1] sm:$0xff pattern:$0x75316420]  ;;  %v234_v20 = vld.sshfl [vmem:[#allocation1 + $0x8] sm:$0xff pattern:$0x75316420] }
  0x25   : > { %241 = vst [vmem:[#allocation1] ss:$2 sm:$0xff] %v13816_v18 }
  0x26   : > { %v236_v21 = vld.sshfl [vmem:[#allocation1 + $0x18] sm:$0xff pattern:$0x75316420]  ;;  %v235_v22 = vld.sshfl [vmem:[#allocation1 + $0x10] sm:$0xff pattern:$0x75316420] }
  0x27   : > { %274 = vrot.lane.b32.xlu2 %v224_v12, %s13717_s23  ;;  %242 = vst [vmem:[#allocation1 + $0x10] ss:$2 sm:$0xff] %v13825_v23 }
  0x28   : > { %284 = vrot.lane.b32.xlu1 %v233_v19, %s13717_s23  ;;  %v237_v24 = vld.sshfl [vmem:[#allocation1 + $0x20] sm:$0xff pattern:$0x75316420]  ;;  %v238_v25 = vld.sshfl [vmem:[#allocation1 + $0x28] sm:$0xff pattern:$0x75316420] }
  0x29   : > { %v239_v26 = vld.sshfl [vmem:[#allocation1 + $0x30] sm:$0xff pattern:$0x75316420]  ;;  %v240_v28 = vld.sshfl [vmem:[#allocation1 + $0x38] sm:$0xff pattern:$0x75316420] }
  0x2a   : > { %243 = vst [vmem:[#allocation1 + $0x20] ss:$2 sm:$0xff] %v13831_v27 }
  0x2b   : > { %244 = vst [vmem:[#allocation1 + $0x30] ss:$2 sm:$0xff] %v13837_v29 }
  0x2c   : > { %276 = vrot.lane.b32.xlu0 %v225_v13, %s13717_s23  ;;  %v246_v30 = vld.sshfl [vmem:[#allocation1 + $0x8] sm:$0xff pattern:$0x75316420]  ;;  %v245_v32 = vld.sshfl [vmem:[#allocation1] sm:$0xff pattern:$0x75316420] }
  0x2d   : > { %253 = vst [vmem:[#allocation1] ss:$2 sm:$0xff] %v13843_v31 }
  0x2e   : > { %v247_v33 = vld.sshfl [vmem:[#allocation1 + $0x10] sm:$0xff pattern:$0x75316420]  ;;  %v248_v35 = vld.sshfl [vmem:[#allocation1 + $0x18] sm:$0xff pattern:$0x75316420] }
  0x2f   : > { %280 = vrot.lane.b32.xlu2 %v227_v15, %s13717_s23  ;;  %254 = vst [vmem:[#allocation1 + $0x10] ss:$2 sm:$0xff] %v13849_v36 }
  0x30   : > { %290 = vrot.lane.b32.xlu1 %v236_v21, %s13717_s23  ;;  %20322 = vst [vmem:[#allocation10_spill] sm:$0xff] %v13870_v46 }
  0x31   : > { %v249_v34 = vld.sshfl [vmem:[#allocation1 + $0x20] sm:$0xff pattern:$0x75316420]  ;;  %v250_v38 = vld.sshfl [vmem:[#allocation1 + $0x28] sm:$0xff pattern:$0x75316420] }
  0x32   : > { %v252_v37 = vld.sshfl [vmem:[#allocation1 + $0x38] sm:$0xff pattern:$0x75316420]  ;;  %255 = vst [vmem:[#allocation1 + $0x20] ss:$2 sm:$0xff] %v13861_v40 }
  0x33   : > { %v251_v41 = vld.sshfl [vmem:[#allocation1 + $0x30] sm:$0xff pattern:$0x75316420]  ;;  %20323 = vst [vmem:[#allocation11_spill] sm:$0xff] %v13875_v47 }
  0x34   : > { %282 = vrot.lane.b32.xlu0 %v228_v16, %s13717_s23  ;;  %v257_v44 = vld.sshfl [vmem:[#allocation1] sm:$0xff pattern:$0x75316420]  ;;  %v258_v45 = vld.sshfl [vmem:[#allocation1 + $0x8] sm:$0xff pattern:$0x75316420] }
  0x35   : > { %256 = vst [vmem:[#allocation1 + $0x30] ss:$2 sm:$0xff] %v13870_v46 }
  0x36   : > { %v259_v39 = vld.sshfl [vmem:[#allocation1 + $0x10] sm:$0xff pattern:$0x75316420]  ;;  %265 = vst [vmem:[#allocation1] ss:$2 sm:$0xff] %v13875_v47 }
  0x37   : > { %286 = vrot.lane.b32.xlu2 %v234_v20, %s13717_s23  ;;  %v260_v51 = vld.sshfl [vmem:[#allocation1 + $0x18] sm:$0xff pattern:$0x75316420] }
  0x38   : > { %296 = vrot.lane.b32.xlu1 %v239_v26, %s13717_s23  ;;  %1203 = vst [vmem:[#allocation1 + $0x10] ss:$2 sm:$0xff] %v13783_v3 }
  0x39   : > { %v262_v42 = vld.sshfl [vmem:[#allocation1 + $0x28] sm:$0xff pattern:$0x75316420]  ;;  %v261_v43 = vld.sshfl [vmem:[#allocation1 + $0x20] sm:$0xff pattern:$0x75316420] }
  0x3a   : > { %1205 = vst [vmem:[#allocation1 + $0x20] ss:$2 sm:$0xff] %v13787_v4 }
  0x3c   : > { %288 = vrot.lane.b32.xlu0 %v235_v22, %s13717_s23  ;;  %v264_v48 = vld.sshfl [vmem:[#allocation1 + $0x38] sm:$0xff pattern:$0x75316420]  ;;  %v263_v55 = vld.sshfl [vmem:[#allocation1 + $0x30] sm:$0xff pattern:$0x75316420] }
  0x3d   : > { %v266_v49 = vld.sshfl [vmem:[#allocation1] sm:$0xff pattern:$0x75316420]  ;;  %1207 = vst [vmem:[#allocation1 + $0x30] ss:$2 sm:$0xff] %v13790_v5 }
  0x3e   : > { %v267_v57 = vld.sshfl [vmem:[#allocation1 + $0x8] sm:$0xff pattern:$0x75316420] }
  0x3f   : > { %292 = vrot.lane.b32.xlu2 %v237_v24, %s13717_s23  ;;  %1201 = vst [vmem:[#allocation1] ss:$2 sm:$0xff] %v13780_v2 }
  0x40   : > { %302 = vrot.lane.b32.xlu1 %v246_v30, %s13717_s23 }
  0x44   : > { %294 = vrot.lane.b32.xlu0 %v238_v25, %s13717_s23 }
  0x47   : > { %298 = vrot.lane.b32.xlu2 %v240_v28, %s13717_s23 }
  0x48   : > { %308 = vrot.lane.b32.xlu1 %v249_v34, %s13717_s23 }
  0x4c   : > { %300 = vrot.lane.b32.xlu0 %v245_v32, %s13717_s23 }
  0x4f   : > { %304 = vrot.lane.b32.xlu2 %v247_v33, %s13717_s23 }
  0x50   : > { %314 = vrot.lane.b32.xlu1 %v252_v37, %s13717_s23 }
  0x54   : > { %306 = vrot.lane.b32.xlu0 %v248_v35, %s13717_s23 }
  0x57   : > { %310 = vrot.lane.b32.xlu2 %v250_v38, %s13717_s23 }
  0x58   : > { %320 = vrot.lane.b32.xlu1 %v259_v39, %s13717_s23 }
  0x5c   : > { %312 = vrot.lane.b32.xlu0 %v251_v41, %s13717_s23 }
  0x5f   : > { %316 = vrot.lane.b32.xlu2 %v257_v44, %s13717_s23 }
  0x60   : > { %326 = vrot.lane.b32.xlu1 %v262_v42, %s13717_s23 }
  0x64   : > { %318 = vrot.lane.b32.xlu0 %v258_v45, %s13717_s23 }
  0x67   : > { %322 = vrot.lane.b32.xlu2 %v260_v51, %s13717_s23 }
  0x68   : > { %332 = vrot.lane.b32.xlu1 %v266_v49, %s13717_s23 }
  0x6c   : > { %324 = vrot.lane.b32.xlu0 %v261_v43, %s13717_s23 }
  0x6f   : > { %328 = vrot.lane.b32.xlu2 %v263_v55, %s13717_s23 }
  0x74   : > { %330 = vrot.lane.b32.xlu0 %v264_v48, %s13717_s23 }
  0x77   : > { %334 = vrot.lane.b32.xlu2 %v267_v57, %s13717_s23  ;;  %s13730_s23 = smov 104  }
  0x79   : > { %v273_v50 = vpop.permute.xlu2 %272 }
  0x7e   : > { %v13882_v53 = vpop.permute.xlu1 %193 }
  0x81   : > { %v275_v52 = vpop.permute.xlu2 %274 }
  0x82   : > { %v339_v54 = vsel %vm336_vm0, %v273_v50, %v275_v52 }
  0x83   : > { %12588 = vmatpush.msk.msra.mxu2 %vm375_vm1, %v339_v54 }
  0x84   : > { %12589 = vmatmul.msk.f32.vlgmr.msra.gmra.mxu2 %vm370_vm2, %v13882_v53 }
  0x86   : > { %v13890_v56 = vpop.permute.xlu1 %195 }
  0x89   : > { %v281_v60 = vpop.permute.xlu2 %280 }
  0x8c   : > { %12590 = vmatmul.msk.f32.gmra.mxu2 %vm370_vm2, %v13890_v56 }
  0x8e   : > { %v269_v58 = vpop.permute.xlu0 %268 }
  0x91   : > { %v287_v8 = vpop.permute.xlu2 %286 }
  0x92   : > { %v279_v59 = vpop.permute.xlu1 %278 }
  0x93   : > { %v342_v6 = vsel %vm336_vm0, %v279_v59, %v281_v60 }
  0x96   : > { %v271_v61 = vpop.permute.xlu0 %270 }
  0x97   : > { %v337_v62 = vsel %vm336_vm0, %v269_v58, %v271_v61  ;;  %v338_v63 = vsel %vm336_vm0, %v271_v61, %v273_v50 }
  0x98   : > { %12582 = vmatpush.msk.msra.mxu0 %vm375_vm1, %v337_v62  ;;  %13541 = vmatpush.msk.msra.mxu1 %vm375_vm1, %v337_v62 }
  0x99   : > { %12583 = vmatmul.msk.f32.vlgmr.msra.gmra.mxu0 %vm370_vm2, %v13882_v53  ;;  %12584 = vmatmul.msk.f32.vlgmr.msra.gmra.mxu1 %vm370_vm2, %v13890_v56  ;;  %v293_v16 = vpop.permute.xlu2 %292 }
  0x9a   : > { %12585 = vmatpush.msk.msrb.mxu1 %vm375_vm1, %v338_v63  ;;  %v285_v10 = vpop.permute.xlu1 %284 }
  0x9b   : > { %v345_v15 = vsel %vm336_vm0, %v285_v10, %v287_v8 }
  0x9c   : > { %12597 = vmatpush.msk.msra.mxu1 %vm375_vm1, %v342_v6  ;;  %v14001_v6 = vld.sshfl [vmem:[#allocation1] sm:$0xff pattern:$0x75316420] }
  0x9e   : > { %v277_v11 = vpop.permute.xlu0 %276 }
  0x9f   : > { %v340_v12 = vsel %vm336_vm0, %v275_v52, %v277_v11  ;;  %v341_v13 = vsel %vm336_vm0, %v277_v11, %v279_v59 }
  0xa0   : > { %12591 = vmatpush.msk.msra.mxu3 %vm375_vm1, %v340_v12  ;;  %12594 = vmatpush.msk.msrb.mxu0 %vm375_vm1, %v341_v13 }
  0xa1   : > { %12586 = vmatmul.msk.f32.vlgmr.msrb.gmra.mxu1 %vm370_vm2, %v13882_v53  ;;  %12592 = vmatmul.msk.f32.vlgmr.msra.gmra.mxu3 %vm370_vm2, %v13882_v53  ;;  %v299_v26 = vpop.permute.xlu2 %298 }
  0xa2   : > { %12595 = vmatmul.msk.f32.vlgmr.msrb.gmra.mxu0 %vm370_vm2, %v13882_v53  ;;  %v291_v19 = vpop.permute.xlu1 %290 }
  0xa3   : > { %12606 = vmatpush.msk.msra.mxu0 %vm375_vm1, %v345_v15  ;;  %v348_v24 = vsel %vm336_vm0, %v291_v19, %v293_v16 }
  0xa6   : > { %v283_v20 = vpop.permute.xlu0 %282 }
  0xa7   : > { %v343_v21 = vsel %vm336_vm0, %v281_v60, %v283_v20  ;;  %v344_v22 = vsel %vm336_vm0, %v283_v20, %v285_v10 }
  0xa8   : > { %12600 = vmatpush.msk.msrb.mxu2 %vm375_vm1, %v343_v21  ;;  %12603 = vmatpush.msk.msrb.mxu3 %vm375_vm1, %v344_v22 }
  0xa9   : > { %12587 = vmatmul.msk.f32.gmra.mxu1 %vm370_vm2, %v13890_v56  ;;  %12593 = vmatmul.msk.f32.gmra.mxu3 %vm370_vm2, %v13890_v56  ;;  %v305_v35 = vpop.permute.xlu2 %304 }
  0xaa   : > { %12596 = vmatmul.msk.f32.gmra.mxu0 %vm370_vm2, %v13890_v56  ;;  %12601 = vmatmul.msk.f32.vlgmr.msrb.gmra.mxu2 %vm370_vm2, %v13882_v53  ;;  %v297_v25 = vpop.permute.xlu1 %296 }
  0xab   : > { %12615 = vmatpush.msk.msra.mxu3 %vm375_vm1, %v348_v24  ;;  %v351_v33 = vsel %vm336_vm0, %v297_v25, %v299_v26 }
  0xae   : > { %v289_v28 = vpop.permute.xlu0 %288 }
  0xaf   : > { %v346_v30 = vsel %vm336_vm0, %v287_v8, %v289_v28  ;;  %v347_v32 = vsel %vm336_vm0, %v289_v28, %v291_v19  ;;  %v14003_v8 = vld.sshfl [vmem:[#allocation1 + $0x8] sm:$0xff pattern:$0x75316420] }
  0xb0   : > { %12609 = vmatpush.msk.msrb.mxu1 %vm375_vm1, %v346_v30  ;;  %12612 = vmatpush.msk.msra.mxu2 %vm375_vm1, %v347_v32  ;;  %1216 = vst [vmem:[#allocation1] ss:$2 sm:$0xff] %v13797_v7  ;;  %v1210_v30 = vld.sshfl [vmem:[#allocation1 + $0x10] sm:$0xff pattern:$0x75316420] }
  0xb1   : > { %12598 = vmatmul.msk.f32.vlgmr.msra.gmra.mxu1 %vm370_vm2, %v13882_v53  ;;  %12604 = vmatmul.msk.f32.vlgmr.msrb.gmra.mxu3 %vm370_vm2, %v13882_v53  ;;  %v311_v41 = vpop.permute.xlu2 %310  ;;  %v1211_v32 = vld.sshfl [vmem:[#allocation1 + $0x18] sm:$0xff pattern:$0x75316420] }
  0xb2   : > { %12602 = vmatmul.msk.f32.gmra.mxu2 %vm370_vm2, %v13890_v56  ;;  %12607 = vmatmul.msk.f32.vlgmr.msra.gmra.mxu0 %vm370_vm2, %v13882_v53  ;;  %v303_v34 = vpop.permute.xlu1 %302  ;;  %1217 = vst [vmem:[#allocation1 + $0x10] ss:$2 sm:$0xff] %v13801_v9 }
  0xb3   : > { %12624 = vmatpush.msk.msrb.mxu2 %vm375_vm1, %v351_v33  ;;  %v354_v48 = vsel %vm336_vm0, %v303_v34, %v305_v35 }
  0xb6   : > { %v295_v37 = vpop.permute.xlu0 %294 }
  0xb7   : > { %v349_v38 = vsel %vm336_vm0, %v293_v16, %v295_v37  ;;  %v350_v39 = vsel %vm336_vm0, %v295_v37, %v297_v25  ;;  %v14018_v15 = vld.sshfl [vmem:[#allocation1] sm:$0xff pattern:$0x75316420]  ;;  %v14020_v16 = vld.sshfl [vmem:[#allocation1 + $0x8] sm:$0xff pattern:$0x75316420] }
  0xb8   : > { %12618 = vmatpush.msk.msrb.mxu0 %vm375_vm1, %v349_v38  ;;  %12621 = vmatpush.msk.msra.mxu1 %vm375_vm1, %v350_v39  ;;  %1228 = vst [vmem:[#allocation1] ss:$2 sm:$0xff] %v13816_v18 }
  0xb9   : > { %12599 = vmatmul.msk.f32.gmra.mxu1 %vm370_vm2, %v13890_v56  ;;  %12605 = vmatmul.msk.f32.gmra.mxu3 %vm370_vm2, %v13890_v56  ;;  %v317_v54 = vpop.permute.xlu2 %316 }
  0xba   : > { %12608 = vmatmul.msk.f32.gmra.mxu0 %vm370_vm2, %v13890_v56  ;;  %12613 = vmatmul.msk.f32.vlgmr.msra.gmra.mxu2 %vm370_vm2, %v13882_v53  ;;  %v309_v42 = vpop.permute.xlu1 %308 }
  0xbb   : > { %v357_v49 = vsel %vm336_vm0, %v309_v42, %v311_v41 }
  0xbe   : > { %v301_v43 = vpop.permute.xlu0 %300 }
  0xbf   : > { %v352_v44 = vsel %vm336_vm0, %v299_v26, %v301_v43  ;;  %v353_v45 = vsel %vm336_vm0, %v301_v43, %v303_v34  ;;  %v14037_v25 = vld.sshfl [vmem:[#allocation1] sm:$0xff pattern:$0x75316420]  ;;  %v14039_v26 = vld.sshfl [vmem:[#allocation1 + $0x8] sm:$0xff pattern:$0x75316420] }
  0xc0   : > { %12627 = vmatpush.msk.msrb.mxu3 %vm375_vm1, %v352_v44  ;;  %12630 = vmatpush.msk.msra.mxu0 %vm375_vm1, %v353_v45  ;;  %1240 = vst [vmem:[#allocation1] ss:$2 sm:$0xff] %v13843_v31  ;;  %v1213_v43 = vld.sshfl [vmem:[#allocation1 + $0x28] sm:$0xff pattern:$0x75316420] }
  0xc1   : > { %12610 = vmatmul.msk.f32.vlgmr.msrb.gmra.mxu1 %vm370_vm2, %v13882_v53  ;;  %12616 = vmatmul.msk.f32.vlgmr.msra.gmra.mxu3 %vm370_vm2, %v13882_v53  ;;  %v323_v61 = vpop.permute.xlu2 %322  ;;  %v14075_v44 = vld.sshfl [vmem:[#allocation1 + $0x10] sm:$0xff pattern:$0x75316420]  ;;  %v14077_v45 = vld.sshfl [vmem:[#allocation1 + $0x18] sm:$0xff pattern:$0x75316420] }
  0xc2   : > { %12614 = vmatmul.msk.f32.gmra.mxu2 %vm370_vm2, %v13890_v56  ;;  %12619 = vmatmul.msk.f32.vlgmr.msrb.gmra.mxu0 %vm370_vm2, %v13882_v53  ;;  %v315_v55 = vpop.permute.xlu1 %314  ;;  %1229 = vst [vmem:[#allocation1 + $0x10] ss:$2 sm:$0xff] %v13825_v23 }
  0xc3   : > { %12633 = vmatpush.msk.msrb.mxu1 %vm375_vm1, %v354_v48  ;;  %12642 = vmatpush.msk.msrb.mxu0 %vm375_vm1, %v357_v49  ;;  %v360_v60 = vsel %vm336_vm0, %v315_v55, %v317_v54 }
  0xc6   : > { %v307_v50 = vpop.permute.xlu0 %306 }
  0xc7   : > { %v355_v51 = vsel %vm336_vm0, %v305_v35, %v307_v50  ;;  %v356_v52 = vsel %vm336_vm0, %v307_v50, %v309_v42  ;;  %v14053_v35 = vld.sshfl [vmem:[#allocation1] sm:$0xff pattern:$0x75316420]  ;;  %v14055_v37 = vld.sshfl [vmem:[#allocation1 + $0x8] sm:$0xff pattern:$0x75316420] }
  0xc8   : > { %12636 = vmatpush.msk.msra.mxu2 %vm375_vm1, %v355_v51  ;;  %12639 = vmatpush.msk.msra.mxu3 %vm375_vm1, %v356_v52  ;;  %1252 = vst [vmem:[#allocation1] ss:$2 sm:$0xff] %v13875_v47  ;;  %v14069_v42 = vld.sshfl [vmem:[#allocation1 + $0x20] sm:$0xff pattern:$0x75316420] }
  0xc9   : > { %12611 = vmatmul.msk.f32.gmra.mxu1 %vm370_vm2, %v13890_v56  ;;  %12617 = vmatmul.msk.f32.gmra.mxu3 %vm370_vm2, %v13890_v56  ;;  %v329_v22 = vpop.permute.xlu2 %328  ;;  %1218 = vst [vmem:[#allocation1 + $0x20] ss:$2 sm:$0xff] %v13808_v14  ;;  %v14098_v51 = vld.sshfl [vmem:[#allocation1 + $0x10] sm:$0xff pattern:$0x75316420] }
  0xca   : > { %12620 = vmatmul.msk.f32.gmra.mxu0 %vm370_vm2, %v13890_v56  ;;  %12625 = vmatmul.msk.f32.vlgmr.msrb.gmra.mxu2 %vm370_vm2, %v13882_v53  ;;  %v321_v63 = vpop.permute.xlu1 %320  ;;  %v14100_v52 = vld.sshfl [vmem:[#allocation1 + $0x18] sm:$0xff pattern:$0x75316420] }
  0xcb   : > { %v363_v11 = vsel %vm336_vm0, %v321_v63, %v323_v61  ;;  %1241 = vst [vmem:[#allocation1 + $0x10] ss:$2 sm:$0xff] %v13849_v36 }
  0xce   : > { %v313_v57 = vpop.permute.xlu0 %312 }
  0xcf   : > { %v359_v58 = vsel %vm336_vm0, %v313_v57, %v315_v55  ;;  %v358_v59 = vsel %vm336_vm0, %v311_v41, %v313_v57  ;;  %v14080_v48 = vld.sshfl [vmem:[#allocation1] sm:$0xff pattern:$0x75316420] }
  0xd0   : > { %12648 = vmatpush.msk.msrb.mxu2 %vm375_vm1, %v359_v58  ;;  %2087 = vst [vmem:[#allocation1] ss:$2 sm:$0xff] %v13780_v2  ;;  %v14091_v49 = vld.sshfl [vmem:[#allocation1 + $0x20] sm:$0xff pattern:$0x75316420] }
  0xd1   : > { %12622 = vmatmul.msk.f32.vlgmr.msra.gmra.mxu1 %vm370_vm2, %v13882_v53  ;;  %12628 = vmatmul.msk.f32.vlgmr.msrb.gmra.mxu3 %vm370_vm2, %v13882_v53  ;;  %v335_v34 = vpop.permute.xlu2 %334  ;;  %v14093_v50 = vld.sshfl [vmem:[#allocation1 + $0x28] sm:$0xff pattern:$0x75316420]  ;;  %v1215_v58 = vld.sshfl [vmem:[#allocation1 + $0x38] sm:$0xff pattern:$0x75316420] }
  0xd2   : > { %12626 = vmatmul.msk.f32.gmra.mxu2 %vm370_vm2, %v13890_v56  ;;  %12631 = vmatmul.msk.f32.vlgmr.msra.gmra.mxu0 %vm370_vm2, %v13882_v53  ;;  %v327_v12 = vpop.permute.xlu1 %326  ;;  %1230 = vst [vmem:[#allocation1 + $0x20] ss:$2 sm:$0xff] %v13831_v27 }
  0xd3   : > { %12645 = vmatpush.msk.msra.mxu1 %vm375_vm1, %v358_v59  ;;  %12651 = vmatpush.msk.msrb.mxu3 %vm375_vm1, %v360_v60  ;;  %v366_v38 = vsel %vm336_vm0, %v327_v12, %v329_v22 }
  0xd6   : > { %v319_v62 = vpop.permute.xlu0 %318 }
  0xd7   : > { %v361_v10 = vsel %vm336_vm0, %v317_v54, %v319_v62  ;;  %v362_v19 = vsel %vm336_vm0, %v319_v62, %v321_v63  ;;  %v1214_v54 = vld.sshfl [vmem:[#allocation1 + $0x30] sm:$0xff pattern:$0x75316420]  ;;  %v2094_v55 = vld.sshfl [vmem:[#allocation1] sm:$0xff pattern:$0x75316420] }
  0xd8   : > { %12654 = vmatpush.msk.msra.mxu0 %vm375_vm1, %v361_v10  ;;  %v2095_v57 = vld.sshfl [vmem:[#allocation1 + $0x8] sm:$0xff pattern:$0x75316420]  ;;  %2141 = vrot.lane.b32.xlu0 %v2094_v55, %s13718_s24  ;;  %1219 = vst [vmem:[#allocation1 + $0x30] ss:$2 sm:$0xff] %v13813_v17 }
  0xd9   : > { %12623 = vmatmul.msk.f32.gmra.mxu1 %vm370_vm2, %v13890_v56  ;;  %12629 = vmatmul.msk.f32.gmra.mxu3 %vm370_vm2, %v13890_v56  ;;  %2102 = vst [vmem:[#allocation1] ss:$2 sm:$0xff] %v13797_v7  ;;  %v14115_v59 = vld.sshfl [vmem:[#allocation1 + $0x20] sm:$0xff pattern:$0x75316420] }
  0xda   : > { %12632 = vmatmul.msk.f32.gmra.mxu0 %vm370_vm2, %v13890_v56  ;;  %12637 = vmatmul.msk.f32.vlgmr.msra.gmra.mxu2 %vm370_vm2, %v13882_v53  ;;  %v333_v33 = vpop.permute.xlu1 %332  ;;  %v14117_v60 = vld.sshfl [vmem:[#allocation1 + $0x28] sm:$0xff pattern:$0x75316420]  ;;  %v14126_v62 = vld.sshfl [vmem:[#allocation1 + $0x18] sm:$0xff pattern:$0x75316420] }
  0xdb   : > { %12660 = vmatpush.msk.msra.mxu2 %vm375_vm1, %v363_v11  ;;  %v369_v41 = vsel %vm336_vm0, %v333_v33, %v335_v34  ;;  %2143 = vrot.lane.b32.xlu1 %v2095_v57, %s13718_s24  ;;  %1242 = vst [vmem:[#allocation1 + $0x20] ss:$2 sm:$0xff] %v13861_v40 }
  0xde   : > { %v325_v13 = vpop.permute.xlu0 %324 }
  0xdf   : > { %v364_v20 = vsel %vm336_vm0, %v323_v61, %v325_v13  ;;  %v365_v21 = vsel %vm336_vm0, %v325_v13, %v327_v12  ;;  %v14124_v61 = vld.sshfl [vmem:[#allocation1 + $0x10] sm:$0xff pattern:$0x75316420] }
  0xe0   : > { %2089 = vst [vmem:[#allocation1 + $0x10] ss:$2 sm:$0xff] %v13783_v3  ;;  %2083 = vrot.lane.b32.xlu0 %v13763_v0, %s13719_s25  ;;  %v14131_v63 = vld.sshfl [vmem:[#allocation1 + $0x30] sm:$0xff pattern:$0x75316420] }
  0xe1   : > { %12634 = vmatmul.msk.f32.vlgmr.msrb.gmra.mxu1 %vm370_vm2, %v13882_v53  ;;  %12640 = vmatmul.msk.f32.vlgmr.msra.gmra.mxu3 %vm370_vm2, %v13882_v53 }
  0xe2   : > { %12638 = vmatmul.msk.f32.gmra.mxu2 %vm370_vm2, %v13890_v56  ;;  %12643 = vmatmul.msk.f32.vlgmr.msrb.gmra.mxu0 %vm370_vm2, %v13882_v53  ;;  %v14146_v10 = vld.sshfl [vmem:[#allocation1 + $0x28] sm:$0xff pattern:$0x75316420] }
  0xe3   : > { %12657 = vmatpush.msk.msrb.mxu1 %vm375_vm1, %v362_v19  ;;  %12663 = vmatpush.msk.msra.mxu3 %vm375_vm1, %v364_v20 }
  0xe4   : > { %12666 = vmatpush.msk.msrb.mxu0 %vm375_vm1, %v365_v21 }
  0xe6   : > { %v331_v24 = vpop.permute.xlu0 %330 }
  0xe7   : > { %v367_v28 = vsel %vm336_vm0, %v329_v22, %v331_v24  ;;  %v368_v39 = vsel %vm336_vm0, %v331_v24, %v333_v33  ;;  %v2097_v11 = vld.sshfl [vmem:[#allocation1 + $0x18] sm:$0xff pattern:$0x75316420] }
  0xe8   : > { %2147 = vrot.lane.b32.xlu1 %v2097_v11, %s13718_s24 }
  0xe9   : > { %12635 = vmatmul.msk.f32.gmra.mxu1 %vm370_vm2, %v13890_v56  ;;  %12641 = vmatmul.msk.f32.gmra.mxu3 %vm370_vm2, %v13890_v56 }
  0xea   : > { %12644 = vmatmul.msk.f32.gmra.mxu0 %vm370_vm2, %v13890_v56  ;;  %12649 = vmatmul.msk.f32.vlgmr.msrb.gmra.mxu2 %vm370_vm2, %v13882_v53 }
  0xeb   : > { %12672 = vmatpush.msk.msrb.mxu2 %vm375_vm1, %v367_v28  ;;  %v2096_v28 = vld.sshfl [vmem:[#allocation1 + $0x10] sm:$0xff pattern:$0x75316420] }
  0xec   : > { %2145 = vrot.lane.b32.xlu2 %v2096_v28, %s13718_s24  ;;  %2103 = vst [vmem:[#allocation1 + $0x10] ss:$2 sm:$0xff] %v13801_v9 }
  0xf1   : > { %12646 = vmatmul.msk.f32.vlgmr.msra.gmra.mxu1 %vm370_vm2, %v13882_v53  ;;  %12652 = vmatmul.msk.f32.vlgmr.msrb.gmra.mxu3 %vm370_vm2, %v13882_v53 }
  0xf2   : > { %12650 = vmatmul.msk.f32.gmra.mxu2 %vm370_vm2, %v13890_v56  ;;  %12655 = vmatmul.msk.f32.vlgmr.msra.gmra.mxu0 %vm370_vm2, %v13882_v53 }
  0xf3   : > { %12669 = vmatpush.msk.msra.mxu1 %vm375_vm1, %v366_v38  ;;  %12675 = vmatpush.msk.msrb.mxu3 %vm375_vm1, %v368_v39  ;;  %v2108_v39 = vld.sshfl [vmem:[#allocation1 + $0x10] sm:$0xff pattern:$0x75316420] }
  0xf4   : > { %12678 = vmatpush.msk.msra.mxu0 %vm375_vm1, %v369_v41  ;;  %2085 = vrot.lane.b32.xlu2 %v13777_v1, %s13719_s25  ;;  %v2109_v41 = vld.sshfl [vmem:[#allocation1 + $0x18] sm:$0xff pattern:$0x75316420] }
  0xf5   : > { %2115 = vst [vmem:[#allocation1 + $0x10] ss:$2 sm:$0xff] %v13825_v23 }
  0xf9   : > { %12647 = vmatmul.msk.f32.gmra.mxu1 %vm370_vm2, %v13890_v56  ;;  %12653 = vmatmul.msk.f32.gmra.mxu3 %vm370_vm2, %v13890_v56 }
  0xfa   : > { %12656 = vmatmul.msk.f32.gmra.mxu0 %vm370_vm2, %v13890_v56  ;;  %12661 = vmatmul.msk.f32.vlgmr.msra.gmra.mxu2 %vm370_vm2, %v13882_v53 }
  0xfb   : > { %12684 = vmatpush.msk.msra.mxu2 %vm375_vm1, %v14003_v8  ;;  %v14133_v8 = vld.sshfl [vmem:[#allocation1 + $0x38] sm:$0xff pattern:$0x75316420] }
  0xfc   : > { %1231 = vst [vmem:[#allocation1 + $0x30] ss:$2 sm:$0xff] %v13837_v29 }
 0x101   : > { %12658 = vmatmul.msk.f32.vlgmr.msrb.gmra.mxu1 %vm370_vm2, %v13882_v53  ;;  %12664 = vmatmul.msk.f32.vlgmr.msra.gmra.mxu3 %vm370_vm2, %v13882_v53 }
 0x102   : > { %12662 = vmatmul.msk.f32.gmra.mxu2 %vm370_vm2, %v13890_v56  ;;  %12667 = vmatmul.msk.f32.vlgmr.msrb.gmra.mxu0 %vm370_vm2, %v13882_v53 }
 0x103   : > { %12687 = vmatpush.msk.msra.mxu3 %vm375_vm1, %v1210_v30  ;;  %12681 = vmatpush.msk.msrb.mxu1 %vm375_vm1, %v14001_v6  ;;  %v14144_v6 = vld.sshfl [vmem:[#allocation1 + $0x20] sm:$0xff pattern:$0x75316420]  ;;  %v14151_v12 = vld.sshfl [vmem:[#allocation1 + $0x30] sm:$0xff pattern:$0x75316420] }
 0x104   : > { %12690 = vmatpush.msk.msrb.mxu0 %vm375_vm1, %v1211_v32  ;;  %2091 = vst [vmem:[#allocation1 + $0x20] ss:$2 sm:$0xff] %v13787_v4  ;;  %v14153_v13 = vld.sshfl [vmem:[#allocation1 + $0x38] sm:$0xff pattern:$0x75316420] }
 0x105   : > { %1243 = vst [vmem:[#allocation1 + $0x30] ss:$2 sm:$0xff] %v13870_v46  ;;  %v2106_v30 = vld.sshfl [vmem:[#allocation1] sm:$0xff pattern:$0x75316420] }
 0x107   : > { %v14188_v32 = vpop.f32.mrf.mxu2 }
 0x108   : > { %20326 = vst [vmem:[#allocation14_spill] sm:$0xff] %v14188_v32 }
 0x109   : > { %12659 = vmatmul.msk.f32.gmra.mxu1 %vm370_vm2, %v13890_v56  ;;  %12665 = vmatmul.msk.f32.gmra.mxu3 %vm370_vm2, %v13890_v56 }
 0x10a   : > { %12668 = vmatmul.msk.f32.gmra.mxu0 %vm370_vm2, %v13890_v56  ;;  %12673 = vmatmul.msk.f32.vlgmr.msrb.gmra.mxu2 %vm370_vm2, %v13882_v53 }
 0x10b   : > { %12696 = vmatpush.msk.msrb.mxu2 %vm375_vm1, %v1213_v43  ;;  %v2098_v19 = vld.sshfl [vmem:[#allocation1 + $0x20] sm:$0xff pattern:$0x75316420]  ;;  %v2099_v20 = vld.sshfl [vmem:[#allocation1 + $0x28] sm:$0xff pattern:$0x75316420] }
 0x10c   : > { %2149 = vrot.lane.b32.xlu0 %v2098_v19, %s13718_s24  ;;  %2104 = vst [vmem:[#allocation1 + $0x20] ss:$2 sm:$0xff] %v13808_v14  ;;  %2151 = vrot.lane.b32.xlu1 %v2099_v20, %s13718_s24  ;;  %v14177_v24 = vld.sshfl [vmem:[#allocation1 + $0x38] sm:$0xff pattern:$0x75316420] }
 0x10f   : > { %v14218_v38 = vpop.f32.mrf.mxu2 }
 0x110   : > { %20329 = vst [vmem:[#allocation17_spill] sm:$0xff] %v14218_v38 }
 0x111   : > { %12670 = vmatmul.msk.f32.vlgmr.msra.gmra.mxu1 %vm370_vm2, %v13882_v53  ;;  %12676 = vmatmul.msk.f32.vlgmr.msrb.gmra.mxu3 %vm370_vm2, %v13882_v53 }
 0x112   : > { %12674 = vmatmul.msk.f32.gmra.mxu2 %vm370_vm2, %v13890_v56  ;;  %12679 = vmatmul.msk.f32.vlgmr.msra.gmra.mxu0 %vm370_vm2, %v13882_v53  ;;  %v14175_v53 = vld.sshfl [vmem:[#allocation1 + $0x30] sm:$0xff pattern:$0x75316420] }
 0x113   : > { %12699 = vmatpush.msk.msrb.mxu3 %vm375_vm1, %v1214_v54  ;;  %12693 = vmatpush.msk.msra.mxu1 %vm375_vm1, %v14069_v42  ;;  %2093 = vst [vmem:[#allocation1 + $0x30] ss:$2 sm:$0xff] %v13790_v5 }
 0x114   : > { %12702 = vmatpush.msk.msra.mxu0 %vm375_vm1, %v1215_v58  ;;  %2157 = vrot.lane.b32.xlu1 %v2106_v30, %s13718_s24 }
 0x116   : > { %v14171_v21 = vpop.f32.mrf.mxu0  ;;  %v14173_v22 = vpop.f32.mrf.mxu1 }
 0x117   : > { %20324 = vst [vmem:[#allocation12_spill] sm:$0xff] %v14171_v21 }
 0x118   : > { %20325 = vst [vmem:[#allocation13_spill] sm:$0xff] %v14173_v22 }
 0x119   : > { %12671 = vmatmul.msk.f32.gmra.mxu1 %vm370_vm2, %v13890_v56  ;;  %12677 = vmatmul.msk.f32.gmra.mxu3 %vm370_vm2, %v13890_v56 }
 0x11a   : > { %12680 = vmatmul.msk.f32.gmra.mxu0 %vm370_vm2, %v13890_v56  ;;  %12685 = vmatmul.msk.f32.vlgmr.msra.gmra.mxu2 %vm370_vm2, %v13763_v0  ;;  %v2101_v56 = vld.sshfl [vmem:[#allocation1 + $0x38] sm:$0xff pattern:$0x75316420] }
 0x11b   : > { %12708 = vmatpush.msk.msra.mxu2 %vm375_vm1, %v14020_v16  ;;  %2155 = vrot.lane.b32.xlu0 %v2101_v56, %s13718_s24  ;;  %v2110_v56 = vld.sshfl [vmem:[#allocation1 + $0x20] sm:$0xff pattern:$0x75316420] }
 0x11c   : > { %2163 = vrot.lane.b32.xlu1 %v2109_v41, %s13718_s24 }
 0x11e   : > { %v14195_v33 = vpop.f32.mrf.mxu1 }
 0x11f   : > { %v14197_v34 = vpop.f32.mrf.mxu0 }
 0x120   : > { %20327 = vst [vmem:[#allocation15_spill] sm:$0xff] %v14197_v34 }
 0x121   : > { %12682 = vmatmul.msk.f32.vlgmr.msrb.gmra.mxu1 %vm370_vm2, %v13763_v0  ;;  %12688 = vmatmul.msk.f32.vlgmr.msra.gmra.mxu3 %vm370_vm2, %v13763_v0 }
 0x122   : > { %12686 = vmatmul.msk.f32.gmra.mxu2 %vm370_vm2, %v13777_v1  ;;  %12691 = vmatmul.msk.f32.vlgmr.msrb.gmra.mxu0 %vm370_vm2, %v13763_v0 }
 0x123   : > { %12711 = vmatpush.msk.msra.mxu3 %vm375_vm1, %v14075_v44  ;;  %12705 = vmatpush.msk.msrb.mxu1 %vm375_vm1, %v14018_v15 }
 0x124   : > { %v14212_v16 = vpop.f32.mrf.mxu3  ;;  %12714 = vmatpush.msk.msrb.mxu0 %vm375_vm1, %v14077_v45  ;;  %2161 = vrot.lane.b32.xlu0 %v2108_v39, %s13718_s24  ;;  %v2100_v45 = vld.sshfl [vmem:[#allocation1 + $0x30] sm:$0xff pattern:$0x75316420] }
 0x125   : > { %20328 = vst [vmem:[#allocation16_spill] sm:$0xff] %v14212_v16  ;;  %2153 = vrot.lane.b32.xlu2 %v2100_v45, %s13718_s24 }
 0x126   : > { %v14220_v42 = vpop.f32.mrf.mxu1  ;;  %2105 = vst [vmem:[#allocation1 + $0x30] ss:$2 sm:$0xff] %v13813_v17 }
 0x127   : > { %v14224_v43 = vpop.f32.mrf.mxu0 }
 0x128   : > { %20330 = vst [vmem:[#allocation18_spill] sm:$0xff] %v14224_v43 }
 0x129   : > { %12683 = vmatmul.msk.f32.gmra.mxu1 %vm370_vm2, %v13777_v1  ;;  %12689 = vmatmul.msk.f32.gmra.mxu3 %vm370_vm2, %v13777_v1 }
 0x12a   : > { %12692 = vmatmul.msk.f32.gmra.mxu0 %vm370_vm2, %v13777_v1  ;;  %12697 = vmatmul.msk.f32.vlgmr.msrb.gmra.mxu2 %vm370_vm2, %v13763_v0 }
 0x12b   : > { %12720 = vmatpush.msk.msrb.mxu2 %vm375_vm1, %v14093_v50  ;;  %v2111_v50 = vld.sshfl [vmem:[#allocation1 + $0x28] sm:$0xff pattern:$0x75316420] }
 0x12c   : > { %v14237_v15 = vpop.f32.mrf.mxu3  ;;  %2167 = vrot.lane.b32.xlu0 %v2111_v50, %s13718_s24  ;;  %2116 = vst [vmem:[#allocation1 + $0x20] ss:$2 sm:$0xff] %v13831_v27 }
 0x12d   : > { %20331 = vst [vmem:[#allocation19_spill] sm:$0xff] %v14237_v15  ;;  %v14239_v44 = vpop.f32.mrf.mxu2  ;;  %v2112_v11 = vld.sshfl [vmem:[#allocation1 + $0x30] sm:$0xff pattern:$0x75316420] }
 0x12e   : > { %20332 = vst [vmem:[#allocation20_spill] sm:$0xff] %v14239_v44  ;;  %v14241_v54 = vpop.f32.mrf.mxu1  ;;  %2169 = vrot.lane.b32.xlu1 %v2112_v11, %s13718_s24  ;;  %v2121_v11 = vld.sshfl [vmem:[#allocation1 + $0x18] sm:$0xff pattern:$0x75316420] }
 0x12f   : > { %v14245_v55 = vpop.f32.mrf.mxu0 }
 0x130   : > { %20333 = vst [vmem:[#allocation21_spill] sm:$0xff] %v14245_v55 }
 0x131   : > { %12694 = vmatmul.msk.f32.vlgmr.msra.gmra.mxu1 %vm370_vm2, %v13763_v0  ;;  %12700 = vmatmul.msk.f32.vlgmr.msrb.gmra.mxu3 %vm370_vm2, %v13763_v0 }
 0x132   : > { %12698 = vmatmul.msk.f32.gmra.mxu2 %vm370_vm2, %v13777_v1  ;;  %12703 = vmatmul.msk.f32.vlgmr.msra.gmra.mxu0 %vm370_vm2, %v13763_v0 }
 0x133   : > { %12723 = vmatpush.msk.msrb.mxu3 %vm375_vm1, %v14131_v63  ;;  %12717 = vmatpush.msk.msra.mxu1 %vm375_vm1, %v14091_v49  ;;  %v2107_v49 = vld.sshfl [vmem:[#allocation1 + $0x8] sm:$0xff pattern:$0x75316420] }
 0x134   : > { %v14259_v57 = vpop.f32.mrf.mxu3  ;;  %12726 = vmatpush.msk.msra.mxu0 %vm375_vm1, %v14133_v8  ;;  %2159 = vrot.lane.b32.xlu2 %v2107_v49, %s13718_s24  ;;  %2114 = vst [vmem:[#allocation1] ss:$2 sm:$0xff] %v13816_v18 }
 0x135   : > { %20334 = vst [vmem:[#allocation22_spill] sm:$0xff] %v14259_v57  ;;  %v14264_v58 = vpop.f32.mrf.mxu2 }
 0x136   : > { %20335 = vst [vmem:[#allocation23_spill] sm:$0xff] %v14264_v58  ;;  %v14266_v19 = vpop.f32.mrf.mxu1 }
 0x137   : > { %v14269_v20 = vpop.f32.mrf.mxu0 }
 0x138   : > { %20336 = vst [vmem:[#allocation24_spill] sm:$0xff] %v14269_v20 }
 0x139   : > { %12695 = vmatmul.msk.f32.gmra.mxu1 %vm370_vm2, %v13777_v1  ;;  %12701 = vmatmul.msk.f32.gmra.mxu3 %vm370_vm2, %v13777_v1 }
 0x13a   : > { %12704 = vmatmul.msk.f32.gmra.mxu0 %vm370_vm2, %v13777_v1  ;;  %12709 = vmatmul.msk.f32.vlgmr.msra.gmra.mxu2 %vm370_vm2, %v13763_v0 }
 0x13b   : > { %12732 = vmatpush.msk.msra.mxu2 %vm375_vm1, %v14039_v26  ;;  %v2118_v26 = vld.sshfl [vmem:[#allocation1] sm:$0xff pattern:$0x75316420]  ;;  %v2119_v39 = vld.sshfl [vmem:[#allocation1 + $0x8] sm:$0xff pattern:$0x75316420] }
 0x13c   : > { %v14283_v63 = vpop.f32.mrf.mxu3  ;;  %2173 = vrot.lane.b32.xlu0 %v2118_v26, %s13718_s24  ;;  %2126 = vst [vmem:[#allocation1] ss:$2 sm:$0xff] %v13843_v31  ;;  %2165 = vrot.lane.b32.xlu2 %v2110_v56, %s13718_s24  ;;  %v2113_v26 = vld.sshfl [vmem:[#allocation1 + $0x38] sm:$0xff pattern:$0x75316420] }
 0x13d   : > { %20337 = vst [vmem:[#allocation25_spill] sm:$0xff] %v14283_v63  ;;  %v14285_v8 = vpop.f32.mrf.mxu2  ;;  %2175 = vrot.lane.b32.xlu1 %v2119_v39, %s13718_s24 }
 0x13e   : > { %20338 = vst [vmem:[#allocation26_spill] sm:$0xff] %v14285_v8  ;;  %v14287_v28 = vpop.f32.mrf.mxu1 }
 0x13f   : > { %v14289_v30 = vpop.f32.mrf.mxu0  ;;  %2117 = vst [vmem:[#allocation1 + $0x30] ss:$2 sm:$0xff] %v13837_v29 }
 0x140   : > { %20339 = vst [vmem:[#allocation27_spill] sm:$0xff] %v14289_v30 }
 0x141   : > { %12706 = vmatmul.msk.f32.vlgmr.msrb.gmra.mxu1 %vm370_vm2, %v13763_v0  ;;  %12712 = vmatmul.msk.f32.vlgmr.msra.gmra.mxu3 %vm370_vm2, %v13763_v0 }
 0x142   : > { %12710 = vmatmul.msk.f32.gmra.mxu2 %vm370_vm2, %v13777_v1  ;;  %12715 = vmatmul.msk.f32.vlgmr.msrb.gmra.mxu0 %vm370_vm2, %v13763_v0 }
 0x143   : > { %12735 = vmatpush.msk.msra.mxu3 %vm375_vm1, %v14098_v51  ;;  %12729 = vmatpush.msk.msrb.mxu1 %vm375_vm1, %v14037_v25  ;;  %v2122_v25 = vld.sshfl [vmem:[#allocation1 + $0x20] sm:$0xff pattern:$0x75316420] }
 0x144   : > { %v14303_v41 = vpop.f32.mrf.mxu3  ;;  %12738 = vmatpush.msk.msrb.mxu0 %vm375_vm1, %v14100_v52  ;;  %2179 = vrot.lane.b32.xlu0 %v2121_v11, %s13718_s24 }
 0x145   : > { %20340 = vst [vmem:[#allocation28_spill] sm:$0xff] %v14303_v41  ;;  %v14310_v45 = vpop.f32.mrf.mxu2  ;;  %2181 = vrot.lane.b32.xlu1 %v2122_v25, %s13718_s24  ;;  %2171 = vrot.lane.b32.xlu2 %v2113_v26, %s13718_s24 }
 0x146   : > { %20341 = vst [vmem:[#allocation29_spill] sm:$0xff] %v14310_v45  ;;  %v14314_v51 = vpop.f32.mrf.mxu1  ;;  %v2125_v25 = vld.sshfl [vmem:[#allocation1 + $0x38] sm:$0xff pattern:$0x75316420] }
 0x147   : > { %v14316_v50 = vpop.f32.mrf.mxu0  ;;  %v2124_v26 = vld.sshfl [vmem:[#allocation1 + $0x30] sm:$0xff pattern:$0x75316420] }
 0x148   : > { %20342 = vst [vmem:[#allocation30_spill] sm:$0xff] %v14316_v50 }
 0x149   : > { %12707 = vmatmul.msk.f32.gmra.mxu1 %vm370_vm2, %v13777_v1  ;;  %12713 = vmatmul.msk.f32.gmra.mxu3 %vm370_vm2, %v13777_v1  ;;  %2129 = vst [vmem:[#allocation1 + $0x30] ss:$2 sm:$0xff] %v13870_v46 }
 0x14a   : > { %12716 = vmatmul.msk.f32.gmra.mxu0 %vm370_vm2, %v13777_v1  ;;  %12721 = vmatmul.msk.f32.vlgmr.msrb.gmra.mxu2 %vm370_vm2, %v13763_v0 }
 0x14b   : > { %12744 = vmatpush.msk.msrb.mxu2 %vm375_vm1, %v14117_v60 }
 0x14c   : > { %v14329_v52 = vpop.f32.mrf.mxu3  ;;  %2185 = vrot.lane.b32.xlu0 %v2124_v26, %s13718_s24 }
 0x14d   : > { %20343 = vst [vmem:[#allocation31_spill] sm:$0xff] %v14329_v52  ;;  %v14331_v49 = vpop.f32.mrf.mxu2  ;;  %2187 = vrot.lane.b32.xlu1 %v2125_v25, %s13718_s24  ;;  %v2120_v25 = vld.sshfl [vmem:[#allocation1 + $0x10] sm:$0xff pattern:$0x75316420] }
 0x14e   : > { %20344 = vst [vmem:[#allocation32_spill] sm:$0xff] %v14331_v49  ;;  %v14334_v56 = vpop.f32.mrf.mxu1  ;;  %2177 = vrot.lane.b32.xlu2 %v2120_v25, %s13718_s24 }
 0x14f   : > { %v14338_v39 = vpop.f32.mrf.mxu0  ;;  %2127 = vst [vmem:[#allocation1 + $0x10] ss:$2 sm:$0xff] %v13849_v36 }
 0x150   : > { %20345 = vst [vmem:[#allocation33_spill] sm:$0xff] %v14338_v39 }
 0x151   : > { %12718 = vmatmul.msk.f32.vlgmr.msra.gmra.mxu1 %vm370_vm2, %v13763_v0  ;;  %12724 = vmatmul.msk.f32.vlgmr.msrb.gmra.mxu3 %vm370_vm2, %v13763_v0 }
 0x152   : > { %12722 = vmatmul.msk.f32.gmra.mxu2 %vm370_vm2, %v13777_v1  ;;  %12727 = vmatmul.msk.f32.vlgmr.msra.gmra.mxu0 %vm370_vm2, %v13763_v0 }
 0x153   : > { %12747 = vmatpush.msk.msrb.mxu3 %vm375_vm1, %v14151_v12  ;;  %12741 = vmatpush.msk.msra.mxu1 %vm375_vm1, %v14115_v59 }
 0x154   : > { %v14352_v60 = vpop.f32.mrf.mxu3  ;;  %12750 = vmatpush.msk.msra.mxu0 %vm375_vm1, %v14153_v13 }
 0x155   : > { %20346 = vst [vmem:[#allocation34_spill] sm:$0xff] %v14352_v60  ;;  %v14356_v11 = vpop.f32.mrf.mxu2 }
 0x156   : > { %20347 = vst [vmem:[#allocation35_spill] sm:$0xff] %v14356_v11  ;;  %v14358_v49 = vpop.f32.mrf.mxu1  ;;  %v2133_v63 = vld.sshfl [vmem:[#allocation1 + $0x18] sm:$0xff pattern:$0x75316420] }
 0x157   : > { %v14363_v12 = vpop.f32.mrf.mxu0 }
 0x158   : > { %20348 = vst [vmem:[#allocation36_spill] sm:$0xff] %v14363_v12 }
 0x159   : > { %12719 = vmatmul.msk.f32.gmra.mxu1 %vm370_vm2, %v13777_v1  ;;  %12725 = vmatmul.msk.f32.gmra.mxu3 %vm370_vm2, %v13777_v1 }
 0x15a   : > { %12728 = vmatmul.msk.f32.gmra.mxu0 %vm370_vm2, %v13777_v1  ;;  %12733 = vmatmul.msk.f32.vlgmr.msra.gmra.mxu2 %vm370_vm2, %v13763_v0 }
 0x15b   : > { %12756 = vmatpush.msk.msra.mxu2 %vm375_vm1, %v14055_v37  ;;  %v2131_v37 = vld.sshfl [vmem:[#allocation1 + $0x8] sm:$0xff pattern:$0x75316420] }
 0x15c   : > { %v14375_v59 = vpop.f32.mrf.mxu3  ;;  %2191 = vrot.lane.b32.xlu0 %v2131_v37, %s13718_s24 }
 0x15d   : > { %20349 = vst [vmem:[#allocation37_spill] sm:$0xff] %v14375_v59  ;;  %v14377_v13 = vpop.f32.mrf.mxu2  ;;  %v2132_v59 = vld.sshfl [vmem:[#allocation1 + $0x10] sm:$0xff pattern:$0x75316420] }
 0x15e   : > { %20350 = vst [vmem:[#allocation38_spill] sm:$0xff] %v14377_v13  ;;  %v14379_v26 = vpop.f32.mrf.mxu1  ;;  %2193 = vrot.lane.b32.xlu1 %v2132_v59, %s13718_s24 }
 0x15f   : > { %v14383_v11 = vpop.f32.mrf.mxu0  ;;  %3144 = vst [vmem:[#allocation1 + $0x10] ss:$2 sm:$0xff] %v13783_v3 }
 0x160   : > { %20351 = vst [vmem:[#allocation39_spill] sm:$0xff] %v14383_v11 }
 0x161   : > { %12730 = vmatmul.msk.f32.vlgmr.msrb.gmra.mxu1 %vm370_vm2, %v13763_v0  ;;  %12736 = vmatmul.msk.f32.vlgmr.msra.gmra.mxu3 %vm370_vm2, %v13763_v0 }
 0x162   : > { %12734 = vmatmul.msk.f32.gmra.mxu2 %vm370_vm2, %v13777_v1  ;;  %12739 = vmatmul.msk.f32.vlgmr.msrb.gmra.mxu0 %vm370_vm2, %v13763_v0 }
 0x163   : > { %12759 = vmatpush.msk.msra.mxu3 %vm375_vm1, %v14124_v61  ;;  %12753 = vmatpush.msk.msrb.mxu1 %vm375_vm1, %v14053_v35  ;;  %v14418_v35 = vld [vmem:[%s20292_s1] sm:$0xff]  ;;  %v2123_v61 = vld.sshfl [vmem:[#allocation1 + $0x28] sm:$0xff pattern:$0x75316420] }
 0x164   : > { %v14397_v25 = vpop.f32.mrf.mxu3  ;;  %12762 = vmatpush.msk.msrb.mxu0 %vm375_vm1, %v14126_v62  ;;  %2183 = vrot.lane.b32.xlu2 %v2123_v61, %s13718_s24  ;;  %2128 = vst [vmem:[#allocation1 + $0x20] ss:$2 sm:$0xff] %v13861_v40 }
 0x165   : > { %20352 = vst [vmem:[#allocation40_spill] sm:$0xff] %v14397_v25  ;;  %v14402_v13 = vpop.f32.mrf.mxu2  ;;  %v2142_v25 = vpop.permute.xlu0 %2141 }
 0x166   : > { %20353 = vst [vmem:[#allocation41_spill] sm:$0xff] %v14402_v13  ;;  %v14404_v60 = vpop.f32.mrf.mxu1 }
 0x167   : > { %v14407_v0 = vpop.f32.mrf.mxu0 }
 0x168   : > { %20354 = vst [vmem:[#allocation42_spill] sm:$0xff] %v14407_v0 }
 0x169   : > { %12731 = vmatmul.msk.f32.gmra.mxu1 %vm370_vm2, %v13777_v1  ;;  %12737 = vmatmul.msk.f32.gmra.mxu3 %vm370_vm2, %v13777_v1 }
 0x16a   : > { %12740 = vmatmul.msk.f32.gmra.mxu0 %vm370_vm2, %v13777_v1  ;;  %12745 = vmatmul.msk.f32.vlgmr.msrb.gmra.mxu2 %vm370_vm2, %v14418_v35 }
 0x16b   : > { %12768 = vmatpush.msk.msrb.mxu2 %vm375_vm1, %v14146_v10  ;;  %v14441_v10 = vld [vmem:[%s20292_s1 + $0x8] sm:$0xff]  ;;  %v2134_v61 = vld.sshfl [vmem:[#allocation1 + $0x20] sm:$0xff pattern:$0x75316420] }
 0x16c   : > { %v14426_v62 = vpop.f32.mrf.mxu3  ;;  %2197 = vrot.lane.b32.xlu0 %v2134_v61, %s13718_s24 }
 0x16d   : > { %20355 = vst [vmem:[#allocation43_spill] sm:$0xff] %v14426_v62  ;;  %v14428_v59 = vpop.f32.mrf.mxu2  ;;  %v2130_v62 = vld.sshfl [vmem:[#allocation1] sm:$0xff pattern:$0x75316420]  ;;  %v14487_v8 = vpop.permute.xlu0 %2083 }
 0x16e   : > { %20356 = vst [vmem:[#allocation44_spill] sm:$0xff] %v14428_v59  ;;  %v14430_v1 = vpop.f32.mrf.mxu1  ;;  %v2135_v59 = vld.sshfl [vmem:[#allocation1 + $0x28] sm:$0xff pattern:$0x75316420]  ;;  %2189 = vrot.lane.b32.xlu2 %v2130_v62, %s13718_s24 }
 0x16f   : > { %v14432_v37 = vpop.f32.mrf.mxu0  ;;  %3146 = vst [vmem:[#allocation1 + $0x20] ss:$2 sm:$0xff] %v13787_v4  ;;  %2199 = vrot.lane.b32.xlu1 %v2135_v59, %s13718_s24 }
 0x170   : > { %20357 = vst [vmem:[#allocation45_spill] sm:$0xff] %v14432_v37 }
 0x171   : > { %12742 = vmatmul.msk.f32.vlgmr.msra.gmra.mxu1 %vm370_vm2, %v14418_v35  ;;  %12748 = vmatmul.msk.f32.vlgmr.msrb.gmra.mxu3 %vm370_vm2, %v14418_v35  ;;  %2138 = vst [vmem:[#allocation1] ss:$2 sm:$0xff] %v13875_v47 }
 0x172   : > { %12746 = vmatmul.msk.f32.gmra.mxu2 %vm370_vm2, %v14441_v10  ;;  %12751 = vmatmul.msk.f32.vlgmr.msra.gmra.mxu0 %vm370_vm2, %v14418_v35 }
 0x173   : > { %12771 = vmatpush.msk.msrb.mxu3 %vm375_vm1, %v14175_v53  ;;  %12765 = vmatpush.msk.msra.mxu1 %vm375_vm1, %v14144_v6  ;;  %v2144_v53 = vpop.permute.xlu1 %2143  ;;  %v2137_v6 = vld.sshfl [vmem:[#allocation1 + $0x38] sm:$0xff pattern:$0x75316420] }
 0x174   : > { %v14451_v13 = vpop.f32.mrf.mxu3  ;;  %12774 = vmatpush.msk.msra.mxu0 %vm375_vm1, %v14177_v24  ;;  %v2210_v45 = vsel %vm2209_vm3, %v2142_v25, %v2144_v53  ;;  %v2146_v24 = vpop.permute.xlu2 %2145  ;;  %2203 = vrot.lane.b32.xlu0 %v2137_v6, %s13718_s24 }
 0x175   : > { %20358 = vst [vmem:[#allocation46_spill] sm:$0xff] %v14451_v13  ;;  %v14458_v52 = vpop.f32.mrf.mxu2 }
 0x176   : > { %20359 = vst [vmem:[#allocation47_spill] sm:$0xff] %v14458_v52  ;;  %v14462_v61 = vpop.f32.mrf.mxu1  ;;  %2195 = vrot.lane.b32.xlu2 %v2133_v63, %s13718_s24 }
 0x177   : > { %v14464_v13 = vpop.f32.mrf.mxu0 }
 0x178   : > { %20360 = vst [vmem:[#allocation48_spill] sm:$0xff] %v14464_v13  ;;  %v2139_v62 = vld.sshfl [vmem:[#allocation1] sm:$0xff pattern:$0x75316420] }
 0x179   : > { %12743 = vmatmul.msk.f32.gmra.mxu1 %vm370_vm2, %v14441_v10  ;;  %12749 = vmatmul.msk.f32.gmra.mxu3 %vm370_vm2, %v14441_v10  ;;  %v14477_v25 = vld.sshfl [vmem:[#allocation1 + $0x8] sm:$0xff pattern:$0x75316420] }
 0x17a   : > { %12752 = vmatmul.msk.f32.gmra.mxu0 %vm370_vm2, %v14441_v10  ;;  %12757 = vmatmul.msk.f32.vlgmr.msra.gmra.mxu2 %vm370_vm2, %v14418_v35  ;;  %3142 = vst [vmem:[#allocation1] ss:$2 sm:$0xff] %v13780_v2 }
 0x17b   : > { %12780 = vmatpush.msk.msra.mxu2 %vm375_vm1, %v2210_v45  ;;  %2205 = vrot.lane.b32.xlu1 %v2139_v62, %s13718_s24  ;;  %v2148_v6 = vpop.permute.xlu1 %2147  ;;  %v2211_v45 = vsel %vm2209_vm3, %v2144_v53, %v2146_v24 }
 0x17c   : > { %v14479_v59 = vpop.f32.mrf.mxu3 }
 0x17d   : > { %20361 = vst [vmem:[#allocation49_spill] sm:$0xff] %v14479_v59  ;;  %v14482_v52 = vpop.f32.mrf.mxu2  ;;  %v2212_v59 = vsel %vm2209_vm3, %v2146_v24, %v2148_v6  ;;  %v14510_v24 = vpop.permute.xlu2 %2085 }
 0x17e   : > { %20362 = vst [vmem:[#allocation50_spill] sm:$0xff] %v14482_v52  ;;  %v14485_v41 = vpop.f32.mrf.mxu1 }
 0x17f   : > { %v14489_v58 = vpop.f32.mrf.mxu0 }
 0x180   : > { %20363 = vst [vmem:[#allocation51_spill] sm:$0xff] %v14489_v58 }
 0x181   : > { %12754 = vmatmul.msk.f32.vlgmr.msrb.gmra.mxu1 %vm370_vm2, %v14418_v35  ;;  %12760 = vmatmul.msk.f32.vlgmr.msra.gmra.mxu3 %vm370_vm2, %v14418_v35  ;;  %v3149_v63 = vld.sshfl [vmem:[#allocation1] sm:$0xff pattern:$0x75316420]  ;;  %v3150_v53 = vld.sshfl [vmem:[#allocation1 + $0x8] sm:$0xff pattern:$0x75316420] }
 0x182   : > { %12758 = vmatmul.msk.f32.gmra.mxu2 %vm370_vm2, %v14441_v10  ;;  %12763 = vmatmul.msk.f32.vlgmr.msrb.gmra.mxu0 %vm370_vm2, %v14418_v35  ;;  %3157 = vst [vmem:[#allocation1] ss:$2 sm:$0xff] %v13797_v7 }
 0x183   : > { %12783 = vmatpush.msk.msra.mxu3 %vm375_vm1, %v2211_v45  ;;  %12786 = vmatpush.msk.msrb.mxu0 %vm375_vm1, %v2212_v59  ;;  %v2150_v59 = vpop.permute.xlu0 %2149 }
 0x184   : > { %v14505_v62 = vpop.f32.mrf.mxu3  ;;  %3196 = vrot.lane.b32.xlu0 %v3149_v63, %s13720_s30  ;;  %12777 = vmatpush.msk.msrb.mxu1 %vm375_vm1, %v14080_v48  ;;  %v3151_v48 = vld.sshfl [vmem:[#allocation1 + $0x10] sm:$0xff pattern:$0x75316420] }
 0x185   : > { %20364 = vst [vmem:[#allocation52_spill] sm:$0xff] %v14505_v62  ;;  %v14513_v52 = vpop.f32.mrf.mxu2  ;;  %3198 = vrot.lane.b32.xlu1 %v3150_v53, %s13720_s30  ;;  %v2152_v62 = vpop.permute.xlu1 %2151  ;;  %v2136_v63 = vld.sshfl [vmem:[#allocation1 + $0x30] sm:$0xff pattern:$0x75316420] }
 0x186   : > { %20365 = vst [vmem:[#allocation53_spill] sm:$0xff] %v14513_v52  ;;  %v14516_v45 = vpop.f32.mrf.mxu1  ;;  %v2214_v44 = vsel %vm2209_vm3, %v2150_v59, %v2152_v62  ;;  %2201 = vrot.lane.b32.xlu2 %v2136_v63, %s13718_s24  ;;  %v2154_v52 = vpop.permute.xlu2 %2153 }
 0x187   : > { %v14518_v57 = vpop.f32.mrf.mxu0  ;;  %3148 = vst [vmem:[#allocation1 + $0x30] ss:$2 sm:$0xff] %v13790_v5  ;;  %v2215_v63 = vsel %vm2209_vm3, %v2152_v62, %v2154_v52 }
 0x188   : > { %20366 = vst [vmem:[#allocation54_spill] sm:$0xff] %v14518_v57 }
 0x189   : > { %12755 = vmatmul.msk.f32.gmra.mxu1 %vm370_vm2, %v14441_v10  ;;  %12761 = vmatmul.msk.f32.gmra.mxu3 %vm370_vm2, %v14441_v10 }
 0x18a   : > { %12764 = vmatmul.msk.f32.gmra.mxu0 %vm370_vm2, %v14441_v10  ;;  %12769 = vmatmul.msk.f32.vlgmr.msrb.gmra.mxu2 %vm370_vm2, %v14418_v35 }
 0x18b   : > { %12792 = vmatpush.msk.msrb.mxu2 %vm375_vm1, %v2214_v44  ;;  %v2213_v44 = vsel %vm2209_vm3, %v2148_v6, %v2150_v59 }
 0x18c   : > { %v14532_v53 = vpop.f32.mrf.mxu3  ;;  %3200 = vrot.lane.b32.xlu0 %v3151_v48, %s13720_s30 }
 0x18d   : > { %20367 = vst [vmem:[#allocation55_spill] sm:$0xff] %v14532_v53  ;;  %v14535_v15 = vpop.f32.mrf.mxu2  ;;  %3140 = vrot.lane.b32.xlu1 %v14441_v10, %s13721_s4  ;;  %v2156_v48 = vpop.permute.xlu0 %2155 }
 0x18e   : > { %20368 = vst [vmem:[#allocation56_spill] sm:$0xff] %v14535_v15  ;;  %v14539_v38 = vpop.f32.mrf.mxu1  ;;  %v3153_v15 = vld.sshfl [vmem:[#allocation1 + $0x20] sm:$0xff pattern:$0x75316420]  ;;  %v2216_v6 = vsel %vm2209_vm3, %v2154_v52, %v2156_v48  ;;  %2207 = vrot.lane.b32.xlu2 %v14477_v25, %s13718_s24  ;;  %v2158_v53 = vpop.permute.xlu1 %2157 }
 0x18f   : > { %20369 = vst [vmem:[#allocation57_spill] sm:$0xff] %v14539_v38  ;;  %v14541_v16 = vpop.f32.mrf.mxu0  ;;  %v3155_v0 = vld.sshfl [vmem:[#allocation1 + $0x30] sm:$0xff pattern:$0x75316420] }
 0x190   : > { %20370 = vst [vmem:[#allocation58_spill] sm:$0xff] %v14541_v16  ;;  %v2160_v16 = vpop.permute.xlu2 %2159 }
 0x191   : > { %12766 = vmatmul.msk.f32.vlgmr.msra.gmra.mxu1 %vm370_vm2, %v14418_v35  ;;  %12772 = vmatmul.msk.f32.vlgmr.msrb.gmra.mxu3 %vm370_vm2, %v14418_v35  ;;  %v2218_v52 = vsel %vm2209_vm3, %v2158_v53, %v2160_v16 }
 0x192   : > { %12770 = vmatmul.msk.f32.gmra.mxu2 %vm370_vm2, %v14441_v10  ;;  %12775 = vmatmul.msk.f32.vlgmr.msra.gmra.mxu0 %vm370_vm2, %v14418_v35 }
 0x193   : > { %12789 = vmatpush.msk.msra.mxu1 %vm375_vm1, %v2213_v44  ;;  %12795 = vmatpush.msk.msrb.mxu3 %vm375_vm1, %v2215_v63  ;;  %v3154_v44 = vld.sshfl [vmem:[#allocation1 + $0x28] sm:$0xff pattern:$0x75316420] }
 0x194   : > { %v14556_v62 = vpop.f32.mrf.mxu3  ;;  %12798 = vmatpush.msk.msra.mxu0 %vm375_vm1, %v2216_v6  ;;  %3204 = vrot.lane.b32.xlu0 %v3153_v15, %s13720_s30  ;;  %3159 = vst [vmem:[#allocation1 + $0x20] ss:$2 sm:$0xff] %v13808_v14  ;;  %v3156_v15 = vld.sshfl [vmem:[#allocation1 + $0x38] sm:$0xff pattern:$0x75316420] }
 0x195   : > { %20371 = vst [vmem:[#allocation59_spill] sm:$0xff] %v14556_v62  ;;  %v14561_v59 = vpop.f32.mrf.mxu2  ;;  %3206 = vrot.lane.b32.xlu1 %v3154_v44, %s13720_s30 }
 0x196   : > { %20372 = vst [vmem:[#allocation60_spill] sm:$0xff] %v14561_v59  ;;  %v14564_v32 = vpop.f32.mrf.mxu1  ;;  %v2162_v63 = vpop.permute.xlu0 %2161  ;;  %3138 = vrot.lane.b32.xlu2 %v14418_v35, %s13721_s4 }
 0x197   : > { %20373 = vst [vmem:[#allocation61_spill] sm:$0xff] %v14564_v32  ;;  %v14566_v57 = vpop.f32.mrf.mxu0  ;;  %v2164_v59 = vpop.permute.xlu1 %2163  ;;  %v2219_v58 = vsel %vm2209_vm3, %v2160_v16, %v2162_v63 }
 0x198   : > { %20374 = vst [vmem:[#allocation62_spill] sm:$0xff] %v14566_v57  ;;  %v2217_v57 = vsel %vm2209_vm3, %v2156_v48, %v2158_v53  ;;  %v2166_v48 = vpop.permute.xlu2 %2165 }
 0x199   : > { %12767 = vmatmul.msk.f32.gmra.mxu1 %vm370_vm2, %v14441_v10  ;;  %12773 = vmatmul.msk.f32.gmra.mxu3 %vm370_vm2, %v14441_v10  ;;  %3160 = vst [vmem:[#allocation1 + $0x30] ss:$2 sm:$0xff] %v13813_v17 }
 0x19a   : > { %12776 = vmatmul.msk.f32.gmra.mxu0 %vm370_vm2, %v14441_v10  ;;  %12781 = vmatmul.msk.f32.vlgmr.msra.gmra.mxu2 %vm370_vm2, %v14487_v8 }
 0x19b   : > { %12804 = vmatpush.msk.msra.mxu2 %vm375_vm1, %v2218_v52  ;;  %v2220_v52 = vsel %vm2209_vm3, %v2162_v63, %v2164_v59 }
 0x19c   : > { %v14580_v25 = vpop.f32.mrf.mxu3  ;;  %3210 = vrot.lane.b32.xlu0 %v3156_v15, %s13720_s30  ;;  %v3152_v15 = vld.sshfl [vmem:[#allocation1 + $0x18] sm:$0xff pattern:$0x75316420] }
 0x19d   : > { %20375 = vst [vmem:[#allocation63_spill] sm:$0xff] %v14580_v25  ;;  %v14584_v6 = vpop.f32.mrf.mxu2  ;;  %v3161_v25 = vld.sshfl [vmem:[#allocation1] sm:$0xff pattern:$0x75316420] }
 0x19e   : > { %v14587_v44 = vpop.f32.mrf.mxu1  ;;  %3158 = vst [vmem:[#allocation1 + $0x10] ss:$2 sm:$0xff] %v13801_v9  ;;  %3202 = vrot.lane.b32.xlu2 %v3152_v15, %s13720_s30  ;;  %3212 = vrot.lane.b32.xlu1 %v3161_v25, %s13720_s30 }
 0x19f   : > { %20376 = vst [vmem:[#allocation64_spill] sm:$0xff] %v14587_v44  ;;  %v14589_v62 = vpop.f32.mrf.mxu0 }
 0x1a0   : > { %20377 = vst [vmem:[#allocation65_spill] sm:$0xff] %v14589_v62  ;;  %v2168_v62 = vpop.permute.xlu0 %2167  ;;  %v2172_v37 = vpop.permute.xlu2 %2171 }
 0x1a1   : > { %12778 = vmatmul.msk.f32.vlgmr.msrb.gmra.mxu1 %vm370_vm2, %v14418_v35  ;;  %12784 = vmatmul.msk.f32.vlgmr.msra.gmra.mxu3 %vm370_vm2, %v14487_v8 }
 0x1a2   : > { %12782 = vmatmul.msk.f32.gmra.mxu2 %vm370_vm2, %v14510_v24  ;;  %12787 = vmatmul.msk.f32.vlgmr.msrb.gmra.mxu0 %vm370_vm2, %v14487_v8 }
 0x1a3   : > { %12801 = vmatpush.msk.msrb.mxu1 %vm375_vm1, %v2217_v57  ;;  %12807 = vmatpush.msk.msra.mxu3 %vm375_vm1, %v2219_v58  ;;  %v2222_v57 = vsel %vm2209_vm3, %v2166_v48, %v2168_v62 }
 0x1a4   : > { %v14605_v16 = vpop.f32.mrf.mxu3  ;;  %12810 = vmatpush.msk.msrb.mxu0 %vm375_vm1, %v2220_v52 }
 0x1a5   : > { %20378 = vst [vmem:[#allocation66_spill] sm:$0xff] %v14605_v16  ;;  %v14609_v53 = vpop.f32.mrf.mxu2  ;;  %v3163_v58 = vld.sshfl [vmem:[#allocation1 + $0x10] sm:$0xff pattern:$0x75316420] }
 0x1a6   : > { %v14612_v63 = vpop.f32.mrf.mxu1  ;;  %v3164_v25 = vld.sshfl [vmem:[#allocation1 + $0x18] sm:$0xff pattern:$0x75316420]  ;;  %3216 = vrot.lane.b32.xlu0 %v3163_v58, %s13720_s30  ;;  %3208 = vrot.lane.b32.xlu2 %v3155_v0, %s13720_s30 }
 0x1a7   : > { %20379 = vst [vmem:[#allocation67_spill] sm:$0xff] %v14612_v63  ;;  %v14614_v13 = vpop.f32.mrf.mxu0  ;;  %3218 = vrot.lane.b32.xlu1 %v3164_v25, %s13720_s30 }
 0x1a8   : > { %20380 = vst [vmem:[#allocation68_spill] sm:$0xff] %v14614_v13  ;;  %v2170_v13 = vpop.permute.xlu1 %2169 }
 0x1a9   : > { %12779 = vmatmul.msk.f32.gmra.mxu1 %vm370_vm2, %v14441_v10  ;;  %12785 = vmatmul.msk.f32.gmra.mxu3 %vm370_vm2, %v14510_v24  ;;  %3170 = vst [vmem:[#allocation1 + $0x10] ss:$2 sm:$0xff] %v13825_v23  ;;  %v2223_v58 = vsel %vm2209_vm3, %v2168_v62, %v2170_v13  ;;  %v2224_v25 = vsel %vm2209_vm3, %v2170_v13, %v2172_v37  ;;  %v3166_v13 = vld.sshfl [vmem:[#allocation1 + $0x28] sm:$0xff pattern:$0x75316420] }
 0x1aa   : > { %12788 = vmatmul.msk.f32.gmra.mxu0 %vm370_vm2, %v14510_v24  ;;  %12793 = vmatmul.msk.f32.vlgmr.msrb.gmra.mxu2 %vm370_vm2, %v14487_v8 }
 0x1ab   : > { %12816 = vmatpush.msk.msrb.mxu2 %vm375_vm1, %v2222_v57  ;;  %v2221_v57 = vsel %vm2209_vm3, %v2164_v59, %v2166_v48 }
 0x1ac   : > { %v14628_v52 = vpop.f32.mrf.mxu3 }
 0x1ad   : > { %20381 = vst [vmem:[#allocation69_spill] sm:$0xff] %v14628_v52  ;;  %v14630_v15 = vpop.f32.mrf.mxu2 }
 0x1ae   : > { %v14633_v16 = vpop.f32.mrf.mxu1  ;;  %v2174_v48 = vpop.permute.xlu0 %2173  ;;  %3222 = vrot.lane.b32.xlu0 %v3166_v13, %s13720_s30 }
 0x1af   : > { %20382 = vst [vmem:[#allocation70_spill] sm:$0xff] %v14633_v16  ;;  %v14635_v11 = vpop.f32.mrf.mxu0  ;;  %v2225_v50 = vsel %vm2209_vm3, %v2172_v37, %v2174_v48 }
 0x1b0   : > { %20383 = vst [vmem:[#allocation71_spill] sm:$0xff] %v14635_v11  ;;  %v3167_v11 = vld.sshfl [vmem:[#allocation1 + $0x30] sm:$0xff pattern:$0x75316420]  ;;  %v2176_v12 = vpop.permute.xlu1 %2175 }
 0x1b1   : > { %12790 = vmatmul.msk.f32.vlgmr.msra.gmra.mxu1 %vm370_vm2, %v14487_v8  ;;  %12796 = vmatmul.msk.f32.vlgmr.msrb.gmra.mxu3 %vm370_vm2, %v14487_v8 }
 0x1b2   : > { %12794 = vmatmul.msk.f32.gmra.mxu2 %vm370_vm2, %v14510_v24  ;;  %12799 = vmatmul.msk.f32.vlgmr.msra.gmra.mxu0 %vm370_vm2, %v14487_v8 }
 0x1b3   : > { %12813 = vmatpush.msk.msra.mxu1 %vm375_vm1, %v2221_v57  ;;  %12819 = vmatpush.msk.msrb.mxu3 %vm375_vm1, %v2223_v58  ;;  %v2226_v57 = vsel %vm2209_vm3, %v2174_v48, %v2176_v12 }
 0x1b4   : > { %v14652_v0 = vpop.f32.mrf.mxu3  ;;  %12822 = vmatpush.msk.msra.mxu0 %vm375_vm1, %v2224_v25  ;;  %3224 = vrot.lane.b32.xlu1 %v3167_v11, %s13720_s30  ;;  %v2178_v25 = vpop.permute.xlu2 %2177  ;;  %v3162_v11 = vld.sshfl [vmem:[#allocation1 + $0x8] sm:$0xff pattern:$0x75316420] }
 0x1b5   : > { %20384 = vst [vmem:[#allocation72_spill] sm:$0xff] %v14652_v0  ;;  %v14655_v62 = vpop.f32.mrf.mxu2  ;;  %3214 = vrot.lane.b32.xlu2 %v3162_v11, %s13720_s30  ;;  %v2227_v30 = vsel %vm2209_vm3, %v2176_v12, %v2178_v25 }
 0x1b6   : > { %v14657_v59 = vpop.f32.mrf.mxu1  ;;  %3169 = vst [vmem:[#allocation1] ss:$2 sm:$0xff] %v13816_v18  ;;  %v2180_v0 = vpop.permute.xlu0 %2179 }
 0x1b7   : > { %20385 = vst [vmem:[#allocation73_spill] sm:$0xff] %v14657_v59  ;;  %v14659_v52 = vpop.f32.mrf.mxu0  ;;  %v3175_v59 = vld.sshfl [vmem:[#allocation1 + $0x10] sm:$0xff pattern:$0x75316420] }
 0x1b8   : > { %20386 = vst [vmem:[#allocation74_spill] sm:$0xff] %v14659_v52  ;;  %v2182_v11 = vpop.permute.xlu1 %2181 }
 0x1b9   : > { %12791 = vmatmul.msk.f32.gmra.mxu1 %vm370_vm2, %v14510_v24  ;;  %12797 = vmatmul.msk.f32.gmra.mxu3 %vm370_vm2, %v14510_v24  ;;  %v2229_v55 = vsel %vm2209_vm3, %v2180_v0, %v2182_v11 }
 0x1ba   : > { %12800 = vmatmul.msk.f32.gmra.mxu0 %vm370_vm2, %v14510_v24  ;;  %12805 = vmatmul.msk.f32.vlgmr.msra.gmra.mxu2 %vm370_vm2, %v14487_v8 }
 0x1bb   : > { %12828 = vmatpush.msk.msra.mxu2 %vm375_vm1, %v2226_v57  ;;  %v2228_v57 = vsel %vm2209_vm3, %v2178_v25, %v2180_v0 }
 0x1bc   : > { %v14673_v58 = vpop.f32.mrf.mxu3 }
 0x1bd   : > { %20387 = vst [vmem:[#allocation75_spill] sm:$0xff] %v14673_v58  ;;  %v14675_v13 = vpop.f32.mrf.mxu2  ;;  %v3173_v12 = vld.sshfl [vmem:[#allocation1] sm:$0xff pattern:$0x75316420] }
 0x1be   : > { %v14679_v52 = vpop.f32.mrf.mxu1  ;;  %3228 = vrot.lane.b32.xlu0 %v3173_v12, %s13720_s30  ;;  %v3174_v58 = vld.sshfl [vmem:[#allocation1 + $0x8] sm:$0xff pattern:$0x75316420]  ;;  %v2186_v12 = vpop.permute.xlu0 %2185 }
 0x1bf   : > { %20388 = vst [vmem:[#allocation76_spill] sm:$0xff] %v14679_v52  ;;  %v14681_v39 = vpop.f32.mrf.mxu0  ;;  %3230 = vrot.lane.b32.xlu1 %v3174_v58, %s13720_s30 }
 0x1c0   : > { %20389 = vst [vmem:[#allocation77_spill] sm:$0xff] %v14681_v39  ;;  %v2184_v39 = vpop.permute.xlu2 %2183 }
 0x1c1   : > { %12802 = vmatmul.msk.f32.vlgmr.msrb.gmra.mxu1 %vm370_vm2, %v14487_v8  ;;  %12808 = vmatmul.msk.f32.vlgmr.msra.gmra.mxu3 %vm370_vm2, %v14487_v8  ;;  %3181 = vst [vmem:[#allocation1] ss:$2 sm:$0xff] %v13843_v31 }
 0x1c2   : > { %12806 = vmatmul.msk.f32.gmra.mxu2 %vm370_vm2, %v14510_v24  ;;  %12811 = vmatmul.msk.f32.vlgmr.msrb.gmra.mxu0 %vm370_vm2, %v14487_v8 }
 0x1c3   : > { %12825 = vmatpush.msk.msrb.mxu1 %vm375_vm1, %v2225_v50  ;;  %12831 = vmatpush.msk.msra.mxu3 %vm375_vm1, %v2227_v30  ;;  %v2230_v30 = vsel %vm2209_vm3, %v2182_v11, %v2184_v39  ;;  %v3165_v50 = vld.sshfl [vmem:[#allocation1 + $0x20] sm:$0xff pattern:$0x75316420] }
 0x1c4   : > { %v14696_v37 = vpop.f32.mrf.mxu3  ;;  %12834 = vmatpush.msk.msrb.mxu0 %vm375_vm1, %v2228_v57  ;;  %v3176_v57 = vld.sshfl [vmem:[#allocation1 + $0x18] sm:$0xff pattern:$0x75316420]  ;;  %3220 = vrot.lane.b32.xlu2 %v3165_v50, %s13720_s30  ;;  %3171 = vst [vmem:[#allocation1 + $0x20] ss:$2 sm:$0xff] %v13831_v27 }
 0x1c5   : > { %20390 = vst [vmem:[#allocation78_spill] sm:$0xff] %v14696_v37  ;;  %v14699_v48 = vpop.f32.mrf.mxu2 }
 0x1c6   : > { %v14702_v25 = vpop.f32.mrf.mxu1  ;;  %3234 = vrot.lane.b32.xlu0 %v3176_v57, %s13720_s30  ;;  %v3168_v57 = vld.sshfl [vmem:[#allocation1 + $0x38] sm:$0xff pattern:$0x75316420]  ;;  %3182 = vst [vmem:[#allocation1 + $0x10] ss:$2 sm:$0xff] %v13849_v36 }
 0x1c7   : > { %20391 = vst [vmem:[#allocation79_spill] sm:$0xff] %v14702_v25  ;;  %v14704_v20 = vpop.f32.mrf.mxu0  ;;  %v2188_v25 = vpop.permute.xlu1 %2187 }
 0x1c8   : > { %20392 = vst [vmem:[#allocation80_spill] sm:$0xff] %v14704_v20  ;;  %v2232_v50 = vsel %vm2209_vm3, %v2186_v12, %v2188_v25  ;;  %v2190_v11 = vpop.permute.xlu2 %2189 }
 0x1c9   : > { %12803 = vmatmul.msk.f32.gmra.mxu1 %vm370_vm2, %v14510_v24  ;;  %12809 = vmatmul.msk.f32.gmra.mxu3 %vm370_vm2, %v14510_v24  ;;  %3172 = vst [vmem:[#allocation1 + $0x30] ss:$2 sm:$0xff] %v13837_v29 }
 0x1ca   : > { %12812 = vmatmul.msk.f32.gmra.mxu0 %vm370_vm2, %v14510_v24  ;;  %12817 = vmatmul.msk.f32.vlgmr.msrb.gmra.mxu2 %vm370_vm2, %v14487_v8 }
 0x1cb   : > { %12840 = vmatpush.msk.msrb.mxu2 %vm375_vm1, %v2230_v30  ;;  %v2231_v30 = vsel %vm2209_vm3, %v2184_v39, %v2186_v12 }
 0x1cc   : > { %v14720_v58 = vpop.f32.mrf.mxu3  ;;  %3226 = vrot.lane.b32.xlu2 %v3168_v57, %s13720_s30 }
 0x1cd   : > { %20393 = vst [vmem:[#allocation81_spill] sm:$0xff] %v14720_v58  ;;  %v14722_v20 = vpop.f32.mrf.mxu2 }
 0x1ce   : > { %v14725_v37 = vpop.f32.mrf.mxu1  ;;  %v2192_v58 = vpop.permute.xlu0 %2191 }
 0x1cf   : > { %20394 = vst [vmem:[#allocation82_spill] sm:$0xff] %v14725_v37  ;;  %v14727_v52 = vpop.f32.mrf.mxu0 }
 0x1d0   : > { %20395 = vst [vmem:[#allocation83_spill] sm:$0xff] %v14727_v52  ;;  %v3177_v52 = vld.sshfl [vmem:[#allocation1 + $0x20] sm:$0xff pattern:$0x75316420] }
 0x1d1   : > { %12814 = vmatmul.msk.f32.vlgmr.msra.gmra.mxu1 %vm370_vm2, %v14487_v8  ;;  %12820 = vmatmul.msk.f32.vlgmr.msrb.gmra.mxu3 %vm370_vm2, %v14487_v8 }
 0x1d2   : > { %12818 = vmatmul.msk.f32.gmra.mxu2 %vm370_vm2, %v14510_v24  ;;  %12823 = vmatmul.msk.f32.vlgmr.msra.gmra.mxu0 %vm370_vm2, %v14487_v8 }
 0x1d3   : > { %12837 = vmatpush.msk.msra.mxu1 %vm375_vm1, %v2229_v55  ;;  %12843 = vmatpush.msk.msrb.mxu3 %vm375_vm1, %v2231_v30  ;;  %v2234_v55 = vsel %vm2209_vm3, %v2190_v11, %v2192_v58  ;;  %v3180_v30 = vld.sshfl [vmem:[#allocation1 + $0x38] sm:$0xff pattern:$0x75316420] }
 0x1d4   : > { %v14743_v39 = vpop.f32.mrf.mxu3  ;;  %12846 = vmatpush.msk.msra.mxu0 %vm375_vm1, %v2232_v50  ;;  %3236 = vrot.lane.b32.xlu1 %v3177_v52, %s13720_s30  ;;  %v3179_v52 = vld.sshfl [vmem:[#allocation1 + $0x30] sm:$0xff pattern:$0x75316420] }
 0x1d5   : > { %20396 = vst [vmem:[#allocation84_spill] sm:$0xff] %v14743_v39  ;;  %v14747_v0 = vpop.f32.mrf.mxu2  ;;  %3240 = vrot.lane.b32.xlu0 %v3179_v52, %s13720_s30  ;;  %3232 = vrot.lane.b32.xlu2 %v3175_v59, %s13720_s30 }
 0x1d6   : > { %v14750_v12 = vpop.f32.mrf.mxu1  ;;  %3184 = vst [vmem:[#allocation1 + $0x30] ss:$2 sm:$0xff] %v13870_v46 }
 0x1d7   : > { %20397 = vst [vmem:[#allocation85_spill] sm:$0xff] %v14750_v12  ;;  %v14752_v37 = vpop.f32.mrf.mxu0  ;;  %v2196_v12 = vpop.permute.xlu2 %2195 }
 0x1d8   : > { %20398 = vst [vmem:[#allocation86_spill] sm:$0xff] %v14752_v37  ;;  %v2194_v37 = vpop.permute.xlu1 %2193 }
 0x1d9   : > { %12815 = vmatmul.msk.f32.gmra.mxu1 %vm370_vm2, %v14510_v24  ;;  %12821 = vmatmul.msk.f32.gmra.mxu3 %vm370_vm2, %v14510_v24  ;;  %v2235_v52 = vsel %vm2209_vm3, %v2192_v58, %v2194_v37 }
 0x1da   : > { %12824 = vmatmul.msk.f32.gmra.mxu0 %vm370_vm2, %v14510_v24  ;;  %12829 = vmatmul.msk.f32.vlgmr.msra.gmra.mxu2 %vm370_vm2, %v14487_v8 }
 0x1db   : > { %12852 = vmatpush.msk.msra.mxu2 %vm375_vm1, %v2234_v55  ;;  %v2233_v55 = vsel %vm2209_vm3, %v2188_v25, %v2190_v11 }
 0x1dc   : > { %v14766_v50 = vpop.f32.mrf.mxu3  ;;  %3242 = vrot.lane.b32.xlu1 %v3180_v30, %s13720_s30  ;;  %v2236_v30 = vsel %vm2209_vm3, %v2194_v37, %v2196_v12  ;;  %v3187_v37 = vld.sshfl [vmem:[#allocation1 + $0x10] sm:$0xff pattern:$0x75316420] }
 0x1dd   : > { %20399 = vst [vmem:[#allocation87_spill] sm:$0xff] %v14766_v50  ;;  %v14768_v57 = vpop.f32.mrf.mxu2  ;;  %v3191_v38 = vld.sshfl [vmem:[#allocation1 + $0x30] sm:$0xff pattern:$0x75316420] }
 0x1de   : > { %v14771_v39 = vpop.f32.mrf.mxu1  ;;  %v2198_v58 = vpop.permute.xlu0 %2197 }
 0x1df   : > { %20400 = vst [vmem:[#allocation88_spill] sm:$0xff] %v14771_v39  ;;  %v14773_v43 = vpop.f32.mrf.mxu0  ;;  %v2237_v16 = vsel %vm2209_vm3, %v2196_v12, %v2198_v58 }
 0x1e0   : > { %20401 = vst [vmem:[#allocation89_spill] sm:$0xff] %v14773_v43  ;;  %v3186_v43 = vld.sshfl [vmem:[#allocation1 + $0x8] sm:$0xff pattern:$0x75316420] }
 0x1e1   : > { %12826 = vmatmul.msk.f32.vlgmr.msrb.gmra.mxu1 %vm370_vm2, %v14487_v8  ;;  %12832 = vmatmul.msk.f32.vlgmr.msra.gmra.mxu3 %vm370_vm2, %v14487_v8  ;;  %v2200_v39 = vpop.permute.xlu1 %2199 }
 0x1e2   : > { %12830 = vmatmul.msk.f32.gmra.mxu2 %vm370_vm2, %v14510_v24  ;;  %12835 = vmatmul.msk.f32.vlgmr.msrb.gmra.mxu0 %vm370_vm2, %v14487_v8 }
 0x1e3   : > { %12849 = vmatpush.msk.msrb.mxu1 %vm375_vm1, %v2233_v55  ;;  %12855 = vmatpush.msk.msra.mxu3 %vm375_vm1, %v2235_v52  ;;  %v2238_v55 = vsel %vm2209_vm3, %v2198_v58, %v2200_v39  ;;  %v2202_v52 = vpop.permute.xlu2 %2201 }
 0x1e4   : > { %v14790_v59 = vpop.f32.mrf.mxu3  ;;  %12858 = vmatpush.msk.msrb.mxu0 %vm375_vm1, %v2236_v30  ;;  %3248 = vrot.lane.b32.xlu1 %v3187_v37, %s13720_s30  ;;  %v2239_v34 = vsel %vm2209_vm3, %v2200_v39, %v2202_v52 }
 0x1e5   : > { %20402 = vst [vmem:[#allocation90_spill] sm:$0xff] %v14790_v59  ;;  %v14793_v25 = vpop.f32.mrf.mxu2  ;;  %3246 = vrot.lane.b32.xlu0 %v3186_v43, %s13720_s30  ;;  %v3178_v43 = vld.sshfl [vmem:[#allocation1 + $0x28] sm:$0xff pattern:$0x75316420] }
 0x1e6   : > { %v14795_v11 = vpop.f32.mrf.mxu1  ;;  %3238 = vrot.lane.b32.xlu2 %v3178_v43, %s13720_s30  ;;  %3183 = vst [vmem:[#allocation1 + $0x20] ss:$2 sm:$0xff] %v13861_v40 }
 0x1e7   : > { %20403 = vst [vmem:[#allocation91_spill] sm:$0xff] %v14795_v11  ;;  %v14797_v50 = vpop.f32.mrf.mxu0 }
 0x1e8   : > { %20404 = vst [vmem:[#allocation92_spill] sm:$0xff] %v14797_v50  ;;  %v2204_v50 = vpop.permute.xlu0 %2203 }
 0x1e9   : > { %12827 = vmatmul.msk.f32.gmra.mxu1 %vm370_vm2, %v14510_v24  ;;  %12833 = vmatmul.msk.f32.gmra.mxu3 %vm370_vm2, %v14510_v24 }
 0x1ea   : > { %12836 = vmatmul.msk.f32.gmra.mxu0 %vm370_vm2, %v14510_v24  ;;  %12841 = vmatmul.msk.f32.vlgmr.msrb.gmra.mxu2 %vm370_vm2, %v14487_v8 }
 0x1eb   : > { %12864 = vmatpush.msk.msrb.mxu2 %vm375_vm1, %v2238_v55  ;;  %v2240_v55 = vsel %vm2209_vm3, %v2202_v52, %v2204_v50  ;;  %v2208_v43 = vpop.permute.xlu2 %2207 }
 0x1ec   : > { %v14811_v30 = vpop.f32.mrf.mxu3 }
 0x1ed   : > { %20405 = vst [vmem:[#allocation93_spill] sm:$0xff] %v14811_v30  ;;  %v14813_v37 = vpop.f32.mrf.mxu2  ;;  %v2206_v30 = vpop.permute.xlu1 %2205  ;;  %v3190_v12 = vld.sshfl [vmem:[#allocation1 + $0x28] sm:$0xff pattern:$0x75316420] }
 0x1ee   : > { %v14817_v59 = vpop.f32.mrf.mxu1  ;;  %v3189_v58 = vld.sshfl [vmem:[#allocation1 + $0x20] sm:$0xff pattern:$0x75316420]  ;;  %3254 = vrot.lane.b32.xlu1 %v3190_v12, %s13720_s30 }
 0x1ef   : > { %20406 = vst [vmem:[#allocation94_spill] sm:$0xff] %v14817_v59  ;;  %v14819_v11 = vpop.f32.mrf.mxu0  ;;  %3252 = vrot.lane.b32.xlu0 %v3189_v58, %s13720_s30  ;;  %v3185_v12 = vld.sshfl [vmem:[#allocation1] sm:$0xff pattern:$0x75316420] }
 0x1f0   : > { %20407 = vst [vmem:[#allocation95_spill] sm:$0xff] %v14819_v11  ;;  %3244 = vrot.lane.b32.xlu2 %v3185_v12, %s13720_s30 }
 0x1f1   : > { %12838 = vmatmul.msk.f32.vlgmr.msra.gmra.mxu1 %vm370_vm2, %v14487_v8  ;;  %12844 = vmatmul.msk.f32.vlgmr.msrb.gmra.mxu3 %vm370_vm2, %v14487_v8  ;;  %4201 = vst [vmem:[#allocation1 + $0x20] ss:$2 sm:$0xff] %v13787_v4 }
 0x1f2   : > { %12842 = vmatmul.msk.f32.gmra.mxu2 %vm370_vm2, %v14510_v24  ;;  %12847 = vmatmul.msk.f32.vlgmr.msra.gmra.mxu0 %vm370_vm2, %v14487_v8  ;;  %3193 = vst [vmem:[#allocation1] ss:$2 sm:$0xff] %v13875_v47 }
 0x1f3   : > { %12861 = vmatpush.msk.msra.mxu1 %vm375_vm1, %v2237_v16  ;;  %12867 = vmatpush.msk.msrb.mxu3 %vm375_vm1, %v2239_v34  ;;  %v2242_v34 = vsel %vm2209_vm3, %v2206_v30, %v2208_v43 }
 0x1f4   : > { %v14834_v39 = vpop.f32.mrf.mxu3  ;;  %12870 = vmatpush.msk.msra.mxu0 %vm375_vm1, %v2240_v55  ;;  %v3192_v55 = vld.sshfl [vmem:[#allocation1 + $0x38] sm:$0xff pattern:$0x75316420] }
 0x1f5   : > { %20408 = vst [vmem:[#allocation96_spill] sm:$0xff] %v14834_v39  ;;  %v14837_v11 = vpop.f32.mrf.mxu2 }
 0x1f6   : > { %v14842_v52 = vpop.f32.mrf.mxu1  ;;  %v3197_v59 = vpop.permute.xlu0 %3196  ;;  %4203 = vst [vmem:[#allocation1 + $0x30] ss:$2 sm:$0xff] %v13790_v5 }
 0x1f7   : > { %20409 = vst [vmem:[#allocation97_spill] sm:$0xff] %v14842_v52  ;;  %v14844_v16 = vpop.f32.mrf.mxu0  ;;  %v3199_v58 = vpop.permute.xlu1 %3198  ;;  %3258 = vrot.lane.b32.xlu0 %v3192_v55, %s13720_s30 }
 0x1f8   : > { %20410 = vst [vmem:[#allocation98_spill] sm:$0xff] %v14844_v16  ;;  %v14860_v16 = vpop.permute.xlu2 %3138  ;;  %v3265_v12 = vsel %vm3264_vm4, %v3197_v59, %v3199_v58  ;;  %v3188_v59 = vld.sshfl [vmem:[#allocation1 + $0x18] sm:$0xff pattern:$0x75316420] }
 0x1f9   : > { %12839 = vmatmul.msk.f32.gmra.mxu1 %vm370_vm2, %v14510_v24  ;;  %12845 = vmatmul.msk.f32.gmra.mxu3 %vm370_vm2, %v14510_v24  ;;  %v3194_v55 = vld.sshfl [vmem:[#allocation1] sm:$0xff pattern:$0x75316420]  ;;  %4199 = vst [vmem:[#allocation1 + $0x10] ss:$2 sm:$0xff] %v13783_v3 }
 0x1fa   : > { %12848 = vmatmul.msk.f32.gmra.mxu0 %vm370_vm2, %v14510_v24  ;;  %12853 = vmatmul.msk.f32.vlgmr.msra.gmra.mxu2 %vm370_vm2, %v14487_v8 }
 0x1fb   : > { %12876 = vmatpush.msk.msra.mxu2 %vm375_vm1, %v2242_v34  ;;  %v2241_v34 = vsel %vm2209_vm3, %v2204_v50, %v2206_v30  ;;  %3260 = vrot.lane.b32.xlu1 %v3194_v55, %s13720_s30 }
 0x1fc   : > { %v14858_v43 = vpop.f32.mrf.mxu3  ;;  %3250 = vrot.lane.b32.xlu2 %v3188_v59, %s13720_s30 }
 0x1fd   : > { %20411 = vst [vmem:[#allocation99_spill] sm:$0xff] %v14858_v43  ;;  %v14862_v39 = vpop.f32.mrf.mxu2 }
 0x1fe   : > { %v14865_v52 = vpop.f32.mrf.mxu1  ;;  %v3201_v63 = vpop.permute.xlu0 %3200 }
 0x1ff   : > { %20412 = vst [vmem:[#allocation100_spill] sm:$0xff] %v14865_v52  ;;  %v14867_v22 = vpop.f32.mrf.mxu0  ;;  %v3266_v43 = vsel %vm3264_vm4, %v3199_v58, %v3201_v63  ;;  %v14883_v50 = vpop.permute.xlu1 %3140 }
 0x200   : > { %20413 = vst [vmem:[#allocation101_spill] sm:$0xff] %v14867_v22  ;;  %v3195_v22 = vld.sshfl [vmem:[#allocation1 + $0x8] sm:$0xff pattern:$0x75316420] }
 0x201   : > { %12850 = vmatmul.msk.f32.vlgmr.msrb.gmra.mxu1 %vm370_vm2, %v14487_v8  ;;  %12856 = vmatmul.msk.f32.vlgmr.msra.gmra.mxu3 %vm370_vm2, %v14487_v8  ;;  %4197 = vst [vmem:[#allocation1] ss:$2 sm:$0xff] %v13780_v2 }
 0x202   : > { %12854 = vmatmul.msk.f32.gmra.mxu2 %vm370_vm2, %v14510_v24  ;;  %12859 = vmatmul.msk.f32.vlgmr.msrb.gmra.mxu0 %vm370_vm2, %v14487_v8 }
 0x203   : > { %12873 = vmatpush.msk.msrb.mxu1 %vm375_vm1, %v2241_v34  ;;  %12879 = vmatpush.msk.msra.mxu3 %vm375_vm1, %v3265_v12  ;;  %v3203_v12 = vpop.permute.xlu2 %3202 }
 0x204   : > { %v14885_v30 = vpop.f32.mrf.mxu3  ;;  %12882 = vmatpush.msk.msrb.mxu0 %vm375_vm1, %v3266_v43  ;;  %3256 = vrot.lane.b32.xlu2 %v3191_v38, %s13720_s30 }
 0x205   : > { %20414 = vst [vmem:[#allocation102_spill] sm:$0xff] %v14885_v30  ;;  %v14890_v58 = vpop.f32.mrf.mxu2 }
 0x206   : > { %20415 = vst [vmem:[#allocation103_spill] sm:$0xff] %v14890_v58  ;;  %v14893_v34 = vpop.f32.mrf.mxu1  ;;  %v3205_v44 = vpop.permute.xlu0 %3204 }
 0x207   : > { %20416 = vst [vmem:[#allocation104_spill] sm:$0xff] %v14893_v34  ;;  %v14895_v52 = vpop.f32.mrf.mxu0  ;;  %v3268_v21 = vsel %vm3264_vm4, %v3203_v12, %v3205_v44  ;;  %v3207_v30 = vpop.permute.xlu1 %3206 }
 0x208   : > { %20417 = vst [vmem:[#allocation105_spill] sm:$0xff] %v14895_v52  ;;  %v4205_v43 = vld.sshfl [vmem:[#allocation1 + $0x8] sm:$0xff pattern:$0x75316420] }
 0x209   : > { %12851 = vmatmul.msk.f32.gmra.mxu1 %vm370_vm2, %v14510_v24  ;;  %12857 = vmatmul.msk.f32.gmra.mxu3 %vm370_vm2, %v14510_v24  ;;  %v4204_v55 = vld.sshfl [vmem:[#allocation1] sm:$0xff pattern:$0x75316420] }
 0x20a   : > { %12860 = vmatmul.msk.f32.gmra.mxu0 %vm370_vm2, %v14510_v24  ;;  %12865 = vmatmul.msk.f32.vlgmr.msrb.gmra.mxu2 %vm370_vm2, %v14487_v8  ;;  %4212 = vst [vmem:[#allocation1] ss:$2 sm:$0xff] %v13797_v7 }
 0x20b   : > { %4251 = vrot.lane.b32.xlu0 %v4204_v55, %s13722_s5  ;;  %12888 = vmatpush.msk.msrb.mxu2 %vm375_vm1, %v3268_v21  ;;  %v3209_v32 = vpop.permute.xlu2 %3208  ;;  %v3267_v55 = vsel %vm3264_vm4, %v3201_v63, %v3203_v12  ;;  %v3269_v21 = vsel %vm3264_vm4, %v3205_v44, %v3207_v30  ;;  %v4209_v12 = vld.sshfl [vmem:[#allocation1 + $0x28] sm:$0xff pattern:$0x75316420] }
 0x20c   : > { %v14909_v59 = vpop.f32.mrf.mxu3  ;;  %4253 = vrot.lane.b32.xlu1 %v4205_v43, %s13722_s5  ;;  %v3270_v43 = vsel %vm3264_vm4, %v3207_v30, %v3209_v32  ;;  %3262 = vrot.lane.b32.xlu2 %v3195_v22, %s13720_s30 }
 0x20d   : > { %20418 = vst [vmem:[#allocation106_spill] sm:$0xff] %v14909_v59  ;;  %v14912_v52 = vpop.f32.mrf.mxu2  ;;  %v4206_v59 = vld.sshfl [vmem:[#allocation1 + $0x10] sm:$0xff pattern:$0x75316420] }
 0x20e   : > { %v14914_v34 = vpop.f32.mrf.mxu1  ;;  %v3211_v30 = vpop.permute.xlu0 %3210 }
 0x20f   : > { %20419 = vst [vmem:[#allocation107_spill] sm:$0xff] %v14914_v34  ;;  %v14916_v58 = vpop.f32.mrf.mxu0 }
 0x210   : > { %20420 = vst [vmem:[#allocation108_spill] sm:$0xff] %v14916_v58  ;;  %v4208_v58 = vld.sshfl [vmem:[#allocation1 + $0x20] sm:$0xff pattern:$0x75316420] }
 0x211   : > { %12862 = vmatmul.msk.f32.vlgmr.msra.gmra.mxu1 %vm370_vm2, %v14487_v8  ;;  %12868 = vmatmul.msk.f32.vlgmr.msrb.gmra.mxu3 %vm370_vm2, %v14487_v8  ;;  %4214 = vst [vmem:[#allocation1 + $0x20] ss:$2 sm:$0xff] %v13808_v14 }
 0x212   : > { %12866 = vmatmul.msk.f32.gmra.mxu2 %vm370_vm2, %v14510_v24  ;;  %12871 = vmatmul.msk.f32.vlgmr.msra.gmra.mxu0 %vm370_vm2, %v14487_v8 }
 0x213   : > { %12885 = vmatpush.msk.msra.mxu1 %vm375_vm1, %v3267_v55  ;;  %12891 = vmatpush.msk.msrb.mxu3 %vm375_vm1, %v3269_v21  ;;  %v3213_v55 = vpop.permute.xlu1 %3212  ;;  %v3215_v22 = vpop.permute.xlu2 %3214 }
 0x214   : > { %v14933_v38 = vpop.f32.mrf.mxu3  ;;  %12894 = vmatpush.msk.msra.mxu0 %vm375_vm1, %v3270_v43  ;;  %4255 = vrot.lane.b32.xlu1 %v4206_v59, %s13722_s5  ;;  %v3272_v21 = vsel %vm3264_vm4, %v3211_v30, %v3213_v55 }
 0x215   : > { %20421 = vst [vmem:[#allocation109_spill] sm:$0xff] %v14933_v38  ;;  %v14937_v44 = vpop.f32.mrf.mxu2  ;;  %4195 = vrot.lane.b32.xlu0 %v14441_v10, %s13723_s6  ;;  %4193 = vrot.lane.b32.xlu2 %v14418_v35, %s13723_s6 }
 0x216   : > { %v14940_v63 = vpop.f32.mrf.mxu1 }
 0x217   : > { %20422 = vst [vmem:[#allocation110_spill] sm:$0xff] %v14940_v63  ;;  %v14942_v34 = vpop.f32.mrf.mxu0  ;;  %v3271_v63 = vsel %vm3264_vm4, %v3209_v32, %v3211_v30  ;;  %v1365_v32 = vadd.f32 %v14584_v6, %v14195_v33  ;;  %v4207_v6 = vld.sshfl [vmem:[#allocation1 + $0x18] sm:$0xff pattern:$0x75316420] }
 0x218   : > { %20423 = vst [vmem:[#allocation111_spill] sm:$0xff] %v14942_v34  ;;  %v3217_v34 = vpop.permute.xlu0 %3216 }
 0x219   : > { %12863 = vmatmul.msk.f32.gmra.mxu1 %vm370_vm2, %v14510_v24  ;;  %12869 = vmatmul.msk.f32.gmra.mxu3 %vm370_vm2, %v14510_v24  ;;  %4213 = vst [vmem:[#allocation1 + $0x10] ss:$2 sm:$0xff] %v13801_v9 }
 0x21a   : > { %12872 = vmatmul.msk.f32.gmra.mxu0 %vm370_vm2, %v14510_v24  ;;  %12877 = vmatmul.msk.f32.vlgmr.msra.gmra.mxu2 %vm370_vm2, %v14487_v8 }
 0x21b   : > { %12900 = vmatpush.msk.msra.mxu2 %vm375_vm1, %v3272_v21  ;;  %v3273_v21 = vsel %vm3264_vm4, %v3213_v55, %v3215_v22  ;;  %v3219_v55 = vpop.permute.xlu1 %3218 }
 0x21c   : > { %v14956_v10 = vpop.f32.mrf.mxu3  ;;  %4261 = vrot.lane.b32.xlu1 %v4209_v12, %s13722_s5  ;;  %v3274_v12 = vsel %vm3264_vm4, %v3215_v22, %v3217_v34 }
 0x21d   : > { %20424 = vst [vmem:[#allocation112_spill] sm:$0xff] %v14956_v10  ;;  %v14959_v59 = vpop.f32.mrf.mxu2  ;;  %4259 = vrot.lane.b32.xlu0 %v4208_v58, %s13722_s5  ;;  %v4211_v58 = vld.sshfl [vmem:[#allocation1 + $0x38] sm:$0xff pattern:$0x75316420]  ;;  %4257 = vrot.lane.b32.xlu2 %v4207_v6, %s13722_s5 }
 0x21e   : > { %v14962_v43 = vpop.f32.mrf.mxu1  ;;  %v3221_v10 = vpop.permute.xlu2 %3220  ;;  %v4210_v6 = vld.sshfl [vmem:[#allocation1 + $0x30] sm:$0xff pattern:$0x75316420] }
 0x21f   : > { %20425 = vst [vmem:[#allocation113_spill] sm:$0xff] %v14962_v43  ;;  %v14964_v38 = vpop.f32.mrf.mxu0  ;;  %v3276_v33 = vsel %vm3264_vm4, %v3219_v55, %v3221_v10 }
 0x220   : > { %20426 = vst [vmem:[#allocation114_spill] sm:$0xff] %v14964_v38  ;;  %v4216_v38 = vld.sshfl [vmem:[#allocation1] sm:$0xff pattern:$0x75316420] }
 0x221   : > { %12874 = vmatmul.msk.f32.vlgmr.msrb.gmra.mxu1 %vm370_vm2, %v14487_v8  ;;  %12880 = vmatmul.msk.f32.vlgmr.msra.gmra.mxu3 %vm370_vm2, %v14860_v16  ;;  %4215 = vst [vmem:[#allocation1 + $0x30] ss:$2 sm:$0xff] %v13813_v17 }
 0x222   : > { %12878 = vmatmul.msk.f32.gmra.mxu2 %vm370_vm2, %v14510_v24  ;;  %12883 = vmatmul.msk.f32.vlgmr.msrb.gmra.mxu0 %vm370_vm2, %v14860_v16 }
 0x223   : > { %12897 = vmatpush.msk.msrb.mxu1 %vm375_vm1, %v3271_v63  ;;  %12903 = vmatpush.msk.msra.mxu3 %vm375_vm1, %v3273_v21  ;;  %v1368_v63 = vadd.f32 %v14609_v53, %v14220_v42 }
 0x224   : > { %v2353_v8 = vpop.f32.mrf.mxu3  ;;  %12906 = vmatpush.msk.msrb.mxu0 %vm375_vm1, %v3274_v12  ;;  %4267 = vrot.lane.b32.xlu1 %v4216_v38, %s13722_s5  ;;  %v3223_v12 = vpop.permute.xlu0 %3222 }
 0x225   : > { %v14983_v35 = vpop.f32.mrf.mxu2  ;;  %v14985_v30 = vadd.f32 %v2353_v8, %v1365_v32  ;;  %4265 = vrot.lane.b32.xlu0 %v4211_v58, %s13722_s5  ;;  %v3277_v42 = vsel %vm3264_vm4, %v3221_v10, %v3223_v12  ;;  %v4219_v10 = vld.sshfl [vmem:[#allocation1 + $0x18] sm:$0xff pattern:$0x75316420]  ;;  %4263 = vrot.lane.b32.xlu2 %v4210_v6, %s13722_s5  ;;  %v1460_v6 = vadd.f32 %v14655_v62, %v14266_v19 }
 0x226   : > { %v14988_v22 = vpop.f32.mrf.mxu1  ;;  %v3225_v32 = vpop.permute.xlu1 %3224 }
 0x227   : > { %20427 = vst [vmem:[#allocation115_spill] sm:$0xff] %v14985_v30  ;;  %v14990_v43 = vpop.f32.mrf.mxu0  ;;  %v3275_v30 = vsel %vm3264_vm4, %v3217_v34, %v3219_v55  ;;  %v3278_v53 = vsel %vm3264_vm4, %v3223_v12, %v3225_v32  ;;  %v1457_v34 = vadd.f32 %v14630_v15, %v14241_v54  ;;  %v3227_v15 = vpop.permute.xlu2 %3226 }
 0x228   : > { %v3279_v19 = vsel %vm3264_vm4, %v3225_v32, %v3227_v15 }
 0x229   : > { %12875 = vmatmul.msk.f32.gmra.mxu1 %vm370_vm2, %v14510_v24  ;;  %12881 = vmatmul.msk.f32.gmra.mxu3 %vm370_vm2, %v14883_v50 }
 0x22a   : > { %12884 = vmatmul.msk.f32.gmra.mxu0 %vm370_vm2, %v14883_v50  ;;  %12889 = vmatmul.msk.f32.vlgmr.msrb.gmra.mxu2 %vm370_vm2, %v14860_v16 }
 0x22b   : > { %12912 = vmatpush.msk.msrb.mxu2 %vm375_vm1, %v3276_v33  ;;  %v4218_v33 = vld.sshfl [vmem:[#allocation1 + $0x10] sm:$0xff pattern:$0x75316420] }
 0x22c   : > { %v2356_v24 = vpop.f32.mrf.mxu3  ;;  %4225 = vst [vmem:[#allocation1 + $0x10] ss:$2 sm:$0xff] %v13825_v23  ;;  %4273 = vrot.lane.b32.xlu1 %v4219_v10, %s13722_s5 }
 0x22d   : > { %v15007_v38 = vadd.f32 %v2356_v24, %v1368_v63  ;;  %v15009_v21 = vpop.f32.mrf.mxu2  ;;  %4271 = vrot.lane.b32.xlu0 %v4218_v33, %s13722_s5  ;;  %v4222_v33 = vld.sshfl [vmem:[#allocation1 + $0x30] sm:$0xff pattern:$0x75316420] }
 0x22e   : > { %v15011_v58 = vpop.f32.mrf.mxu1 }
 0x22f   : > { %20428 = vst [vmem:[#allocation116_spill] sm:$0xff] %v15007_v38  ;;  %v15013_v8 = vpop.f32.mrf.mxu0 }
 0x230   : > { %20429 = vst [vmem:[#allocation117_spill] sm:$0xff] %v15013_v8  ;;  %v3229_v12 = vpop.permute.xlu0 %3228  ;;  %v4217_v8 = vld.sshfl [vmem:[#allocation1 + $0x8] sm:$0xff pattern:$0x75316420] }
 0x231   : > { %12886 = vmatmul.msk.f32.vlgmr.msra.gmra.mxu1 %vm370_vm2, %v14860_v16  ;;  %12892 = vmatmul.msk.f32.vlgmr.msrb.gmra.mxu3 %vm370_vm2, %v14860_v16  ;;  %4224 = vst [vmem:[#allocation1] ss:$2 sm:$0xff] %v13816_v18 }
 0x232   : > { %12890 = vmatmul.msk.f32.gmra.mxu2 %vm370_vm2, %v14883_v50  ;;  %12895 = vmatmul.msk.f32.vlgmr.msra.gmra.mxu0 %vm370_vm2, %v14860_v16 }
 0x233   : > { %12909 = vmatpush.msk.msra.mxu1 %vm375_vm1, %v3275_v30  ;;  %12915 = vmatpush.msk.msrb.mxu3 %vm375_vm1, %v3277_v42  ;;  %v3280_v42 = vsel %vm3264_vm4, %v3227_v15, %v3229_v12 }
 0x234   : > { %v2445_v55 = vpop.f32.mrf.mxu3  ;;  %12918 = vmatpush.msk.msra.mxu0 %vm375_vm1, %v3278_v53  ;;  %v4221_v53 = vld.sshfl [vmem:[#allocation1 + $0x28] sm:$0xff pattern:$0x75316420]  ;;  %4279 = vrot.lane.b32.xlu1 %v4222_v33, %s13722_s5 }
 0x235   : > { %v15034_v63 = vpop.f32.mrf.mxu2  ;;  %v15036_v24 = vadd.f32 %v2445_v55, %v1457_v34  ;;  %4277 = vrot.lane.b32.xlu0 %v4221_v53, %s13722_s5  ;;  %4269 = vrot.lane.b32.xlu2 %v4217_v8, %s13722_s5  ;;  %v1549_v8 = vadd.f32 %v14675_v13, %v14287_v28  ;;  %v1552_v13 = vadd.f32 %v14699_v48, %v14314_v51 }
 0x236   : > { %v15040_v54 = vpop.f32.mrf.mxu1 }
 0x237   : > { %20430 = vst [vmem:[#allocation118_spill] sm:$0xff] %v15036_v24  ;;  %v15042_v30 = vpop.f32.mrf.mxu0  ;;  %v3231_v24 = vpop.permute.xlu1 %3230 }
 0x238   : > { %20431 = vst [vmem:[#allocation119_spill] sm:$0xff] %v15040_v54  ;;  %v3281_v62 = vsel %vm3264_vm4, %v3229_v12, %v3231_v24  ;;  %v3235_v53 = vpop.permute.xlu0 %3234  ;;  %v4229_v33 = vld.sshfl [vmem:[#allocation1 + $0x8] sm:$0xff pattern:$0x75316420] }
 0x239   : > { %20432 = vst [vmem:[#allocation120_spill] sm:$0xff] %v15042_v30  ;;  %12887 = vmatmul.msk.f32.gmra.mxu1 %vm370_vm2, %v14883_v50  ;;  %12893 = vmatmul.msk.f32.gmra.mxu3 %vm370_vm2, %v14883_v50  ;;  %v3233_v30 = vpop.permute.xlu2 %3232 }
 0x23a   : > { %12896 = vmatmul.msk.f32.gmra.mxu0 %vm370_vm2, %v14883_v50  ;;  %12901 = vmatmul.msk.f32.vlgmr.msra.gmra.mxu2 %vm370_vm2, %v14860_v16  ;;  %v3283_v51 = vsel %vm3264_vm4, %v3233_v30, %v3235_v53 }
 0x23b   : > { %12924 = vmatpush.msk.msra.mxu2 %vm375_vm1, %v3280_v42  ;;  %v3282_v42 = vsel %vm3264_vm4, %v3231_v24, %v3233_v30  ;;  %v1641_v30 = vadd.f32 %v14722_v20, %v14334_v56  ;;  %v4223_v56 = vld.sshfl [vmem:[#allocation1 + $0x38] sm:$0xff pattern:$0x75316420] }
 0x23c   : > { %v2448_v34 = vpop.f32.mrf.mxu3  ;;  %4285 = vrot.lane.b32.xlu1 %v4229_v33, %s13722_s5  ;;  %4227 = vst [vmem:[#allocation1 + $0x30] ss:$2 sm:$0xff] %v13837_v29 }
 0x23d   : > { %v15057_v10 = vadd.f32 %v2448_v34, %v1460_v6  ;;  %v15059_v55 = vpop.f32.mrf.mxu2  ;;  %v4228_v6 = vld.sshfl [vmem:[#allocation1] sm:$0xff pattern:$0x75316420] }
 0x23e   : > { %v15062_v38 = vpop.f32.mrf.mxu1  ;;  %4283 = vrot.lane.b32.xlu0 %v4228_v6, %s13722_s5  ;;  %4236 = vst [vmem:[#allocation1] ss:$2 sm:$0xff] %v13843_v31  ;;  %v4220_v6 = vld.sshfl [vmem:[#allocation1 + $0x20] sm:$0xff pattern:$0x75316420] }
 0x23f   : > { %20433 = vst [vmem:[#allocation121_spill] sm:$0xff] %v15057_v10  ;;  %v15064_v54 = vpop.f32.mrf.mxu0  ;;  %4275 = vrot.lane.b32.xlu2 %v4220_v6, %s13722_s5 }
 0x240   : > { %4226 = vst [vmem:[#allocation1 + $0x20] ss:$2 sm:$0xff] %v13831_v27 }
 0x241   : > { %12898 = vmatmul.msk.f32.vlgmr.msrb.gmra.mxu1 %vm370_vm2, %v14860_v16  ;;  %12904 = vmatmul.msk.f32.vlgmr.msra.gmra.mxu3 %vm370_vm2, %v14860_v16 }
 0x242   : > { %12902 = vmatmul.msk.f32.gmra.mxu2 %vm370_vm2, %v14883_v50  ;;  %12907 = vmatmul.msk.f32.vlgmr.msrb.gmra.mxu0 %vm370_vm2, %v14860_v16 }
 0x243   : > { %12921 = vmatpush.msk.msrb.mxu1 %vm375_vm1, %v3279_v19  ;;  %12927 = vmatpush.msk.msra.mxu3 %vm375_vm1, %v3281_v62  ;;  %v3239_v62 = vpop.permute.xlu2 %3238 }
 0x244   : > { %v2537_v32 = vpop.f32.mrf.mxu3  ;;  %12930 = vmatpush.msk.msrb.mxu0 %vm375_vm1, %v3282_v42 }
 0x245   : > { %v15084_v15 = vpop.f32.mrf.mxu2  ;;  %v15086_v12 = vadd.f32 %v2537_v32, %v1549_v8 }
 0x246   : > { %v15088_v24 = vpop.f32.mrf.mxu1  ;;  %v3237_v10 = vpop.permute.xlu1 %3236 }
 0x247   : > { %20434 = vst [vmem:[#allocation122_spill] sm:$0xff] %v15086_v12  ;;  %v15090_v34 = vpop.f32.mrf.mxu0  ;;  %v3284_v28 = vsel %vm3264_vm4, %v3235_v53, %v3237_v10  ;;  %v3241_v33 = vpop.permute.xlu0 %3240  ;;  %v3285_v48 = vsel %vm3264_vm4, %v3237_v10, %v3239_v62  ;;  %4281 = vrot.lane.b32.xlu2 %v4223_v56, %s13722_s5  ;;  %v4230_v56 = vld.sshfl [vmem:[#allocation1 + $0x10] sm:$0xff pattern:$0x75316420] }
 0x248   : > { %20435 = vst [vmem:[#allocation123_spill] sm:$0xff] %v15090_v34 }
 0x249   : > { %12899 = vmatmul.msk.f32.gmra.mxu1 %vm370_vm2, %v14883_v50  ;;  %12905 = vmatmul.msk.f32.gmra.mxu3 %vm370_vm2, %v14883_v50 }
 0x24a   : > { %12908 = vmatmul.msk.f32.gmra.mxu0 %vm370_vm2, %v14883_v50  ;;  %12913 = vmatmul.msk.f32.vlgmr.msrb.gmra.mxu2 %vm370_vm2, %v14860_v16 }
 0x24b   : > { %12936 = vmatpush.msk.msrb.mxu2 %vm375_vm1, %v3284_v28  ;;  %v3286_v28 = vsel %vm3264_vm4, %v3239_v62, %v3241_v33 }
 0x24c   : > { %v2540_v19 = vpop.f32.mrf.mxu3 }
 0x24d   : > { %v15107_v42 = vadd.f32 %v2540_v19, %v1552_v13  ;;  %v15109_v8 = vpop.f32.mrf.mxu2  ;;  %v4231_v13 = vld.sshfl [vmem:[#allocation1 + $0x18] sm:$0xff pattern:$0x75316420] }
 0x24e   : > { %v15111_v32 = vpop.f32.mrf.mxu1  ;;  %4289 = vrot.lane.b32.xlu0 %v4231_v13, %s13722_s5  ;;  %v3243_v62 = vpop.permute.xlu1 %3242  ;;  %4237 = vst [vmem:[#allocation1 + $0x10] ss:$2 sm:$0xff] %v13849_v36 }
 0x24f   : > { %20436 = vst [vmem:[#allocation124_spill] sm:$0xff] %v15107_v42  ;;  %v15113_v12 = vpop.f32.mrf.mxu0  ;;  %v3245_v42 = vpop.permute.xlu2 %3244  ;;  %4287 = vrot.lane.b32.xlu2 %v4230_v56, %s13722_s5 }
 0x250   : > { %20437 = vst [vmem:[#allocation125_spill] sm:$0xff] %v15111_v32  ;;  %v3288_v20 = vsel %vm3264_vm4, %v3243_v62, %v3245_v42 }
 0x251   : > { %20438 = vst [vmem:[#allocation126_spill] sm:$0xff] %v15113_v12  ;;  %12910 = vmatmul.msk.f32.vlgmr.msra.gmra.mxu1 %vm370_vm2, %v14860_v16  ;;  %12916 = vmatmul.msk.f32.vlgmr.msrb.gmra.mxu3 %vm370_vm2, %v14860_v16  ;;  %v4232_v12 = vld.sshfl [vmem:[#allocation1 + $0x20] sm:$0xff pattern:$0x75316420] }
 0x252   : > { %12914 = vmatmul.msk.f32.gmra.mxu2 %vm370_vm2, %v14883_v50  ;;  %12919 = vmatmul.msk.f32.vlgmr.msra.gmra.mxu0 %vm370_vm2, %v14860_v16 }
 0x253   : > { %12933 = vmatpush.msk.msra.mxu1 %vm375_vm1, %v3283_v51  ;;  %12939 = vmatpush.msk.msrb.mxu3 %vm375_vm1, %v3285_v48  ;;  %v1644_v51 = vadd.f32 %v14747_v0, %v14358_v49 }
 0x254   : > { %v2629_v10 = vpop.f32.mrf.mxu3  ;;  %12942 = vmatpush.msk.msra.mxu0 %vm375_vm1, %v3286_v28  ;;  %4291 = vrot.lane.b32.xlu1 %v4232_v12, %s13722_s5 }
 0x255   : > { %v15134_v53 = vpop.f32.mrf.mxu2  ;;  %v15136_v19 = vadd.f32 %v2629_v10, %v1641_v30  ;;  %v15203_v56 = vld.sshfl [vmem:[#allocation1 + $0x18] sm:$0xff pattern:$0x75316420] }
 0x256   : > { %v15138_v6 = vpop.f32.mrf.mxu1  ;;  %v3249_v10 = vpop.permute.xlu1 %3248 }
 0x257   : > { %20439 = vst [vmem:[#allocation127_spill] sm:$0xff] %v15136_v19  ;;  %v15140_v34 = vpop.f32.mrf.mxu0  ;;  %v3247_v13 = vpop.permute.xlu0 %3246 }
 0x258   : > { %20440 = vst [vmem:[#allocation128_spill] sm:$0xff] %v15138_v6  ;;  %v3289_v49 = vsel %vm3264_vm4, %v3245_v42, %v3247_v13  ;;  %v3290_v0 = vsel %vm3264_vm4, %v3247_v13, %v3249_v10  ;;  %v4235_v42 = vld.sshfl [vmem:[#allocation1 + $0x38] sm:$0xff pattern:$0x75316420]  ;;  %v3251_v13 = vpop.permute.xlu2 %3250 }
 0x259   : > { %20441 = vst [vmem:[#allocation129_spill] sm:$0xff] %v15140_v34  ;;  %12911 = vmatmul.msk.f32.gmra.mxu1 %vm370_vm2, %v14883_v50  ;;  %12917 = vmatmul.msk.f32.gmra.mxu3 %vm370_vm2, %v14883_v50  ;;  %v3287_v34 = vsel %vm3264_vm4, %v3241_v33, %v3243_v62  ;;  %v1733_v33 = vadd.f32 %v14768_v57, %v14379_v26 }
 0x25a   : > { %12920 = vmatmul.msk.f32.gmra.mxu0 %vm370_vm2, %v14883_v50  ;;  %12925 = vmatmul.msk.f32.vlgmr.msra.gmra.mxu2 %vm370_vm2, %v14860_v16 }
 0x25b   : > { %12948 = vmatpush.msk.msra.mxu2 %vm375_vm1, %v3288_v20  ;;  %v4234_v20 = vld.sshfl [vmem:[#allocation1 + $0x30] sm:$0xff pattern:$0x75316420] }
 0x25c   : > { %v2632_v12 = vpop.f32.mrf.mxu3  ;;  %4295 = vrot.lane.b32.xlu0 %v4234_v20, %s13722_s5  ;;  %4239 = vst [vmem:[#allocation1 + $0x30] ss:$2 sm:$0xff] %v13870_v46  ;;  %4297 = vrot.lane.b32.xlu1 %v4235_v42, %s13722_s5  ;;  %v4242_v20 = vld.sshfl [vmem:[#allocation1 + $0x10] sm:$0xff pattern:$0x75316420] }
 0x25d   : > { %v15157_v48 = vadd.f32 %v2632_v12, %v1644_v51  ;;  %v15159_v28 = vpop.f32.mrf.mxu2  ;;  %5254 = vst [vmem:[#allocation1 + $0x10] ss:$2 sm:$0xff] %v13783_v3 }
 0x25e   : > { %v15161_v30 = vpop.f32.mrf.mxu1 }
 0x25f   : > { %20442 = vst [vmem:[#allocation130_spill] sm:$0xff] %v15157_v48  ;;  %v15163_v19 = vpop.f32.mrf.mxu0 }
 0x260   : > { %20443 = vst [vmem:[#allocation131_spill] sm:$0xff] %v15161_v30 }
 0x261   : > { %20444 = vst [vmem:[#allocation132_spill] sm:$0xff] %v15163_v19  ;;  %12922 = vmatmul.msk.f32.vlgmr.msrb.gmra.mxu1 %vm370_vm2, %v14860_v16  ;;  %12928 = vmatmul.msk.f32.vlgmr.msra.gmra.mxu3 %vm370_vm2, %v14860_v16 }
 0x262   : > { %12926 = vmatmul.msk.f32.gmra.mxu2 %vm370_vm2, %v14883_v50  ;;  %12931 = vmatmul.msk.f32.vlgmr.msrb.gmra.mxu0 %vm370_vm2, %v14860_v16 }
 0x263   : > { %12945 = vmatpush.msk.msrb.mxu1 %vm375_vm1, %v3287_v34  ;;  %12951 = vmatpush.msk.msra.mxu3 %vm375_vm1, %v3289_v49  ;;  %v3253_v34 = vpop.permute.xlu0 %3252 }
 0x264   : > { %v2721_v62 = vpop.f32.mrf.mxu3  ;;  %12954 = vmatpush.msk.msrb.mxu0 %vm375_vm1, %v3290_v0  ;;  %v3292_v49 = vsel %vm3264_vm4, %v3251_v13, %v3253_v34  ;;  %v4241_v0 = vld.sshfl [vmem:[#allocation1 + $0x8] sm:$0xff pattern:$0x75316420]  ;;  %4303 = vrot.lane.b32.xlu1 %v4242_v20, %s13722_s5 }
 0x265   : > { %v15184_v51 = vpop.f32.mrf.mxu2  ;;  %v15186_v12 = vadd.f32 %v2721_v62, %v1733_v33  ;;  %v1736_v33 = vadd.f32 %v14793_v25, %v14404_v60  ;;  %v3255_v62 = vpop.permute.xlu1 %3254  ;;  %4301 = vrot.lane.b32.xlu0 %v4241_v0, %s13722_s5  ;;  %v3291_v60 = vsel %vm3264_vm4, %v3249_v10, %v3251_v13 }
 0x266   : > { %v15190_v26 = vpop.f32.mrf.mxu1  ;;  %v3293_v25 = vsel %vm3264_vm4, %v3253_v34, %v3255_v62 }
 0x267   : > { %20445 = vst [vmem:[#allocation133_spill] sm:$0xff] %v15186_v12  ;;  %v15192_v57 = vpop.f32.mrf.mxu0 }
 0x268   : > { %20446 = vst [vmem:[#allocation134_spill] sm:$0xff] %v15190_v26  ;;  %v4233_v26 = vld.sshfl [vmem:[#allocation1 + $0x28] sm:$0xff pattern:$0x75316420] }
 0x269   : > { %20447 = vst [vmem:[#allocation135_spill] sm:$0xff] %v15192_v57  ;;  %12923 = vmatmul.msk.f32.gmra.mxu1 %vm370_vm2, %v14883_v50  ;;  %12929 = vmatmul.msk.f32.gmra.mxu3 %vm370_vm2, %v14883_v50  ;;  %v3257_v57 = vpop.permute.xlu2 %3256 }
 0x26a   : > { %12932 = vmatmul.msk.f32.gmra.mxu0 %vm370_vm2, %v14883_v50  ;;  %12937 = vmatmul.msk.f32.vlgmr.msrb.gmra.mxu2 %vm370_vm2, %v14860_v16  ;;  %4238 = vst [vmem:[#allocation1 + $0x20] ss:$2 sm:$0xff] %v13861_v40 }
 0x26b   : > { %12960 = vmatpush.msk.msrb.mxu2 %vm375_vm1, %v3292_v49  ;;  %4293 = vrot.lane.b32.xlu2 %v4233_v26, %s13722_s5  ;;  %v3294_v49 = vsel %vm3264_vm4, %v3255_v62, %v3257_v57  ;;  %v1825_v26 = vadd.f32 %v14813_v37, %v14430_v1  ;;  %v3259_v0 = vpop.permute.xlu0 %3258 }
 0x26c   : > { %v2724_v42 = vpop.f32.mrf.mxu3 }
 0x26d   : > { %v15210_v12 = vadd.f32 %v2724_v42, %v1736_v33  ;;  %v15212_v48 = vpop.f32.mrf.mxu2  ;;  %v3261_v33 = vpop.permute.xlu1 %3260 }
 0x26e   : > { %v15215_v19 = vpop.f32.mrf.mxu1  ;;  %v3296_v37 = vsel %vm3264_vm4, %v3259_v0, %v3261_v33 }
 0x26f   : > { %20448 = vst [vmem:[#allocation136_spill] sm:$0xff] %v15210_v12  ;;  %v15217_v30 = vpop.f32.mrf.mxu0 }
 0x270   : > { %20449 = vst [vmem:[#allocation137_spill] sm:$0xff] %v15215_v19 }
 0x271   : > { %20450 = vst [vmem:[#allocation138_spill] sm:$0xff] %v15217_v30  ;;  %12934 = vmatmul.msk.f32.vlgmr.msra.gmra.mxu1 %vm370_vm2, %v14860_v16  ;;  %12940 = vmatmul.msk.f32.vlgmr.msrb.gmra.mxu3 %vm370_vm2, %v14860_v16  ;;  %v4245_v42 = vld.sshfl [vmem:[#allocation1 + $0x28] sm:$0xff pattern:$0x75316420]  ;;  %v3263_v1 = vpop.permute.xlu2 %3262 }
 0x272   : > { %12938 = vmatmul.msk.f32.gmra.mxu2 %vm370_vm2, %v14883_v50  ;;  %12943 = vmatmul.msk.f32.vlgmr.msra.gmra.mxu0 %vm370_vm2, %v14860_v16  ;;  %v4244_v62 = vld.sshfl [vmem:[#allocation1 + $0x20] sm:$0xff pattern:$0x75316420] }
 0x273   : > { %12957 = vmatpush.msk.msra.mxu1 %vm375_vm1, %v3291_v60  ;;  %12963 = vmatpush.msk.msrb.mxu3 %vm375_vm1, %v3293_v25  ;;  %5256 = vst [vmem:[#allocation1 + $0x20] ss:$2 sm:$0xff] %v13787_v4  ;;  %v1828_v60 = vadd.f32 %v14837_v11, %v14462_v61  ;;  %v3295_v11 = vsel %vm3264_vm4, %v3257_v57, %v3259_v0 }
 0x274   : > { %v2813_v10 = vpop.f32.mrf.mxu3  ;;  %12966 = vmatpush.msk.msra.mxu0 %vm375_vm1, %v3294_v49  ;;  %4309 = vrot.lane.b32.xlu1 %v4245_v42, %s13722_s5  ;;  %v4240_v49 = vld.sshfl [vmem:[#allocation1] sm:$0xff pattern:$0x75316420]  ;;  %v1917_v57 = vadd.f32 %v14862_v39, %v14485_v41 }
 0x275   : > { %v15237_v13 = vpop.f32.mrf.mxu2  ;;  %v15239_v34 = vadd.f32 %v2813_v10, %v1825_v26  ;;  %4307 = vrot.lane.b32.xlu0 %v4244_v62, %s13722_s5  ;;  %4299 = vrot.lane.b32.xlu2 %v4240_v49, %s13722_s5  ;;  %4248 = vst [vmem:[#allocation1] ss:$2 sm:$0xff] %v13875_v47 }
 0x276   : > { %v15241_v20 = vpop.f32.mrf.mxu1 }
 0x277   : > { %20451 = vst [vmem:[#allocation139_spill] sm:$0xff] %v15239_v34  ;;  %v15243_v12 = vpop.f32.mrf.mxu0 }
 0x278   : > { %20452 = vst [vmem:[#allocation140_spill] sm:$0xff] %v15241_v20 }
 0x279   : > { %20453 = vst [vmem:[#allocation141_spill] sm:$0xff] %v15243_v12  ;;  %12935 = vmatmul.msk.f32.gmra.mxu1 %vm370_vm2, %v14883_v50  ;;  %12941 = vmatmul.msk.f32.gmra.mxu3 %vm370_vm2, %v14883_v50  ;;  %v15270_v61 = vpop.permute.xlu2 %4193 }
 0x27a   : > { %12944 = vmatmul.msk.f32.gmra.mxu0 %vm370_vm2, %v14883_v50  ;;  %12949 = vmatmul.msk.f32.vlgmr.msra.gmra.mxu2 %vm370_vm2, %v14860_v16 }
 0x27b   : > { %12972 = vmatpush.msk.msra.mxu2 %vm375_vm1, %v3296_v37  ;;  %v3297_v37 = vsel %vm3264_vm4, %v3261_v33, %v3263_v1 }
 0x27c   : > { %v2816_v25 = vpop.f32.mrf.mxu3  ;;  %v4249_v33 = vld.sshfl [vmem:[#allocation1] sm:$0xff pattern:$0x75316420]  ;;  %v15288_v1 = vld.sshfl [vmem:[#allocation1 + $0x8] sm:$0xff pattern:$0x75316420] }
 0x27d   : > { %v15260_v26 = vadd.f32 %v2816_v25, %v1828_v60  ;;  %v15262_v10 = vpop.f32.mrf.mxu2  ;;  %v4252_v42 = vpop.permute.xlu0 %4251  ;;  %v4247_v25 = vld.sshfl [vmem:[#allocation1 + $0x38] sm:$0xff pattern:$0x75316420]  ;;  %4315 = vrot.lane.b32.xlu1 %v4249_v33, %s13722_s5  ;;  %5252 = vst [vmem:[#allocation1] ss:$2 sm:$0xff] %v13780_v2  ;;  %4305 = vrot.lane.b32.xlu2 %v15203_v56, %s13722_s5 }
 0x27e   : > { %v15266_v62 = vpop.f32.mrf.mxu1  ;;  %v4254_v34 = vpop.permute.xlu1 %4253  ;;  %4313 = vrot.lane.b32.xlu0 %v4247_v25, %s13722_s5  ;;  %v5261_v56 = vld.sshfl [vmem:[#allocation1 + $0x10] sm:$0xff pattern:$0x75316420] }
 0x27f   : > { %20454 = vst [vmem:[#allocation142_spill] sm:$0xff] %v15260_v26  ;;  %v15268_v12 = vpop.f32.mrf.mxu0  ;;  %v4320_v60 = vsel %vm4319_vm5, %v4252_v42, %v4254_v34 }
 0x280   : > { %20455 = vst [vmem:[#allocation143_spill] sm:$0xff] %v15266_v62 }
 0x281   : > { %20456 = vst [vmem:[#allocation144_spill] sm:$0xff] %v15268_v12  ;;  %12946 = vmatmul.msk.f32.vlgmr.msrb.gmra.mxu1 %vm370_vm2, %v14860_v16  ;;  %12952 = vmatmul.msk.f32.vlgmr.msra.gmra.mxu3 %vm370_vm2, %v14860_v16 }
 0x282   : > { %12950 = vmatmul.msk.f32.gmra.mxu2 %vm370_vm2, %v14883_v50  ;;  %12955 = vmatmul.msk.f32.vlgmr.msrb.gmra.mxu0 %vm370_vm2, %v14860_v16 }
 0x283   : > { %12969 = vmatpush.msk.msrb.mxu1 %vm375_vm1, %v3295_v11  ;;  %12975 = vmatpush.msk.msra.mxu3 %vm375_vm1, %v3297_v37 }
 0x284   : > { %v2905_v0 = vpop.f32.mrf.mxu3  ;;  %12978 = vmatpush.msk.msrb.mxu0 %vm375_vm1, %v4320_v60  ;;  %v4258_v60 = vpop.permute.xlu2 %4257  ;;  %v5259_v62 = vld.sshfl [vmem:[#allocation1] sm:$0xff pattern:$0x75316420] }
 0x285   : > { %v15291_v49 = vpop.f32.mrf.mxu2  ;;  %v15293_v42 = vadd.f32 %v2905_v0, %v1917_v57  ;;  %v20460_v57 = vld [vmem:[#allocation103_spill] sm:$0xff]  ;;  %5310 = vrot.lane.b32.xlu1 %v5261_v56, %s13724_s7 }
 0x286   : > { %v15299_v41 = vpop.f32.mrf.mxu1  ;;  %v4256_v39 = vpop.permute.xlu1 %4255  ;;  %v1920_v0 = vadd.f32 %v20460_v57, %v14516_v45  ;;  %v20464_v57 = vld [vmem:[#allocation57_spill] sm:$0xff] }
 0x287   : > { %20457 = vst [vmem:[#allocation145_spill] sm:$0xff] %v15293_v42  ;;  %v15301_v11 = vpop.f32.mrf.mxu0  ;;  %v15303_v37 = vpop.permute.xlu0 %4195  ;;  %v4322_v25 = vsel %vm4319_vm5, %v4256_v39, %v4258_v60  ;;  %v4321_v45 = vsel %vm4319_vm5, %v4254_v34, %v4256_v39  ;;  %v2009_v34 = vadd.f32 %v14912_v52, %v20464_v57 }
 0x288   : > { %20458 = vst [vmem:[#allocation146_spill] sm:$0xff] %v15299_v41  ;;  %v5260_v41 = vld.sshfl [vmem:[#allocation1 + $0x8] sm:$0xff pattern:$0x75316420] }
 0x289   : > { %20459 = vst [vmem:[#allocation147_spill] sm:$0xff] %v15301_v11  ;;  %12947 = vmatmul.msk.f32.gmra.mxu1 %vm370_vm2, %v14883_v50  ;;  %12953 = vmatmul.msk.f32.gmra.mxu3 %vm370_vm2, %v14883_v50 }
 0x28a   : > { %12956 = vmatmul.msk.f32.gmra.mxu0 %vm370_vm2, %v14883_v50  ;;  %12961 = vmatmul.msk.f32.vlgmr.msrb.gmra.mxu2 %vm370_vm2, %v14860_v16  ;;  %5267 = vst [vmem:[#allocation1] ss:$2 sm:$0xff] %v13797_v7 }
 0x28b   : > { %12984 = vmatpush.msk.msrb.mxu2 %vm375_vm1, %v4322_v25  ;;  %5308 = vrot.lane.b32.xlu0 %v5260_v41, %s13724_s7  ;;  %v4246_v41 = vld.sshfl [vmem:[#allocation1 + $0x30] sm:$0xff pattern:$0x75316420] }
 0x28c   : > { %v2908_v33 = vpop.f32.mrf.mxu3  ;;  %5258 = vst [vmem:[#allocation1 + $0x30] ss:$2 sm:$0xff] %v13790_v5  ;;  %4311 = vrot.lane.b32.xlu2 %v4246_v41, %s13722_s5  ;;  %v4264_v52 = vpop.permute.xlu2 %4263  ;;  %v20468_v41 = vld [vmem:[#allocation61_spill] sm:$0xff] }
 0x28d   : > { %v15317_v42 = vadd.f32 %v2908_v33, %v1920_v0  ;;  %v15319_v26 = vpop.f32.mrf.mxu2  ;;  %5306 = vrot.lane.b32.xlu1 %v5259_v62, %s13724_s7  ;;  %v5264_v62 = vld.sshfl [vmem:[#allocation1 + $0x28] sm:$0xff pattern:$0x75316420]  ;;  %v2012_v57 = vadd.f32 %v14937_v44, %v20468_v41  ;;  %v20472_v41 = vld [vmem:[#allocation12_spill] sm:$0xff] }
 0x28e   : > { %v15322_v11 = vpop.f32.mrf.mxu1  ;;  %v4262_v12 = vpop.permute.xlu1 %4261  ;;  %v15387_v44 = vld [vmem:[%s20292_s1 + $0x8] sm:$0xff] }
 0x28f   : > { %20461 = vst [vmem:[#allocation103_spill] sm:$0xff] %v15317_v42  ;;  %v15324_v30 = vpop.f32.mrf.mxu0  ;;  %v4260_v20 = vpop.permute.xlu0 %4259 }
 0x290   : > { %20462 = vst [vmem:[#allocation148_spill] sm:$0xff] %v15322_v11  ;;  %v4323_v25 = vsel %vm4319_vm5, %v4258_v60, %v4260_v20  ;;  %v4324_v56 = vsel %vm4319_vm5, %v4260_v20, %v4262_v12 }
 0x291   : > { %20463 = vst [vmem:[#allocation149_spill] sm:$0xff] %v15324_v30  ;;  %12958 = vmatmul.msk.f32.vlgmr.msra.gmra.mxu1 %vm370_vm2, %v14860_v16  ;;  %12964 = vmatmul.msk.f32.vlgmr.msrb.gmra.mxu3 %vm370_vm2, %v14860_v16 }
 0x292   : > { %12962 = vmatmul.msk.f32.gmra.mxu2 %vm370_vm2, %v14883_v50  ;;  %12967 = vmatmul.msk.f32.vlgmr.msra.gmra.mxu0 %vm370_vm2, %v14860_v16 }
 0x293   : > { %12981 = vmatpush.msk.msra.mxu1 %vm375_vm1, %v4321_v45  ;;  %12987 = vmatpush.msk.msrb.mxu3 %vm375_vm1, %v4323_v25  ;;  %v15358_v25 = vld [vmem:[%s20292_s1] sm:$0xff] }
 0x294   : > { %v2997_v39 = vpop.f32.mrf.mxu3  ;;  %12990 = vmatpush.msk.msra.mxu0 %vm375_vm1, %v4324_v56  ;;  %5248 = vrot.lane.b32.xlu0 %v15358_v25, %s13725_s10  ;;  %v4270_v30 = vpop.permute.xlu2 %4269 }
 0x295   : > { %v15346_v20 = vpop.f32.mrf.mxu2  ;;  %v15348_v60 = vadd.f32 %v2997_v39, %v2009_v34  ;;  %4317 = vrot.lane.b32.xlu2 %v15288_v1, %s13722_s5  ;;  %5316 = vrot.lane.b32.xlu1 %v5264_v62, %s13724_s7  ;;  %v4325_v1 = vsel %vm4319_vm5, %v4262_v12, %v4264_v52  ;;  %v5262_v12 = vld.sshfl [vmem:[#allocation1 + $0x18] sm:$0xff pattern:$0x75316420] }
 0x296   : > { %v15351_v0 = vpop.f32.mrf.mxu1  ;;  %v4268_v42 = vpop.permute.xlu1 %4267  ;;  %5268 = vst [vmem:[#allocation1 + $0x10] ss:$2 sm:$0xff] %v13801_v9 }
 0x297   : > { %20465 = vst [vmem:[#allocation57_spill] sm:$0xff] %v15348_v60  ;;  %v15353_v33 = vpop.f32.mrf.mxu0  ;;  %v4266_v45 = vpop.permute.xlu0 %4265  ;;  %v4328_v62 = vsel %vm4319_vm5, %v4268_v42, %v4270_v30 }
 0x298   : > { %20466 = vst [vmem:[#allocation150_spill] sm:$0xff] %v15351_v0  ;;  %v4326_v56 = vsel %vm4319_vm5, %v4264_v52, %v4266_v45 }
 0x299   : > { %20467 = vst [vmem:[#allocation151_spill] sm:$0xff] %v15353_v33  ;;  %12959 = vmatmul.msk.f32.gmra.mxu1 %vm370_vm2, %v14883_v50  ;;  %12965 = vmatmul.msk.f32.gmra.mxu3 %vm370_vm2, %v14883_v50 }
 0x29a   : > { %12968 = vmatmul.msk.f32.gmra.mxu0 %vm370_vm2, %v14883_v50  ;;  %12973 = vmatmul.msk.f32.vlgmr.msra.gmra.mxu2 %vm370_vm2, %v14860_v16 }
 0x29b   : > { %12996 = vmatpush.msk.msra.mxu2 %vm375_vm1, %v4326_v56  ;;  %v4327_v56 = vsel %vm4319_vm5, %v4266_v45, %v4268_v42 }
 0x29c   : > { %v3000_v34 = vpop.f32.mrf.mxu3  ;;  %5250 = vrot.lane.b32.xlu0 %v15387_v44, %s13725_s10 }
 0x29d   : > { %v15375_v39 = vadd.f32 %v3000_v34, %v2012_v57  ;;  %v15377_v60 = vpop.f32.mrf.mxu2  ;;  %v20473_v57 = vld [vmem:[#allocation64_spill] sm:$0xff]  ;;  %5312 = vrot.lane.b32.xlu2 %v5262_v12, %s13724_s7  ;;  %v20478_v12 = vld [vmem:[#allocation67_spill] sm:$0xff] }
 0x29e   : > { %v15380_v33 = vpop.f32.mrf.mxu1  ;;  %v1342_v34 = vadd.f32 %v20473_v57, %v20472_v41 }
 0x29f   : > { %20469 = vst [vmem:[#allocation61_spill] sm:$0xff] %v15375_v39  ;;  %v15382_v0 = vpop.f32.mrf.mxu0  ;;  %v4272_v57 = vpop.permute.xlu0 %4271  ;;  %v5266_v39 = vld.sshfl [vmem:[#allocation1 + $0x38] sm:$0xff pattern:$0x75316420] }
 0x2a0   : > { %20470 = vst [vmem:[#allocation152_spill] sm:$0xff] %v15380_v33  ;;  %v3072_v52 = vadd.f32 %v14959_v59, %v1342_v34  ;;  %v5271_v59 = vld.sshfl [vmem:[#allocation1] sm:$0xff pattern:$0x75316420] }
 0x2a1   : > { %20471 = vst [vmem:[#allocation153_spill] sm:$0xff] %v15382_v0  ;;  %12970 = vmatmul.msk.f32.vlgmr.msrb.gmra.mxu1 %vm370_vm2, %v14860_v16  ;;  %12976 = vmatmul.msk.f32.vlgmr.msra.gmra.mxu3 %vm370_vm2, %v14860_v16 }
 0x2a2   : > { %12974 = vmatmul.msk.f32.gmra.mxu2 %vm370_vm2, %v14883_v50  ;;  %12979 = vmatmul.msk.f32.vlgmr.msrb.gmra.mxu0 %vm370_vm2, %v15270_v61 }
 0x2a3   : > { %12993 = vmatpush.msk.msrb.mxu1 %vm375_vm1, %v4325_v1  ;;  %12999 = vmatpush.msk.msra.mxu3 %vm375_vm1, %v4327_v56  ;;  %v4274_v1 = vpop.permute.xlu1 %4273 }
 0x2a4   : > { %v3385_v45 = vpop.f32.mrf.mxu3  ;;  %13002 = vmatpush.msk.msrb.mxu0 %vm375_vm1, %v4328_v62  ;;  %5320 = vrot.lane.b32.xlu0 %v5266_v39, %s13724_s7  ;;  %v4330_v56 = vsel %vm4319_vm5, %v4272_v57, %v4274_v1  ;;  %v20477_v62 = vld [vmem:[#allocation13_spill] sm:$0xff] }
 0x2a5   : > { %v15409_v16 = vpop.f32.mrf.mxu2  ;;  %v15411_v42 = vadd.f32 %v3385_v45, %v3072_v52  ;;  %5322 = vrot.lane.b32.xlu1 %v5271_v59, %s13724_s7  ;;  %v1345_v0 = vadd.f32 %v20478_v12, %v20477_v62  ;;  %v5263_v39 = vld.sshfl [vmem:[#allocation1 + $0x20] sm:$0xff pattern:$0x75316420]  ;;  %v4276_v59 = vpop.permute.xlu2 %4275 }
 0x2a6   : > { %v15413_v41 = vpop.f32.mrf.mxu1  ;;  %5269 = vst [vmem:[#allocation1 + $0x20] ss:$2 sm:$0xff] %v13808_v14  ;;  %5314 = vrot.lane.b32.xlu2 %v5263_v39, %s13724_s7 }
 0x2a7   : > { %20474 = vst [vmem:[#allocation12_spill] sm:$0xff] %v15411_v42  ;;  %v15415_v34 = vpop.f32.mrf.mxu0  ;;  %v3105_v52 = vadd.f32 %v14983_v35, %v1345_v0  ;;  %v4278_v42 = vpop.permute.xlu0 %4277  ;;  %v4331_v35 = vsel %vm4319_vm5, %v4274_v1, %v4276_v59  ;;  %v20481_v0 = vld [vmem:[#allocation15_spill] sm:$0xff] }
 0x2a8   : > { %20475 = vst [vmem:[#allocation64_spill] sm:$0xff] %v15413_v41  ;;  %v4329_v41 = vsel %vm4319_vm5, %v4270_v30, %v4272_v57  ;;  %v4332_v39 = vsel %vm4319_vm5, %v4276_v59, %v4278_v42  ;;  %v5273_v30 = vld.sshfl [vmem:[#allocation1 + $0x10] sm:$0xff pattern:$0x75316420] }
 0x2a9   : > { %20476 = vst [vmem:[#allocation154_spill] sm:$0xff] %v15415_v34  ;;  %12971 = vmatmul.msk.f32.gmra.mxu1 %vm370_vm2, %v14883_v50  ;;  %12977 = vmatmul.msk.f32.gmra.mxu3 %vm370_vm2, %v14883_v50 }
 0x2aa   : > { %12980 = vmatmul.msk.f32.gmra.mxu0 %vm370_vm2, %v15303_v37  ;;  %12985 = vmatmul.msk.f32.vlgmr.msrb.gmra.mxu2 %vm370_vm2, %v15270_v61 }
 0x2ab   : > { %13008 = vmatpush.msk.msrb.mxu2 %vm375_vm1, %v4330_v56  ;;  %v20482_v56 = vld [vmem:[#allocation70_spill] sm:$0xff]  ;;  %v4280_v59 = vpop.permute.xlu1 %4279 }
 0x2ac   : > { %v3388_v45 = vpop.f32.mrf.mxu3  ;;  %v1434_v33 = vadd.f32 %v20482_v56, %v20481_v0  ;;  %5326 = vrot.lane.b32.xlu0 %v5273_v30, %s13724_s7 }
 0x2ad   : > { %v15434_v62 = vadd.f32 %v3388_v45, %v3105_v52  ;;  %v15436_v50 = vpop.f32.mrf.mxu2  ;;  %v4282_v56 = vpop.permute.xlu2 %4281  ;;  %v5275_v6 = vld.sshfl [vmem:[#allocation1 + $0x20] sm:$0xff pattern:$0x75316420] }
 0x2ae   : > { %v15438_v12 = vpop.f32.mrf.mxu1  ;;  %v3076_v57 = vadd.f32 %v15009_v21, %v1434_v33  ;;  %v4334_v21 = vsel %vm4319_vm5, %v4280_v59, %v4282_v56  ;;  %v20485_v33 = vld [vmem:[#allocation18_spill] sm:$0xff] }
 0x2af   : > { %20479 = vst [vmem:[#allocation13_spill] sm:$0xff] %v15434_v62  ;;  %v15440_v34 = vpop.f32.mrf.mxu0  ;;  %v5274_v62 = vld.sshfl [vmem:[#allocation1 + $0x18] sm:$0xff pattern:$0x75316420] }
 0x2b0   : > { %20480 = vst [vmem:[#allocation67_spill] sm:$0xff] %v15440_v34  ;;  %5328 = vrot.lane.b32.xlu1 %v5274_v62, %s13724_s7  ;;  %v5265_v62 = vld.sshfl [vmem:[#allocation1 + $0x30] sm:$0xff pattern:$0x75316420] }
 0x2b1   : > { %12982 = vmatmul.msk.f32.vlgmr.msra.gmra.mxu1 %vm370_vm2, %v15270_v61  ;;  %12988 = vmatmul.msk.f32.vlgmr.msrb.gmra.mxu3 %vm370_vm2, %v15270_v61  ;;  %5280 = vst [vmem:[#allocation1 + $0x10] ss:$2 sm:$0xff] %v13825_v23 }
 0x2b2   : > { %12986 = vmatmul.msk.f32.gmra.mxu2 %vm370_vm2, %v15303_v37  ;;  %12991 = vmatmul.msk.f32.vlgmr.msra.gmra.mxu0 %vm370_vm2, %v15270_v61  ;;  %5270 = vst [vmem:[#allocation1 + $0x30] ss:$2 sm:$0xff] %v13813_v17 }
 0x2b3   : > { %13005 = vmatpush.msk.msra.mxu1 %vm375_vm1, %v4329_v41  ;;  %13011 = vmatpush.msk.msrb.mxu3 %vm375_vm1, %v4331_v35  ;;  %v20486_v41 = vld [vmem:[#allocation73_spill] sm:$0xff] }
 0x2b4   : > { %v3477_v1 = vpop.f32.mrf.mxu3  ;;  %13014 = vmatpush.msk.msra.mxu0 %vm375_vm1, %v4332_v39  ;;  %v1437_v35 = vadd.f32 %v20486_v41, %v20485_v33  ;;  %v5276_v39 = vld.sshfl [vmem:[#allocation1 + $0x28] sm:$0xff pattern:$0x75316420]  ;;  %5318 = vrot.lane.b32.xlu2 %v5265_v62, %s13724_s7  ;;  %v20490_v62 = vld [vmem:[#allocation76_spill] sm:$0xff] }
 0x2b5   : > { %v15460_v52 = vpop.f32.mrf.mxu2  ;;  %v15462_v45 = vadd.f32 %v3477_v1, %v3076_v57  ;;  %v4284_v1 = vpop.permute.xlu0 %4283  ;;  %5332 = vrot.lane.b32.xlu0 %v5276_v39, %s13724_s7  ;;  %5281 = vst [vmem:[#allocation1 + $0x20] ss:$2 sm:$0xff] %v13831_v27 }
 0x2b6   : > { %v15464_v0 = vpop.f32.mrf.mxu1  ;;  %v3109_v30 = vadd.f32 %v15034_v63, %v1437_v35  ;;  %v4333_v63 = vsel %vm4319_vm5, %v4278_v42, %v4280_v59  ;;  %v20489_v35 = vld [vmem:[#allocation21_spill] sm:$0xff]  ;;  %v5272_v42 = vld.sshfl [vmem:[#allocation1 + $0x8] sm:$0xff pattern:$0x75316420] }
 0x2b7   : > { %20483 = vst [vmem:[#allocation15_spill] sm:$0xff] %v15462_v45  ;;  %v15466_v34 = vpop.f32.mrf.mxu0  ;;  %v1526_v19 = vadd.f32 %v20490_v62, %v20489_v35  ;;  %v4288_v35 = vpop.permute.xlu2 %4287 }
 0x2b8   : > { %20484 = vst [vmem:[#allocation70_spill] sm:$0xff] %v15466_v34  ;;  %v4286_v34 = vpop.permute.xlu1 %4285 }
 0x2b9   : > { %12983 = vmatmul.msk.f32.gmra.mxu1 %vm370_vm2, %v15303_v37  ;;  %12989 = vmatmul.msk.f32.gmra.mxu3 %vm370_vm2, %v15303_v37  ;;  %v4336_v39 = vsel %vm4319_vm5, %v4284_v1, %v4286_v34  ;;  %v5277_v59 = vld.sshfl [vmem:[#allocation1 + $0x30] sm:$0xff pattern:$0x75316420]  ;;  %5279 = vst [vmem:[#allocation1] ss:$2 sm:$0xff] %v13816_v18 }
 0x2ba   : > { %12992 = vmatmul.msk.f32.gmra.mxu0 %vm370_vm2, %v15303_v37  ;;  %12997 = vmatmul.msk.f32.vlgmr.msra.gmra.mxu2 %vm370_vm2, %v15270_v61 }
 0x2bb   : > { %13020 = vmatpush.msk.msra.mxu2 %vm375_vm1, %v4334_v21  ;;  %v4335_v21 = vsel %vm4319_vm5, %v4282_v56, %v4284_v1  ;;  %v3080_v56 = vadd.f32 %v15059_v55, %v1526_v19  ;;  %5334 = vrot.lane.b32.xlu1 %v5277_v59, %s13724_s7 }
 0x2bc   : > { %v3480_v57 = vpop.f32.mrf.mxu3  ;;  %5324 = vrot.lane.b32.xlu2 %v5272_v42, %s13724_s7 }
 0x2bd   : > { %v15486_v33 = vadd.f32 %v3480_v57, %v3109_v30  ;;  %v15488_v41 = vpop.f32.mrf.mxu2 }
 0x2be   : > { %v15490_v45 = vpop.f32.mrf.mxu1 }
 0x2bf   : > { %20487 = vst [vmem:[#allocation18_spill] sm:$0xff] %v15486_v33  ;;  %v15492_v11 = vpop.f32.mrf.mxu0  ;;  %v20494_v33 = vld [vmem:[#allocation79_spill] sm:$0xff] }
 0x2c0   : > { %20488 = vst [vmem:[#allocation73_spill] sm:$0xff] %v15492_v11  ;;  %v4290_v55 = vpop.permute.xlu0 %4289  ;;  %v5284_v42 = vld.sshfl [vmem:[#allocation1 + $0x8] sm:$0xff pattern:$0x75316420] }
 0x2c1   : > { %12994 = vmatmul.msk.f32.vlgmr.msrb.gmra.mxu1 %vm370_vm2, %v15270_v61  ;;  %13000 = vmatmul.msk.f32.vlgmr.msra.gmra.mxu3 %vm370_vm2, %v15270_v61 }
 0x2c2   : > { %12998 = vmatmul.msk.f32.gmra.mxu2 %vm370_vm2, %v15303_v37  ;;  %13003 = vmatmul.msk.f32.vlgmr.msrb.gmra.mxu0 %vm370_vm2, %v15270_v61 }
 0x2c3   : > { %13017 = vmatpush.msk.msrb.mxu1 %vm375_vm1, %v4333_v63  ;;  %13023 = vmatpush.msk.msra.mxu3 %vm375_vm1, %v4335_v21  ;;  %v4338_v63 = vsel %vm4319_vm5, %v4288_v35, %v4290_v55  ;;  %v20493_v21 = vld [vmem:[#allocation24_spill] sm:$0xff] }
 0x2c4   : > { %v3569_v30 = vpop.f32.mrf.mxu3  ;;  %13026 = vmatpush.msk.msrb.mxu0 %vm375_vm1, %v4336_v39  ;;  %v1529_v11 = vadd.f32 %v20494_v33, %v20493_v21  ;;  %v5283_v39 = vld.sshfl [vmem:[#allocation1] sm:$0xff pattern:$0x75316420]  ;;  %5340 = vrot.lane.b32.xlu1 %v5284_v42, %s13724_s7 }
 0x2c5   : > { %v15513_v57 = vpop.f32.mrf.mxu2  ;;  %v15515_v1 = vadd.f32 %v3569_v30, %v3080_v56  ;;  %5338 = vrot.lane.b32.xlu0 %v5283_v39, %s13724_s7  ;;  %5291 = vst [vmem:[#allocation1] ss:$2 sm:$0xff] %v13843_v31  ;;  %5330 = vrot.lane.b32.xlu2 %v5275_v6, %s13724_s7  ;;  %v20498_v39 = vld [vmem:[#allocation82_spill] sm:$0xff]  ;;  %v20507_v31 = vld [vmem:[#allocation88_spill] sm:$0xff] }
 0x2c6   : > { %v15518_v62 = vpop.f32.mrf.mxu1  ;;  %v3113_v59 = vadd.f32 %v15084_v15, %v1529_v11  ;;  %v4292_v21 = vpop.permute.xlu1 %4291  ;;  %v4337_v15 = vsel %vm4319_vm5, %v4286_v34, %v4288_v35 }
 0x2c7   : > { %20491 = vst [vmem:[#allocation21_spill] sm:$0xff] %v15515_v1  ;;  %v15520_v19 = vpop.f32.mrf.mxu0  ;;  %v4339_v11 = vsel %vm4319_vm5, %v4290_v55, %v4292_v21 }
 0x2c8   : > { %20492 = vst [vmem:[#allocation76_spill] sm:$0xff] %v15520_v19  ;;  %v4294_v19 = vpop.permute.xlu2 %4293 }
 0x2c9   : > { %12995 = vmatmul.msk.f32.gmra.mxu1 %vm370_vm2, %v15303_v37  ;;  %13001 = vmatmul.msk.f32.gmra.mxu3 %vm370_vm2, %v15303_v37  ;;  %v4340_v42 = vsel %vm4319_vm5, %v4292_v21, %v4294_v19 }
 0x2ca   : > { %13004 = vmatmul.msk.f32.gmra.mxu0 %vm370_vm2, %v15303_v37  ;;  %13009 = vmatmul.msk.f32.vlgmr.msrb.gmra.mxu2 %vm370_vm2, %v15270_v61 }
 0x2cb   : > { %13032 = vmatpush.msk.msrb.mxu2 %vm375_vm1, %v4338_v63  ;;  %v20497_v63 = vld [vmem:[#allocation27_spill] sm:$0xff] }
 0x2cc   : > { %v3572_v33 = vpop.f32.mrf.mxu3 }
 0x2cd   : > { %v15537_v56 = vadd.f32 %v3572_v33, %v3113_v59  ;;  %v15539_v30 = vpop.f32.mrf.mxu2  ;;  %v1618_v59 = vadd.f32 %v20498_v39, %v20497_v63  ;;  %v5287_v63 = vld.sshfl [vmem:[#allocation1 + $0x20] sm:$0xff pattern:$0x75316420]  ;;  %v5286_v39 = vld.sshfl [vmem:[#allocation1 + $0x18] sm:$0xff pattern:$0x75316420] }
 0x2ce   : > { %v15542_v1 = vpop.f32.mrf.mxu1  ;;  %v4296_v21 = vpop.permute.xlu0 %4295  ;;  %5346 = vrot.lane.b32.xlu1 %v5287_v63, %s13724_s7  ;;  %5344 = vrot.lane.b32.xlu0 %v5286_v39, %s13724_s7  ;;  %v5278_v63 = vld.sshfl [vmem:[#allocation1 + $0x38] sm:$0xff pattern:$0x75316420] }
 0x2cf   : > { %20495 = vst [vmem:[#allocation24_spill] sm:$0xff] %v15537_v56  ;;  %v15544_v32 = vpop.f32.mrf.mxu0  ;;  %v3084_v6 = vadd.f32 %v15109_v8, %v1618_v59  ;;  %5336 = vrot.lane.b32.xlu2 %v5278_v63, %s13724_s7 }
 0x2d0   : > { %20496 = vst [vmem:[#allocation79_spill] sm:$0xff] %v15544_v32  ;;  %v4298_v32 = vpop.permute.xlu1 %4297 }
 0x2d1   : > { %13006 = vmatmul.msk.f32.vlgmr.msra.gmra.mxu1 %vm370_vm2, %v15270_v61  ;;  %13012 = vmatmul.msk.f32.vlgmr.msrb.gmra.mxu3 %vm370_vm2, %v15270_v61  ;;  %v4342_v8 = vsel %vm4319_vm5, %v4296_v21, %v4298_v32  ;;  %5282 = vst [vmem:[#allocation1 + $0x30] ss:$2 sm:$0xff] %v13837_v29 }
 0x2d2   : > { %13010 = vmatmul.msk.f32.gmra.mxu2 %vm370_vm2, %v15303_v37  ;;  %13015 = vmatmul.msk.f32.vlgmr.msra.gmra.mxu0 %vm370_vm2, %v15270_v61 }
 0x2d3   : > { %13029 = vmatpush.msk.msra.mxu1 %vm375_vm1, %v4337_v15  ;;  %13035 = vmatpush.msk.msrb.mxu3 %vm375_vm1, %v4339_v11  ;;  %v20502_v15 = vld [vmem:[#allocation30_spill] sm:$0xff]  ;;  %v20503_v11 = vld [vmem:[#allocation85_spill] sm:$0xff] }
 0x2d4   : > { %v3661_v34 = vpop.f32.mrf.mxu3  ;;  %13038 = vmatpush.msk.msra.mxu0 %vm375_vm1, %v4340_v42  ;;  %v1621_v59 = vadd.f32 %v20503_v11, %v20502_v15 }
 0x2d5   : > { %v15565_v35 = vpop.f32.mrf.mxu2  ;;  %v15567_v55 = vadd.f32 %v3661_v34, %v3084_v6  ;;  %v4300_v34 = vpop.permute.xlu2 %4299 }
 0x2d6   : > { %20499 = vst [vmem:[#allocation27_spill] sm:$0xff] %v15565_v35  ;;  %v15569_v33 = vpop.f32.mrf.mxu1  ;;  %v3117_v42 = vadd.f32 %v15134_v53, %v1621_v59  ;;  %v4341_v53 = vsel %vm4319_vm5, %v4294_v19, %v4296_v21  ;;  %v20506_v59 = vld [vmem:[#allocation33_spill] sm:$0xff] }
 0x2d7   : > { %20500 = vst [vmem:[#allocation82_spill] sm:$0xff] %v15567_v55  ;;  %v15571_v56 = vpop.f32.mrf.mxu0  ;;  %v4302_v55 = vpop.permute.xlu0 %4301  ;;  %v1710_v35 = vadd.f32 %v20507_v31, %v20506_v59 }
 0x2d8   : > { %20501 = vst [vmem:[#allocation155_spill] sm:$0xff] %v15571_v56 }
 0x2d9   : > { %13007 = vmatmul.msk.f32.gmra.mxu1 %vm370_vm2, %v15303_v37  ;;  %13013 = vmatmul.msk.f32.gmra.mxu3 %vm370_vm2, %v15303_v37  ;;  %v3088_v19 = vadd.f32 %v15159_v28, %v1710_v35 }
 0x2da   : > { %13016 = vmatmul.msk.f32.gmra.mxu0 %vm370_vm2, %v15303_v37  ;;  %13021 = vmatmul.msk.f32.vlgmr.msra.gmra.mxu2 %vm370_vm2, %v15270_v61 }
 0x2db   : > { %13044 = vmatpush.msk.msra.mxu2 %vm375_vm1, %v4342_v8  ;;  %v4343_v8 = vsel %vm4319_vm5, %v4298_v32, %v4300_v34  ;;  %v5289_v32 = vld.sshfl [vmem:[#allocation1 + $0x30] sm:$0xff pattern:$0x75316420] }
 0x2dc   : > { %v3664_v6 = vpop.f32.mrf.mxu3  ;;  %5350 = vrot.lane.b32.xlu0 %v5289_v32, %s13724_s7 }
 0x2dd   : > { %v15588_v39 = vadd.f32 %v3664_v6, %v3117_v42  ;;  %v15590_v15 = vpop.f32.mrf.mxu2  ;;  %v4344_v42 = vsel %vm4319_vm5, %v4300_v34, %v4302_v55  ;;  %v4304_v34 = vpop.permute.xlu1 %4303 }
 0x2de   : > { %v15594_v11 = vpop.f32.mrf.mxu1  ;;  %v4306_v59 = vpop.permute.xlu2 %4305 }
 0x2df   : > { %20504 = vst [vmem:[#allocation30_spill] sm:$0xff] %v15588_v39  ;;  %v15596_v56 = vpop.f32.mrf.mxu0  ;;  %v5290_v39 = vld.sshfl [vmem:[#allocation1 + $0x38] sm:$0xff pattern:$0x75316420]  ;;  %v4346_v35 = vsel %vm4319_vm5, %v4304_v34, %v4306_v59 }
 0x2e0   : > { %20505 = vst [vmem:[#allocation85_spill] sm:$0xff] %v15596_v56  ;;  %5352 = vrot.lane.b32.xlu1 %v5290_v39, %s13724_s7  ;;  %v5285_v39 = vld.sshfl [vmem:[#allocation1 + $0x10] sm:$0xff pattern:$0x75316420] }
 0x2e1   : > { %13018 = vmatmul.msk.f32.vlgmr.msrb.gmra.mxu1 %vm370_vm2, %v15270_v61  ;;  %13024 = vmatmul.msk.f32.vlgmr.msra.gmra.mxu3 %vm370_vm2, %v15270_v61  ;;  %5294 = vst [vmem:[#allocation1 + $0x30] ss:$2 sm:$0xff] %v13870_v46 }
 0x2e2   : > { %13022 = vmatmul.msk.f32.gmra.mxu2 %vm370_vm2, %v15303_v37  ;;  %13027 = vmatmul.msk.f32.vlgmr.msrb.gmra.mxu0 %vm370_vm2, %v15270_v61  ;;  %5292 = vst [vmem:[#allocation1 + $0x10] ss:$2 sm:$0xff] %v13849_v36  ;;  %v20516_v36 = vld [vmem:[#allocation94_spill] sm:$0xff] }
 0x2e3   : > { %13041 = vmatpush.msk.msrb.mxu1 %vm375_vm1, %v4341_v53  ;;  %13047 = vmatpush.msk.msra.mxu3 %vm375_vm1, %v4343_v8  ;;  %v20511_v53 = vld [vmem:[#allocation36_spill] sm:$0xff]  ;;  %v20512_v8 = vld [vmem:[#allocation91_spill] sm:$0xff] }
 0x2e4   : > { %v3753_v31 = vpop.f32.mrf.mxu3  ;;  %13050 = vmatpush.msk.msrb.mxu0 %vm375_vm1, %v4344_v42  ;;  %v1713_v42 = vadd.f32 %v20512_v8, %v20511_v53  ;;  %5342 = vrot.lane.b32.xlu2 %v5285_v39, %s13724_s7  ;;  %v20515_v39 = vld [vmem:[#allocation39_spill] sm:$0xff] }
 0x2e5   : > { %v15615_v21 = vpop.f32.mrf.mxu2  ;;  %v15617_v6 = vadd.f32 %v3753_v31, %v3088_v19  ;;  %v5296_v19 = vld.sshfl [vmem:[#allocation1 + $0x8] sm:$0xff pattern:$0x75316420] }
 0x2e6   : > { %20508 = vst [vmem:[#allocation33_spill] sm:$0xff] %v15615_v21  ;;  %v15620_v63 = vpop.f32.mrf.mxu1  ;;  %v3121_v31 = vadd.f32 %v15184_v51, %v1713_v42  ;;  %5356 = vrot.lane.b32.xlu0 %v5296_v19, %s13724_s7  ;;  %v4310_v56 = vpop.permute.xlu1 %4309  ;;  %v4345_v51 = vsel %vm4319_vm5, %v4302_v55, %v4304_v34  ;;  %v1802_v21 = vadd.f32 %v20516_v36, %v20515_v39  ;;  %v5288_v55 = vld.sshfl [vmem:[#allocation1 + $0x28] sm:$0xff pattern:$0x75316420] }
 0x2e7   : > { %20509 = vst [vmem:[#allocation88_spill] sm:$0xff] %v15617_v6  ;;  %v15622_v28 = vpop.f32.mrf.mxu0  ;;  %v4308_v53 = vpop.permute.xlu0 %4307  ;;  %v20520_v39 = vld [vmem:[#allocation42_spill] sm:$0xff] }
 0x2e8   : > { %20510 = vst [vmem:[#allocation156_spill] sm:$0xff] %v15622_v28  ;;  %v4312_v42 = vpop.permute.xlu2 %4311  ;;  %v4348_v19 = vsel %vm4319_vm5, %v4308_v53, %v4310_v56 }
 0x2e9   : > { %13019 = vmatmul.msk.f32.gmra.mxu1 %vm370_vm2, %v15303_v37  ;;  %13025 = vmatmul.msk.f32.gmra.mxu3 %vm370_vm2, %v15303_v37  ;;  %v5297_v34 = vld.sshfl [vmem:[#allocation1 + $0x10] sm:$0xff pattern:$0x75316420]  ;;  %5293 = vst [vmem:[#allocation1 + $0x20] ss:$2 sm:$0xff] %v13861_v40 }
 0x2ea   : > { %13028 = vmatmul.msk.f32.gmra.mxu0 %vm370_vm2, %v15303_v37  ;;  %13033 = vmatmul.msk.f32.vlgmr.msrb.gmra.mxu2 %vm370_vm2, %v15270_v61  ;;  %v5298_v36 = vld.sshfl [vmem:[#allocation1 + $0x18] sm:$0xff pattern:$0x75316420] }
 0x2eb   : > { %13056 = vmatpush.msk.msrb.mxu2 %vm375_vm1, %v4346_v35  ;;  %v4347_v35 = vsel %vm4319_vm5, %v4306_v59, %v4308_v53  ;;  %v3092_v59 = vadd.f32 %v15212_v48, %v1802_v21  ;;  %6310 = vst [vmem:[#allocation1 + $0x10] ss:$2 sm:$0xff] %v13783_v3  ;;  %5358 = vrot.lane.b32.xlu1 %v5297_v34, %s13724_s7  ;;  %v5295_v3 = vld.sshfl [vmem:[#allocation1] sm:$0xff pattern:$0x75316420] }
 0x2ec   : > { %v3756_v32 = vpop.f32.mrf.mxu3  ;;  %5348 = vrot.lane.b32.xlu2 %v5288_v55, %s13724_s7  ;;  %5303 = vst [vmem:[#allocation1] ss:$2 sm:$0xff] %v13875_v47 }
 0x2ed   : > { %v15641_v8 = vadd.f32 %v3756_v32, %v3121_v31  ;;  %v15643_v6 = vpop.f32.mrf.mxu2 }
 0x2ee   : > { %v15646_v28 = vpop.f32.mrf.mxu1 }
 0x2ef   : > { %20513 = vst [vmem:[#allocation36_spill] sm:$0xff] %v15641_v8  ;;  %v15648_v46 = vpop.f32.mrf.mxu0  ;;  %v20521_v8 = vld [vmem:[#allocation97_spill] sm:$0xff]  ;;  %v4316_v55 = vpop.permute.xlu1 %4315 }
 0x2f0   : > { %20514 = vst [vmem:[#allocation91_spill] sm:$0xff] %v15648_v46  ;;  %v4314_v21 = vpop.permute.xlu0 %4313  ;;  %v5299_v34 = vld.sshfl [vmem:[#allocation1 + $0x20] sm:$0xff pattern:$0x75316420] }
 0x2f1   : > { %13030 = vmatmul.msk.f32.vlgmr.msra.gmra.mxu1 %vm370_vm2, %v15270_v61  ;;  %13036 = vmatmul.msk.f32.vlgmr.msrb.gmra.mxu3 %vm370_vm2, %v15270_v61 }
 0x2f2   : > { %13034 = vmatmul.msk.f32.gmra.mxu2 %vm370_vm2, %v15303_v37  ;;  %13039 = vmatmul.msk.f32.vlgmr.msra.gmra.mxu0 %vm370_vm2, %v15270_v61 }
 0x2f3   : > { %13053 = vmatpush.msk.msra.mxu1 %vm375_vm1, %v4345_v51  ;;  %13059 = vmatpush.msk.msrb.mxu3 %vm375_vm1, %v4347_v35  ;;  %v4350_v35 = vsel %vm4319_vm5, %v4312_v42, %v4314_v21 }
 0x2f4   : > { %v3845_v31 = vpop.f32.mrf.mxu3  ;;  %13062 = vmatpush.msk.msra.mxu0 %vm375_vm1, %v4348_v19  ;;  %v1805_v19 = vadd.f32 %v20521_v8, %v20520_v39  ;;  %5362 = vrot.lane.b32.xlu0 %v5299_v34, %s13724_s7 }
 0x2f5   : > { %v15670_v32 = vpop.f32.mrf.mxu2  ;;  %v15672_v53 = vadd.f32 %v3845_v31, %v3092_v59  ;;  %v4318_v59 = vpop.permute.xlu2 %4317  ;;  %v5300_v31 = vld.sshfl [vmem:[#allocation1 + $0x28] sm:$0xff pattern:$0x75316420]  ;;  %5354 = vrot.lane.b32.xlu2 %v5295_v3, %s13724_s7 }
 0x2f6   : > { %20517 = vst [vmem:[#allocation39_spill] sm:$0xff] %v15670_v32  ;;  %v15675_v48 = vpop.f32.mrf.mxu1  ;;  %5364 = vrot.lane.b32.xlu1 %v5300_v31, %s13724_s7  ;;  %v4352_v31 = vsel %vm4319_vm5, %v4316_v55, %v4318_v59 }
 0x2f7   : > { %20518 = vst [vmem:[#allocation94_spill] sm:$0xff] %v15672_v53  ;;  %v15677_v51 = vpop.f32.mrf.mxu0  ;;  %v3125_v53 = vadd.f32 %v15237_v13, %v1805_v19  ;;  %v4349_v13 = vsel %vm4319_vm5, %v4310_v56, %v4312_v42  ;;  %v20524_v19 = vld [vmem:[#allocation45_spill] sm:$0xff]  ;;  %v5311_v56 = vpop.permute.xlu1 %5310 }
 0x2f8   : > { %20519 = vst [vmem:[#allocation157_spill] sm:$0xff] %v15677_v51 }
 0x2f9   : > { %13031 = vmatmul.msk.f32.gmra.mxu1 %vm370_vm2, %v15303_v37  ;;  %13037 = vmatmul.msk.f32.gmra.mxu3 %vm370_vm2, %v15303_v37  ;;  %6312 = vst [vmem:[#allocation1 + $0x20] ss:$2 sm:$0xff] %v13787_v4 }
 0x2fa   : > { %13040 = vmatmul.msk.f32.gmra.mxu0 %vm370_vm2, %v15303_v37  ;;  %13045 = vmatmul.msk.f32.vlgmr.msra.gmra.mxu2 %vm370_vm2, %v15270_v61 }
 0x2fb   : > { %13068 = vmatpush.msk.msra.mxu2 %vm375_vm1, %v4350_v35  ;;  %v4351_v35 = vsel %vm4319_vm5, %v4314_v21, %v4316_v55 }
 0x2fc   : > { %v3848_v8 = vpop.f32.mrf.mxu3 }
 0x2fd   : > { %v15694_v39 = vadd.f32 %v3848_v8, %v3125_v53  ;;  %v15696_v51 = vpop.f32.mrf.mxu2  ;;  %v20525_v53 = vld [vmem:[#allocation100_spill] sm:$0xff]  ;;  %v5313_v21 = vpop.permute.xlu2 %5312  ;;  %5360 = vrot.lane.b32.xlu2 %v5298_v36, %s13724_s7  ;;  %v5305_v36 = vld.sshfl [vmem:[#allocation1 + $0x8] sm:$0xff pattern:$0x75316420] }
 0x2fe   : > { %v15699_v46 = vpop.f32.mrf.mxu1  ;;  %v1894_v34 = vadd.f32 %v20525_v53, %v20524_v19  ;;  %v5302_v8 = vld.sshfl [vmem:[#allocation1 + $0x38] sm:$0xff pattern:$0x75316420]  ;;  %v5304_v53 = vld.sshfl [vmem:[#allocation1] sm:$0xff pattern:$0x75316420] }
 0x2ff   : > { %20522 = vst [vmem:[#allocation42_spill] sm:$0xff] %v15694_v39  ;;  %v15701_v32 = vpop.f32.mrf.mxu0  ;;  %v5309_v39 = vpop.permute.xlu0 %5308  ;;  %5368 = vrot.lane.b32.xlu0 %v5302_v8, %s13724_s7  ;;  %5370 = vrot.lane.b32.xlu1 %v5304_v53, %s13724_s7  ;;  %v6316_v8 = vld.sshfl [vmem:[#allocation1 + $0x10] sm:$0xff pattern:$0x75316420] }
 0x300   : > { %20523 = vst [vmem:[#allocation97_spill] sm:$0xff] %v15701_v32  ;;  %v3096_v3 = vadd.f32 %v15262_v10, %v1894_v34  ;;  %v20530_v34 = vld [vmem:[#allocation104_spill] sm:$0xff] }
 0x301   : > { %13042 = vmatmul.msk.f32.vlgmr.msrb.gmra.mxu1 %vm370_vm2, %v15270_v61  ;;  %13048 = vmatmul.msk.f32.vlgmr.msra.gmra.mxu3 %vm370_vm2, %v15270_v61  ;;  %6308 = vst [vmem:[#allocation1] ss:$2 sm:$0xff] %v13780_v2  ;;  %v6317_v53 = vld.sshfl [vmem:[#allocation1 + $0x18] sm:$0xff pattern:$0x75316420]  ;;  %v20533_v2 = vld [vmem:[#allocation51_spill] sm:$0xff] }
 0x302   : > { %13046 = vmatmul.msk.f32.gmra.mxu2 %vm370_vm2, %v15303_v37  ;;  %13051 = vmatmul.msk.f32.vlgmr.msrb.gmra.mxu0 %vm370_vm2, %v15270_v61  ;;  %6323 = vst [vmem:[#allocation1 + $0x10] ss:$2 sm:$0xff] %v13801_v9 }
 0x303   : > { %13065 = vmatpush.msk.msrb.mxu1 %vm375_vm1, %v4349_v13  ;;  %13071 = vmatpush.msk.msra.mxu3 %vm375_vm1, %v4351_v35  ;;  %v5376_v13 = vsel %vm5374_vm6, %v5309_v39, %v5311_v56  ;;  %v20529_v35 = vld [vmem:[#allocation48_spill] sm:$0xff] }
 0x304   : > { %v3937_v42 = vpop.f32.mrf.mxu3  ;;  %13074 = vmatpush.msk.msrb.mxu0 %vm375_vm1, %v4352_v31  ;;  %v1897_v31 = vadd.f32 %v20530_v34, %v20529_v35 }
 0x305   : > { %v15723_v55 = vpop.f32.mrf.mxu2  ;;  %v15725_v59 = vadd.f32 %v3937_v42, %v3096_v3  ;;  %v5315_v4 = vpop.permute.xlu2 %5314 }
 0x306   : > { %20526 = vst [vmem:[#allocation45_spill] sm:$0xff] %v15723_v55  ;;  %v15727_v19 = vpop.f32.mrf.mxu1  ;;  %v3129_v42 = vadd.f32 %v15291_v49, %v1897_v31 }
 0x307   : > { %20527 = vst [vmem:[#allocation100_spill] sm:$0xff] %v15725_v59  ;;  %v15729_v10 = vpop.f32.mrf.mxu0  ;;  %v15744_v3 = vpop.permute.xlu0 %5248  ;;  %6365 = vrot.lane.b32.xlu0 %v6316_v8, %s13726_s15  ;;  %6367 = vrot.lane.b32.xlu1 %v6317_v53, %s13726_s15  ;;  %v20534_v8 = vld [vmem:[#allocation107_spill] sm:$0xff] }
 0x308   : > { %20528 = vst [vmem:[#allocation158_spill] sm:$0xff] %v15729_v10  ;;  %v5307_v10 = vpop.permute.xlu1 %5306  ;;  %v1986_v55 = vadd.f32 %v20534_v8, %v20533_v2 }
 0x309   : > { %13043 = vmatmul.msk.f32.gmra.mxu1 %vm370_vm2, %v15303_v37  ;;  %13049 = vmatmul.msk.f32.gmra.mxu3 %vm370_vm2, %v15303_v37  ;;  %v5375_v31 = vsel %vm5374_vm6, %v5307_v10, %v5309_v39 }
 0x30a   : > { %13052 = vmatmul.msk.f32.gmra.mxu0 %vm370_vm2, %v15303_v37  ;;  %13057 = vmatmul.msk.f32.vlgmr.msrb.gmra.mxu2 %vm370_vm2, %v15270_v61 }
 0x30b   : > { %13080 = vmatpush.msk.msrb.mxu2 %vm375_vm1, %v5376_v13  ;;  %v5377_v13 = vsel %vm5374_vm6, %v5311_v56, %v5313_v21  ;;  %v3100_v56 = vadd.f32 %v15319_v26, %v1986_v55 }
 0x30c   : > { %v3940_v35 = vpop.f32.mrf.mxu3 }
 0x30d   : > { %v15751_v34 = vadd.f32 %v3940_v35, %v3129_v42  ;;  %v15753_v59 = vpop.f32.mrf.mxu2  ;;  %v5378_v42 = vsel %vm5374_vm6, %v5313_v21, %v5315_v4  ;;  %v6318_v21 = vld.sshfl [vmem:[#allocation1 + $0x20] sm:$0xff pattern:$0x75316420] }
 0x30e   : > { %v15755_v32 = vpop.f32.mrf.mxu1  ;;  %v5319_v26 = vpop.permute.xlu2 %5318 }
 0x30f   : > { %20531 = vst [vmem:[#allocation48_spill] sm:$0xff] %v15751_v34  ;;  %v15757_v49 = vpop.f32.mrf.mxu0  ;;  %5372 = vrot.lane.b32.xlu0 %v5305_v36, %s13724_s7  ;;  %v15778_v39 = vpop.permute.xlu0 %5250  ;;  %6369 = vrot.lane.b32.xlu1 %v6318_v21, %s13726_s15 }
 0x310   : > { %20532 = vst [vmem:[#allocation104_spill] sm:$0xff] %v15757_v49  ;;  %v5317_v35 = vpop.permute.xlu1 %5316 }
 0x311   : > { %13054 = vmatmul.msk.f32.vlgmr.msra.gmra.mxu1 %vm370_vm2, %v15270_v61  ;;  %13060 = vmatmul.msk.f32.vlgmr.msrb.gmra.mxu3 %vm370_vm2, %v15270_v61 }
 0x312   : > { %13058 = vmatmul.msk.f32.gmra.mxu2 %vm370_vm2, %v15303_v37  ;;  %13063 = vmatmul.msk.f32.vlgmr.msra.gmra.mxu0 %vm370_vm2, %v15270_v61 }
 0x313   : > { %13077 = vmatpush.msk.msra.mxu1 %vm375_vm1, %v5375_v31  ;;  %13083 = vmatpush.msk.msrb.mxu3 %vm375_vm1, %v5377_v13  ;;  %v5380_v13 = vsel %vm5374_vm6, %v5317_v35, %v5319_v26  ;;  %v20538_v31 = vld [vmem:[#allocation54_spill] sm:$0xff] }
 0x314   : > { %v4029_v2 = vpop.f32.mrf.mxu3  ;;  %13086 = vmatpush.msk.msra.mxu0 %vm375_vm1, %v5378_v42  ;;  %v20539_v42 = vld [vmem:[#allocation110_spill] sm:$0xff] }
 0x315   : > { %v15780_v10 = vpop.f32.mrf.mxu2  ;;  %v15782_v53 = vadd.f32 %v4029_v2, %v3100_v56  ;;  %v1989_v36 = vadd.f32 %v20539_v42, %v20538_v31  ;;  %v5301_v56 = vld.sshfl [vmem:[#allocation1 + $0x30] sm:$0xff pattern:$0x75316420]  ;;  %v6319_v2 = vld.sshfl [vmem:[#allocation1 + $0x28] sm:$0xff pattern:$0x75316420] }
 0x316   : > { %20535 = vst [vmem:[#allocation51_spill] sm:$0xff] %v15780_v10  ;;  %v15784_v8 = vpop.f32.mrf.mxu1  ;;  %5366 = vrot.lane.b32.xlu2 %v5301_v56, %s13724_s7  ;;  %v20542_v56 = vld [vmem:[#allocation58_spill] sm:$0xff] }
 0x317   : > { %20536 = vst [vmem:[#allocation107_spill] sm:$0xff] %v15782_v53  ;;  %v15786_v55 = vpop.f32.mrf.mxu0  ;;  %v3133_v21 = vadd.f32 %v15346_v20, %v1989_v36  ;;  %v5321_v42 = vpop.permute.xlu0 %5320  ;;  %6371 = vrot.lane.b32.xlu0 %v6319_v2, %s13726_s15 }
 0x318   : > { %20537 = vst [vmem:[#allocation159_spill] sm:$0xff] %v15786_v55  ;;  %v5323_v49 = vpop.permute.xlu1 %5322  ;;  %v5381_v36 = vsel %vm5374_vm6, %v5319_v26, %v5321_v42  ;;  %v6315_v26 = vld.sshfl [vmem:[#allocation1 + $0x8] sm:$0xff pattern:$0x75316420] }
 0x319   : > { %13055 = vmatmul.msk.f32.gmra.mxu1 %vm370_vm2, %v15303_v37  ;;  %13061 = vmatmul.msk.f32.gmra.mxu3 %vm370_vm2, %v15303_v37  ;;  %6314 = vst [vmem:[#allocation1 + $0x30] ss:$2 sm:$0xff] %v13790_v5  ;;  %v20543_v5 = vld [vmem:[#allocation113_spill] sm:$0xff]  ;;  %v5382_v2 = vsel %vm5374_vm6, %v5321_v42, %v5323_v49  ;;  %v5325_v42 = vpop.permute.xlu2 %5324 }
 0x31a   : > { %13064 = vmatmul.msk.f32.gmra.mxu0 %vm370_vm2, %v15303_v37  ;;  %13069 = vmatmul.msk.f32.vlgmr.msra.gmra.mxu2 %vm370_vm2, %v15270_v61  ;;  %6324 = vst [vmem:[#allocation1 + $0x20] ss:$2 sm:$0xff] %v13808_v14  ;;  %v2078_v10 = vadd.f32 %v20543_v5, %v20542_v56 }
 0x31b   : > { %13092 = vmatpush.msk.msra.mxu2 %vm375_vm1, %v5380_v13  ;;  %v5379_v13 = vsel %vm5374_vm6, %v5315_v4, %v5317_v35  ;;  %6322 = vst [vmem:[#allocation1] ss:$2 sm:$0xff] %v13797_v7 }
 0x31c   : > { %v4032_v31 = vpop.f32.mrf.mxu3  ;;  %v3104_v35 = vadd.f32 %v15377_v60, %v2078_v10 }
 0x31d   : > { %v15806_v53 = vadd.f32 %v4032_v31, %v3133_v21  ;;  %v15808_v34 = vpop.f32.mrf.mxu2 }
 0x31e   : > { %v15810_v55 = vpop.f32.mrf.mxu1  ;;  %6363 = vrot.lane.b32.xlu2 %v6315_v26, %s13726_s15 }
 0x31f   : > { %20540 = vst [vmem:[#allocation54_spill] sm:$0xff] %v15806_v53  ;;  %v15812_v20 = vpop.f32.mrf.mxu0  ;;  %v5327_v60 = vpop.permute.xlu0 %5326 }
 0x320   : > { %20541 = vst [vmem:[#allocation110_spill] sm:$0xff] %v15812_v20  ;;  %v6320_v4 = vld.sshfl [vmem:[#allocation1 + $0x30] sm:$0xff pattern:$0x75316420] }
 0x321   : > { %13066 = vmatmul.msk.f32.vlgmr.msrb.gmra.mxu1 %vm370_vm2, %v15270_v61  ;;  %13072 = vmatmul.msk.f32.vlgmr.msra.gmra.mxu3 %vm370_vm2, %v15270_v61 }
 0x322   : > { %13070 = vmatmul.msk.f32.gmra.mxu2 %vm370_vm2, %v15303_v37  ;;  %13075 = vmatmul.msk.f32.vlgmr.msrb.gmra.mxu0 %vm370_vm2, %v15270_v61 }
 0x323   : > { %13089 = vmatpush.msk.msrb.mxu1 %vm375_vm1, %v5379_v13  ;;  %13095 = vmatpush.msk.msra.mxu3 %vm375_vm1, %v5381_v36  ;;  %v20546_v13 = vld [vmem:[#allocation14_spill] sm:$0xff] }
 0x324   : > { %v4121_v5 = vpop.f32.mrf.mxu3  ;;  %13098 = vmatpush.msk.msrb.mxu0 %vm375_vm1, %v5382_v2  ;;  %6373 = vrot.lane.b32.xlu1 %v6320_v4, %s13726_s15  ;;  %v20547_v36 = vld [vmem:[#allocation66_spill] sm:$0xff]  ;;  %v5384_v2 = vsel %vm5374_vm6, %v5325_v42, %v5327_v60 }
 0x325   : > { %v15832_v21 = vpop.f32.mrf.mxu2  ;;  %v15834_v31 = vadd.f32 %v4121_v5, %v3104_v35  ;;  %v1388_v56 = vadd.f32 %v20547_v36, %v20546_v13  ;;  %v20548_v4 = vld [vmem:[#allocation62_spill] sm:$0xff]  ;;  %v6326_v36 = vld.sshfl [vmem:[#allocation1] sm:$0xff pattern:$0x75316420] }
 0x326   : > { %v15838_v61 = vpop.f32.mrf.mxu1  ;;  %v2081_v53 = vadd.f32 %v14988_v22, %v20548_v4  ;;  %v20549_v35 = vld [vmem:[#allocation114_spill] sm:$0xff]  ;;  %6377 = vrot.lane.b32.xlu0 %v6326_v36, %s13726_s15  ;;  %6303 = vrot.lane.b32.xlu2 %v15358_v25, %s13727_s16 }
 0x327   : > { %20544 = vst [vmem:[#allocation58_spill] sm:$0xff] %v15834_v31  ;;  %v15840_v10 = vpop.f32.mrf.mxu0  ;;  %v3074_v5 = vadd.f32 %v20549_v35, %v1388_v56  ;;  %v6327_v4 = vld.sshfl [vmem:[#allocation1 + $0x8] sm:$0xff pattern:$0x75316420]  ;;  %v5329_v56 = vpop.permute.xlu1 %5328 }
 0x328   : > { %20545 = vst [vmem:[#allocation113_spill] sm:$0xff] %v15840_v10  ;;  %v3137_v26 = vadd.f32 %v15409_v16, %v2081_v53  ;;  %v5331_v53 = vpop.permute.xlu2 %5330 }
 0x329   : > { %13067 = vmatmul.msk.f32.gmra.mxu1 %vm370_vm2, %v15303_v37  ;;  %13073 = vmatmul.msk.f32.gmra.mxu3 %vm370_vm2, %v15303_v37  ;;  %v4129_v22 = vadd.f32 %v15438_v12, %v3074_v5  ;;  %6334 = vst [vmem:[#allocation1] ss:$2 sm:$0xff] %v13816_v18  ;;  %v20551_v12 = vld [vmem:[#allocation16_spill] sm:$0xff]  ;;  %v5386_v25 = vsel %vm5374_vm6, %v5329_v56, %v5331_v53 }
 0x32a   : > { %13076 = vmatmul.msk.f32.gmra.mxu0 %vm370_vm2, %v15303_v37  ;;  %13081 = vmatmul.msk.f32.vlgmr.msrb.gmra.mxu2 %vm370_vm2, %v15744_v3 }
 0x32b   : > { %13104 = vmatpush.msk.msrb.mxu2 %vm375_vm1, %v5384_v2  ;;  %v20552_v2 = vld [vmem:[#allocation65_spill] sm:$0xff] }
 0x32c   : > { %v4124_v13 = vpop.f32.mrf.mxu3  ;;  %6379 = vrot.lane.b32.xlu1 %v6327_v4, %s13726_s15  ;;  %v1411_v35 = vadd.f32 %v20552_v2, %v20551_v12  ;;  %v5383_v4 = vsel %vm5374_vm6, %v5323_v49, %v5325_v42  ;;  %v5333_v2 = vpop.permute.xlu0 %5332 }
 0x32d   : > { %v15859_v31 = vadd.f32 %v4124_v13, %v3137_v26  ;;  %v4486_v10 = vpop.f32.mrf.mxu2  ;;  %v20554_v26 = vld [vmem:[#allocation17_spill] sm:$0xff] }
 0x32e   : > { %v15864_v37 = vadd.f32 %v4486_v10, %v4129_v22  ;;  %v15866_v16 = vpop.f32.mrf.mxu1  ;;  %v20555_v13 = vld [vmem:[#allocation69_spill] sm:$0xff]  ;;  %v3075_v10 = vadd.f32 %v15011_v58, %v1411_v35  ;;  %6305 = vrot.lane.b32.xlu2 %v15387_v44, %s13727_s16  ;;  %v6329_v35 = vld.sshfl [vmem:[#allocation1 + $0x18] sm:$0xff pattern:$0x75316420] }
 0x32f   : > { %20550 = vst [vmem:[#allocation14_spill] sm:$0xff] %v15859_v31  ;;  %v15871_v5 = vpop.f32.mrf.mxu0  ;;  %v1391_v36 = vadd.f32 %v20555_v13, %v20554_v26  ;;  %v5385_v31 = vsel %vm5374_vm6, %v5327_v60, %v5329_v56  ;;  %v20557_v26 = vld [vmem:[#allocation19_spill] sm:$0xff]  ;;  %v20558_v13 = vld [vmem:[#allocation68_spill] sm:$0xff]  ;;  %6383 = vrot.lane.b32.xlu0 %v6329_v35, %s13726_s15  ;;  %v20563_v44 = vld [vmem:[#allocation117_spill] sm:$0xff] }
 0x330   : > { %20553 = vst [vmem:[#allocation66_spill] sm:$0xff] %v15871_v5  ;;  %v4130_v49 = vadd.f32 %v15436_v50, %v3075_v10  ;;  %v6330_v50 = vld.sshfl [vmem:[#allocation1 + $0x20] sm:$0xff pattern:$0x75316420]  ;;  %v20561_v10 = vld [vmem:[#allocation72_spill] sm:$0xff] }
 0x331   : > { %13078 = vmatmul.msk.f32.vlgmr.msra.gmra.mxu1 %vm370_vm2, %v15744_v3  ;;  %13084 = vmatmul.msk.f32.vlgmr.msrb.gmra.mxu3 %vm370_vm2, %v15744_v3  ;;  %v3107_v22 = vadd.f32 %v14990_v43, %v1391_v36 }
 0x332   : > { %13082 = vmatmul.msk.f32.gmra.mxu2 %vm370_vm2, %v15778_v39  ;;  %13087 = vmatmul.msk.f32.vlgmr.msra.gmra.mxu0 %vm370_vm2, %v15744_v3 }
 0x333   : > { %13101 = vmatpush.msk.msra.mxu1 %vm375_vm1, %v5383_v4  ;;  %13107 = vmatpush.msk.msrb.mxu3 %vm375_vm1, %v5385_v31  ;;  %v4162_v58 = vadd.f32 %v15464_v0, %v3107_v22  ;;  %v1414_v31 = vadd.f32 %v20558_v13, %v20557_v26  ;;  %v5335_v0 = vpop.permute.xlu1 %5334  ;;  %v20560_v4 = vld [vmem:[#allocation20_spill] sm:$0xff]  ;;  %v5337_v26 = vpop.permute.xlu2 %5336 }
 0x334   : > { %v4509_v42 = vpop.f32.mrf.mxu3  ;;  %13110 = vmatpush.msk.msra.mxu0 %vm375_vm1, %v5386_v25  ;;  %6385 = vrot.lane.b32.xlu1 %v6330_v50, %s13726_s15  ;;  %v1480_v25 = vadd.f32 %v20561_v10, %v20560_v4  ;;  %v5388_v22 = vsel %vm5374_vm6, %v5333_v2, %v5335_v0  ;;  %v6321_v13 = vld.sshfl [vmem:[#allocation1 + $0x38] sm:$0xff pattern:$0x75316420] }
 0x335   : > { %v4489_v60 = vpop.f32.mrf.mxu2  ;;  %v15893_v56 = vadd.f32 %v4509_v42, %v4130_v49  ;;  %v20562_v49 = vld [vmem:[#allocation119_spill] sm:$0xff]  ;;  %6325 = vst [vmem:[#allocation1 + $0x30] ss:$2 sm:$0xff] %v13813_v17 }
 0x336   : > { %v15895_v43 = vadd.f32 %v4489_v60, %v4162_v58  ;;  %v15897_v12 = vpop.f32.mrf.mxu1  ;;  %v3108_v58 = vadd.f32 %v20562_v49, %v1414_v31  ;;  %v3078_v42 = vadd.f32 %v20563_v44, %v1480_v25  ;;  %6375 = vrot.lane.b32.xlu2 %v6321_v13, %s13726_s15 }
 0x337   : > { %20556 = vst [vmem:[#allocation62_spill] sm:$0xff] %v15893_v56  ;;  %v15902_v36 = vpop.f32.mrf.mxu0  ;;  %v5339_v49 = vpop.permute.xlu0 %5338 }
 0x338   : > { %20559 = vst [vmem:[#allocation114_spill] sm:$0xff] %v15902_v36  ;;  %v4163_v60 = vadd.f32 %v15460_v52, %v3108_v58  ;;  %v4133_v50 = vadd.f32 %v15490_v45, %v3078_v42  ;;  %v20565_v52 = vld [vmem:[#allocation22_spill] sm:$0xff]  ;;  %v20566_v58 = vld [vmem:[#allocation71_spill] sm:$0xff]  ;;  %v5390_v13 = vsel %vm5374_vm6, %v5337_v26, %v5339_v49  ;;  %v20619_v36 = vld [vmem:[#allocation137_spill] sm:$0xff] }
 0x339   : > { %13079 = vmatmul.msk.f32.gmra.mxu1 %vm370_vm2, %v15778_v39  ;;  %13085 = vmatmul.msk.f32.gmra.mxu3 %vm370_vm2, %v15778_v39  ;;  %v20568_v45 = vld [vmem:[#allocation23_spill] sm:$0xff] }
 0x33a   : > { %13088 = vmatmul.msk.f32.gmra.mxu0 %vm370_vm2, %v15778_v39  ;;  %13093 = vmatmul.msk.f32.vlgmr.msra.gmra.mxu2 %vm370_vm2, %v15744_v3  ;;  %v20569_v42 = vld [vmem:[#allocation75_spill] sm:$0xff] }
 0x33b   : > { %13116 = vmatpush.msk.msra.mxu2 %vm375_vm1, %v5388_v22  ;;  %v1503_v22 = vadd.f32 %v20566_v58, %v20565_v52  ;;  %v1483_v56 = vadd.f32 %v20569_v42, %v20568_v45  ;;  %v5341_v58 = vpop.permute.xlu1 %5340 }
 0x33c   : > { %v4512_v35 = vpop.f32.mrf.mxu3  ;;  %v6333_v42 = vld.sshfl [vmem:[#allocation1 + $0x38] sm:$0xff pattern:$0x75316420] }
 0x33d   : > { %v15922_v31 = vadd.f32 %v4512_v35, %v4163_v60  ;;  %v4578_v4 = vpop.f32.mrf.mxu2  ;;  %v5387_v60 = vsel %vm5374_vm6, %v5331_v53, %v5333_v2  ;;  %v5389_v35 = vsel %vm5374_vm6, %v5335_v0, %v5337_v26  ;;  %v6332_v0 = vld.sshfl [vmem:[#allocation1 + $0x30] sm:$0xff pattern:$0x75316420]  ;;  %6391 = vrot.lane.b32.xlu1 %v6333_v42, %s13726_s15 }
 0x33e   : > { %v15925_v10 = vadd.f32 %v4578_v4, %v4133_v50  ;;  %v15927_v25 = vpop.f32.mrf.mxu1  ;;  %v3079_v50 = vadd.f32 %v15062_v38, %v1503_v22  ;;  %v20570_v4 = vld [vmem:[#allocation120_spill] sm:$0xff]  ;;  %6389 = vrot.lane.b32.xlu0 %v6332_v0, %s13726_s15  ;;  %6337 = vst [vmem:[#allocation1 + $0x30] ss:$2 sm:$0xff] %v13837_v29  ;;  %v6328_v0 = vld.sshfl [vmem:[#allocation1 + $0x10] sm:$0xff pattern:$0x75316420] }
 0x33f   : > { %20564 = vst [vmem:[#allocation16_spill] sm:$0xff] %v15922_v31  ;;  %v15932_v44 = vpop.f32.mrf.mxu0  ;;  %v3111_v52 = vadd.f32 %v20570_v4, %v1483_v56  ;;  %v20576_v4 = vld [vmem:[#allocation78_spill] sm:$0xff]  ;;  %6381 = vrot.lane.b32.xlu2 %v6328_v0, %s13726_s15  ;;  %v20582_v31 = vld [vmem:[#allocation81_spill] sm:$0xff] }
 0x340   : > { %20567 = vst [vmem:[#allocation65_spill] sm:$0xff] %v15932_v44  ;;  %v4134_v53 = vadd.f32 %v15488_v41, %v3079_v50  ;;  %v5343_v41 = vpop.permute.xlu2 %5342 }
 0x341   : > { %13090 = vmatmul.msk.f32.vlgmr.msrb.gmra.mxu1 %vm370_vm2, %v15744_v3  ;;  %13096 = vmatmul.msk.f32.vlgmr.msra.gmra.mxu3 %vm370_vm2, %v15744_v3  ;;  %v4166_v38 = vadd.f32 %v15518_v62, %v3111_v52  ;;  %6335 = vst [vmem:[#allocation1 + $0x10] ss:$2 sm:$0xff] %v13825_v23 }
 0x342   : > { %13094 = vmatmul.msk.f32.gmra.mxu2 %vm370_vm2, %v15778_v39  ;;  %13099 = vmatmul.msk.f32.vlgmr.msrb.gmra.mxu0 %vm370_vm2, %v15744_v3 }
 0x343   : > { %13113 = vmatpush.msk.msrb.mxu1 %vm375_vm1, %v5387_v60  ;;  %13119 = vmatpush.msk.msra.mxu3 %vm375_vm1, %v5389_v35  ;;  %v20572_v60 = vld [vmem:[#allocation25_spill] sm:$0xff]  ;;  %v20573_v35 = vld [vmem:[#allocation74_spill] sm:$0xff] }
 0x344   : > { %v4601_v2 = vpop.f32.mrf.mxu3  ;;  %13122 = vmatpush.msk.msrb.mxu0 %vm375_vm1, %v5390_v13  ;;  %v1506_v50 = vadd.f32 %v20573_v35, %v20572_v60  ;;  %v20575_v13 = vld [vmem:[#allocation26_spill] sm:$0xff] }
 0x345   : > { %v4581_v26 = vpop.f32.mrf.mxu2  ;;  %v15954_v56 = vadd.f32 %v4601_v2, %v4134_v53  ;;  %v1572_v52 = vadd.f32 %v20576_v4, %v20575_v13  ;;  %v5392_v53 = vsel %vm5374_vm6, %v5341_v58, %v5343_v41 }
 0x346   : > { %v15957_v22 = vadd.f32 %v4581_v26, %v4166_v38  ;;  %v15959_v45 = vpop.f32.mrf.mxu1  ;;  %v3112_v38 = vadd.f32 %v15088_v24, %v1506_v50  ;;  %v6339_v26 = vld.sshfl [vmem:[#allocation1 + $0x8] sm:$0xff pattern:$0x75316420]  ;;  %v5345_v50 = vpop.permute.xlu0 %5344 }
 0x347   : > { %20571 = vst [vmem:[#allocation17_spill] sm:$0xff] %v15954_v56  ;;  %v15963_v62 = vpop.f32.mrf.mxu0  ;;  %v3082_v2 = vadd.f32 %v15064_v54, %v1572_v52  ;;  %6395 = vrot.lane.b32.xlu0 %v6339_v26, %s13726_s15  ;;  %v20578_v52 = vld [vmem:[#allocation28_spill] sm:$0xff]  ;;  %v20581_v56 = vld [vmem:[#allocation29_spill] sm:$0xff] }
 0x348   : > { %20574 = vst [vmem:[#allocation69_spill] sm:$0xff] %v15963_v62  ;;  %v4167_v42 = vadd.f32 %v15513_v57, %v3112_v38  ;;  %v5347_v57 = vpop.permute.xlu1 %5346  ;;  %v20614_v62 = vld [vmem:[#allocation40_spill] sm:$0xff] }
 0x349   : > { %13091 = vmatmul.msk.f32.gmra.mxu1 %vm370_vm2, %v15778_v39  ;;  %13097 = vmatmul.msk.f32.gmra.mxu3 %vm370_vm2, %v15778_v39  ;;  %v4137_v24 = vadd.f32 %v15542_v1, %v3082_v2  ;;  %v1575_v1 = vadd.f32 %v20582_v31, %v20581_v56  ;;  %v5391_v2 = vsel %vm5374_vm6, %v5339_v49, %v5341_v58  ;;  %v6331_v31 = vld.sshfl [vmem:[#allocation1 + $0x28] sm:$0xff pattern:$0x75316420]  ;;  %v6340_v49 = vld.sshfl [vmem:[#allocation1 + $0x10] sm:$0xff pattern:$0x75316420] }
 0x34a   : > { %13100 = vmatmul.msk.f32.gmra.mxu0 %vm370_vm2, %v15778_v39  ;;  %13105 = vmatmul.msk.f32.vlgmr.msrb.gmra.mxu2 %vm370_vm2, %v15744_v3  ;;  %v5394_v26 = vsel %vm5374_vm6, %v5345_v50, %v5347_v57  ;;  %6336 = vst [vmem:[#allocation1 + $0x20] ss:$2 sm:$0xff] %v13831_v27 }
 0x34b   : > { %13128 = vmatpush.msk.msrb.mxu2 %vm375_vm1, %v5392_v53  ;;  %v20579_v53 = vld [vmem:[#allocation77_spill] sm:$0xff]  ;;  %6387 = vrot.lane.b32.xlu2 %v6331_v31, %s13726_s15  ;;  %v20591_v31 = vld [vmem:[#allocation128_spill] sm:$0xff] }
 0x34c   : > { %v4604_v60 = vpop.f32.mrf.mxu3  ;;  %v1595_v38 = vadd.f32 %v20579_v53, %v20578_v52  ;;  %6397 = vrot.lane.b32.xlu1 %v6340_v49, %s13726_s15  ;;  %v20592_v49 = vld [vmem:[#allocation126_spill] sm:$0xff] }
 0x34d   : > { %v15985_v54 = vadd.f32 %v4604_v60, %v4167_v42  ;;  %v4670_v35 = vpop.f32.mrf.mxu2  ;;  %v5393_v42 = vsel %vm5374_vm6, %v5343_v41, %v5345_v50  ;;  %v20583_v60 = vld [vmem:[#allocation125_spill] sm:$0xff] }
 0x34e   : > { %v15988_v13 = vadd.f32 %v4670_v35, %v4137_v24  ;;  %v15990_v4 = vpop.f32.mrf.mxu1  ;;  %v20584_v24 = vld [vmem:[#allocation123_spill] sm:$0xff] }
 0x34f   : > { %20577 = vst [vmem:[#allocation19_spill] sm:$0xff] %v15985_v54  ;;  %v15994_v0 = vpop.f32.mrf.mxu0  ;;  %v3083_v54 = vadd.f32 %v20583_v60, %v1595_v38  ;;  %v3115_v35 = vadd.f32 %v20584_v24, %v1575_v1  ;;  %v20586_v38 = vld [vmem:[#allocation31_spill] sm:$0xff]  ;;  %v20587_v1 = vld [vmem:[#allocation80_spill] sm:$0xff] }
 0x350   : > { %20580 = vst [vmem:[#allocation68_spill] sm:$0xff] %v15994_v0  ;;  %v20589_v60 = vld [vmem:[#allocation32_spill] sm:$0xff] }
 0x351   : > { %13102 = vmatmul.msk.f32.vlgmr.msra.gmra.mxu1 %vm370_vm2, %v15744_v3  ;;  %13108 = vmatmul.msk.f32.vlgmr.msrb.gmra.mxu3 %vm370_vm2, %v15744_v3  ;;  %v4138_v56 = vadd.f32 %v15539_v30, %v3083_v54  ;;  %v4170_v58 = vadd.f32 %v15569_v33, %v3115_v35  ;;  %v5349_v54 = vpop.permute.xlu2 %5348  ;;  %v5351_v33 = vpop.permute.xlu0 %5350 }
 0x352   : > { %13106 = vmatmul.msk.f32.gmra.mxu2 %vm370_vm2, %v15778_v39  ;;  %13111 = vmatmul.msk.f32.vlgmr.msra.gmra.mxu0 %vm370_vm2, %v15744_v3  ;;  %v5396_v35 = vsel %vm5374_vm6, %v5349_v54, %v5351_v33 }
 0x353   : > { %13125 = vmatpush.msk.msra.mxu1 %vm375_vm1, %v5391_v2  ;;  %13131 = vmatpush.msk.msrb.mxu3 %vm375_vm1, %v5393_v42  ;;  %v1598_v2 = vadd.f32 %v20587_v1, %v20586_v38  ;;  %v20593_v38 = vld [vmem:[#allocation27_spill] sm:$0xff] }
 0x354   : > { %v4693_v41 = vpop.f32.mrf.mxu3  ;;  %13134 = vmatpush.msk.msra.mxu0 %vm375_vm1, %v5394_v26  ;;  %v20590_v26 = vld [vmem:[#allocation84_spill] sm:$0xff] }
 0x355   : > { %v4673_v50 = vpop.f32.mrf.mxu2  ;;  %v16018_v52 = vadd.f32 %v4693_v41, %v4138_v56  ;;  %v1664_v24 = vadd.f32 %v20590_v26, %v20589_v60  ;;  %v3116_v56 = vadd.f32 %v20591_v31, %v1598_v2  ;;  %v6342_v41 = vld.sshfl [vmem:[#allocation1 + $0x20] sm:$0xff pattern:$0x75316420]  ;;  %v5353_v31 = vpop.permute.xlu1 %5352 }
 0x356   : > { %v16021_v53 = vadd.f32 %v4673_v50, %v4170_v58  ;;  %v16023_v30 = vpop.f32.mrf.mxu1  ;;  %v6343_v50 = vld.sshfl [vmem:[#allocation1 + $0x28] sm:$0xff pattern:$0x75316420]  ;;  %6401 = vrot.lane.b32.xlu0 %v6342_v41, %s13726_s15 }
 0x357   : > { %20585 = vst [vmem:[#allocation20_spill] sm:$0xff] %v16018_v52  ;;  %v16027_v42 = vpop.f32.mrf.mxu0  ;;  %v3086_v58 = vadd.f32 %v20592_v49, %v1664_v24  ;;  %v4171_v1 = vadd.f32 %v20593_v38, %v3116_v56  ;;  %6403 = vrot.lane.b32.xlu1 %v6343_v50, %s13726_s15  ;;  %v6338_v38 = vld.sshfl [vmem:[#allocation1] sm:$0xff pattern:$0x75316420]  ;;  %v20595_v41 = vld [vmem:[#allocation34_spill] sm:$0xff]  ;;  %v5395_v50 = vsel %vm5374_vm6, %v5347_v57, %v5349_v54 }
 0x358   : > { %20588 = vst [vmem:[#allocation72_spill] sm:$0xff] %v16027_v42  ;;  %v20596_v42 = vld [vmem:[#allocation83_spill] sm:$0xff]  ;;  %6393 = vrot.lane.b32.xlu2 %v6338_v38, %s13726_s15  ;;  %v20602_v38 = vld [vmem:[#allocation129_spill] sm:$0xff] }
 0x359   : > { %13103 = vmatmul.msk.f32.gmra.mxu1 %vm370_vm2, %v15778_v39  ;;  %13109 = vmatmul.msk.f32.gmra.mxu3 %vm370_vm2, %v15778_v39  ;;  %6348 = vst [vmem:[#allocation1 + $0x20] ss:$2 sm:$0xff] %v13861_v40  ;;  %v4141_v2 = vadd.f32 %v15594_v11, %v3086_v58  ;;  %v5355_v56 = vpop.permute.xlu2 %5354  ;;  %v20598_v11 = vld [vmem:[#allocation8_spill] sm:$0xff]  ;;  %v20599_v58 = vld [vmem:[#allocation35_spill] sm:$0xff] }
 0x35a   : > { %13112 = vmatmul.msk.f32.gmra.mxu0 %vm370_vm2, %v15778_v39  ;;  %13117 = vmatmul.msk.f32.vlgmr.msra.gmra.mxu2 %vm370_vm2, %v15744_v3  ;;  %6346 = vst [vmem:[#allocation1] ss:$2 sm:$0xff] %v20598_v11 }
 0x35b   : > { %13140 = vmatpush.msk.msra.mxu2 %vm375_vm1, %v5396_v35  ;;  %v1687_v35 = vadd.f32 %v20596_v42, %v20595_v41  ;;  %v5398_v42 = vsel %vm5374_vm6, %v5353_v31, %v5355_v56 }
 0x35c   : > { %v4696_v60 = vpop.f32.mrf.mxu3 }
 0x35d   : > { %v16047_v26 = vadd.f32 %v4696_v60, %v4171_v1  ;;  %v4762_v24 = vpop.f32.mrf.mxu2  ;;  %v20600_v1 = vld [vmem:[#allocation87_spill] sm:$0xff] }
 0x35e   : > { %v16050_v49 = vadd.f32 %v4762_v24, %v4141_v2  ;;  %v16052_v52 = vpop.f32.mrf.mxu1  ;;  %v1667_v60 = vadd.f32 %v20600_v1, %v20599_v58  ;;  %v5397_v2 = vsel %vm5374_vm6, %v5351_v33, %v5353_v31  ;;  %v20601_v24 = vld [vmem:[#allocation131_spill] sm:$0xff]  ;;  %v5357_v58 = vpop.permute.xlu0 %5356 }
 0x35f   : > { %20594 = vst [vmem:[#allocation119_spill] sm:$0xff] %v16047_v26  ;;  %v16056_v0 = vpop.f32.mrf.mxu0  ;;  %v3087_v26 = vadd.f32 %v20601_v24, %v1687_v35  ;;  %v6345_v24 = vld.sshfl [vmem:[#allocation1 + $0x38] sm:$0xff pattern:$0x75316420] }
 0x360   : > { %20597 = vst [vmem:[#allocation117_spill] sm:$0xff] %v16056_v0  ;;  %v3119_v41 = vadd.f32 %v20602_v38, %v1667_v60  ;;  %6407 = vrot.lane.b32.xlu0 %v6345_v24, %s13726_s15  ;;  %v20611_v24 = vld [vmem:[#allocation33_spill] sm:$0xff] }
 0x361   : > { %13114 = vmatmul.msk.f32.vlgmr.msrb.gmra.mxu1 %vm370_vm2, %v15744_v3  ;;  %13120 = vmatmul.msk.f32.vlgmr.msra.gmra.mxu3 %vm370_vm2, %v15744_v3  ;;  %v4142_v57 = vadd.f32 %v15590_v15, %v3087_v26  ;;  %v6350_v38 = vld.sshfl [vmem:[#allocation1] sm:$0xff pattern:$0x75316420]  ;;  %v20605_v26 = vld [vmem:[#allocation86_spill] sm:$0xff] }
 0x362   : > { %13118 = vmatmul.msk.f32.gmra.mxu2 %vm370_vm2, %v15778_v39  ;;  %13123 = vmatmul.msk.f32.vlgmr.msrb.gmra.mxu0 %vm370_vm2, %v15744_v3  ;;  %v4174_v54 = vadd.f32 %v15620_v63, %v3119_v41  ;;  %v20604_v15 = vld [vmem:[#allocation37_spill] sm:$0xff]  ;;  %v20607_v63 = vld [vmem:[#allocation38_spill] sm:$0xff] }
 0x363   : > { %13137 = vmatpush.msk.msrb.mxu1 %vm375_vm1, %v5395_v50  ;;  %13143 = vmatpush.msk.msra.mxu3 %vm375_vm1, %v5397_v2  ;;  %v1690_v50 = vadd.f32 %v20605_v26, %v20604_v15  ;;  %v5359_v2 = vpop.permute.xlu1 %5358 }
 0x364   : > { %v4785_v33 = vpop.f32.mrf.mxu3  ;;  %13146 = vmatpush.msk.msrb.mxu0 %vm375_vm1, %v5398_v42  ;;  %6409 = vrot.lane.b32.xlu1 %v6350_v38, %s13726_s15  ;;  %v20608_v42 = vld [vmem:[#allocation90_spill] sm:$0xff] }
 0x365   : > { %v4765_v31 = vpop.f32.mrf.mxu2  ;;  %v16080_v35 = vadd.f32 %v4785_v33, %v4142_v57  ;;  %v1756_v41 = vadd.f32 %v20608_v42, %v20607_v63  ;;  %v5400_v57 = vsel %vm5374_vm6, %v5357_v58, %v5359_v2  ;;  %v6341_v63 = vld.sshfl [vmem:[#allocation1 + $0x18] sm:$0xff pattern:$0x75316420] }
 0x366   : > { %v16082_v1 = vadd.f32 %v4765_v31, %v4174_v54  ;;  %v16084_v60 = vpop.f32.mrf.mxu1  ;;  %v20609_v54 = vld [vmem:[#allocation134_spill] sm:$0xff]  ;;  %v20610_v31 = vld [vmem:[#allocation132_spill] sm:$0xff]  ;;  %6399 = vrot.lane.b32.xlu2 %v6341_v63, %s13726_s15 }
 0x367   : > { %20603 = vst [vmem:[#allocation22_spill] sm:$0xff] %v16080_v35  ;;  %v16088_v0 = vpop.f32.mrf.mxu0  ;;  %v3120_v33 = vadd.f32 %v20609_v54, %v1690_v50  ;;  %v3090_v15 = vadd.f32 %v20610_v31, %v1756_v41  ;;  %v5361_v35 = vpop.permute.xlu2 %5360  ;;  %v20613_v41 = vld [vmem:[#allocation9_spill] sm:$0xff] }
 0x368   : > { %20606 = vst [vmem:[#allocation71_spill] sm:$0xff] %v16088_v0  ;;  %v5401_v63 = vsel %vm5374_vm6, %v5359_v2, %v5361_v35 }
 0x369   : > { %13115 = vmatmul.msk.f32.gmra.mxu1 %vm370_vm2, %v15778_v39  ;;  %13121 = vmatmul.msk.f32.gmra.mxu3 %vm370_vm2, %v15778_v39  ;;  %v4175_v38 = vadd.f32 %v20611_v24, %v3120_v33  ;;  %v4145_v26 = vadd.f32 %v15646_v28, %v3090_v15  ;;  %6347 = vst [vmem:[#allocation1 + $0x10] ss:$2 sm:$0xff] %v20613_v41  ;;  %v20615_v33 = vld [vmem:[#allocation89_spill] sm:$0xff]  ;;  %v5363_v28 = vpop.permute.xlu0 %5362 }
 0x36a   : > { %13124 = vmatmul.msk.f32.gmra.mxu0 %vm370_vm2, %v15778_v39  ;;  %13129 = vmatmul.msk.f32.vlgmr.msrb.gmra.mxu2 %vm370_vm2, %v15744_v3  ;;  %v1779_v24 = vadd.f32 %v20615_v33, %v20614_v62  ;;  %v20617_v15 = vld [vmem:[#allocation41_spill] sm:$0xff]  ;;  %v5402_v62 = vsel %vm5374_vm6, %v5361_v35, %v5363_v28 }
 0x36b   : > { %13152 = vmatpush.msk.msrb.mxu2 %vm375_vm1, %v5400_v57  ;;  %v5365_v44 = vpop.permute.xlu1 %5364 }
 0x36c   : > { %v4788_v50 = vpop.f32.mrf.mxu3 }
 0x36d   : > { %v16108_v42 = vadd.f32 %v4788_v50, %v4175_v38  ;;  %v4854_v54 = vpop.f32.mrf.mxu2  ;;  %v20618_v38 = vld [vmem:[#allocation93_spill] sm:$0xff] }
 0x36e   : > { %v16112_v31 = vadd.f32 %v4854_v54, %v4145_v26  ;;  %v16114_v0 = vpop.f32.mrf.mxu1  ;;  %v1759_v50 = vadd.f32 %v20618_v38, %v20617_v15  ;;  %v3091_v26 = vadd.f32 %v20619_v36, %v1779_v24  ;;  %v20620_v54 = vld [vmem:[#allocation135_spill] sm:$0xff]  ;;  %v16139_v36 = vld [vmem:[%s13772_s20 + $0x88] sm:$0x7]  ;;  %s13729_s20 = smov 107  }
 0x36f   : > { %20612 = vst [vmem:[#allocation23_spill] sm:$0xff] %v16108_v42  ;;  %v16118_v57 = vpop.f32.mrf.mxu0  ;;  %v5399_v42 = vsel %vm5374_vm6, %v5355_v56, %v5357_v58 }
 0x370   : > { %20616 = vst [vmem:[#allocation75_spill] sm:$0xff] %v16118_v57  ;;  %v3123_v33 = vadd.f32 %v20620_v54, %v1759_v50  ;;  %v4146_v56 = vadd.f32 %v15643_v6, %v3091_v26  ;;  %v6352_v35 = vld.sshfl [vmem:[#allocation1 + $0x10] sm:$0xff pattern:$0x75316420] }
 0x371   : > { %13126 = vmatmul.msk.f32.vlgmr.msra.gmra.mxu1 %vm370_vm2, %v15744_v3  ;;  %13132 = vmatmul.msk.f32.vlgmr.msrb.gmra.mxu3 %vm370_vm2, %v15744_v3  ;;  %v20623_v50 = vld [vmem:[#allocation43_spill] sm:$0xff] }
 0x372   : > { %13130 = vmatmul.msk.f32.gmra.mxu2 %vm370_vm2, %v15778_v39  ;;  %13135 = vmatmul.msk.f32.vlgmr.msra.gmra.mxu0 %vm370_vm2, %v15744_v3  ;;  %v4178_v58 = vadd.f32 %v15675_v48, %v3123_v33  ;;  %v5367_v48 = vpop.permute.xlu2 %5366  ;;  %v20627_v33 = vld [vmem:[#allocation96_spill] sm:$0xff] }
 0x373   : > { %13149 = vmatpush.msk.msra.mxu1 %vm375_vm1, %v5399_v42  ;;  %13155 = vmatpush.msk.msrb.mxu3 %vm375_vm1, %v5401_v63  ;;  %v6353_v42 = vld.sshfl [vmem:[#allocation1 + $0x18] sm:$0xff pattern:$0x75316420] }
 0x374   : > { %v4877_v2 = vpop.f32.mrf.mxu3  ;;  %13158 = vmatpush.msk.msra.mxu0 %vm375_vm1, %v5402_v62  ;;  %6413 = vrot.lane.b32.xlu0 %v6352_v35, %s13726_s15  ;;  %v20624_v63 = vld [vmem:[#allocation92_spill] sm:$0xff]  ;;  %6359 = vst [vmem:[#allocation1 + $0x10] ss:$2 sm:$0xff] %v16139_v36 }
 0x375   : > { %v4857_v24 = vpop.f32.mrf.mxu2  ;;  %v16143_v15 = vadd.f32 %v4877_v2, %v4146_v56  ;;  %v1782_v26 = vadd.f32 %v20624_v63, %v20623_v50  ;;  %6415 = vrot.lane.b32.xlu1 %v6353_v42, %s13726_s15  ;;  %v20626_v62 = vld [vmem:[#allocation44_spill] sm:$0xff]  ;;  %v5404_v2 = vsel %vm5374_vm6, %v5365_v44, %v5367_v48  ;;  %v20629_v50 = vld [vmem:[#allocation138_spill] sm:$0xff]  ;;  %v16169_v42 = vpop.permute.xlu1 %5370 }
 0x376   : > { %v16146_v38 = vadd.f32 %v4857_v24, %v4178_v58  ;;  %v16148_v6 = vpop.f32.mrf.mxu1  ;;  %v1848_v56 = vadd.f32 %v20627_v33, %v20626_v62  ;;  %v20628_v58 = vld [vmem:[#allocation140_spill] sm:$0xff]  ;;  %v5369_v24 = vpop.permute.xlu0 %5368  ;;  %v6355_v62 = vld.sshfl [vmem:[#allocation1 + $0x28] sm:$0xff pattern:$0x75316420] }
 0x377   : > { %20621 = vst [vmem:[#allocation120_spill] sm:$0xff] %v16143_v15  ;;  %v16152_v54 = vpop.f32.mrf.mxu0  ;;  %v3124_v35 = vadd.f32 %v20628_v58, %v1782_v26  ;;  %v6344_v33 = vld.sshfl [vmem:[#allocation1 + $0x30] sm:$0xff pattern:$0x75316420]  ;;  %v20631_v15 = vld [vmem:[#allocation10_spill] sm:$0xff] }
 0x378   : > { %20622 = vst [vmem:[#allocation25_spill] sm:$0xff] %v16146_v38  ;;  %v3094_v63 = vadd.f32 %v20629_v50, %v1848_v56  ;;  %v20630_v26 = vld [vmem:[#allocation39_spill] sm:$0xff]  ;;  %6405 = vrot.lane.b32.xlu2 %v6344_v33, %s13726_s15 }
 0x379   : > { %20625 = vst [vmem:[#allocation74_spill] sm:$0xff] %v16152_v54  ;;  %13127 = vmatmul.msk.f32.gmra.mxu1 %vm370_vm2, %v15778_v39  ;;  %13133 = vmatmul.msk.f32.gmra.mxu3 %vm370_vm2, %v15778_v39  ;;  %v4179_v58 = vadd.f32 %v20630_v26, %v3124_v35  ;;  %v20634_v35 = vld [vmem:[#allocation46_spill] sm:$0xff] }
 0x37a   : > { %13136 = vmatmul.msk.f32.gmra.mxu0 %vm370_vm2, %v15778_v39  ;;  %13141 = vmatmul.msk.f32.vlgmr.msra.gmra.mxu2 %vm370_vm2, %v15744_v3  ;;  %6349 = vst [vmem:[#allocation1 + $0x30] ss:$2 sm:$0xff] %v20631_v15  ;;  %v4149_v56 = vadd.f32 %v15699_v46, %v3094_v63  ;;  %v20637_v15 = vld [vmem:[#allocation3_spill] sm:$0xff] }
 0x37b   : > { %13164 = vmatpush.msk.msra.mxu2 %vm375_vm1, %v5404_v2  ;;  %v16183_v38 = vld.sshfl [vmem:[#allocation1 + $0x10] sm:$0xff pattern:$0x75316420] }
 0x37c   : > { %v4880_v50 = vpop.f32.mrf.mxu3  ;;  %6419 = vrot.lane.b32.xlu0 %v6355_v62, %s13726_s15  ;;  %v20635_v2 = vld [vmem:[#allocation95_spill] sm:$0xff]  ;;  %7366 = vst [vmem:[#allocation1 + $0x10] ss:$2 sm:$0xff] %v20637_v15  ;;  %v5405_v62 = vsel %vm5374_vm6, %v5367_v48, %v5369_v24 }
 0x37d   : > { %v16176_v54 = vadd.f32 %v4880_v50, %v4179_v58  ;;  %v4946_v57 = vpop.f32.mrf.mxu2  ;;  %v1871_v26 = vadd.f32 %v20635_v2, %v20634_v35  ;;  %v20638_v46 = vld [vmem:[#allocation47_spill] sm:$0xff]  ;;  %v5403_v50 = vsel %vm5374_vm6, %v5363_v28, %v5365_v44  ;;  %v5406_v35 = vsel %vm5374_vm6, %v5369_v24, %v16169_v42  ;;  %v20641_v2 = vld [vmem:[#allocation141_spill] sm:$0xff]  ;;  %v6351_v44 = vld.sshfl [vmem:[#allocation1 + $0x8] sm:$0xff pattern:$0x75316420] }
 0x37e   : > { %v16179_v5 = vadd.f32 %v4946_v57, %v4149_v56  ;;  %v16181_v20 = vpop.f32.mrf.mxu1  ;;  %v20639_v63 = vld [vmem:[#allocation99_spill] sm:$0xff]  ;;  %v6364_v57 = vpop.permute.xlu2 %6363  ;;  %6358 = vst [vmem:[#allocation1] ss:$2 sm:$0xff] %v13875_v47 }
 0x37f   : > { %20632 = vst [vmem:[#allocation26_spill] sm:$0xff] %v16176_v54  ;;  %v16187_v33 = vpop.f32.mrf.mxu0  ;;  %v1851_v58 = vadd.f32 %v20639_v63, %v20638_v46  ;;  %v20640_v56 = vld [vmem:[#allocation143_spill] sm:$0xff]  ;;  %v6368_v63 = vpop.permute.xlu1 %6367 }
 0x380   : > { %20633 = vst [vmem:[#allocation78_spill] sm:$0xff] %v16179_v5  ;;  %v3095_v54 = vadd.f32 %v20640_v56, %v1871_v26  ;;  %v6366_v26 = vpop.permute.xlu0 %6365  ;;  %6411 = vrot.lane.b32.xlu2 %v6351_v44, %s13726_s15  ;;  %v20649_v5 = vld [vmem:[#allocation146_spill] sm:$0xff] }
 0x381   : > { %20636 = vst [vmem:[#allocation28_spill] sm:$0xff] %v16187_v33  ;;  %13138 = vmatmul.msk.f32.vlgmr.msrb.gmra.mxu1 %vm370_vm2, %v15744_v3  ;;  %13144 = vmatmul.msk.f32.vlgmr.msra.gmra.mxu3 %vm370_vm2, %v15744_v3  ;;  %v3127_v33 = vadd.f32 %v20641_v2, %v1851_v58  ;;  %v6356_v28 = vld.sshfl [vmem:[#allocation1 + $0x30] sm:$0xff pattern:$0x75316420]  ;;  %v6432_v44 = vsel %vm6431_vm7, %v6364_v57, %v6366_v26 }
 0x382   : > { %13142 = vmatmul.msk.f32.gmra.mxu2 %vm370_vm2, %v15778_v39  ;;  %13147 = vmatmul.msk.f32.vlgmr.msrb.gmra.mxu0 %vm370_vm2, %v15744_v3  ;;  %v4150_v48 = vadd.f32 %v15696_v51, %v3095_v54 }
 0x383   : > { %13161 = vmatpush.msk.msrb.mxu1 %vm375_vm1, %v5403_v50  ;;  %13167 = vmatpush.msk.msra.mxu3 %vm375_vm1, %v5405_v62  ;;  %v4182_v24 = vadd.f32 %v15727_v19, %v3127_v33  ;;  %v20644_v50 = vld [vmem:[#allocation49_spill] sm:$0xff]  ;;  %v20645_v62 = vld [vmem:[#allocation98_spill] sm:$0xff] }
 0x384   : > { %v4969_v46 = vpop.f32.mrf.mxu3  ;;  %13170 = vmatpush.msk.msrb.mxu0 %vm375_vm1, %v5406_v35  ;;  %6421 = vrot.lane.b32.xlu1 %v6356_v28, %s13726_s15  ;;  %v1874_v2 = vadd.f32 %v20645_v62, %v20644_v50  ;;  %v20647_v33 = vld [vmem:[#allocation50_spill] sm:$0xff]  ;;  %v20650_v28 = vld [vmem:[#allocation144_spill] sm:$0xff]  ;;  %v20651_v50 = vld [vmem:[#allocation45_spill] sm:$0xff] }
 0x385   : > { %v4949_v58 = vpop.f32.mrf.mxu2  ;;  %v16213_v56 = vadd.f32 %v4969_v46, %v4150_v48  ;;  %v20648_v35 = vld [vmem:[#allocation102_spill] sm:$0xff]  ;;  %v6360_v46 = vld.sshfl [vmem:[#allocation1] sm:$0xff pattern:$0x75316420] }
 0x386   : > { %v16216_v51 = vadd.f32 %v4949_v58, %v4182_v24  ;;  %v16218_v54 = vpop.f32.mrf.mxu1  ;;  %v1940_v47 = vadd.f32 %v20648_v35, %v20647_v33  ;;  %v3128_v48 = vadd.f32 %v20649_v5, %v1874_v2  ;;  %v16237_v58 = vpop.permute.xlu2 %6303  ;;  %v6361_v57 = vld.sshfl [vmem:[#allocation1 + $0x8] sm:$0xff pattern:$0x75316420]  ;;  %6425 = vrot.lane.b32.xlu0 %v6360_v46, %s13726_s15  ;;  %v20655_v46 = vld [vmem:[#allocation101_spill] sm:$0xff] }
 0x387   : > { %20642 = vst [vmem:[#allocation77_spill] sm:$0xff] %v16213_v56  ;;  %v16222_v19 = vpop.f32.mrf.mxu0  ;;  %v20652_v62 = vld [vmem:[#allocation2_spill] sm:$0xff] }
 0x388   : > { %20643 = vst [vmem:[#allocation29_spill] sm:$0xff] %v16216_v51  ;;  %v3098_v24 = vadd.f32 %v20650_v28, %v1940_v47  ;;  %v4183_v5 = vadd.f32 %v20651_v50, %v3128_v48  ;;  %v5373_v28 = vpop.permute.xlu0 %5372  ;;  %v16251_v48 = vpop.permute.xlu1 %6369  ;;  %v20654_v50 = vld [vmem:[#allocation52_spill] sm:$0xff] }
 0x389   : > { %20646 = vst [vmem:[#allocation81_spill] sm:$0xff] %v16222_v19  ;;  %13139 = vmatmul.msk.f32.gmra.mxu1 %vm370_vm2, %v15778_v39  ;;  %13145 = vmatmul.msk.f32.gmra.mxu3 %vm370_vm2, %v15778_v39  ;;  %v1963_v51 = vadd.f32 %v20655_v46, %v20654_v50  ;;  %v20661_v50 = vld [vmem:[#allocation147_spill] sm:$0xff] }
 0x38a   : > { %13148 = vmatmul.msk.f32.gmra.mxu0 %vm370_vm2, %v15778_v39  ;;  %13153 = vmatmul.msk.f32.vlgmr.msrb.gmra.mxu2 %vm370_vm2, %v15744_v3  ;;  %7364 = vst [vmem:[#allocation1] ss:$2 sm:$0xff] %v20652_v62  ;;  %v4153_v47 = vadd.f32 %v15755_v32, %v3098_v24  ;;  %v20657_v32 = vld [vmem:[#allocation4_spill] sm:$0xff]  ;;  %v20658_v24 = vld [vmem:[#allocation53_spill] sm:$0xff] }
 0x38b   : > { %13176 = vmatpush.msk.msrb.mxu2 %vm375_vm1, %v6432_v44  ;;  %v6354_v44 = vld.sshfl [vmem:[#allocation1 + $0x20] sm:$0xff pattern:$0x75316420] }
 0x38c   : > { %v4972_v2 = vpop.f32.mrf.mxu3  ;;  %6427 = vrot.lane.b32.xlu1 %v6361_v57, %s13726_s15  ;;  %6417 = vrot.lane.b32.xlu2 %v6354_v44, %s13726_s15  ;;  %7368 = vst [vmem:[#allocation1 + $0x20] ss:$2 sm:$0xff] %v20657_v32  ;;  %v5407_v57 = vsel %vm5374_vm6, %v16169_v42, %v5373_v28  ;;  %v6434_v44 = vsel %vm6431_vm7, %v6368_v63, %v16251_v48 }
 0x38d   : > { %v16244_v33 = vadd.f32 %v4972_v2, %v4183_v5  ;;  %v5038_v35 = vpop.f32.mrf.mxu2  ;;  %v20659_v5 = vld [vmem:[#allocation106_spill] sm:$0xff] }
 0x38e   : > { %v16247_v56 = vadd.f32 %v5038_v35, %v4153_v47  ;;  %v16249_v19 = vpop.f32.mrf.mxu1  ;;  %v1943_v2 = vadd.f32 %v20659_v5, %v20658_v24  ;;  %v6433_v47 = vsel %vm6431_vm7, %v6366_v26, %v6368_v63  ;;  %v20660_v35 = vld [vmem:[#allocation148_spill] sm:$0xff]  ;;  %v7372_v26 = vld.sshfl [vmem:[#allocation1 + $0x10] sm:$0xff pattern:$0x75316420]  ;;  %v16283_v24 = vpop.permute.xlu2 %6305 }
 0x38f   : > { %20653 = vst [vmem:[#allocation125_spill] sm:$0xff] %v16244_v33  ;;  %v16255_v62 = vpop.f32.mrf.mxu0  ;;  %v3099_v33 = vadd.f32 %v20660_v35, %v1963_v51  ;;  %v20665_v35 = vld [vmem:[#allocation105_spill] sm:$0xff] }
 0x390   : > { %20656 = vst [vmem:[#allocation123_spill] sm:$0xff] %v16255_v62  ;;  %v3131_v46 = vadd.f32 %v20661_v50, %v1943_v2  ;;  %v20668_v62 = vld [vmem:[#allocation109_spill] sm:$0xff] }
 0x391   : > { %13150 = vmatmul.msk.f32.vlgmr.msra.gmra.mxu1 %vm370_vm2, %v15744_v3  ;;  %13156 = vmatmul.msk.f32.vlgmr.msrb.gmra.mxu3 %vm370_vm2, %v15744_v3  ;;  %v7371_v42 = vld.sshfl [vmem:[#allocation1 + $0x8] sm:$0xff pattern:$0x75316420]  ;;  %v4154_v51 = vadd.f32 %v15753_v59, %v3099_v33 }
 0x392   : > { %13154 = vmatmul.msk.f32.gmra.mxu2 %vm370_vm2, %v15778_v39  ;;  %13159 = vmatmul.msk.f32.vlgmr.msra.gmra.mxu0 %vm370_vm2, %v15744_v3  ;;  %7378 = vst [vmem:[#allocation1] ss:$2 sm:$0xff] %v13797_v7  ;;  %v4186_v63 = vadd.f32 %v15784_v8, %v3131_v46  ;;  %v20664_v8 = vld [vmem:[#allocation55_spill] sm:$0xff]  ;;  %v6372_v46 = vpop.permute.xlu0 %6371  ;;  %v20680_v7 = vld [vmem:[#allocation152_spill] sm:$0xff] }
 0x393   : > { %13173 = vmatpush.msk.msra.mxu1 %vm375_vm1, %v5407_v57  ;;  %13179 = vmatpush.msk.msrb.mxu3 %vm375_vm1, %v6433_v47  ;;  %v7373_v47 = vld.sshfl [vmem:[#allocation1 + $0x18] sm:$0xff pattern:$0x75316420]  ;;  %v1966_v50 = vadd.f32 %v20665_v35, %v20664_v8 }
 0x394   : > { %v5061_v28 = vpop.f32.mrf.mxu3  ;;  %13182 = vmatpush.msk.msra.mxu0 %vm375_vm1, %v6434_v44  ;;  %7419 = vrot.lane.b32.xlu0 %v7371_v42, %s13728_s17  ;;  %7379 = vst [vmem:[#allocation1 + $0x10] ss:$2 sm:$0xff] %v13801_v9  ;;  %v20667_v42 = vld [vmem:[#allocation56_spill] sm:$0xff] }
 0x395   : > { %v5041_v5 = vpop.f32.mrf.mxu2  ;;  %v16285_v2 = vadd.f32 %v5061_v28, %v4154_v51  ;;  %7421 = vrot.lane.b32.xlu1 %v7372_v26, %s13728_s17  ;;  %v2032_v51 = vadd.f32 %v20668_v62, %v20667_v42  ;;  %v20669_v26 = vld [vmem:[#allocation150_spill] sm:$0xff]  ;;  %v6357_v35 = vld.sshfl [vmem:[#allocation1 + $0x38] sm:$0xff pattern:$0x75316420]  ;;  %v20671_v62 = vld [vmem:[#allocation51_spill] sm:$0xff] }
 0x396   : > { %v16288_v59 = vadd.f32 %v5041_v5, %v4186_v63  ;;  %v16290_v33 = vpop.f32.mrf.mxu1  ;;  %v6374_v57 = vpop.permute.xlu1 %6373  ;;  %v3132_v63 = vadd.f32 %v20669_v26, %v1966_v50  ;;  %v20670_v5 = vld [vmem:[#allocation149_spill] sm:$0xff]  ;;  %6423 = vrot.lane.b32.xlu2 %v6357_v35, %s13726_s15 }
 0x397   : > { %20662 = vst [vmem:[#allocation31_spill] sm:$0xff] %v16285_v2  ;;  %v16294_v44 = vpop.f32.mrf.mxu0  ;;  %v6436_v28 = vsel %vm6431_vm7, %v6372_v46, %v6374_v57  ;;  %v3102_v8 = vadd.f32 %v20670_v5, %v2032_v51  ;;  %v20672_v50 = vld [vmem:[#allocation5_spill] sm:$0xff]  ;;  %v6376_v51 = vpop.permute.xlu2 %6375 }
 0x398   : > { %20663 = vst [vmem:[#allocation80_spill] sm:$0xff] %v16288_v59  ;;  %v4187_v42 = vadd.f32 %v20671_v62, %v3132_v63  ;;  %v16321_v59 = vld [vmem:[%s20292_s1 + $0x8] sm:$0xff]  ;;  %v20678_v62 = vld [vmem:[#allocation60_spill] sm:$0xff]  ;;  %v6437_v9 = vsel %vm6431_vm7, %v6374_v57, %v6376_v51 }
 0x399   : > { %20666 = vst [vmem:[#allocation32_spill] sm:$0xff] %v16294_v44  ;;  %13151 = vmatmul.msk.f32.gmra.mxu1 %vm370_vm2, %v15778_v39  ;;  %13157 = vmatmul.msk.f32.gmra.mxu3 %vm370_vm2, %v15778_v39  ;;  %v4157_v26 = vadd.f32 %v15810_v55, %v3102_v8  ;;  %v20675_v55 = vld [vmem:[#allocation59_spill] sm:$0xff]  ;;  %v20676_v8 = vld [vmem:[#allocation108_spill] sm:$0xff] }
 0x39a   : > { %13160 = vmatmul.msk.f32.gmra.mxu0 %vm370_vm2, %v15778_v39  ;;  %13165 = vmatmul.msk.f32.vlgmr.msra.gmra.mxu2 %vm370_vm2, %v15744_v3  ;;  %7370 = vst [vmem:[#allocation1 + $0x30] ss:$2 sm:$0xff] %v20672_v50  ;;  %v6435_v50 = vsel %vm6431_vm7, %v16251_v48, %v6372_v46  ;;  %v7375_v48 = vld.sshfl [vmem:[#allocation1 + $0x28] sm:$0xff pattern:$0x75316420] }
 0x39b   : > { %13188 = vmatpush.msk.msra.mxu2 %vm375_vm1, %v6436_v28  ;;  %20674 = vst [vmem:[#allocation128_spill] sm:$0xff] %v16321_v59 }
 0x39c   : > { %v5064_v2 = vpop.f32.mrf.mxu3  ;;  %7423 = vrot.lane.b32.xlu0 %v7373_v47, %s13728_s17  ;;  %v2055_v47 = vadd.f32 %v20676_v8, %v20675_v55 }
 0x39d   : > { %v16316_v5 = vadd.f32 %v5064_v2, %v4187_v42  ;;  %v5130_v44 = vpop.f32.mrf.mxu2  ;;  %7362 = vrot.lane.b32.xlu1 %v16321_v59, %s13729_s20  ;;  %v6378_v2 = vpop.permute.xlu0 %6377  ;;  %v20679_v42 = vld [vmem:[#allocation112_spill] sm:$0xff] }
 0x39e   : > { %v16325_v28 = vadd.f32 %v5130_v44, %v4157_v26  ;;  %v16327_v63 = vpop.f32.mrf.mxu1  ;;  %v3103_v59 = vadd.f32 %v20680_v7, %v2055_v47  ;;  %v6438_v44 = vsel %vm6431_vm7, %v6376_v51, %v6378_v2  ;;  %v20681_v26 = vld [vmem:[#allocation151_spill] sm:$0xff]  ;;  %6429 = vrot.lane.b32.xlu2 %v16183_v38, %s13726_s15  ;;  %v6380_v8 = vpop.permute.xlu1 %6379 }
 0x39f   : > { %20673 = vst [vmem:[#allocation84_spill] sm:$0xff] %v16316_v5  ;;  %v16331_v35 = vpop.f32.mrf.mxu0  ;;  %v2035_v5 = vadd.f32 %v20679_v42, %v20678_v62 }
 0x3a0   : > { %20677 = vst [vmem:[#allocation126_spill] sm:$0xff] %v16331_v35  ;;  %v4158_v57 = vadd.f32 %v15808_v34, %v3103_v59  ;;  %v6382_v59 = vpop.permute.xlu2 %6381 }
 0x3a1   : > { %13162 = vmatmul.msk.f32.vlgmr.msrb.gmra.mxu1 %vm370_vm2, %v15744_v3  ;;  %13168 = vmatmul.msk.f32.vlgmr.msra.gmra.mxu3 %vm370_vm2, %v15744_v3  ;;  %v3135_v55 = vadd.f32 %v20681_v26, %v2035_v5  ;;  %v6440_v38 = vsel %vm6431_vm7, %v6380_v8, %v6382_v59 }
 0x3a2   : > { %13166 = vmatmul.msk.f32.gmra.mxu2 %vm370_vm2, %v15778_v39  ;;  %13171 = vmatmul.msk.f32.vlgmr.msrb.gmra.mxu0 %vm370_vm2, %v15744_v3 }
 0x3a3   : > { %13185 = vmatpush.msk.msrb.mxu1 %vm375_vm1, %v6435_v50  ;;  %13191 = vmatpush.msk.msra.mxu3 %vm375_vm1, %v6437_v9  ;;  %v4190_v7 = vadd.f32 %v15838_v61, %v3135_v55  ;;  %v7376_v9 = vld.sshfl [vmem:[#allocation1 + $0x30] sm:$0xff pattern:$0x75316420] }
 0x3a4   : > { %v5153_v46 = vpop.f32.mrf.mxu3  ;;  %13194 = vmatpush.msk.msrb.mxu0 %vm375_vm1, %v6438_v44  ;;  %7427 = vrot.lane.b32.xlu0 %v7375_v48, %s13728_s17  ;;  %v20683_v50 = vld [vmem:[#allocation63_spill] sm:$0xff]  ;;  %v20686_v44 = vld [vmem:[#allocation64_spill] sm:$0xff]  ;;  %v20688_v48 = vld [vmem:[#allocation153_spill] sm:$0xff] }
 0x3a5   : > { %v5133_v51 = vpop.f32.mrf.mxu2  ;;  %v16356_v5 = vadd.f32 %v5153_v46, %v4158_v57  ;;  %v20684_v61 = vld [vmem:[#allocation111_spill] sm:$0xff]  ;;  %7429 = vrot.lane.b32.xlu1 %v7376_v9, %s13728_s17 }
 0x3a6   : > { %v16359_v47 = vadd.f32 %v5133_v51, %v4190_v7  ;;  %v16361_v34 = vpop.f32.mrf.mxu1  ;;  %v2058_v62 = vadd.f32 %v20684_v61, %v20683_v50  ;;  %v20687_v55 = vld [vmem:[#allocation115_spill] sm:$0xff]  ;;  %v7382_v7 = vld.sshfl [vmem:[#allocation1] sm:$0xff pattern:$0x75316420] }
 0x3a7   : > { %20682 = vst [vmem:[#allocation27_spill] sm:$0xff] %v16356_v5  ;;  %v16365_v42 = vpop.f32.mrf.mxu0  ;;  %v4128_v57 = vadd.f32 %v20688_v48, %v20687_v55  ;;  %v16386_v50 = vld [vmem:[%s20292_s1] sm:$0xff]  ;;  %v6439_v55 = vsel %vm6431_vm7, %v6378_v2, %v6380_v8  ;;  %v7383_v8 = vld.sshfl [vmem:[#allocation1 + $0x8] sm:$0xff pattern:$0x75316420] }
 0x3a8   : > { %20685 = vst [vmem:[#allocation34_spill] sm:$0xff] %v16365_v42  ;;  %v3136_v26 = vadd.f32 %v20686_v44, %v2058_v62  ;;  %7360 = vrot.lane.b32.xlu2 %v16386_v50, %s13729_s20  ;;  %v6384_v44 = vpop.permute.xlu0 %6383  ;;  %v7374_v2 = vld.sshfl [vmem:[#allocation1 + $0x20] sm:$0xff pattern:$0x75316420] }
 0x3a9   : > { %13163 = vmatmul.msk.f32.gmra.mxu1 %vm370_vm2, %v15778_v39  ;;  %13169 = vmatmul.msk.f32.gmra.mxu3 %vm370_vm2, %v15778_v39  ;;  %v5183_v51 = vadd.f32 %v15866_v16, %v4128_v57  ;;  %v6386_v16 = vpop.permute.xlu1 %6385  ;;  %v6441_v48 = vsel %vm6431_vm7, %v6382_v59, %v6384_v44  ;;  %7380 = vst [vmem:[#allocation1 + $0x20] ss:$2 sm:$0xff] %v13808_v14 }
 0x3aa   : > { %13172 = vmatmul.msk.f32.gmra.mxu0 %vm370_vm2, %v15778_v39  ;;  %13177 = vmatmul.msk.f32.vlgmr.msrb.gmra.mxu2 %vm370_vm2, %v16237_v58  ;;  %v4191_v46 = vadd.f32 %v15832_v21, %v3136_v26  ;;  %v6442_v57 = vsel %vm6431_vm7, %v6384_v44, %v6386_v16  ;;  %7390 = vst [vmem:[#allocation1] ss:$2 sm:$0xff] %v13816_v18 }
 0x3ab   : > { %13200 = vmatpush.msk.msrb.mxu2 %vm375_vm1, %v6440_v38 }
 0x3ac   : > { %v5156_v9 = vpop.f32.mrf.mxu3  ;;  %7433 = vrot.lane.b32.xlu0 %v7382_v7, %s13728_s17  ;;  %v20691_v7 = vld [vmem:[#allocation116_spill] sm:$0xff] }
 0x3ad   : > { %v16390_v61 = vadd.f32 %v5156_v9, %v4191_v46  ;;  %v5518_v62 = vpop.f32.mrf.mxu2  ;;  %v20692_v46 = vld [vmem:[#allocation154_spill] sm:$0xff]  ;;  %7435 = vrot.lane.b32.xlu1 %v7383_v8, %s13728_s17 }
 0x3ae   : > { %v16393_v21 = vadd.f32 %v5518_v62, %v5183_v51  ;;  %v16395_v38 = vpop.f32.mrf.mxu1  ;;  %v4161_v51 = vadd.f32 %v20692_v46, %v20691_v7  ;;  %v7385_v7 = vld.sshfl [vmem:[#allocation1 + $0x18] sm:$0xff pattern:$0x75316420] }
 0x3af   : > { %20689 = vst [vmem:[#allocation83_spill] sm:$0xff] %v16390_v61  ;;  %v16397_v26 = vpop.f32.mrf.mxu0  ;;  %v7377_v61 = vld.sshfl [vmem:[#allocation1 + $0x38] sm:$0xff pattern:$0x75316420] }
 0x3b0   : > { %20690 = vst [vmem:[#allocation8_spill] sm:$0xff] %v16397_v26  ;;  %7425 = vrot.lane.b32.xlu2 %v7374_v2, %s13728_s17  ;;  %v6390_v46 = vpop.permute.xlu0 %6389  ;;  %v7386_v8 = vld.sshfl [vmem:[#allocation1 + $0x20] sm:$0xff pattern:$0x75316420] }
 0x3b1   : > { %13174 = vmatmul.msk.f32.vlgmr.msra.gmra.mxu1 %vm370_vm2, %v15744_v3  ;;  %13180 = vmatmul.msk.f32.vlgmr.msrb.gmra.mxu3 %vm370_vm2, %v16237_v58  ;;  %v5216_v3 = vadd.f32 %v15897_v12, %v4161_v51  ;;  %v20696_v51 = vld [vmem:[#allocation67_spill] sm:$0xff]  ;;  %7381 = vst [vmem:[#allocation1 + $0x30] ss:$2 sm:$0xff] %v13813_v17 }
 0x3b2   : > { %13178 = vmatmul.msk.f32.gmra.mxu2 %vm370_vm2, %v16283_v24  ;;  %13183 = vmatmul.msk.f32.vlgmr.msra.gmra.mxu0 %vm370_vm2, %v16237_v58 }
 0x3b3   : > { %13197 = vmatpush.msk.msra.mxu1 %vm375_vm1, %v6439_v55  ;;  %13203 = vmatpush.msk.msrb.mxu3 %vm375_vm1, %v6441_v48  ;;  %v6388_v48 = vpop.permute.xlu2 %6387 }
 0x3b4   : > { %v5541_v59 = vpop.f32.mrf.mxu3  ;;  %13206 = vmatpush.msk.msra.mxu0 %vm375_vm1, %v6442_v57  ;;  %7439 = vrot.lane.b32.xlu0 %v7385_v7, %s13728_s17  ;;  %v6444_v57 = vsel %vm6431_vm7, %v6388_v48, %v6390_v46  ;;  %v6392_v7 = vpop.permute.xlu1 %6391 }
 0x3b5   : > { %v5521_v9 = vpop.f32.mrf.mxu2  ;;  %v16420_v62 = vadd.f32 %v5541_v59, %v15864_v37  ;;  %v20695_v37 = vld [vmem:[#allocation118_spill] sm:$0xff]  ;;  %7441 = vrot.lane.b32.xlu1 %v7386_v8, %s13728_s17 }
 0x3b6   : > { %v16423_v44 = vadd.f32 %v5521_v9, %v5216_v3  ;;  %v16425_v55 = vpop.f32.mrf.mxu1  ;;  %v4132_v2 = vadd.f32 %v20696_v51, %v20695_v37  ;;  %v20700_v8 = vld [vmem:[#allocation70_spill] sm:$0xff] }
 0x3b7   : > { %20693 = vst [vmem:[#allocation35_spill] sm:$0xff] %v16420_v62  ;;  %v16427_v12 = vpop.f32.mrf.mxu0 }
 0x3b8   : > { %20694 = vst [vmem:[#allocation87_spill] sm:$0xff] %v16427_v12  ;;  %v5187_v3 = vadd.f32 %v15927_v25, %v4132_v2  ;;  %7431 = vrot.lane.b32.xlu2 %v7377_v61, %s13728_s17  ;;  %v6443_v25 = vsel %vm6431_vm7, %v6386_v16, %v6388_v48  ;;  %v20699_v2 = vld [vmem:[#allocation121_spill] sm:$0xff] }
 0x3b9   : > { %13175 = vmatmul.msk.f32.gmra.mxu1 %vm370_vm2, %v15778_v39  ;;  %13181 = vmatmul.msk.f32.gmra.mxu3 %vm370_vm2, %v16283_v24 }
 0x3ba   : > { %13184 = vmatmul.msk.f32.gmra.mxu0 %vm370_vm2, %v16283_v24  ;;  %13189 = vmatmul.msk.f32.vlgmr.msra.gmra.mxu2 %vm370_vm2, %v16237_v58 }
 0x3bb   : > { %13212 = vmatpush.msk.msra.mxu2 %vm375_vm1, %v6444_v57  ;;  %v6394_v62 = vpop.permute.xlu2 %6393 }
 0x3bc   : > { %v5544_v59 = vpop.f32.mrf.mxu3  ;;  %v6446_v57 = vsel %vm6431_vm7, %v6392_v7, %v6394_v62 }
 0x3bd   : > { %v16444_v39 = vadd.f32 %v5544_v59, %v15895_v43  ;;  %v5610_v9 = vpop.f32.mrf.mxu2  ;;  %v6445_v43 = vsel %vm6431_vm7, %v6390_v46, %v6392_v7  ;;  %v6396_v7 = vpop.permute.xlu0 %6395 }
 0x3be   : > { %v16447_v37 = vadd.f32 %v5610_v9, %v5187_v3  ;;  %v16449_v51 = vpop.f32.mrf.mxu1  ;;  %v4165_v3 = vadd.f32 %v20700_v8, %v20699_v2  ;;  %v7389_v2 = vld.sshfl [vmem:[#allocation1 + $0x38] sm:$0xff pattern:$0x75316420]  ;;  %v7388_v8 = vld.sshfl [vmem:[#allocation1 + $0x30] sm:$0xff pattern:$0x75316420] }
 0x3bf   : > { %20697 = vst [vmem:[#allocation131_spill] sm:$0xff] %v16444_v39  ;;  %v16451_v5 = vpop.f32.mrf.mxu0  ;;  %7447 = vrot.lane.b32.xlu1 %v7389_v2, %s13728_s17  ;;  %7445 = vrot.lane.b32.xlu0 %v7388_v8, %s13728_s17 }
 0x3c0   : > { %20698 = vst [vmem:[#allocation129_spill] sm:$0xff] %v16451_v5  ;;  %v5220_v61 = vadd.f32 %v15959_v45, %v4165_v3 }
 0x3c1   : > { %13186 = vmatmul.msk.f32.vlgmr.msrb.gmra.mxu1 %vm370_vm2, %v16237_v58  ;;  %13192 = vmatmul.msk.f32.vlgmr.msra.gmra.mxu3 %vm370_vm2, %v16237_v58  ;;  %7393 = vst [vmem:[#allocation1 + $0x30] ss:$2 sm:$0xff] %v13837_v29 }
 0x3c2   : > { %13190 = vmatmul.msk.f32.gmra.mxu2 %vm370_vm2, %v16283_v24  ;;  %13195 = vmatmul.msk.f32.vlgmr.msrb.gmra.mxu0 %vm370_vm2, %v16237_v58 }
 0x3c3   : > { %13209 = vmatpush.msk.msrb.mxu1 %vm375_vm1, %v6443_v25  ;;  %13215 = vmatpush.msk.msra.mxu3 %vm375_vm1, %v6445_v43  ;;  %v6398_v25 = vpop.permute.xlu1 %6397  ;;  %v20704_v43 = vld [vmem:[#allocation73_spill] sm:$0xff] }
 0x3c4   : > { %v5633_v16 = vpop.f32.mrf.mxu3  ;;  %13218 = vmatpush.msk.msrb.mxu0 %vm375_vm1, %v6446_v57  ;;  %v6448_v45 = vsel %vm6431_vm7, %v6396_v7, %v6398_v25 }
 0x3c5   : > { %v5613_v48 = vpop.f32.mrf.mxu2  ;;  %v16473_v46 = vadd.f32 %v5633_v16, %v15925_v10  ;;  %v20703_v10 = vld [vmem:[#allocation122_spill] sm:$0xff]  ;;  %v6400_v16 = vpop.permute.xlu2 %6399 }
 0x3c6   : > { %v16475_v59 = vadd.f32 %v5613_v48, %v5220_v61  ;;  %v16477_v9 = vpop.f32.mrf.mxu1  ;;  %v4136_v57 = vadd.f32 %v20704_v43, %v20703_v10  ;;  %v7384_v43 = vld.sshfl [vmem:[#allocation1 + $0x10] sm:$0xff pattern:$0x75316420] }
 0x3c7   : > { %20701 = vst [vmem:[#allocation37_spill] sm:$0xff] %v16473_v46  ;;  %v16479_v39 = vpop.f32.mrf.mxu0  ;;  %7437 = vrot.lane.b32.xlu2 %v7384_v43, %s13728_s17 }
 0x3c8   : > { %20702 = vst [vmem:[#allocation86_spill] sm:$0xff] %v16479_v39  ;;  %v5191_v3 = vadd.f32 %v15990_v4, %v4136_v57  ;;  %v6402_v10 = vpop.permute.xlu0 %6401  ;;  %v6447_v4 = vsel %vm6431_vm7, %v6394_v62, %v6396_v7  ;;  %v20707_v57 = vld [vmem:[#allocation124_spill] sm:$0xff]  ;;  %v7395_v62 = vld.sshfl [vmem:[#allocation1 + $0x8] sm:$0xff pattern:$0x75316420] }
 0x3c9   : > { %13187 = vmatmul.msk.f32.gmra.mxu1 %vm370_vm2, %v16283_v24  ;;  %13193 = vmatmul.msk.f32.gmra.mxu3 %vm370_vm2, %v16283_v24  ;;  %7391 = vst [vmem:[#allocation1 + $0x10] ss:$2 sm:$0xff] %v13825_v23 }
 0x3ca   : > { %13196 = vmatmul.msk.f32.gmra.mxu0 %vm370_vm2, %v16283_v24  ;;  %13201 = vmatmul.msk.f32.vlgmr.msrb.gmra.mxu2 %vm370_vm2, %v16237_v58 }
 0x3cb   : > { %13224 = vmatpush.msk.msrb.mxu2 %vm375_vm1, %v6448_v45  ;;  %v6449_v45 = vsel %vm6431_vm7, %v6398_v25, %v6400_v16  ;;  %7451 = vrot.lane.b32.xlu0 %v7395_v62, %s13728_s17  ;;  %v6404_v43 = vpop.permute.xlu1 %6403 }
 0x3cc   : > { %v5636_v61 = vpop.f32.mrf.mxu3 }
 0x3cd   : > { %v16498_v48 = vadd.f32 %v5636_v61, %v15957_v22  ;;  %v5702_v2 = vpop.f32.mrf.mxu2  ;;  %v6450_v22 = vsel %vm6431_vm7, %v6400_v16, %v6402_v10 }
 0x3ce   : > { %v16500_v8 = vadd.f32 %v5702_v2, %v5191_v3  ;;  %v16502_v46 = vpop.f32.mrf.mxu1  ;;  %v20708_v3 = vld [vmem:[#allocation76_spill] sm:$0xff] }
 0x3cf   : > { %20705 = vst [vmem:[#allocation38_spill] sm:$0xff] %v16498_v48  ;;  %v16504_v39 = vpop.f32.mrf.mxu0  ;;  %v4169_v61 = vadd.f32 %v20708_v3, %v20707_v57 }
 0x3d0   : > { %20706 = vst [vmem:[#allocation90_spill] sm:$0xff] %v16504_v39  ;;  %v7397_v5 = vld.sshfl [vmem:[#allocation1 + $0x18] sm:$0xff pattern:$0x75316420] }
 0x3d1   : > { %13198 = vmatmul.msk.f32.vlgmr.msra.gmra.mxu1 %vm370_vm2, %v16237_v58  ;;  %13204 = vmatmul.msk.f32.vlgmr.msrb.gmra.mxu3 %vm370_vm2, %v16237_v58  ;;  %v5224_v7 = vadd.f32 %v16023_v30, %v4169_v61  ;;  %v7387_v61 = vld.sshfl [vmem:[#allocation1 + $0x28] sm:$0xff pattern:$0x75316420] }
 0x3d2   : > { %13202 = vmatmul.msk.f32.gmra.mxu2 %vm370_vm2, %v16283_v24  ;;  %13207 = vmatmul.msk.f32.vlgmr.msra.gmra.mxu0 %vm370_vm2, %v16237_v58  ;;  %v6406_v48 = vpop.permute.xlu2 %6405  ;;  %7392 = vst [vmem:[#allocation1 + $0x20] ss:$2 sm:$0xff] %v13831_v27 }
 0x3d3   : > { %13221 = vmatpush.msk.msra.mxu1 %vm375_vm1, %v6447_v4  ;;  %13227 = vmatpush.msk.msrb.mxu3 %vm375_vm1, %v6449_v45  ;;  %v7396_v4 = vld.sshfl [vmem:[#allocation1 + $0x10] sm:$0xff pattern:$0x75316420]  ;;  %v6452_v30 = vsel %vm6431_vm7, %v6404_v43, %v6406_v48 }
 0x3d4   : > { %v5725_v25 = vpop.f32.mrf.mxu3  ;;  %13230 = vmatpush.msk.msra.mxu0 %vm375_vm1, %v6450_v22  ;;  %7453 = vrot.lane.b32.xlu1 %v7396_v4, %s13728_s17  ;;  %v20712_v45 = vld [vmem:[#allocation79_spill] sm:$0xff]  ;;  %v6408_v4 = vpop.permute.xlu0 %6407  ;;  %7403 = vst [vmem:[#allocation1 + $0x10] ss:$2 sm:$0xff] %v20613_v41 }
 0x3d5   : > { %v5705_v16 = vpop.f32.mrf.mxu2  ;;  %v16527_v2 = vadd.f32 %v5725_v25, %v15988_v13  ;;  %v20711_v13 = vld [vmem:[#allocation127_spill] sm:$0xff]  ;;  %7443 = vrot.lane.b32.xlu2 %v7387_v61, %s13728_s17  ;;  %v6453_v61 = vsel %vm6431_vm7, %v6406_v48, %v6408_v4  ;;  %v7394_v48 = vld.sshfl [vmem:[#allocation1] sm:$0xff pattern:$0x75316420] }
 0x3d6   : > { %v16529_v57 = vadd.f32 %v5705_v16, %v5224_v7  ;;  %v16531_v3 = vpop.f32.mrf.mxu1  ;;  %v4140_v22 = vadd.f32 %v20712_v45, %v20711_v13  ;;  %7402 = vst [vmem:[#allocation1] ss:$2 sm:$0xff] %v20598_v11 }
 0x3d7   : > { %20709 = vst [vmem:[#allocation134_spill] sm:$0xff] %v16527_v2  ;;  %v16533_v39 = vpop.f32.mrf.mxu0  ;;  %v6410_v2 = vpop.permute.xlu1 %6409 }
 0x3d8   : > { %20710 = vst [vmem:[#allocation132_spill] sm:$0xff] %v16533_v39  ;;  %v5195_v62 = vadd.f32 %v16052_v52, %v4140_v22  ;;  %v6454_v52 = vsel %vm6431_vm7, %v6408_v4, %v6410_v2  ;;  %v20716_v22 = vld [vmem:[#allocation155_spill] sm:$0xff] }
 0x3d9   : > { %13199 = vmatmul.msk.f32.gmra.mxu1 %vm370_vm2, %v16283_v24  ;;  %13205 = vmatmul.msk.f32.gmra.mxu3 %vm370_vm2, %v16283_v24 }
 0x3da   : > { %13208 = vmatmul.msk.f32.gmra.mxu0 %vm370_vm2, %v16283_v24  ;;  %13213 = vmatmul.msk.f32.vlgmr.msra.gmra.mxu2 %vm370_vm2, %v16237_v58 }
 0x3db   : > { %13236 = vmatpush.msk.msra.mxu2 %vm375_vm1, %v6452_v30  ;;  %v6451_v30 = vsel %vm6431_vm7, %v6402_v10, %v6404_v43  ;;  %v7398_v10 = vld.sshfl [vmem:[#allocation1 + $0x20] sm:$0xff pattern:$0x75316420]  ;;  %v7399_v43 = vld.sshfl [vmem:[#allocation1 + $0x28] sm:$0xff pattern:$0x75316420] }
 0x3dc   : > { %v5728_v7 = vpop.f32.mrf.mxu3  ;;  %7404 = vst [vmem:[#allocation1 + $0x20] ss:$2 sm:$0xff] %v13861_v40  ;;  %7457 = vrot.lane.b32.xlu0 %v7398_v10, %s13728_s17  ;;  %7459 = vrot.lane.b32.xlu1 %v7399_v43, %s13728_s17  ;;  %v20719_v10 = vld [vmem:[#allocation133_spill] sm:$0xff] }
 0x3dd   : > { %v16552_v25 = vadd.f32 %v5728_v7, %v16021_v53  ;;  %v5794_v16 = vpop.f32.mrf.mxu2  ;;  %v20715_v53 = vld [vmem:[#allocation130_spill] sm:$0xff]  ;;  %7449 = vrot.lane.b32.xlu2 %v7394_v48, %s13728_s17  ;;  %v20720_v43 = vld [vmem:[#allocation85_spill] sm:$0xff] }
 0x3de   : > { %v16554_v13 = vadd.f32 %v5794_v16, %v5195_v62  ;;  %v16556_v45 = vpop.f32.mrf.mxu1  ;;  %v4173_v62 = vadd.f32 %v20716_v22, %v20715_v53  ;;  %v4144_v48 = vadd.f32 %v20720_v43, %v20719_v10 }
 0x3df   : > { %20713 = vst [vmem:[#allocation33_spill] sm:$0xff] %v16552_v25  ;;  %v16558_v39 = vpop.f32.mrf.mxu0 }
 0x3e0   : > { %20714 = vst [vmem:[#allocation9_spill] sm:$0xff] %v16558_v39  ;;  %v5228_v7 = vadd.f32 %v16084_v60, %v4173_v62  ;;  %v6412_v60 = vpop.permute.xlu2 %6411 }
 0x3e1   : > { %13210 = vmatmul.msk.f32.vlgmr.msrb.gmra.mxu1 %vm370_vm2, %v16237_v58  ;;  %13216 = vmatmul.msk.f32.vlgmr.msra.gmra.mxu3 %vm370_vm2, %v16237_v58 }
 0x3e2   : > { %13214 = vmatmul.msk.f32.gmra.mxu2 %vm370_vm2, %v16283_v24  ;;  %13219 = vmatmul.msk.f32.vlgmr.msrb.gmra.mxu0 %vm370_vm2, %v16237_v58 }
 0x3e3   : > { %13233 = vmatpush.msk.msrb.mxu1 %vm375_vm1, %v6451_v30  ;;  %13239 = vmatpush.msk.msra.mxu3 %vm375_vm1, %v6453_v61 }
 0x3e4   : > { %v5817_v16 = vpop.f32.mrf.mxu3  ;;  %13242 = vmatpush.msk.msrb.mxu0 %vm375_vm1, %v6454_v52 }
 0x3e5   : > { %v5797_v4 = vpop.f32.mrf.mxu2  ;;  %v16581_v53 = vadd.f32 %v5817_v16, %v16050_v49  ;;  %v7401_v49 = vld.sshfl [vmem:[#allocation1 + $0x38] sm:$0xff pattern:$0x75316420]  ;;  %v5199_v16 = vadd.f32 %v16114_v0, %v4144_v48  ;;  %7455 = vrot.lane.b32.xlu2 %v7397_v5, %s13728_s17  ;;  %v6455_v0 = vsel %vm6431_vm7, %v6410_v2, %v6412_v60 }
 0x3e6   : > { %v16585_v30 = vadd.f32 %v5797_v4, %v5228_v7  ;;  %v16587_v61 = vpop.f32.mrf.mxu1  ;;  %v6414_v52 = vpop.permute.xlu0 %6413  ;;  %v7406_v7 = vld.sshfl [vmem:[#allocation1] sm:$0xff pattern:$0x75316420]  ;;  %7463 = vrot.lane.b32.xlu0 %v7401_v49, %s13728_s17  ;;  %v20723_v49 = vld [vmem:[#allocation136_spill] sm:$0xff] }
 0x3e7   : > { %20717 = vst [vmem:[#allocation40_spill] sm:$0xff] %v16581_v53  ;;  %v16589_v22 = vpop.f32.mrf.mxu0  ;;  %v6456_v62 = vsel %vm6431_vm7, %v6412_v60, %v6414_v52  ;;  %7465 = vrot.lane.b32.xlu1 %v7406_v7, %s13728_s17  ;;  %v20724_v48 = vld [vmem:[#allocation156_spill] sm:$0xff] }
 0x3e8   : > { %20718 = vst [vmem:[#allocation89_spill] sm:$0xff] %v16589_v22  ;;  %v6416_v22 = vpop.permute.xlu1 %6415  ;;  %v6418_v39 = vpop.permute.xlu2 %6417  ;;  %v4177_v7 = vadd.f32 %v20724_v48, %v20723_v49  ;;  %v7408_v49 = vld.sshfl [vmem:[#allocation1 + $0x10] sm:$0xff pattern:$0x75316420] }
 0x3e9   : > { %13211 = vmatmul.msk.f32.gmra.mxu1 %vm370_vm2, %v16283_v24  ;;  %13217 = vmatmul.msk.f32.gmra.mxu3 %vm370_vm2, %v16283_v24  ;;  %v7409_v48 = vld.sshfl [vmem:[#allocation1 + $0x18] sm:$0xff pattern:$0x75316420] }
 0x3ea   : > { %13220 = vmatmul.msk.f32.gmra.mxu0 %vm370_vm2, %v16283_v24  ;;  %13225 = vmatmul.msk.f32.vlgmr.msrb.gmra.mxu2 %vm370_vm2, %v16237_v58  ;;  %v5232_v5 = vadd.f32 %v16148_v6, %v4177_v7  ;;  %7415 = vst [vmem:[#allocation1 + $0x10] ss:$2 sm:$0xff] %v16139_v36 }
 0x3eb   : > { %13248 = vmatpush.msk.msrb.mxu2 %vm375_vm1, %v6456_v62 }
 0x3ec   : > { %v5820_v4 = vpop.f32.mrf.mxu3 }
 0x3ed   : > { %v16606_v53 = vadd.f32 %v5820_v4, %v16082_v1  ;;  %v5886_v25 = vpop.f32.mrf.mxu2  ;;  %v6457_v1 = vsel %vm6431_vm7, %v6414_v52, %v6416_v22 }
 0x3ee   : > { %v16609_v10 = vadd.f32 %v5886_v25, %v5199_v16  ;;  %v16611_v43 = vpop.f32.mrf.mxu1  ;;  %v6458_v25 = vsel %vm6431_vm7, %v6416_v22, %v6418_v39  ;;  %v6420_v52 = vpop.permute.xlu0 %6419  ;;  %7469 = vrot.lane.b32.xlu0 %v7408_v49, %s13728_s17 }
 0x3ef   : > { %20721 = vst [vmem:[#allocation41_spill] sm:$0xff] %v16606_v53  ;;  %v16613_v62 = vpop.f32.mrf.mxu0  ;;  %7471 = vrot.lane.b32.xlu1 %v7409_v48, %s13728_s17 }
 0x3f0   : > { %20722 = vst [vmem:[#allocation93_spill] sm:$0xff] %v16613_v62  ;;  %v6424_v6 = vpop.permute.xlu2 %6423 }
 0x3f1   : > { %13222 = vmatmul.msk.f32.vlgmr.msra.gmra.mxu1 %vm370_vm2, %v16237_v58  ;;  %13228 = vmatmul.msk.f32.vlgmr.msrb.gmra.mxu3 %vm370_vm2, %v16237_v58 }
 0x3f2   : > { %13226 = vmatmul.msk.f32.gmra.mxu2 %vm370_vm2, %v16283_v24  ;;  %13231 = vmatmul.msk.f32.vlgmr.msra.gmra.mxu0 %vm370_vm2, %v16237_v58 }
 0x3f3   : > { %13245 = vmatpush.msk.msra.mxu1 %vm375_vm1, %v6455_v0  ;;  %13251 = vmatpush.msk.msrb.mxu3 %vm375_vm1, %v6457_v1  ;;  %v20727_v1 = vld [vmem:[#allocation139_spill] sm:$0xff] }
 0x3f4   : > { %v5909_v2 = vpop.f32.mrf.mxu3  ;;  %13254 = vmatpush.msk.msra.mxu0 %vm375_vm1, %v6458_v25  ;;  %v20728_v25 = vld [vmem:[#allocation91_spill] sm:$0xff] }
 0x3f5   : > { %v5889_v60 = vpop.f32.mrf.mxu2  ;;  %v16635_v22 = vadd.f32 %v5909_v2, %v16112_v31  ;;  %v4148_v7 = vadd.f32 %v20728_v25, %v20727_v1  ;;  %v16666_v1 = vld.sshfl [vmem:[#allocation1 + $0x10] sm:$0xff pattern:$0x75316420] }
 0x3f6   : > { %v16637_v16 = vadd.f32 %v5889_v60, %v5232_v5  ;;  %v16639_v4 = vpop.f32.mrf.mxu1  ;;  %v6422_v0 = vpop.permute.xlu1 %6421  ;;  %v20729_v60 = vld [vmem:[#allocation25_spill] sm:$0xff]  ;;  %v7400_v25 = vld.sshfl [vmem:[#allocation1 + $0x30] sm:$0xff pattern:$0x75316420]  ;;  %8422 = vst [vmem:[#allocation1 + $0x10] ss:$2 sm:$0xff] %v20637_v15 }
 0x3f7   : > { %20725 = vst [vmem:[#allocation137_spill] sm:$0xff] %v16635_v22  ;;  %v16641_v53 = vpop.f32.mrf.mxu0  ;;  %v6460_v31 = vsel %vm6431_vm7, %v6420_v52, %v6422_v0  ;;  %v5203_v5 = vadd.f32 %v16181_v20, %v4148_v7  ;;  %7461 = vrot.lane.b32.xlu2 %v7400_v25, %s13728_s17  ;;  %v6459_v20 = vsel %vm6431_vm7, %v6418_v39, %v6420_v52  ;;  %v20732_v7 = vld [vmem:[#allocation10_spill] sm:$0xff] }
 0x3f8   : > { %20726 = vst [vmem:[#allocation135_spill] sm:$0xff] %v16641_v53  ;;  %v6426_v53 = vpop.permute.xlu0 %6425  ;;  %v6430_v39 = vpop.permute.xlu2 %6429  ;;  %v7411_v52 = vld.sshfl [vmem:[#allocation1 + $0x28] sm:$0xff pattern:$0x75316420] }
 0x3f9   : > { %13223 = vmatmul.msk.f32.gmra.mxu1 %vm370_vm2, %v16283_v24  ;;  %13229 = vmatmul.msk.f32.gmra.mxu3 %vm370_vm2, %v16283_v24  ;;  %7405 = vst [vmem:[#allocation1 + $0x30] ss:$2 sm:$0xff] %v20732_v7 }
 0x3fa   : > { %13232 = vmatmul.msk.f32.gmra.mxu0 %vm370_vm2, %v16283_v24  ;;  %13237 = vmatmul.msk.f32.vlgmr.msra.gmra.mxu2 %vm370_vm2, %v16237_v58 }
 0x3fb   : > { %13260 = vmatpush.msk.msra.mxu2 %vm375_vm1, %v6460_v31  ;;  %v6461_v31 = vsel %vm6431_vm7, %v6422_v0, %v6424_v6  ;;  %7475 = vrot.lane.b32.xlu0 %v7411_v52, %s13728_s17  ;;  %v7407_v52 = vld.sshfl [vmem:[#allocation1 + $0x8] sm:$0xff pattern:$0x75316420] }
 0x3fc   : > { %v5912_v2 = vpop.f32.mrf.mxu3 }
 0x3fd   : > { %v16660_v49 = vadd.f32 %v5912_v2, %v20729_v60  ;;  %v5978_v48 = vpop.f32.mrf.mxu2  ;;  %v20733_v60 = vld [vmem:[#allocation142_spill] sm:$0xff] }
 0x3fe   : > { %v16662_v22 = vadd.f32 %v5978_v48, %v5203_v5  ;;  %v16664_v62 = vpop.f32.mrf.mxu1  ;;  %v6462_v5 = vsel %vm6431_vm7, %v6424_v6, %v6426_v53  ;;  %v6428_v2 = vpop.permute.xlu1 %6427  ;;  %v20734_v48 = vld [vmem:[#allocation157_spill] sm:$0xff] }
 0x3ff   : > { %20730 = vst [vmem:[#allocation43_spill] sm:$0xff] %v16660_v49  ;;  %v16668_v12 = vpop.f32.mrf.mxu0  ;;  %v4181_v15 = vadd.f32 %v20734_v48, %v20733_v60  ;;  %v20735_v60 = vld [vmem:[#allocation78_spill] sm:$0xff]  ;;  %7467 = vrot.lane.b32.xlu2 %v7407_v52, %s13728_s17  ;;  %v6463_v52 = vsel %vm6431_vm7, %v6426_v53, %v6428_v2 }
 0x400   : > { %20731 = vst [vmem:[#allocation92_spill] sm:$0xff] %v16668_v12 }
 0x401   : > { %13234 = vmatmul.msk.f32.vlgmr.msrb.gmra.mxu1 %vm370_vm2, %v16237_v58  ;;  %13240 = vmatmul.msk.f32.vlgmr.msra.gmra.mxu3 %vm370_vm2, %v16237_v58  ;;  %v5236_v0 = vadd.f32 %v16218_v54, %v4181_v15  ;;  %v20739_v54 = vld [vmem:[#allocation145_spill] sm:$0xff] }
 0x402   : > { %13238 = vmatmul.msk.f32.gmra.mxu2 %vm370_vm2, %v16283_v24  ;;  %13243 = vmatmul.msk.f32.vlgmr.msrb.gmra.mxu0 %vm370_vm2, %v16237_v58 }
 0x403   : > { %13257 = vmatpush.msk.msrb.mxu1 %vm375_vm1, %v6459_v20  ;;  %13263 = vmatpush.msk.msra.mxu3 %vm375_vm1, %v6461_v31  ;;  %v7412_v20 = vld.sshfl [vmem:[#allocation1 + $0x30] sm:$0xff pattern:$0x75316420]  ;;  %v6464_v31 = vsel %vm6431_vm7, %v6428_v2, %v6430_v39 }
 0x404   : > { %v6001_v25 = vpop.f32.mrf.mxu3  ;;  %13266 = vmatpush.msk.msrb.mxu0 %vm375_vm1, %v6462_v5  ;;  %7477 = vrot.lane.b32.xlu1 %v7412_v20, %s13728_s17  ;;  %v20740_v5 = vld [vmem:[#allocation97_spill] sm:$0xff] }
 0x405   : > { %v5981_v6 = vpop.f32.mrf.mxu2  ;;  %v16692_v48 = vadd.f32 %v6001_v25, %v20735_v60  ;;  %v4152_v15 = vadd.f32 %v20740_v5, %v20739_v54  ;;  %v16716_v60 = vpop.permute.xlu2 %7360  ;;  %v20742_v20 = vld [vmem:[#allocation29_spill] sm:$0xff] }
 0x406   : > { %v16694_v12 = vadd.f32 %v5981_v6, %v5236_v0  ;;  %v16696_v49 = vpop.f32.mrf.mxu1  ;;  %v7420_v26 = vpop.permute.xlu0 %7419  ;;  %v20741_v0 = vld [vmem:[#allocation11_spill] sm:$0xff] }
 0x407   : > { %20736 = vst [vmem:[#allocation44_spill] sm:$0xff] %v16692_v48  ;;  %v16698_v42 = vpop.f32.mrf.mxu0  ;;  %v7422_v39 = vpop.permute.xlu1 %7421  ;;  %v5207_v25 = vadd.f32 %v16249_v19, %v4152_v15  ;;  %v20746_v15 = vld [vmem:[#allocation103_spill] sm:$0xff] }
 0x408   : > { %20737 = vst [vmem:[#allocation96_spill] sm:$0xff] %v16694_v12 }
 0x409   : > { %20738 = vst [vmem:[#allocation140_spill] sm:$0xff] %v16698_v42  ;;  %13235 = vmatmul.msk.f32.gmra.mxu1 %vm370_vm2, %v16283_v24  ;;  %13241 = vmatmul.msk.f32.gmra.mxu3 %vm370_vm2, %v16283_v24 }
 0x40a   : > { %13244 = vmatmul.msk.f32.gmra.mxu0 %vm370_vm2, %v16283_v24  ;;  %13249 = vmatmul.msk.f32.vlgmr.msrb.gmra.mxu2 %vm370_vm2, %v16237_v58  ;;  %7414 = vst [vmem:[#allocation1] ss:$2 sm:$0xff] %v20741_v0  ;;  %v7488_v0 = vsel %vm7487_vm8, %v7420_v26, %v7422_v39  ;;  %v20748_v26 = vld [vmem:[#allocation2_spill] sm:$0xff] }
 0x40b   : > { %13272 = vmatpush.msk.msrb.mxu2 %vm375_vm1, %v6464_v31 }
 0x40c   : > { %v6004_v6 = vpop.f32.mrf.mxu3 }
 0x40d   : > { %v16719_v54 = vadd.f32 %v6004_v6, %v20742_v20  ;;  %v6070_v5 = vpop.f32.mrf.mxu2 }
 0x40e   : > { %v16721_v42 = vadd.f32 %v6070_v5, %v5207_v25  ;;  %v16723_v48 = vpop.f32.mrf.mxu1  ;;  %v7424_v31 = vpop.permute.xlu0 %7423  ;;  %v20747_v25 = vld [vmem:[#allocation158_spill] sm:$0xff] }
 0x40f   : > { %20743 = vst [vmem:[#allocation138_spill] sm:$0xff] %v16719_v54  ;;  %v16725_v35 = vpop.f32.mrf.mxu0  ;;  %v7489_v19 = vsel %vm7487_vm8, %v7422_v39, %v7424_v31  ;;  %v4185_v6 = vadd.f32 %v20747_v25, %v20746_v15  ;;  %v16743_v20 = vpop.permute.xlu1 %7362  ;;  %v7410_v39 = vld.sshfl [vmem:[#allocation1 + $0x20] sm:$0xff pattern:$0x75316420] }
 0x410   : > { %20744 = vst [vmem:[#allocation39_spill] sm:$0xff] %v16721_v42  ;;  %7473 = vrot.lane.b32.xlu2 %v7410_v39, %s13728_s17 }
 0x411   : > { %20745 = vst [vmem:[#allocation46_spill] sm:$0xff] %v16725_v35  ;;  %13246 = vmatmul.msk.f32.vlgmr.msra.gmra.mxu1 %vm370_vm2, %v16237_v58  ;;  %13252 = vmatmul.msk.f32.vlgmr.msrb.gmra.mxu3 %vm370_vm2, %v16237_v58  ;;  %v7417_v53 = vld.sshfl [vmem:[#allocation1 + $0x8] sm:$0xff pattern:$0x75316420]  ;;  %v5240_v5 = vadd.f32 %v16290_v33, %v4185_v6  ;;  %v7426_v33 = vpop.permute.xlu2 %7425 }
 0x412   : > { %13250 = vmatmul.msk.f32.gmra.mxu2 %vm370_vm2, %v16283_v24  ;;  %13255 = vmatmul.msk.f32.vlgmr.msra.gmra.mxu0 %vm370_vm2, %v16237_v58  ;;  %v7416_v2 = vld.sshfl [vmem:[#allocation1] sm:$0xff pattern:$0x75316420]  ;;  %8424 = vst [vmem:[#allocation1 + $0x20] ss:$2 sm:$0xff] %v20657_v32 }
 0x413   : > { %13269 = vmatpush.msk.msra.mxu1 %vm375_vm1, %v6463_v52  ;;  %13275 = vmatpush.msk.msrb.mxu3 %vm375_vm1, %v7488_v0  ;;  %8420 = vst [vmem:[#allocation1] ss:$2 sm:$0xff] %v20748_v26  ;;  %v20753_v32 = vld [vmem:[#allocation57_spill] sm:$0xff] }
 0x414   : > { %v6093_v15 = vpop.f32.mrf.mxu3  ;;  %13278 = vmatpush.msk.msra.mxu0 %vm375_vm1, %v7489_v19  ;;  %7483 = vrot.lane.b32.xlu1 %v7417_v53, %s13728_s17 }
 0x415   : > { %v6073_v25 = vpop.f32.mrf.mxu2  ;;  %v16750_v35 = vadd.f32 %v6093_v15, %v16247_v56  ;;  %7481 = vrot.lane.b32.xlu0 %v7416_v2, %s13728_s17  ;;  %v8428_v56 = vld.sshfl [vmem:[#allocation1 + $0x10] sm:$0xff pattern:$0x75316420]  ;;  %v20754_v2 = vld [vmem:[#allocation104_spill] sm:$0xff] }
 0x416   : > { %v16754_v0 = vadd.f32 %v6073_v25, %v5240_v5  ;;  %v16756_v52 = vpop.f32.mrf.mxu1  ;;  %v7428_v19 = vpop.permute.xlu0 %7427  ;;  %v4156_v26 = vadd.f32 %v20754_v2, %v20753_v32  ;;  %v20755_v5 = vld [vmem:[#allocation6_spill] sm:$0xff]  ;;  %v8429_v15 = vld.sshfl [vmem:[#allocation1 + $0x18] sm:$0xff pattern:$0x75316420] }
 0x417   : > { %20749 = vst [vmem:[#allocation95_spill] sm:$0xff] %v16750_v35  ;;  %v16758_v6 = vpop.f32.mrf.mxu0  ;;  %v7491_v53 = vsel %vm7487_vm8, %v7426_v33, %v7428_v19  ;;  %v20756_v35 = vld [vmem:[#allocation7_spill] sm:$0xff]  ;;  %v20757_v32 = vld [vmem:[#allocation80_spill] sm:$0xff] }
 0x418   : > { %20750 = vst [vmem:[#allocation3_spill] sm:$0xff] %v16754_v0  ;;  %v5211_v25 = vadd.f32 %v16327_v63, %v4156_v26  ;;  %v7430_v0 = vpop.permute.xlu1 %7429  ;;  %v20758_v63 = vld [vmem:[#allocation5_spill] sm:$0xff]  ;;  %v20760_v26 = vld [vmem:[#allocation159_spill] sm:$0xff] }
 0x419   : > { %20751 = vst [vmem:[#allocation47_spill] sm:$0xff] %v16756_v52  ;;  %13247 = vmatmul.msk.f32.gmra.mxu1 %vm370_vm2, %v16283_v24  ;;  %13253 = vmatmul.msk.f32.gmra.mxu3 %vm370_vm2, %v16283_v24  ;;  %v7413_v52 = vld.sshfl [vmem:[#allocation1 + $0x38] sm:$0xff pattern:$0x75316420] }
 0x41a   : > { %20752 = vst [vmem:[#allocation99_spill] sm:$0xff] %v16758_v6  ;;  %13256 = vmatmul.msk.f32.gmra.mxu0 %vm370_vm2, %v16283_v24  ;;  %13261 = vmatmul.msk.f32.vlgmr.msra.gmra.mxu2 %vm370_vm2, %v16237_v58  ;;  %v8427_v39 = vld.sshfl [vmem:[#allocation1 + $0x8] sm:$0xff pattern:$0x75316420] }
 0x41b   : > { %8434 = vst [vmem:[#allocation1] ss:$2 sm:$0xff] %v20755_v5  ;;  %13284 = vmatpush.msk.msra.mxu2 %vm375_vm1, %v7491_v53  ;;  %v7432_v53 = vpop.permute.xlu2 %7431  ;;  %7479 = vrot.lane.b32.xlu2 %v7413_v52, %s13728_s17 }
 0x41c   : > { %v6096_v6 = vpop.f32.mrf.mxu3  ;;  %8477 = vrot.lane.b32.xlu1 %v8428_v56, %s13719_s25  ;;  %8435 = vst [vmem:[#allocation1 + $0x10] ss:$2 sm:$0xff] %v20756_v35  ;;  %v7490_v35 = vsel %vm7487_vm8, %v7424_v31, %v7426_v33  ;;  %v20759_v56 = vld [vmem:[#allocation61_spill] sm:$0xff] }
 0x41d   : > { %v16777_v2 = vadd.f32 %v6096_v6, %v20757_v32  ;;  %v6162_v54 = vpop.f32.mrf.mxu2  ;;  %8475 = vrot.lane.b32.xlu0 %v8427_v39, %s13719_s25  ;;  %8426 = vst [vmem:[#allocation1 + $0x30] ss:$2 sm:$0xff] %v20758_v63  ;;  %v7492_v6 = vsel %vm7487_vm8, %v7428_v19, %v7430_v0  ;;  %v4189_v39 = vadd.f32 %v20760_v26, %v20759_v56  ;;  %v20762_v19 = vld [vmem:[#allocation128_spill] sm:$0xff]  ;;  %v8431_v26 = vld.sshfl [vmem:[#allocation1 + $0x28] sm:$0xff pattern:$0x75316420] }
 0x41e   : > { %v16780_v42 = vadd.f32 %v6162_v54, %v5211_v25  ;;  %v16782_v5 = vpop.f32.mrf.mxu1  ;;  %v7493_v54 = vsel %vm7487_vm8, %v7430_v0, %v7432_v53  ;;  %v7434_v63 = vpop.permute.xlu0 %7433 }
 0x41f   : > { %v16784_v12 = vpop.f32.mrf.mxu0  ;;  %v5244_v31 = vadd.f32 %v16361_v34, %v4189_v39 }
 0x420   : > { %v7436_v34 = vpop.permute.xlu1 %7435 }
 0x421   : > { %13258 = vmatmul.msk.f32.vlgmr.msrb.gmra.mxu1 %vm370_vm2, %v16237_v58  ;;  %13264 = vmatmul.msk.f32.vlgmr.msra.gmra.mxu3 %vm370_vm2, %v16237_v58 }
 0x422   : > { %13262 = vmatmul.msk.f32.gmra.mxu2 %vm370_vm2, %v16283_v24  ;;  %13267 = vmatmul.msk.f32.vlgmr.msrb.gmra.mxu0 %vm370_vm2, %v16237_v58 }
 0x423   : > { %13281 = vmatpush.msk.msrb.mxu1 %vm375_vm1, %v7490_v35  ;;  %13287 = vmatpush.msk.msra.mxu3 %vm375_vm1, %v7492_v6  ;;  %v20764_v6 = vld [vmem:[#allocation12_spill] sm:$0xff] }
 0x424   : > { %v6185_v52 = vpop.f32.mrf.mxu3  ;;  %13290 = vmatpush.msk.msrb.mxu0 %vm375_vm1, %v7493_v54  ;;  %8479 = vrot.lane.b32.xlu1 %v8429_v15, %s13719_s25  ;;  %v7495_v15 = vsel %vm7487_vm8, %v7434_v63, %v7436_v34  ;;  %v20765_v54 = vld [vmem:[#allocation110_spill] sm:$0xff] }
 0x425   : > { %v6165_v0 = vpop.f32.mrf.mxu2  ;;  %v16807_v33 = vadd.f32 %v6185_v52, %v16325_v28  ;;  %8418 = vrot.lane.b32.xlu0 %v20762_v19, %s13730_s23  ;;  %7485 = vrot.lane.b32.xlu2 %v16666_v1, %s13728_s17  ;;  %v8432_v28 = vld.sshfl [vmem:[#allocation1 + $0x30] sm:$0xff pattern:$0x75316420]  ;;  %v5182_v56 = vadd.f32 %v20765_v54, %v20764_v6 }
 0x426   : > { %v16810_v25 = vadd.f32 %v6165_v0, %v5244_v31  ;;  %v16812_v32 = vpop.f32.mrf.mxu1  ;;  %v7438_v31 = vpop.permute.xlu2 %7437 }
 0x427   : > { %20761 = vst [vmem:[#allocation143_spill] sm:$0xff] %v16807_v33  ;;  %v16814_v35 = vpop.f32.mrf.mxu0  ;;  %v6237_v1 = vadd.f32 %v16395_v38, %v5182_v56  ;;  %v7440_v54 = vpop.permute.xlu0 %7439  ;;  %v7494_v38 = vsel %vm7487_vm8, %v7432_v53, %v7434_v63  ;;  %v20769_v56 = vld [vmem:[#allocation113_spill] sm:$0xff] }
 0x428   : > { %20763 = vst [vmem:[#allocation141_spill] sm:$0xff] %v16814_v35 }
 0x429   : > { %13259 = vmatmul.msk.f32.gmra.mxu1 %vm370_vm2, %v16283_v24  ;;  %13265 = vmatmul.msk.f32.gmra.mxu3 %vm370_vm2, %v16283_v24 }
 0x42a   : > { %13268 = vmatmul.msk.f32.gmra.mxu0 %vm370_vm2, %v16283_v24  ;;  %13273 = vmatmul.msk.f32.vlgmr.msrb.gmra.mxu2 %vm370_vm2, %v16237_v58 }
 0x42b   : > { %13296 = vmatpush.msk.msrb.mxu2 %vm375_vm1, %v7495_v15  ;;  %v7496_v15 = vsel %vm7487_vm8, %v7436_v34, %v7438_v31 }
 0x42c   : > { %v6188_v39 = vpop.f32.mrf.mxu3  ;;  %8485 = vrot.lane.b32.xlu1 %v8432_v28, %s13719_s25  ;;  %v20768_v28 = vld [vmem:[#allocation13_spill] sm:$0xff] }
 0x42d   : > { %v16833_v52 = vadd.f32 %v6188_v39, %v16359_v47  ;;  %v6552_v0 = vpop.f32.mrf.mxu2  ;;  %8483 = vrot.lane.b32.xlu0 %v8431_v26, %s13719_s25  ;;  %8416 = vrot.lane.b32.xlu2 %v16386_v50, %s13730_s23  ;;  %v7497_v47 = vsel %vm7487_vm8, %v7438_v31, %v7440_v54  ;;  %v5215_v26 = vadd.f32 %v20769_v56, %v20768_v28  ;;  %v8438_v50 = vld.sshfl [vmem:[#allocation1] sm:$0xff pattern:$0x75316420] }
 0x42e   : > { %v16836_v19 = vadd.f32 %v6552_v0, %v6237_v1  ;;  %v16838_v6 = vpop.f32.mrf.mxu1  ;;  %v7442_v1 = vpop.permute.xlu1 %7441  ;;  %v8430_v56 = vld.sshfl [vmem:[#allocation1 + $0x20] sm:$0xff pattern:$0x75316420] }
 0x42f   : > { %20766 = vst [vmem:[#allocation49_spill] sm:$0xff] %v16833_v52  ;;  %v16840_v35 = vpop.f32.mrf.mxu0  ;;  %v7444_v0 = vpop.permute.xlu2 %7443 }
 0x430   : > { %20767 = vst [vmem:[#allocation98_spill] sm:$0xff] %v16840_v35  ;;  %v13731_v35 = vmov 0  }
 0x431   : > { %13270 = vmatmul.msk.f32.vlgmr.msra.gmra.mxu1 %vm370_vm2, %v16237_v58  ;;  %13276 = vmatmul.msk.f32.vlgmr.msrb.gmra.mxu3 %vm370_vm2, %v16716_v60  ;;  %v6270_v58 = vadd.f32 %v16425_v55, %v5215_v26  ;;  %v7499_v55 = vsel %vm7487_vm8, %v7442_v1, %v7444_v0  ;;  %v8441_v26 = vld.sshfl [vmem:[#allocation1 + $0x18] sm:$0xff pattern:$0x75316420]  ;;  %8436 = vst [vmem:[#allocation1 + $0x20] ss:$2 sm:$0xff] %v13808_v14 }
 0x432   : > { %13274 = vmatmul.msk.f32.gmra.mxu2 %vm370_vm2, %v16283_v24  ;;  %13279 = vmatmul.msk.f32.vlgmr.msra.gmra.mxu0 %vm370_vm2, %v16716_v60 }
 0x433   : > { %13293 = vmatpush.msk.msra.mxu1 %vm375_vm1, %v7494_v38  ;;  %13299 = vmatpush.msk.msrb.mxu3 %vm375_vm1, %v7496_v15  ;;  %v8439_v38 = vld.sshfl [vmem:[#allocation1 + $0x8] sm:$0xff pattern:$0x75316420] }
 0x434   : > { %v6575_v53 = vpop.f32.mrf.mxu3  ;;  %13302 = vmatpush.msk.msra.mxu0 %vm375_vm1, %v7497_v47  ;;  %8491 = vrot.lane.b32.xlu1 %v8439_v38, %s13719_s25  ;;  %8446 = vst [vmem:[#allocation1] ss:$2 sm:$0xff] %v13816_v18  ;;  %v20773_v15 = vld [vmem:[#allocation66_spill] sm:$0xff] }
 0x435   : > { %v6555_v63 = vpop.f32.mrf.mxu2  ;;  %v16861_v34 = vadd.f32 %v6575_v53, %v16393_v21  ;;  %8489 = vrot.lane.b32.xlu0 %v8438_v50, %s13719_s25  ;;  %v20772_v21 = vld [vmem:[#allocation15_spill] sm:$0xff]  ;;  %8481 = vrot.lane.b32.xlu2 %v8430_v56, %s13719_s25  ;;  %v7446_v50 = vpop.permute.xlu0 %7445 }
 0x436   : > { %v16864_v39 = vadd.f32 %v6555_v63, %v6270_v58  ;;  %v16866_v31 = vpop.f32.mrf.mxu1  ;;  %v5186_v47 = vadd.f32 %v20773_v15, %v20772_v21  ;;  %v7448_v21 = vpop.permute.xlu1 %7447  ;;  %v7498_v15 = vsel %vm7487_vm8, %v7440_v54, %v7442_v1  ;;  %v7500_v14 = vsel %vm7487_vm8, %v7444_v0, %v7446_v50  ;;  %v8433_v54 = vld.sshfl [vmem:[#allocation1 + $0x38] sm:$0xff pattern:$0x75316420]  ;;  %13568 = vset.pattern.permute.xlu0 %v13731_v35 }
 0x437   : > { %20770 = vst [vmem:[#allocation50_spill] sm:$0xff] %v16861_v34  ;;  %v16868_v28 = vpop.f32.mrf.mxu0  ;;  %13569 = vset.pattern.permute.xlu1 %v13731_v35 }
 0x438   : > { %20771 = vst [vmem:[#allocation102_spill] sm:$0xff] %v16868_v28  ;;  %v6241_v18 = vadd.f32 %v16449_v51, %v5186_v47  ;;  %v20776_v51 = vld [vmem:[#allocation18_spill] sm:$0xff]  ;;  %v8442_v1 = vld.sshfl [vmem:[#allocation1 + $0x20] sm:$0xff pattern:$0x75316420] }
 0x439   : > { %13271 = vmatmul.msk.f32.gmra.mxu1 %vm370_vm2, %v16283_v24  ;;  %13277 = vmatmul.msk.f32.gmra.mxu3 %vm370_vm2, %v16743_v20  ;;  %v20777_v47 = vld [vmem:[#allocation114_spill] sm:$0xff]  ;;  %8437 = vst [vmem:[#allocation1 + $0x30] ss:$2 sm:$0xff] %v13813_v17 }
 0x43a   : > { %13280 = vmatmul.msk.f32.gmra.mxu0 %vm370_vm2, %v16743_v20  ;;  %13285 = vmatmul.msk.f32.vlgmr.msra.gmra.mxu2 %vm370_vm2, %v16716_v60  ;;  %v5219_v56 = vadd.f32 %v20777_v47, %v20776_v51 }
 0x43b   : > { %13308 = vmatpush.msk.msra.mxu2 %vm375_vm1, %v7499_v55 }
 0x43c   : > { %v6578_v24 = vpop.f32.mrf.mxu3  ;;  %v6274_v0 = vadd.f32 %v16477_v9, %v5219_v56  ;;  %8497 = vrot.lane.b32.xlu1 %v8442_v1, %s13719_s25 }
 0x43d   : > { %v16888_v58 = vadd.f32 %v6578_v24, %v16423_v44  ;;  %v6644_v53 = vpop.f32.mrf.mxu2  ;;  %8495 = vrot.lane.b32.xlu0 %v8441_v26, %s13719_s25  ;;  %v7501_v44 = vsel %vm7487_vm8, %v7446_v50, %v7448_v21  ;;  %8487 = vrot.lane.b32.xlu2 %v8433_v54, %s13719_s25  ;;  %v7450_v50 = vpop.permute.xlu2 %7449 }
 0x43e   : > { %v16891_v63 = vadd.f32 %v6644_v53, %v6241_v18  ;;  %v16893_v38 = vpop.f32.mrf.mxu1 }
 0x43f   : > { %20774 = vst [vmem:[#allocation146_spill] sm:$0xff] %v16888_v58  ;;  %v16895_v55 = vpop.f32.mrf.mxu0 }
 0x440   : > { %20775 = vst [vmem:[#allocation144_spill] sm:$0xff] %v16895_v55  ;;  %v8444_v47 = vld.sshfl [vmem:[#allocation1 + $0x30] sm:$0xff pattern:$0x75316420] }
 0x441   : > { %13282 = vmatmul.msk.f32.vlgmr.msrb.gmra.mxu1 %vm370_vm2, %v16716_v60  ;;  %13288 = vmatmul.msk.f32.vlgmr.msra.gmra.mxu3 %vm370_vm2, %v16716_v60  ;;  %v8445_v56 = vld.sshfl [vmem:[#allocation1 + $0x38] sm:$0xff pattern:$0x75316420] }
 0x442   : > { %13286 = vmatmul.msk.f32.gmra.mxu2 %vm370_vm2, %v16743_v20  ;;  %13291 = vmatmul.msk.f32.vlgmr.msrb.gmra.mxu0 %vm370_vm2, %v16716_v60  ;;  %8449 = vst [vmem:[#allocation1 + $0x30] ss:$2 sm:$0xff] %v13837_v29  ;;  %v7502_v29 = vsel %vm7487_vm8, %v7448_v21, %v7450_v50 }
 0x443   : > { %13305 = vmatpush.msk.msrb.mxu1 %vm375_vm1, %v7498_v15  ;;  %13311 = vmatpush.msk.msra.mxu3 %vm375_vm1, %v7500_v14  ;;  %v7452_v14 = vpop.permute.xlu0 %7451 }
 0x444   : > { %v6667_v26 = vpop.f32.mrf.mxu3  ;;  %13314 = vmatpush.msk.msrb.mxu0 %vm375_vm1, %v7501_v44  ;;  %v7503_v9 = vsel %vm7487_vm8, %v7450_v50, %v7452_v14  ;;  %v20781_v44 = vld [vmem:[#allocation65_spill] sm:$0xff]  ;;  %8503 = vrot.lane.b32.xlu1 %v8445_v56, %s13719_s25 }
 0x445   : > { %v6647_v18 = vpop.f32.mrf.mxu2  ;;  %v16917_v24 = vadd.f32 %v6667_v26, %v16447_v37  ;;  %v20780_v37 = vld [vmem:[#allocation21_spill] sm:$0xff]  ;;  %8501 = vrot.lane.b32.xlu0 %v8444_v47, %s13719_s25  ;;  %v8440_v47 = vld.sshfl [vmem:[#allocation1 + $0x10] sm:$0xff pattern:$0x75316420] }
 0x446   : > { %v16920_v53 = vadd.f32 %v6647_v18, %v6274_v0  ;;  %v16922_v15 = vpop.f32.mrf.mxu1  ;;  %v5190_v51 = vadd.f32 %v20781_v44, %v20780_v37  ;;  %v7454_v18 = vpop.permute.xlu1 %7453  ;;  %8493 = vrot.lane.b32.xlu2 %v8440_v47, %s13719_s25  ;;  %8447 = vst [vmem:[#allocation1 + $0x10] ss:$2 sm:$0xff] %v13825_v23  ;;  %v8451_v47 = vld.sshfl [vmem:[#allocation1 + $0x8] sm:$0xff pattern:$0x75316420] }
 0x447   : > { %20778 = vst [vmem:[#allocation45_spill] sm:$0xff] %v16917_v24  ;;  %v16924_v17 = vpop.f32.mrf.mxu0  ;;  %v7456_v24 = vpop.permute.xlu2 %7455 }
 0x448   : > { %20779 = vst [vmem:[#allocation52_spill] sm:$0xff] %v16924_v17  ;;  %v6245_v54 = vadd.f32 %v16502_v46, %v5190_v51  ;;  %v7504_v46 = vsel %vm7487_vm8, %v7452_v14, %v7454_v18  ;;  %v20785_v51 = vld [vmem:[#allocation69_spill] sm:$0xff] }
 0x449   : > { %13283 = vmatmul.msk.f32.gmra.mxu1 %vm370_vm2, %v16743_v20  ;;  %13289 = vmatmul.msk.f32.gmra.mxu3 %vm370_vm2, %v16743_v20 }
 0x44a   : > { %13292 = vmatmul.msk.f32.gmra.mxu0 %vm370_vm2, %v16743_v20  ;;  %13297 = vmatmul.msk.f32.vlgmr.msrb.gmra.mxu2 %vm370_vm2, %v16716_v60 }
 0x44b   : > { %13320 = vmatpush.msk.msrb.mxu2 %vm375_vm1, %v7503_v9  ;;  %v20784_v9 = vld [vmem:[#allocation24_spill] sm:$0xff] }
 0x44c   : > { %v6670_v1 = vpop.f32.mrf.mxu3  ;;  %v5223_v56 = vadd.f32 %v20785_v51, %v20784_v9 }
 0x44d   : > { %v16942_v0 = vadd.f32 %v6670_v1, %v16475_v59  ;;  %v6736_v26 = vpop.f32.mrf.mxu2  ;;  %v7505_v59 = vsel %vm7487_vm8, %v7454_v18, %v7456_v24  ;;  %v8452_v18 = vld.sshfl [vmem:[#allocation1 + $0x10] sm:$0xff pattern:$0x75316420]  ;;  %8507 = vrot.lane.b32.xlu0 %v8451_v47, %s13719_s25 }
 0x44e   : > { %v16945_v37 = vadd.f32 %v6736_v26, %v6245_v54  ;;  %v16947_v44 = vpop.f32.mrf.mxu1  ;;  %v6278_v23 = vadd.f32 %v16531_v3, %v5223_v56  ;;  %v7458_v26 = vpop.permute.xlu0 %7457  ;;  %8509 = vrot.lane.b32.xlu1 %v8452_v18, %s13719_s25 }
 0x44f   : > { %20782 = vst [vmem:[#allocation101_spill] sm:$0xff] %v16942_v0  ;;  %v16949_v58 = vpop.f32.mrf.mxu0 }
 0x450   : > { %20783 = vst [vmem:[#allocation4_spill] sm:$0xff] %v16949_v58 }
 0x451   : > { %13294 = vmatmul.msk.f32.vlgmr.msra.gmra.mxu1 %vm370_vm2, %v16716_v60  ;;  %13300 = vmatmul.msk.f32.vlgmr.msrb.gmra.mxu3 %vm370_vm2, %v16716_v60 }
 0x452   : > { %13298 = vmatmul.msk.f32.gmra.mxu2 %vm370_vm2, %v16743_v20  ;;  %13303 = vmatmul.msk.f32.vlgmr.msra.gmra.mxu0 %vm370_vm2, %v16716_v60 }
 0x453   : > { %13317 = vmatpush.msk.msra.mxu1 %vm375_vm1, %v7502_v29  ;;  %13323 = vmatpush.msk.msrb.mxu3 %vm375_vm1, %v7504_v46  ;;  %v7460_v29 = vpop.permute.xlu1 %7459  ;;  %v20789_v46 = vld [vmem:[#allocation68_spill] sm:$0xff] }
 0x454   : > { %v6759_v21 = vpop.f32.mrf.mxu3  ;;  %13326 = vmatpush.msk.msra.mxu0 %vm375_vm1, %v7505_v59  ;;  %v7507_v3 = vsel %vm7487_vm8, %v7458_v26, %v7460_v29 }
 0x455   : > { %v6739_v50 = vpop.f32.mrf.mxu2  ;;  %v16971_v14 = vadd.f32 %v6759_v21, %v16500_v8  ;;  %v20788_v8 = vld [vmem:[#allocation82_spill] sm:$0xff] }
 0x456   : > { %v16973_v54 = vadd.f32 %v6739_v50, %v6278_v23  ;;  %v16975_v1 = vpop.f32.mrf.mxu1  ;;  %v5194_v59 = vadd.f32 %v20789_v46, %v20788_v8  ;;  %v7462_v23 = vpop.permute.xlu2 %7461  ;;  %v8443_v21 = vld.sshfl [vmem:[#allocation1 + $0x28] sm:$0xff pattern:$0x75316420] }
 0x457   : > { %20786 = vst [vmem:[#allocation53_spill] sm:$0xff] %v16971_v14  ;;  %v16977_v9 = vpop.f32.mrf.mxu0  ;;  %8499 = vrot.lane.b32.xlu2 %v8443_v21, %s13719_s25 }
 0x458   : > { %20787 = vst [vmem:[#allocation106_spill] sm:$0xff] %v16977_v9  ;;  %v6249_v51 = vadd.f32 %v16556_v45, %v5194_v59  ;;  %v7464_v46 = vpop.permute.xlu0 %7463  ;;  %v7506_v45 = vsel %vm7487_vm8, %v7456_v24, %v7458_v26  ;;  %v20793_v59 = vld [vmem:[#allocation72_spill] sm:$0xff] }
 0x459   : > { %13295 = vmatmul.msk.f32.gmra.mxu1 %vm370_vm2, %v16743_v20  ;;  %13301 = vmatmul.msk.f32.gmra.mxu3 %vm370_vm2, %v16743_v20  ;;  %8448 = vst [vmem:[#allocation1 + $0x20] ss:$2 sm:$0xff] %v13831_v27  ;;  %v20792_v27 = vld [vmem:[#allocation30_spill] sm:$0xff] }
 0x45a   : > { %13304 = vmatmul.msk.f32.gmra.mxu0 %vm370_vm2, %v16743_v20  ;;  %13309 = vmatmul.msk.f32.vlgmr.msra.gmra.mxu2 %vm370_vm2, %v16716_v60 }
 0x45b   : > { %13332 = vmatpush.msk.msra.mxu2 %vm375_vm1, %v7507_v3  ;;  %v7508_v3 = vsel %vm7487_vm8, %v7460_v29, %v7462_v23  ;;  %v7466_v21 = vpop.permute.xlu1 %7465 }
 0x45c   : > { %v6762_v56 = vpop.f32.mrf.mxu3 }
 0x45d   : > { %v16995_v50 = vadd.f32 %v6762_v56, %v16529_v57  ;;  %v6828_v18 = vpop.f32.mrf.mxu2  ;;  %v7509_v57 = vsel %vm7487_vm8, %v7462_v23, %v7464_v46 }
 0x45e   : > { %v16999_v47 = vadd.f32 %v6828_v18, %v6249_v51  ;;  %v17001_v8 = vpop.f32.mrf.mxu1  ;;  %v5227_v51 = vadd.f32 %v20793_v59, %v20792_v27 }
 0x45f   : > { %20790 = vst [vmem:[#allocation148_spill] sm:$0xff] %v16995_v50  ;;  %v17003_v14 = vpop.f32.mrf.mxu0 }
 0x460   : > { %20791 = vst [vmem:[#allocation147_spill] sm:$0xff] %v17003_v14  ;;  %v6282_v24 = vadd.f32 %v16587_v61, %v5227_v51  ;;  %v8454_v29 = vld.sshfl [vmem:[#allocation1 + $0x20] sm:$0xff pattern:$0x75316420] }
 0x461   : > { %13306 = vmatmul.msk.f32.vlgmr.msrb.gmra.mxu1 %vm370_vm2, %v16716_v60  ;;  %13312 = vmatmul.msk.f32.vlgmr.msra.gmra.mxu3 %vm370_vm2, %v16716_v60  ;;  %v8455_v59 = vld.sshfl [vmem:[#allocation1 + $0x28] sm:$0xff pattern:$0x75316420] }
 0x462   : > { %13310 = vmatmul.msk.f32.gmra.mxu2 %vm370_vm2, %v16743_v20  ;;  %13315 = vmatmul.msk.f32.vlgmr.msrb.gmra.mxu0 %vm370_vm2, %v16716_v60  ;;  %8460 = vst [vmem:[#allocation1 + $0x20] ss:$2 sm:$0xff] %v13861_v40 }
 0x463   : > { %13329 = vmatpush.msk.msrb.mxu1 %vm375_vm1, %v7506_v45  ;;  %13335 = vmatpush.msk.msra.mxu3 %vm375_vm1, %v7508_v3  ;;  %v7468_v45 = vpop.permute.xlu2 %7467  ;;  %v7472_v50 = vpop.permute.xlu1 %7471 }
 0x464   : > { %v6851_v26 = vpop.f32.mrf.mxu3  ;;  %13338 = vmatpush.msk.msrb.mxu0 %vm375_vm1, %v7509_v57  ;;  %8513 = vrot.lane.b32.xlu0 %v8454_v29, %s13719_s25  ;;  %v7511_v61 = vsel %vm7487_vm8, %v7466_v21, %v7468_v45  ;;  %v20797_v57 = vld [vmem:[#allocation117_spill] sm:$0xff] }
 0x465   : > { %v6831_v56 = vpop.f32.mrf.mxu2  ;;  %v17023_v23 = vadd.f32 %v6851_v26, %v16554_v13  ;;  %8515 = vrot.lane.b32.xlu1 %v8455_v59, %s13719_s25  ;;  %v20796_v13 = vld [vmem:[#allocation88_spill] sm:$0xff]  ;;  %v8450_v26 = vld.sshfl [vmem:[#allocation1] sm:$0xff pattern:$0x75316420] }
 0x466   : > { %v17026_v18 = vadd.f32 %v6831_v56, %v6282_v24  ;;  %v17028_v27 = vpop.f32.mrf.mxu1  ;;  %v5198_v51 = vadd.f32 %v20797_v57, %v20796_v13  ;;  %v8457_v24 = vld.sshfl [vmem:[#allocation1 + $0x38] sm:$0xff pattern:$0x75316420]  ;;  %8505 = vrot.lane.b32.xlu2 %v8450_v26, %s13719_s25  ;;  %8458 = vst [vmem:[#allocation1] ss:$2 sm:$0xff] %v20598_v11  ;;  %v7470_v56 = vpop.permute.xlu0 %7469  ;;  %v7510_v26 = vsel %vm7487_vm8, %v7464_v46, %v7466_v21 }
 0x467   : > { %20794 = vst [vmem:[#allocation55_spill] sm:$0xff] %v17023_v23  ;;  %v17030_v3 = vpop.f32.mrf.mxu0  ;;  %v7512_v11 = vsel %vm7487_vm8, %v7468_v45, %v7470_v56  ;;  %v8453_v46 = vld.sshfl [vmem:[#allocation1 + $0x18] sm:$0xff pattern:$0x75316420] }
 0x468   : > { %20795 = vst [vmem:[#allocation105_spill] sm:$0xff] %v17030_v3  ;;  %v6253_v40 = vadd.f32 %v16611_v43, %v5198_v51  ;;  %v20799_v43 = vld [vmem:[#allocation36_spill] sm:$0xff]  ;;  %v20800_v51 = vld [vmem:[#allocation71_spill] sm:$0xff] }
 0x469   : > { %13307 = vmatmul.msk.f32.gmra.mxu1 %vm370_vm2, %v16743_v20  ;;  %13313 = vmatmul.msk.f32.gmra.mxu3 %vm370_vm2, %v16743_v20  ;;  %8459 = vst [vmem:[#allocation1 + $0x10] ss:$2 sm:$0xff] %v20613_v41 }
 0x46a   : > { %13316 = vmatmul.msk.f32.gmra.mxu0 %vm370_vm2, %v16743_v20  ;;  %13321 = vmatmul.msk.f32.vlgmr.msrb.gmra.mxu2 %vm370_vm2, %v16716_v60 }
 0x46b   : > { %13344 = vmatpush.msk.msrb.mxu2 %vm375_vm1, %v7511_v61 }
 0x46c   : > { %v6854_v29 = vpop.f32.mrf.mxu3  ;;  %8519 = vrot.lane.b32.xlu0 %v8457_v24, %s13719_s25  ;;  %v5231_v24 = vadd.f32 %v20800_v51, %v20799_v43 }
 0x46d   : > { %v17050_v59 = vadd.f32 %v6854_v29, %v16585_v30  ;;  %v6920_v13 = vpop.f32.mrf.mxu2  ;;  %v7513_v30 = vsel %vm7487_vm8, %v7470_v56, %v7472_v50  ;;  %v8462_v21 = vld.sshfl [vmem:[#allocation1] sm:$0xff pattern:$0x75316420] }
 0x46e   : > { %v17053_v57 = vadd.f32 %v6920_v13, %v6253_v40  ;;  %v17055_v23 = vpop.f32.mrf.mxu1  ;;  %v6286_v45 = vadd.f32 %v16639_v4, %v5231_v24  ;;  %8511 = vrot.lane.b32.xlu2 %v8453_v46, %s13719_s25  ;;  %v7474_v13 = vpop.permute.xlu2 %7473  ;;  %8521 = vrot.lane.b32.xlu1 %v8462_v21, %s13719_s25 }
 0x46f   : > { %20798 = vst [vmem:[#allocation56_spill] sm:$0xff] %v17050_v59  ;;  %v17057_v61 = vpop.f32.mrf.mxu0 }
 0x470   : > { %v8464_v24 = vld.sshfl [vmem:[#allocation1 + $0x10] sm:$0xff pattern:$0x75316420]  ;;  %v8465_v46 = vld.sshfl [vmem:[#allocation1 + $0x18] sm:$0xff pattern:$0x75316420] }
 0x471   : > { %13318 = vmatmul.msk.f32.vlgmr.msra.gmra.mxu1 %vm370_vm2, %v16716_v60  ;;  %13324 = vmatmul.msk.f32.vlgmr.msrb.gmra.mxu3 %vm370_vm2, %v16716_v60  ;;  %8471 = vst [vmem:[#allocation1 + $0x10] ss:$2 sm:$0xff] %v16139_v36  ;;  %v7514_v36 = vsel %vm7487_vm8, %v7472_v50, %v7474_v13 }
 0x472   : > { %13322 = vmatmul.msk.f32.gmra.mxu2 %vm370_vm2, %v16743_v20  ;;  %13327 = vmatmul.msk.f32.vlgmr.msra.gmra.mxu0 %vm370_vm2, %v16716_v60 }
 0x473   : > { %13341 = vmatpush.msk.msra.mxu1 %vm375_vm1, %v7510_v26  ;;  %13347 = vmatpush.msk.msrb.mxu3 %vm375_vm1, %v7512_v11  ;;  %v7476_v11 = vpop.permute.xlu0 %7475 }
 0x474   : > { %v6943_v40 = vpop.f32.mrf.mxu3  ;;  %13350 = vmatpush.msk.msra.mxu0 %vm375_vm1, %v7513_v30  ;;  %v7515_v4 = vsel %vm7487_vm8, %v7474_v13, %v7476_v11  ;;  %v20803_v30 = vld [vmem:[#allocation75_spill] sm:$0xff]  ;;  %8525 = vrot.lane.b32.xlu0 %v8464_v24, %s13719_s25 }
 0x475   : > { %v6923_v29 = vpop.f32.mrf.mxu2  ;;  %v17079_v56 = vadd.f32 %v6943_v40, %v16609_v10  ;;  %v20802_v10 = vld [vmem:[#allocation94_spill] sm:$0xff]  ;;  %v8456_v24 = vld.sshfl [vmem:[#allocation1 + $0x30] sm:$0xff pattern:$0x75316420] }
 0x476   : > { %v17082_v43 = vadd.f32 %v6923_v29, %v6286_v45  ;;  %v17084_v26 = vpop.f32.mrf.mxu1  ;;  %v5202_v51 = vadd.f32 %v20803_v30, %v20802_v10  ;;  %v7478_v40 = vpop.permute.xlu1 %7477  ;;  %8527 = vrot.lane.b32.xlu1 %v8465_v46, %s13719_s25  ;;  %8517 = vrot.lane.b32.xlu2 %v8456_v24, %s13719_s25  ;;  %8461 = vst [vmem:[#allocation1 + $0x30] ss:$2 sm:$0xff] %v20732_v7 }
 0x477   : > { %20801 = vst [vmem:[#allocation109_spill] sm:$0xff] %v17079_v56  ;;  %v17086_v41 = vpop.f32.mrf.mxu0  ;;  %v7480_v59 = vpop.permute.xlu2 %7479 }
 0x478   : > { %v6257_v21 = vadd.f32 %v16664_v62, %v5202_v51  ;;  %v7516_v62 = vsel %vm7487_vm8, %v7476_v11, %v7478_v40  ;;  %v20806_v51 = vld [vmem:[#allocation74_spill] sm:$0xff] }
 0x479   : > { %13319 = vmatmul.msk.f32.gmra.mxu1 %vm370_vm2, %v16743_v20  ;;  %13325 = vmatmul.msk.f32.gmra.mxu3 %vm370_vm2, %v16743_v20 }
 0x47a   : > { %13328 = vmatmul.msk.f32.gmra.mxu0 %vm370_vm2, %v16743_v20  ;;  %13333 = vmatmul.msk.f32.vlgmr.msra.gmra.mxu2 %vm370_vm2, %v16716_v60 }
 0x47b   : > { %13356 = vmatpush.msk.msra.mxu2 %vm375_vm1, %v7515_v4  ;;  %v20805_v4 = vld [vmem:[#allocation42_spill] sm:$0xff] }
 0x47c   : > { %v6946_v45 = vpop.f32.mrf.mxu3  ;;  %v5235_v46 = vadd.f32 %v20806_v51, %v20805_v4 }
 0x47d   : > { %v17104_v29 = vadd.f32 %v6946_v45, %v16637_v16  ;;  %v7012_v10 = vpop.f32.mrf.mxu2  ;;  %v7517_v16 = vsel %vm7487_vm8, %v7478_v40, %v7480_v59  ;;  %v8468_v24 = vld.sshfl [vmem:[#allocation1 + $0x30] sm:$0xff pattern:$0x75316420]  ;;  %v8469_v35 = vld.sshfl [vmem:[#allocation1 + $0x38] sm:$0xff pattern:$0x75316420] }
 0x47e   : > { %v17107_v30 = vadd.f32 %v7012_v10, %v6257_v21  ;;  %v17109_v56 = vpop.f32.mrf.mxu1  ;;  %v6290_v7 = vadd.f32 %v16696_v49, %v5235_v46  ;;  %v8467_v10 = vld.sshfl [vmem:[#allocation1 + $0x28] sm:$0xff pattern:$0x75316420]  ;;  %8533 = vrot.lane.b32.xlu1 %v8468_v24, %s13719_s25 }
 0x47f   : > { %20804 = vst [vmem:[#allocation150_spill] sm:$0xff] %v17104_v29  ;;  %v17111_v0 = vpop.f32.mrf.mxu0  ;;  %8531 = vrot.lane.b32.xlu0 %v8467_v10, %s13719_s25  ;;  %v20810_v29 = vld [vmem:[#allocation11_spill] sm:$0xff] }
 0x481   : > { %13330 = vmatmul.msk.f32.vlgmr.msrb.gmra.mxu1 %vm370_vm2, %v16716_v60  ;;  %13336 = vmatmul.msk.f32.vlgmr.msra.gmra.mxu3 %vm370_vm2, %v16716_v60 }
 0x482   : > { %13334 = vmatmul.msk.f32.gmra.mxu2 %vm370_vm2, %v16743_v20  ;;  %13339 = vmatmul.msk.f32.vlgmr.msrb.gmra.mxu0 %vm370_vm2, %v16716_v60 }
 0x483   : > { %13353 = vmatpush.msk.msrb.mxu1 %vm375_vm1, %v7514_v36  ;;  %13359 = vmatpush.msk.msra.mxu3 %vm375_vm1, %v7516_v62  ;;  %v7486_v62 = vpop.permute.xlu2 %7485 }
 0x484   : > { %v7035_v50 = vpop.f32.mrf.mxu3  ;;  %13362 = vmatpush.msk.msrb.mxu0 %vm375_vm1, %v7517_v16  ;;  %v20808_v16 = vld [vmem:[#allocation28_spill] sm:$0xff] }
 0x485   : > { %v7015_v13 = vpop.f32.mrf.mxu2  ;;  %v17133_v11 = vadd.f32 %v7035_v50, %v16662_v22  ;;  %v20807_v22 = vld [vmem:[#allocation100_spill] sm:$0xff]  ;;  %v8463_v50 = vld.sshfl [vmem:[#allocation1 + $0x8] sm:$0xff pattern:$0x75316420] }
 0x486   : > { %v17135_v21 = vadd.f32 %v7015_v13, %v6290_v7  ;;  %v17137_v45 = vpop.f32.mrf.mxu1  ;;  %v7484_v40 = vpop.permute.xlu1 %7483  ;;  %v5206_v51 = vadd.f32 %v20808_v16, %v20807_v22  ;;  %v20809_v13 = vld [vmem:[#allocation96_spill] sm:$0xff]  ;;  %8523 = vrot.lane.b32.xlu2 %v8463_v50, %s13719_s25  ;;  %8470 = vst [vmem:[#allocation1] ss:$2 sm:$0xff] %v20810_v29  ;;  %v20812_v50 = vld [vmem:[#allocation81_spill] sm:$0xff] }
 0x487   : > { %v17139_v4 = vpop.f32.mrf.mxu0  ;;  %v7482_v36 = vpop.permute.xlu0 %7481 }
 0x488   : > { %v7519_v49 = vsel %vm7487_vm8, %v7482_v36, %v7484_v40  ;;  %v6261_v46 = vadd.f32 %v16723_v48, %v5206_v51  ;;  %v7518_v48 = vsel %vm7487_vm8, %v7480_v59, %v7482_v36  ;;  %v7520_v51 = vsel %vm7487_vm8, %v7484_v40, %v7486_v62  ;;  %v20813_v59 = vld [vmem:[#allocation47_spill] sm:$0xff] }
 0x489   : > { %13331 = vmatmul.msk.f32.gmra.mxu1 %vm370_vm2, %v16743_v20  ;;  %13337 = vmatmul.msk.f32.gmra.mxu3 %vm370_vm2, %v16743_v20 }
 0x48a   : > { %13340 = vmatmul.msk.f32.gmra.mxu0 %vm370_vm2, %v16743_v20  ;;  %13345 = vmatmul.msk.f32.vlgmr.msrb.gmra.mxu2 %vm370_vm2, %v16716_v60 }
 0x48b   : > { %13368 = vmatpush.msk.msrb.mxu2 %vm375_vm1, %v7519_v49 }
 0x48c   : > { %v7038_v7 = vpop.f32.mrf.mxu3 }
 0x48d   : > { %v17157_v10 = vadd.f32 %v7038_v7, %v20809_v13  ;;  %v7104_v24 = vpop.f32.mrf.mxu2  ;;  %v17169_v7 = vpop.permute.xlu2 %8416  ;;  %v8472_v62 = vld.sshfl [vmem:[#allocation1] sm:$0xff pattern:$0x75316420] }
 0x48e   : > { %v17161_v22 = vadd.f32 %v7104_v24, %v6261_v46  ;;  %v17163_v16 = vpop.f32.mrf.mxu1  ;;  %v8478_v3 = vpop.permute.xlu1 %8477  ;;  %v20811_v46 = vld [vmem:[#allocation48_spill] sm:$0xff]  ;;  %8537 = vrot.lane.b32.xlu0 %v8472_v62, %s13719_s25  ;;  %v8466_v62 = vld.sshfl [vmem:[#allocation1 + $0x20] sm:$0xff pattern:$0x75316420] }
 0x48f   : > { %v17165_v14 = vpop.f32.mrf.mxu0  ;;  %v8476_v49 = vpop.permute.xlu0 %8475  ;;  %v5239_v13 = vadd.f32 %v20812_v50, %v20811_v46  ;;  %8529 = vrot.lane.b32.xlu2 %v8466_v62, %s13719_s25 }
 0x490   : > { %v8544_v29 = vsel %vm8543_vm9, %v8476_v49, %v8478_v3  ;;  %v20814_v49 = vld [vmem:[#allocation39_spill] sm:$0xff] }
 0x491   : > { %13342 = vmatmul.msk.f32.vlgmr.msra.gmra.mxu1 %vm370_vm2, %v16716_v60  ;;  %13348 = vmatmul.msk.f32.vlgmr.msrb.gmra.mxu3 %vm370_vm2, %v16716_v60  ;;  %v6294_v40 = vadd.f32 %v20813_v59, %v5239_v13  ;;  %v20815_v59 = vld [vmem:[#allocation107_spill] sm:$0xff] }
 0x492   : > { %13346 = vmatmul.msk.f32.gmra.mxu2 %vm370_vm2, %v16743_v20  ;;  %13351 = vmatmul.msk.f32.vlgmr.msra.gmra.mxu0 %vm370_vm2, %v16716_v60 }
 0x493   : > { %13365 = vmatpush.msk.msra.mxu1 %vm375_vm1, %v7518_v48  ;;  %13371 = vmatpush.msk.msrb.mxu3 %vm375_vm1, %v7520_v51  ;;  %v8473_v48 = vld.sshfl [vmem:[#allocation1 + $0x8] sm:$0xff pattern:$0x75316420] }
 0x494   : > { %v7127_v36 = vpop.f32.mrf.mxu3  ;;  %13374 = vmatpush.msk.msra.mxu0 %vm375_vm1, %v8544_v29  ;;  %8539 = vrot.lane.b32.xlu1 %v8473_v48, %s13719_s25  ;;  %v20817_v48 = vld [vmem:[#allocation3_spill] sm:$0xff] }
 0x495   : > { %v7107_v24 = vpop.f32.mrf.mxu2  ;;  %v17187_v34 = vadd.f32 %v7127_v36, %v20814_v49  ;;  %v8482_v29 = vpop.permute.xlu2 %8481 }
 0x496   : > { %v17190_v46 = vadd.f32 %v7107_v24, %v6294_v40  ;;  %v17192_v50 = vpop.f32.mrf.mxu1  ;;  %v8480_v9 = vpop.permute.xlu1 %8479  ;;  %v20816_v40 = vld [vmem:[#allocation123_spill] sm:$0xff] }
 0x497   : > { %v17194_v58 = vpop.f32.mrf.mxu0  ;;  %v17196_v51 = vpop.permute.xlu0 %8418  ;;  %v8546_v13 = vsel %vm8543_vm9, %v8480_v9, %v8482_v29  ;;  %v5210_v36 = vadd.f32 %v20816_v40, %v20815_v59  ;;  %8535 = vrot.lane.b32.xlu2 %v8469_v35, %s13719_s25 }
 0x499   : > { %13343 = vmatmul.msk.f32.gmra.mxu1 %vm370_vm2, %v16743_v20  ;;  %13349 = vmatmul.msk.f32.gmra.mxu3 %vm370_vm2, %v16743_v20  ;;  %v6265_v24 = vadd.f32 %v16782_v5, %v5210_v36  ;;  %v8545_v36 = vsel %vm8543_vm9, %v8478_v3, %v8480_v9 }
 0x49a   : > { %13352 = vmatmul.msk.f32.gmra.mxu0 %vm370_vm2, %v16743_v20  ;;  %13357 = vmatmul.msk.f32.vlgmr.msra.gmra.mxu2 %vm370_vm2, %v16716_v60 }
 0x49b   : > { %13380 = vmatpush.msk.msra.mxu2 %vm375_vm1, %v8546_v13  ;;  %v9472_v13 = vld [vmem:[%s20293_s2] sm:$0xff] }
 0x49c   : > { %v7130_v49 = vpop.f32.mrf.mxu3  ;;  %9476 = vperm.xlu0 %13568, %v9472_v13  }
 0x49d   : > { %v17214_v17 = vadd.f32 %v7130_v49, %v20817_v48  ;;  %v7196_v55 = vpop.f32.mrf.mxu2  ;;  %v20820_v48 = vld [vmem:[#allocation32_spill] sm:$0xff] }
 0x49e   : > { %v17216_v28 = vadd.f32 %v7196_v55, %v6265_v24  ;;  %v17218_v59 = vpop.f32.mrf.mxu1  ;;  %v8486_v40 = vpop.permute.xlu1 %8485  ;;  %v20819_v24 = vld [vmem:[#allocation54_spill] sm:$0xff] }
 0x49f   : > { %v17223_v62 = vpop.f32.mrf.mxu0  ;;  %v8484_v5 = vpop.permute.xlu0 %8483  ;;  %v5243_v52 = vadd.f32 %v20820_v48, %v20819_v24 }
 0x4a0   : > { %20818 = vst [vmem:[#allocation149_spill] sm:$0xff] %v17223_v62  ;;  %v8547_v49 = vsel %vm8543_vm9, %v8482_v29, %v8484_v5  ;;  %v8548_v55 = vsel %vm8543_vm9, %v8484_v5, %v8486_v40  ;;  %v8488_v48 = vpop.permute.xlu2 %8487 }
 0x4a1   : > { %13354 = vmatmul.msk.f32.vlgmr.msrb.gmra.mxu1 %vm370_vm2, %v16716_v60  ;;  %13360 = vmatmul.msk.f32.vlgmr.msra.gmra.mxu3 %vm370_vm2, %v16716_v60  ;;  %v6298_v9 = vadd.f32 %v16812_v32, %v5243_v52 }
 0x4a2   : > { %13358 = vmatmul.msk.f32.gmra.mxu2 %vm370_vm2, %v16743_v20  ;;  %13363 = vmatmul.msk.f32.vlgmr.msrb.gmra.mxu0 %vm370_vm2, %v16716_v60 }
 0x4a3   : > { %13377 = vmatpush.msk.msrb.mxu1 %vm375_vm1, %v8545_v36  ;;  %13383 = vmatpush.msk.msra.mxu3 %vm375_vm1, %v8547_v49  ;;  %v9473_v36 = vld [vmem:[%s20293_s2 + $0x8] sm:$0xff] }
 0x4a4   : > { %v7219_v3 = vpop.f32.mrf.mxu3  ;;  %13386 = vmatpush.msk.msrb.mxu0 %vm375_vm1, %v8548_v55  ;;  %9481 = vperm.xlu1 %13569, %v9473_v36   ;;  %v20824_v55 = vld [vmem:[#allocation126_spill] sm:$0xff] }
 0x4a5   : > { %v7199_v29 = vpop.f32.mrf.mxu2  ;;  %v17244_v13 = vadd.f32 %v7219_v3, %v16780_v42  ;;  %v20823_v42 = vld [vmem:[#allocation58_spill] sm:$0xff] }
 0x4a6   : > { %v17246_v5 = vadd.f32 %v7199_v29, %v6298_v9  ;;  %v17248_v24 = vpop.f32.mrf.mxu1  ;;  %v5214_v35 = vadd.f32 %v20824_v55, %v20823_v42  ;;  %v8474_v55 = vld.sshfl [vmem:[#allocation1 + $0x10] sm:$0xff pattern:$0x75316420] }
 0x4a7   : > { %v17253_v49 = vpop.f32.mrf.mxu0  ;;  %v8490_v32 = vpop.permute.xlu0 %8489  ;;  %8541 = vrot.lane.b32.xlu2 %v8474_v55, %s13719_s25  ;;  %s13543_s25 = smul.u32 528, %s21087_s13 }
 0x4a8   : > { %20821 = vst [vmem:[#allocation51_spill] sm:$0xff] %v17246_v5  ;;  %v8550_v52 = vsel %vm8543_vm9, %v8488_v48, %v8490_v32  ;;  %v6269_v9 = vadd.f32 %v16838_v6, %v5214_v35  ;;  %v8494_v42 = vpop.permute.xlu2 %8493  ;;  %v20826_v35 = vld [vmem:[#allocation14_spill] sm:$0xff] }
 0x4a9   : > { %20822 = vst [vmem:[#allocation59_spill] sm:$0xff] %v17253_v49  ;;  %13355 = vmatmul.msk.f32.gmra.mxu1 %vm370_vm2, %v16743_v20  ;;  %13361 = vmatmul.msk.f32.gmra.mxu3 %vm370_vm2, %v16743_v20  ;;  %v8492_v49 = vpop.permute.xlu1 %8491  ;;  %s17918_s30 = scalar_lea.vmem %s20294_s3, %s13543_s25 }
 0x4aa   : > { %13364 = vmatmul.msk.f32.gmra.mxu0 %vm370_vm2, %v16743_v20  ;;  %13369 = vmatmul.msk.f32.vlgmr.msrb.gmra.mxu2 %vm370_vm2, %v16716_v60  ;;  %v8551_v6 = vsel %vm8543_vm9, %v8490_v32, %v8492_v49 }
 0x4ab   : > { %13392 = vmatpush.msk.msrb.mxu2 %vm375_vm1, %v8550_v52  ;;  %v8549_v52 = vsel %vm8543_vm9, %v8486_v40, %v8488_v48 }
 0x4ac   : > { %v7222_v3 = vpop.f32.mrf.mxu3 }
 0x4ad   : > { %v17269_v29 = vadd.f32 %v7222_v3, %v16810_v25  ;;  %v7288_v36 = vpop.f32.mrf.mxu2  ;;  %v8552_v25 = vsel %vm8543_vm9, %v8492_v49, %v8494_v42 }
 0x4ae   : > { %v17271_v5 = vadd.f32 %v7288_v36, %v6269_v9  ;;  %v17273_v62 = vpop.f32.mrf.mxu1  ;;  %v20827_v9 = vld [vmem:[#allocation34_spill] sm:$0xff] }
 0x4af   : > { %v17275_v33 = vpop.f32.mrf.mxu0  ;;  %v5247_v3 = vadd.f32 %v20827_v9, %v20826_v35  ;;  %v8496_v55 = vpop.permute.xlu0 %8495 }
 0x4b0   : > { %20825 = vst [vmem:[#allocation108_spill] sm:$0xff] %v17275_v33 }
 0x4b1   : > { %13366 = vmatmul.msk.f32.vlgmr.msra.gmra.mxu1 %vm370_vm2, %v16716_v60  ;;  %13372 = vmatmul.msk.f32.vlgmr.msrb.gmra.mxu3 %vm370_vm2, %v16716_v60  ;;  %v6302_v40 = vadd.f32 %v16866_v31, %v5247_v3  ;;  %v8498_v9 = vpop.permute.xlu1 %8497  ;;  %v20830_v31 = vld [vmem:[#allocation62_spill] sm:$0xff] }
 0x4b2   : > { %13370 = vmatmul.msk.f32.gmra.mxu2 %vm370_vm2, %v16743_v20  ;;  %13375 = vmatmul.msk.f32.vlgmr.msra.gmra.mxu0 %vm370_vm2, %v17169_v7 }
 0x4b3   : > { %13389 = vmatpush.msk.msra.mxu1 %vm375_vm1, %v8549_v52  ;;  %13395 = vmatpush.msk.msrb.mxu3 %vm375_vm1, %v8551_v6  ;;  %v8554_v52 = vsel %vm8543_vm9, %v8496_v55, %v8498_v9  ;;  %v20831_v6 = vld [vmem:[#allocation8_spill] sm:$0xff] }
 0x4b4   : > { %v7608_v48 = vpop.f32.mrf.mxu3  ;;  %13398 = vmatpush.msk.msra.mxu0 %vm375_vm1, %v8552_v25 }
 0x4b5   : > { %v7291_v60 = vpop.f32.mrf.mxu2  ;;  %v17296_v49 = vadd.f32 %v7608_v48, %v16836_v19  ;;  %v6240_v19 = vadd.f32 %v20831_v6, %v20830_v31 }
 0x4b6   : > { %v17298_v32 = vadd.f32 %v7291_v60, %v6302_v40  ;;  %v17300_v36 = vpop.f32.mrf.mxu1  ;;  %v8500_v40 = vpop.permute.xlu2 %8499 }
 0x4b7   : > { %v17302_v35 = vpop.f32.mrf.mxu0  ;;  %v7297_v25 = vadd.f32 %v16893_v38, %v6240_v19  ;;  %v8502_v31 = vpop.permute.xlu0 %8501  ;;  %v8555_v33 = vsel %vm8543_vm9, %v8498_v9, %v8500_v40  ;;  %v20833_v38 = vld [vmem:[#allocation16_spill] sm:$0xff] }
 0x4b8   : > { %20828 = vst [vmem:[#allocation60_spill] sm:$0xff] %v17298_v32  ;;  %v8553_v32 = vsel %vm8543_vm9, %v8494_v42, %v8496_v55 }
 0x4b9   : > { %20829 = vst [vmem:[#allocation112_spill] sm:$0xff] %v17302_v35  ;;  %13367 = vmatmul.msk.f32.gmra.mxu1 %vm370_vm2, %v16743_v20  ;;  %13373 = vmatmul.msk.f32.gmra.mxu3 %vm370_vm2, %v16743_v20 }
 0x4ba   : > { %13376 = vmatmul.msk.f32.gmra.mxu0 %vm370_vm2, %v17196_v51  ;;  %13381 = vmatmul.msk.f32.vlgmr.msra.gmra.mxu2 %vm370_vm2, %v17169_v7 }
 0x4bb   : > { %13404 = vmatpush.msk.msra.mxu2 %vm375_vm1, %v8554_v52  ;;  %v20834_v52 = vld [vmem:[#allocation87_spill] sm:$0xff] }
 0x4bc   : > { %v7611_v3 = vpop.f32.mrf.mxu3  ;;  %v6273_v19 = vadd.f32 %v20834_v52, %v20833_v38 }
 0x4bd   : > { %v17318_v48 = vadd.f32 %v7611_v3, %v16864_v39  ;;  %v7677_v60 = vpop.f32.mrf.mxu2  ;;  %v8556_v39 = vsel %vm8543_vm9, %v8500_v40, %v8502_v31  ;;  %v8504_v3 = vpop.permute.xlu1 %8503 }
 0x4be   : > { %v17320_v20 = vadd.f32 %v7677_v60, %v7297_v25  ;;  %v17322_v35 = vpop.f32.mrf.mxu1  ;;  %v7330_v42 = vadd.f32 %v16922_v15, %v6273_v19  ;;  %v20839_v15 = vld [vmem:[#allocation129_spill] sm:$0xff] }
 0x4bf   : > { %v17324_v6 = vpop.f32.mrf.mxu0 }
 0x4c0   : > { %20832 = vst [vmem:[#allocation152_spill] sm:$0xff] %v17320_v20  ;;  %v8506_v38 = vpop.permute.xlu2 %8505 }
 0x4c1   : > { %13378 = vmatmul.msk.f32.vlgmr.msrb.gmra.mxu1 %vm370_vm2, %v17169_v7  ;;  %13384 = vmatmul.msk.f32.vlgmr.msra.gmra.mxu3 %vm370_vm2, %v17169_v7 }
 0x4c2   : > { %13382 = vmatmul.msk.f32.gmra.mxu2 %vm370_vm2, %v17196_v51  ;;  %13387 = vmatmul.msk.f32.vlgmr.msrb.gmra.mxu0 %vm370_vm2, %v17169_v7 }
 0x4c3   : > { %13401 = vmatpush.msk.msrb.mxu1 %vm375_vm1, %v8553_v32  ;;  %13407 = vmatpush.msk.msra.mxu3 %vm375_vm1, %v8555_v33  ;;  %v8558_v32 = vsel %vm8543_vm9, %v8504_v3, %v8506_v38  ;;  %v20838_v33 = vld [vmem:[#allocation17_spill] sm:$0xff] }
 0x4c4   : > { %v7700_v55 = vpop.f32.mrf.mxu3  ;;  %13410 = vmatpush.msk.msrb.mxu0 %vm375_vm1, %v8556_v39 }
 0x4c5   : > { %v7680_v9 = vpop.f32.mrf.mxu2  ;;  %v17344_v25 = vadd.f32 %v7700_v55, %v16891_v63  ;;  %v6244_v63 = vadd.f32 %v20839_v15, %v20838_v33  ;;  %v8510_v33 = vpop.permute.xlu1 %8509 }
 0x4c6   : > { %v17346_v40 = vadd.f32 %v7680_v9, %v7330_v42  ;;  %v17348_v60 = vpop.f32.mrf.mxu1  ;;  %v8508_v9 = vpop.permute.xlu0 %8507 }
 0x4c7   : > { %20835 = vst [vmem:[#allocation151_spill] sm:$0xff] %v17344_v25  ;;  %v17350_v52 = vpop.f32.mrf.mxu0  ;;  %v7301_v39 = vadd.f32 %v16947_v44, %v6244_v63  ;;  %v8559_v25 = vsel %vm8543_vm9, %v8506_v38, %v8508_v9  ;;  %v20842_v44 = vld [vmem:[#allocation19_spill] sm:$0xff] }
 0x4c8   : > { %20836 = vst [vmem:[#allocation63_spill] sm:$0xff] %v17346_v40 }
 0x4c9   : > { %20837 = vst [vmem:[#allocation111_spill] sm:$0xff] %v17350_v52  ;;  %13379 = vmatmul.msk.f32.gmra.mxu1 %vm370_vm2, %v17196_v51  ;;  %13385 = vmatmul.msk.f32.gmra.mxu3 %vm370_vm2, %v17196_v51  ;;  %v8557_v52 = vsel %vm8543_vm9, %v8502_v31, %v8504_v3 }
 0x4ca   : > { %13388 = vmatmul.msk.f32.gmra.mxu0 %vm370_vm2, %v17196_v51  ;;  %13393 = vmatmul.msk.f32.vlgmr.msrb.gmra.mxu2 %vm370_vm2, %v17169_v7 }
 0x4cb   : > { %13416 = vmatpush.msk.msrb.mxu2 %vm375_vm1, %v8558_v32  ;;  %v20843_v32 = vld [vmem:[#allocation86_spill] sm:$0xff] }
 0x4cc   : > { %v7703_v19 = vpop.f32.mrf.mxu3  ;;  %v6277_v63 = vadd.f32 %v20843_v32, %v20842_v44 }
 0x4cd   : > { %v17366_v42 = vadd.f32 %v7703_v19, %v16920_v53  ;;  %v7769_v55 = vpop.f32.mrf.mxu2  ;;  %v8560_v53 = vsel %vm8543_vm9, %v8508_v9, %v8510_v33  ;;  %v8512_v9 = vpop.permute.xlu2 %8511 }
 0x4ce   : > { %v17368_v40 = vadd.f32 %v7769_v55, %v7301_v39  ;;  %v17370_v20 = vpop.f32.mrf.mxu1  ;;  %v7334_v31 = vadd.f32 %v16975_v1, %v6277_v63  ;;  %v20846_v1 = vld [vmem:[#allocation20_spill] sm:$0xff] }
 0x4cf   : > { %20840 = vst [vmem:[#allocation64_spill] sm:$0xff] %v17366_v42  ;;  %v17372_v15 = vpop.f32.mrf.mxu0 }
 0x4d0   : > { %20841 = vst [vmem:[#allocation115_spill] sm:$0xff] %v17368_v40 }
 0x4d1   : > { %13390 = vmatmul.msk.f32.vlgmr.msra.gmra.mxu1 %vm370_vm2, %v17169_v7  ;;  %13396 = vmatmul.msk.f32.vlgmr.msrb.gmra.mxu3 %vm370_vm2, %v17169_v7 }
 0x4d2   : > { %13394 = vmatmul.msk.f32.gmra.mxu2 %vm370_vm2, %v17196_v51  ;;  %13399 = vmatmul.msk.f32.vlgmr.msra.gmra.mxu0 %vm370_vm2, %v17169_v7 }
 0x4d3   : > { %13413 = vmatpush.msk.msra.mxu1 %vm375_vm1, %v8557_v52  ;;  %13419 = vmatpush.msk.msrb.mxu3 %vm375_vm1, %v8559_v25  ;;  %v20847_v25 = vld [vmem:[#allocation90_spill] sm:$0xff] }
 0x4d4   : > { %v7792_v3 = vpop.f32.mrf.mxu3  ;;  %13422 = vmatpush.msk.msra.mxu0 %vm375_vm1, %v8560_v53 }
 0x4d5   : > { %v7772_v38 = vpop.f32.mrf.mxu2  ;;  %v17392_v39 = vadd.f32 %v7792_v3, %v16945_v37  ;;  %v6248_v37 = vadd.f32 %v20847_v25, %v20846_v1  ;;  %v8518_v1 = vpop.permute.xlu2 %8517 }
 0x4d6   : > { %v17394_v19 = vadd.f32 %v7772_v38, %v7334_v31  ;;  %v17396_v55 = vpop.f32.mrf.mxu1  ;;  %v8514_v32 = vpop.permute.xlu0 %8513 }
 0x4d7   : > { %20844 = vst [vmem:[#allocation153_spill] sm:$0xff] %v17392_v39  ;;  %v17398_v44 = vpop.f32.mrf.mxu0  ;;  %v8562_v52 = vsel %vm8543_vm9, %v8512_v9, %v8514_v32  ;;  %v7305_v53 = vadd.f32 %v17001_v8, %v6248_v37  ;;  %v8516_v38 = vpop.permute.xlu1 %8515  ;;  %v8561_v39 = vsel %vm8543_vm9, %v8510_v33, %v8512_v9  ;;  %v20850_v8 = vld [vmem:[#allocation119_spill] sm:$0xff] }
 0x4d8   : > { %20845 = vst [vmem:[#allocation116_spill] sm:$0xff] %v17394_v19  ;;  %v8563_v42 = vsel %vm8543_vm9, %v8514_v32, %v8516_v38 }
 0x4d9   : > { %13391 = vmatmul.msk.f32.gmra.mxu1 %vm370_vm2, %v17196_v51  ;;  %13397 = vmatmul.msk.f32.gmra.mxu3 %vm370_vm2, %v17196_v51 }
 0x4da   : > { %13400 = vmatmul.msk.f32.gmra.mxu0 %vm370_vm2, %v17196_v51  ;;  %13405 = vmatmul.msk.f32.vlgmr.msra.gmra.mxu2 %vm370_vm2, %v17169_v7 }
 0x4db   : > { %13428 = vmatpush.msk.msra.mxu2 %vm375_vm1, %v8562_v52  ;;  %v20851_v52 = vld [vmem:[#allocation132_spill] sm:$0xff] }
 0x4dc   : > { %v7795_v63 = vpop.f32.mrf.mxu3  ;;  %v6281_v37 = vadd.f32 %v20851_v52, %v20850_v8 }
 0x4dd   : > { %v17414_v31 = vadd.f32 %v7795_v63, %v16973_v54  ;;  %v7861_v3 = vpop.f32.mrf.mxu2  ;;  %v8564_v54 = vsel %vm8543_vm9, %v8516_v38, %v8518_v1 }
 0x4de   : > { %v17416_v19 = vadd.f32 %v7861_v3, %v7305_v53  ;;  %v17418_v40 = vpop.f32.mrf.mxu1  ;;  %v7338_v33 = vadd.f32 %v17028_v27, %v6281_v37  ;;  %v8520_v38 = vpop.permute.xlu0 %8519  ;;  %v20854_v27 = vld [vmem:[#allocation22_spill] sm:$0xff] }
 0x4df   : > { %20848 = vst [vmem:[#allocation154_spill] sm:$0xff] %v17414_v31  ;;  %v17420_v25 = vpop.f32.mrf.mxu0 }
 0x4e0   : > { %20849 = vst [vmem:[#allocation118_spill] sm:$0xff] %v17416_v19  ;;  %v8522_v52 = vpop.permute.xlu1 %8521 }
 0x4e1   : > { %13402 = vmatmul.msk.f32.vlgmr.msrb.gmra.mxu1 %vm370_vm2, %v17169_v7  ;;  %13408 = vmatmul.msk.f32.vlgmr.msra.gmra.mxu3 %vm370_vm2, %v17169_v7 }
 0x4e2   : > { %13406 = vmatmul.msk.f32.gmra.mxu2 %vm370_vm2, %v17196_v51  ;;  %13411 = vmatmul.msk.f32.vlgmr.msrb.gmra.mxu0 %vm370_vm2, %v17169_v7 }
 0x4e3   : > { %13425 = vmatpush.msk.msrb.mxu1 %vm375_vm1, %v8561_v39  ;;  %13431 = vmatpush.msk.msra.mxu3 %vm375_vm1, %v8563_v42  ;;  %v8566_v39 = vsel %vm8543_vm9, %v8520_v38, %v8522_v52  ;;  %v20855_v42 = vld [vmem:[#allocation9_spill] sm:$0xff] }
 0x4e4   : > { %v7884_v9 = vpop.f32.mrf.mxu3  ;;  %13434 = vmatpush.msk.msrb.mxu0 %vm375_vm1, %v8564_v54 }
 0x4e5   : > { %v7864_v32 = vpop.f32.mrf.mxu2  ;;  %v17440_v53 = vadd.f32 %v7884_v9, %v16999_v47  ;;  %v6252_v47 = vadd.f32 %v20855_v42, %v20854_v27 }
 0x4e6   : > { %v17442_v63 = vadd.f32 %v7864_v32, %v7338_v33  ;;  %v17444_v3 = vpop.f32.mrf.mxu1  ;;  %v8524_v33 = vpop.permute.xlu2 %8523 }
 0x4e7   : > { %20852 = vst [vmem:[#allocation67_spill] sm:$0xff] %v17440_v53  ;;  %v17446_v8 = vpop.f32.mrf.mxu0  ;;  %v7309_v54 = vadd.f32 %v17055_v23, %v6252_v47  ;;  %v8526_v27 = vpop.permute.xlu0 %8525  ;;  %v8565_v53 = vsel %vm8543_vm9, %v8518_v1, %v8520_v38  ;;  %v8567_v31 = vsel %vm8543_vm9, %v8522_v52, %v8524_v33 }
 0x4e8   : > { %20853 = vst [vmem:[#allocation121_spill] sm:$0xff] %v17442_v63  ;;  %v8568_v23 = vsel %vm8543_vm9, %v8524_v33, %v8526_v27 }
 0x4e9   : > { %13403 = vmatmul.msk.f32.gmra.mxu1 %vm370_vm2, %v17196_v51  ;;  %13409 = vmatmul.msk.f32.gmra.mxu3 %vm370_vm2, %v17196_v51 }
 0x4ea   : > { %13412 = vmatmul.msk.f32.gmra.mxu0 %vm370_vm2, %v17196_v51  ;;  %13417 = vmatmul.msk.f32.vlgmr.msrb.gmra.mxu2 %vm370_vm2, %v17169_v7 }
 0x4eb   : > { %13440 = vmatpush.msk.msrb.mxu2 %vm375_vm1, %v8566_v39  ;;  %v20859_v39 = vld [vmem:[#allocation89_spill] sm:$0xff] }
 0x4ec   : > { %v7887_v37 = vpop.f32.mrf.mxu3 }
 0x4ed   : > { %v17462_v9 = vadd.f32 %v7887_v37, %v17026_v18  ;;  %v7953_v32 = vpop.f32.mrf.mxu2  ;;  %v20858_v18 = vld [vmem:[#allocation23_spill] sm:$0xff]  ;;  %v8528_v37 = vpop.permute.xlu1 %8527 }
 0x4ee   : > { %v17464_v63 = vadd.f32 %v7953_v32, %v7309_v54  ;;  %v17466_v19 = vpop.f32.mrf.mxu1  ;;  %v6285_v47 = vadd.f32 %v20859_v39, %v20858_v18  ;;  %v8530_v18 = vpop.permute.xlu2 %8529 }
 0x4ef   : > { %v17468_v42 = vpop.f32.mrf.mxu0 }
 0x4f0   : > { %20856 = vst [vmem:[#allocation70_spill] sm:$0xff] %v17464_v63  ;;  %v7342_v1 = vadd.f32 %v17084_v26, %v6285_v47  ;;  %v20863_v26 = vld [vmem:[#allocation120_spill] sm:$0xff] }
 0x4f1   : > { %20857 = vst [vmem:[#allocation122_spill] sm:$0xff] %v17468_v42  ;;  %13414 = vmatmul.msk.f32.vlgmr.msra.gmra.mxu1 %vm370_vm2, %v17169_v7  ;;  %13420 = vmatmul.msk.f32.vlgmr.msrb.gmra.mxu3 %vm370_vm2, %v17169_v7 }
 0x4f2   : > { %13418 = vmatmul.msk.f32.gmra.mxu2 %vm370_vm2, %v17196_v51  ;;  %13423 = vmatmul.msk.f32.vlgmr.msra.gmra.mxu0 %vm370_vm2, %v17169_v7 }
 0x4f3   : > { %13437 = vmatpush.msk.msra.mxu1 %vm375_vm1, %v8565_v53  ;;  %13443 = vmatpush.msk.msrb.mxu3 %vm375_vm1, %v8567_v31  ;;  %v8570_v53 = vsel %vm8543_vm9, %v8528_v37, %v8530_v18  ;;  %v20864_v31 = vld [vmem:[#allocation93_spill] sm:$0xff] }
 0x4f4   : > { %v7976_v38 = vpop.f32.mrf.mxu3  ;;  %13446 = vmatpush.msk.msra.mxu0 %vm375_vm1, %v8568_v23 }
 0x4f5   : > { %v7956_v52 = vpop.f32.mrf.mxu2  ;;  %v17488_v54 = vadd.f32 %v7976_v38, %v17053_v57  ;;  %v6256_v57 = vadd.f32 %v20864_v31, %v20863_v26  ;;  %v8534_v42 = vpop.permute.xlu1 %8533 }
 0x4f6   : > { %v17490_v33 = vadd.f32 %v7956_v52, %v7342_v1  ;;  %v17492_v32 = vpop.f32.mrf.mxu1  ;;  %v20865_v1 = vld [vmem:[#allocation137_spill] sm:$0xff] }
 0x4f7   : > { %20860 = vst [vmem:[#allocation73_spill] sm:$0xff] %v17488_v54  ;;  %v17494_v39 = vpop.f32.mrf.mxu0  ;;  %v7313_v23 = vadd.f32 %v17109_v56, %v6256_v57  ;;  %v7312_v38 = vadd.f32 %v17057_v61, %v20865_v1  ;;  %v8569_v56 = vsel %vm8543_vm9, %v8526_v27, %v8528_v37 }
 0x4f8   : > { %20861 = vst [vmem:[#allocation124_spill] sm:$0xff] %v17490_v33  ;;  %v8532_v33 = vpop.permute.xlu0 %8531 }
 0x4f9   : > { %20862 = vst [vmem:[#allocation76_spill] sm:$0xff] %v17494_v39  ;;  %13415 = vmatmul.msk.f32.gmra.mxu1 %vm370_vm2, %v17196_v51  ;;  %13421 = vmatmul.msk.f32.gmra.mxu3 %vm370_vm2, %v17196_v51  ;;  %v8571_v57 = vsel %vm8543_vm9, %v8530_v18, %v8532_v33  ;;  %v8572_v61 = vsel %vm8543_vm9, %v8532_v33, %v8534_v42 }
 0x4fa   : > { %13424 = vmatmul.msk.f32.gmra.mxu0 %vm370_vm2, %v17196_v51  ;;  %13429 = vmatmul.msk.f32.vlgmr.msra.gmra.mxu2 %vm370_vm2, %v17169_v7 }
 0x4fb   : > { %13452 = vmatpush.msk.msra.mxu2 %vm375_vm1, %v8570_v53 }
 0x4fc   : > { %v7979_v47 = vpop.f32.mrf.mxu3 }
 0x4fd   : > { %v17512_v52 = vadd.f32 %v7979_v47, %v17082_v43  ;;  %v8045_v39 = vpop.f32.mrf.mxu2  ;;  %v20867_v43 = vld [vmem:[#allocation26_spill] sm:$0xff] }
 0x4fe   : > { %v17514_v26 = vadd.f32 %v8045_v39, %v7313_v23  ;;  %v8022_v31 = vpop.f32.mrf.mxu1  ;;  %v20868_v39 = vld [vmem:[#allocation135_spill] sm:$0xff] }
 0x4ff   : > { %v17516_v63 = vadd.f32 %v8022_v31, %v7312_v38  ;;  %v8091_v54 = vpop.f32.mrf.mxu0  ;;  %v6289_v23 = vadd.f32 %v20868_v39, %v20867_v43  ;;  %v8536_v38 = vpop.permute.xlu2 %8535 }
 0x500   : > { %v17519_v53 = vadd.f32 %v8091_v54, %v17133_v11  ;;  %v20869_v54 = vld [vmem:[#allocation43_spill] sm:$0xff] }
 0x501   : > { %13426 = vmatmul.msk.f32.vlgmr.msrb.gmra.mxu1 %vm370_vm2, %v17169_v7  ;;  %13432 = vmatmul.msk.f32.vlgmr.msra.gmra.mxu3 %vm370_vm2, %v17169_v7  ;;  %v7346_v11 = vadd.f32 %v17137_v45, %v6289_v23  ;;  %v7345_v37 = vadd.f32 %v17086_v41, %v20869_v54  ;;  %v20872_v41 = vld [vmem:[#allocation77_spill] sm:$0xff]  ;;  %v20874_v23 = vld [vmem:[#allocation44_spill] sm:$0xff] }
 0x502   : > { %20866 = vst [vmem:[#allocation127_spill] sm:$0xff] %v17519_v53  ;;  %13430 = vmatmul.msk.f32.gmra.mxu2 %vm370_vm2, %v17196_v51  ;;  %13435 = vmatmul.msk.f32.vlgmr.msrb.gmra.mxu0 %vm370_vm2, %v17169_v7 }
 0x503   : > { %13449 = vmatpush.msk.msrb.mxu1 %vm375_vm1, %v8569_v56  ;;  %13455 = vmatpush.msk.msra.mxu3 %vm375_vm1, %v8571_v57  ;;  %v8538_v57 = vpop.permute.xlu0 %8537 }
 0x504   : > { %v8068_v27 = vpop.f32.mrf.mxu3  ;;  %13458 = vmatpush.msk.msrb.mxu0 %vm375_vm1, %v8572_v61  ;;  %v8574_v61 = vsel %vm8543_vm9, %v8536_v38, %v8538_v57 }
 0x505   : > { %v8048_v33 = vpop.f32.mrf.mxu2  ;;  %v17541_v18 = vadd.f32 %v8068_v27, %v17107_v30  ;;  %v20873_v30 = vld [vmem:[#allocation92_spill] sm:$0xff] }
 0x506   : > { %v17543_v47 = vadd.f32 %v8048_v33, %v7346_v11  ;;  %v8025_v1 = vpop.f32.mrf.mxu1  ;;  %v6260_v43 = vadd.f32 %v20873_v30, %v20872_v41  ;;  %v7316_v11 = vadd.f32 %v17111_v0, %v20874_v23 }
 0x507   : > { %v8094_v31 = vpop.f32.mrf.mxu0  ;;  %v17545_v56 = vadd.f32 %v8025_v1, %v7345_v37  ;;  %v8540_v37 = vpop.permute.xlu1 %8539 }
 0x508   : > { %20870 = vst [vmem:[#allocation79_spill] sm:$0xff] %v17543_v47  ;;  %v17548_v45 = vadd.f32 %v8094_v31, %v17157_v10  ;;  %v7317_v10 = vadd.f32 %v17163_v16, %v6260_v43  ;;  %v8542_v31 = vpop.permute.xlu2 %8541  ;;  %v8573_v16 = vsel %vm8543_vm9, %v8534_v42, %v8536_v38  ;;  %v8575_v43 = vsel %vm8543_vm9, %v8538_v57, %v8540_v37  ;;  %v20881_v38 = vld [vmem:[#allocation138_spill] sm:$0xff] }
 0x509   : > { %13427 = vmatmul.msk.f32.gmra.mxu1 %vm370_vm2, %v17196_v51  ;;  %13433 = vmatmul.msk.f32.gmra.mxu3 %vm370_vm2, %v17196_v51  ;;  %v8576_v0 = vsel %vm8543_vm9, %v8540_v37, %v8542_v31  ;;  %v7349_v57 = vadd.f32 %v17139_v4, %v20881_v38  ;;  %v20886_v4 = vld [vmem:[#allocation31_spill] sm:$0xff] }
 0x50a   : > { %20871 = vst [vmem:[#allocation130_spill] sm:$0xff] %v17548_v45  ;;  %13436 = vmatmul.msk.f32.gmra.mxu0 %vm370_vm2, %v17196_v51  ;;  %13441 = vmatmul.msk.f32.vlgmr.msrb.gmra.mxu2 %vm370_vm2, %v17169_v7 }
 0x50b   : > { %13464 = vmatpush.msk.msrb.mxu2 %vm375_vm1, %v8574_v61 }
 0x50c   : > { %v8071_v39 = vpop.f32.mrf.mxu3 }
 0x50d   : > { %v17566_v27 = vadd.f32 %v8071_v39, %v17135_v21  ;;  %v8137_v54 = vpop.f32.mrf.mxu2  ;;  %v20879_v21 = vld [vmem:[#allocation125_spill] sm:$0xff] }
 0x50e   : > { %v17568_v33 = vadd.f32 %v8137_v54, %v7317_v10  ;;  %v8114_v1 = vpop.f32.mrf.mxu1  ;;  %v20880_v10 = vld [vmem:[#allocation140_spill] sm:$0xff] }
 0x50f   : > { %20875 = vst [vmem:[#allocation155_spill] sm:$0xff] %v17566_v27  ;;  %v17570_v41 = vadd.f32 %v8114_v1, %v7316_v11  ;;  %v8183_v30 = vpop.f32.mrf.mxu0  ;;  %v6293_v39 = vadd.f32 %v20880_v10, %v20879_v21 }
 0x510   : > { %20876 = vst [vmem:[#allocation133_spill] sm:$0xff] %v17568_v33  ;;  %v17573_v61 = vadd.f32 %v8183_v30, %v17187_v34 }
 0x511   : > { %20877 = vst [vmem:[#allocation85_spill] sm:$0xff] %v17570_v41  ;;  %13438 = vmatmul.msk.f32.vlgmr.msra.gmra.mxu1 %vm370_vm2, %v17169_v7  ;;  %13444 = vmatmul.msk.f32.vlgmr.msrb.gmra.mxu3 %vm370_vm2, %v17169_v7  ;;  %v7350_v34 = vadd.f32 %v17192_v50, %v6293_v39  ;;  %v20887_v50 = vld [vmem:[#allocation46_spill] sm:$0xff] }
 0x512   : > { %20878 = vst [vmem:[#allocation136_spill] sm:$0xff] %v17573_v61  ;;  %13442 = vmatmul.msk.f32.gmra.mxu2 %vm370_vm2, %v17196_v51  ;;  %13447 = vmatmul.msk.f32.vlgmr.msra.gmra.mxu0 %vm370_vm2, %v17169_v7  ;;  %v20940_v61 = vld [vmem:[#allocation148_spill] sm:$0xff] }
 0x513   : > { %13461 = vmatpush.msk.msra.mxu1 %vm375_vm1, %v8573_v16  ;;  %13467 = vmatpush.msk.msrb.mxu3 %vm375_vm1, %v8575_v43  ;;  %v6264_v16 = vadd.f32 %v20887_v50, %v20886_v4 }
 0x514   : > { %v8160_v42 = vpop.f32.mrf.mxu3  ;;  %13470 = vmatpush.msk.msra.mxu0 %vm375_vm1, %v8576_v0 }
 0x515   : > { %v8140_v23 = vpop.f32.mrf.mxu2  ;;  %v17595_v11 = vadd.f32 %v8160_v42, %v17161_v22  ;;  %v7321_v22 = vadd.f32 %v17218_v59, %v6264_v16  ;;  %v20894_v59 = vld [vmem:[#allocation99_spill] sm:$0xff] }
 0x516   : > { %v17597_v54 = vadd.f32 %v8140_v23, %v7350_v34  ;;  %v8117_v37 = vpop.f32.mrf.mxu1 }
 0x517   : > { %20882 = vst [vmem:[#allocation156_spill] sm:$0xff] %v17595_v11  ;;  %v8186_v1 = vpop.f32.mrf.mxu0  ;;  %v17599_v31 = vadd.f32 %v8117_v37, %v7349_v57 }
 0x518   : > { %20883 = vst [vmem:[#allocation139_spill] sm:$0xff] %v17597_v54  ;;  %v17602_v30 = vadd.f32 %v8186_v1, %v17214_v17  ;;  %v20888_v17 = vld [vmem:[#allocation95_spill] sm:$0xff] }
 0x519   : > { %20884 = vst [vmem:[#allocation91_spill] sm:$0xff] %v17599_v31  ;;  %13439 = vmatmul.msk.f32.gmra.mxu1 %vm370_vm2, %v17196_v51  ;;  %13445 = vmatmul.msk.f32.gmra.mxu3 %vm370_vm2, %v17196_v51  ;;  %v7320_v0 = vadd.f32 %v17165_v14, %v20888_v17  ;;  %v20893_v14 = vld [vmem:[#allocation84_spill] sm:$0xff] }
 0x51a   : > { %20885 = vst [vmem:[#allocation25_spill] sm:$0xff] %v17602_v30  ;;  %13448 = vmatmul.msk.f32.gmra.mxu0 %vm370_vm2, %v17196_v51  ;;  %13453 = vmatmul.msk.f32.vlgmr.msra.gmra.mxu2 %vm370_vm2, %v17169_v7  ;;  %v20930_v30 = vld [vmem:[#allocation147_spill] sm:$0xff] }
 0x51c   : > { %v8163_v43 = vpop.f32.mrf.mxu3 }
 0x51d   : > { %v17618_v21 = vadd.f32 %v8163_v43, %v17190_v46  ;;  %v8229_v10 = vpop.f32.mrf.mxu2  ;;  %v6297_v46 = vadd.f32 %v20894_v59, %v20893_v14 }
 0x51e   : > { %v17620_v39 = vadd.f32 %v8229_v10, %v7321_v22  ;;  %v8206_v34 = vpop.f32.mrf.mxu1 }
 0x51f   : > { %20889 = vst [vmem:[#allocation10_spill] sm:$0xff] %v17618_v21  ;;  %v17622_v42 = vadd.f32 %v8206_v34, %v7320_v0  ;;  %v8275_v38 = vpop.f32.mrf.mxu0  ;;  %v7354_v23 = vadd.f32 %v17248_v24, %v6297_v46  ;;  %v20901_v0 = vld [vmem:[#allocation149_spill] sm:$0xff]  ;;  %v20902_v34 = vld [vmem:[#allocation51_spill] sm:$0xff] }
 0x520   : > { %20890 = vst [vmem:[#allocation142_spill] sm:$0xff] %v17620_v39  ;;  %v17625_v57 = vadd.f32 %v8275_v38, %v17244_v13  ;;  %v7353_v13 = vadd.f32 %v17194_v58, %v16777_v2  ;;  %v20899_v2 = vld [vmem:[#allocation27_spill] sm:$0xff]  ;;  %v20932_v39 = vld [vmem:[#allocation105_spill] sm:$0xff] }
 0x521   : > { %20891 = vst [vmem:[#allocation157_spill] sm:$0xff] %v17622_v42  ;;  %13450 = vmatmul.msk.f32.vlgmr.msrb.gmra.mxu1 %vm370_vm2, %v17169_v7  ;;  %13456 = vmatmul.msk.f32.vlgmr.msra.gmra.mxu3 %vm370_vm2, %v17169_v7  ;;  %v6268_v58 = vadd.f32 %v16784_v12, %v20899_v2  ;;  %v17816_v42 = vadd.f32 %v17398_v44, %v20940_v61 }
 0x522   : > { %20892 = vst [vmem:[#allocation78_spill] sm:$0xff] %v17625_v57  ;;  %13454 = vmatmul.msk.f32.gmra.mxu2 %vm370_vm2, %v17196_v51  ;;  %13459 = vmatmul.msk.f32.vlgmr.msrb.gmra.mxu0 %vm370_vm2, %v17169_v7  ;;  %v20922_v57 = vld [vmem:[#allocation4_spill] sm:$0xff] }
 0x524   : > { %v8252_v37 = vpop.f32.mrf.mxu3 }
 0x525   : > { %v8232_v1 = vpop.f32.mrf.mxu2  ;;  %v17641_v4 = vadd.f32 %v8252_v37, %v17216_v28  ;;  %v7325_v28 = vadd.f32 %v17273_v62, %v6268_v58  ;;  %v17670_v37 = vpop.permute.xlu0 %9476  ;;  %v20906_v62 = vld [vmem:[#allocation83_spill] sm:$0xff] }
 0x526   : > { %v17643_v50 = vadd.f32 %v8232_v1, %v7354_v23  ;;  %v8209_v16 = vpop.f32.mrf.mxu1  ;;  %v20907_v1 = vld [vmem:[#allocation141_spill] sm:$0xff] }
 0x527   : > { %20895 = vst [vmem:[#allocation145_spill] sm:$0xff] %v17641_v4  ;;  %v8278_v22 = vpop.f32.mrf.mxu0  ;;  %v17645_v43 = vadd.f32 %v8209_v16, %v7353_v13  ;;  %v6301_v16 = vadd.f32 %v20907_v1, %v20906_v62  ;;  %v20914_v1 = vld [vmem:[#allocation98_spill] sm:$0xff] }
 0x528   : > { %20896 = vst [vmem:[#allocation97_spill] sm:$0xff] %v17643_v50  ;;  %v17648_v17 = vadd.f32 %v8278_v22, %v17269_v29  ;;  %v20900_v29 = vld [vmem:[#allocation143_spill] sm:$0xff]  ;;  %v20924_v50 = vld [vmem:[#allocation106_spill] sm:$0xff] }
 0x529   : > { %20897 = vst [vmem:[#allocation29_spill] sm:$0xff] %v17645_v43  ;;  %13451 = vmatmul.msk.f32.gmra.mxu1 %vm370_vm2, %v17196_v51  ;;  %13457 = vmatmul.msk.f32.gmra.mxu3 %vm370_vm2, %v17196_v51  ;;  %v7324_v10 = vadd.f32 %v20901_v0, %v20900_v29 }
 0x52a   : > { %20898 = vst [vmem:[#allocation103_spill] sm:$0xff] %v17648_v17  ;;  %13460 = vmatmul.msk.f32.gmra.mxu0 %vm370_vm2, %v17196_v51  ;;  %13465 = vmatmul.msk.f32.vlgmr.msrb.gmra.mxu2 %vm370_vm2, %v17169_v7 }
 0x52c   : > { %v8255_v24 = vpop.f32.mrf.mxu3 }
 0x52d   : > { %v17664_v38 = vadd.f32 %v8255_v24, %v20902_v34  ;;  %v8321_v14 = vpop.f32.mrf.mxu2  ;;  %v20909_v24 = vld [vmem:[#allocation59_spill] sm:$0xff] }
 0x52e   : > { %v17666_v59 = vadd.f32 %v8321_v14, %v7325_v28  ;;  %v8298_v46 = vpop.f32.mrf.mxu1  ;;  %v20908_v28 = vld [vmem:[#allocation49_spill] sm:$0xff] }
 0x52f   : > { %20903 = vst [vmem:[#allocation158_spill] sm:$0xff] %v17664_v38  ;;  %v17668_v12 = vadd.f32 %v8298_v46, %v7324_v10  ;;  %v8664_v23 = vpop.f32.mrf.mxu0  ;;  %v7357_v29 = vadd.f32 %v20909_v24, %v20908_v28  ;;  %v20916_v24 = vld [vmem:[#allocation102_spill] sm:$0xff]  ;;  %v20927_v38 = vld [vmem:[#allocation60_spill] sm:$0xff] }
 0x530   : > { %20904 = vst [vmem:[#allocation2_spill] sm:$0xff] %v17666_v59  ;;  %v9406_v13 = vadd.f32 %v8664_v23, %v17296_v49  ;;  %v7358_v49 = vadd.f32 %v17300_v36, %v6301_v16  ;;  %v17701_v23 = vpop.permute.xlu1 %9481 }
 0x531   : > { %20905 = vst [vmem:[#allocation57_spill] sm:$0xff] %v17668_v12  ;;  %13462 = vmatmul.msk.f32.vlgmr.msra.gmra.mxu1 %vm370_vm2, %v17169_v7  ;;  %13468 = vmatmul.msk.f32.vlgmr.msrb.gmra.mxu3 %vm370_vm2, %v17169_v7  ;;  %v20923_v12 = vld [vmem:[#allocation33_spill] sm:$0xff] }
 0x532   : > { %v17680_v22 = vadd.f32 %v17670_v37, %v9406_v13  ;;  %13466 = vmatmul.msk.f32.gmra.mxu2 %vm370_vm2, %v17196_v51  ;;  %13471 = vmatmul.msk.f32.vlgmr.msra.gmra.mxu0 %vm370_vm2, %v17169_v7 }
 0x534   : > { %v17688_v2 = vmul.f32 0.70710677, %v17680_v22  ;;  %v8344_v58 = vpop.f32.mrf.mxu3 }
 0x535   : > { %v8324_v0 = vpop.f32.mrf.mxu2  ;;  %v17693_v10 = vadd.f32 %v8344_v58, %v17271_v5  ;;  %v20913_v5 = vld [vmem:[#allocation35_spill] sm:$0xff] }
 0x536   : > { %v9583_v34 = vmul.f32 %v17688_v2, %v17688_v2  ;;  %v17697_v14 = vadd.f32 %v8324_v0, %v7358_v49  ;;  %v8301_v46 = vpop.f32.mrf.mxu1  ;;  %v7296_v16 = vadd.f32 %v20914_v1, %v20913_v5  ;;  %v20917_v0 = vld [vmem:[#allocation37_spill] sm:$0xff] }
 0x537   : > { %20910 = vst [vmem:[#allocation104_spill] sm:$0xff] %v17693_v10  ;;  %v17699_v7 = vadd.f32 %v8301_v46, %v7357_v29  ;;  %v8667_v36 = vpop.f32.mrf.mxu0  ;;  %v20921_v10 = vld [vmem:[#allocation134_spill] sm:$0xff] }
 0x538   : > { %20911 = vst [vmem:[#allocation6_spill] sm:$0xff] %v17697_v14  ;;  %v17703_v13 = vmin.f32 %v9583_v34, 16.0  ;;  %v9439_v62 = vadd.f32 %v8667_v36, %v17318_v48  ;;  %v20915_v48 = vld [vmem:[#allocation131_spill] sm:$0xff]  ;;  %v20918_v34 = vld [vmem:[#allocation144_spill] sm:$0xff]  ;;  %v20919_v36 = vld [vmem:[#allocation38_spill] sm:$0xff]  ;;  %v8352_v5 = vadd.f32 %v17322_v35, %v7296_v16 }
 0x539   : > { %20912 = vst [vmem:[#allocation7_spill] sm:$0xff] %v17699_v7  ;;  %13463 = vmatmul.msk.f32.gmra.mxu1 %vm370_vm2, %v17196_v51  ;;  %13469 = vmatmul.msk.f32.gmra.mxu3 %vm370_vm2, %v17196_v51  ;;  %v7329_v29 = vadd.f32 %v20916_v24, %v20915_v48  ;;  %v7300_v46 = vadd.f32 %v20918_v34, %v20917_v0  ;;  %v20920_v14 = vld [vmem:[#allocation52_spill] sm:$0xff]  ;;  %v20925_v24 = vld [vmem:[#allocation50_spill] sm:$0xff] }
 0x53a   : > { %v9585_v49 = vmul.f32 2.1237322e-06, %v17703_v13  ;;  %v9596_v58 = vmul.f32 3.8918573e-05, %v17703_v13  ;;  %v17715_v28 = vadd.f32 %v17701_v23, %v9439_v62  ;;  %13472 = vmatmul.msk.f32.gmra.mxu0 %vm370_vm2, %v17196_v51  ;;  %v7333_v17 = vadd.f32 %v20920_v14, %v20919_v36  ;;  %v20926_v0 = vld [vmem:[#allocation108_spill] sm:$0xff] }
 0x53b   : > { %v7304_v51 = vadd.f32 %v20922_v57, %v20921_v10  ;;  %v17733_v48 = vadd.f32 %v20924_v50, %v20923_v12  ;;  %v8351_v34 = vadd.f32 %v20926_v0, %v20925_v24  ;;  %v20929_v10 = vld [vmem:[#allocation40_spill] sm:$0xff]  ;;  %v20931_v12 = vld [vmem:[#allocation41_spill] sm:$0xff] }
 0x53c   : > { %v9586_v1 = vadd.f32 0.00028619796, %v9585_v49  ;;  %v9597_v59 = vadd.f32 0.001143296, %v9596_v58  ;;  %v17727_v7 = vmul.f32 0.70710677, %v17715_v28  ;;  %v8347_v62 = vpop.f32.mrf.mxu3  ;;  %v17746_v50 = vadd.f32 %v20930_v30, %v20929_v10 }
 0x53d   : > { %v17738_v14 = vadd.f32 %v8347_v62, %v20927_v38  ;;  %v8710_v35 = vpop.f32.mrf.mxu2  ;;  %v17750_v24 = vadd.f32 %v20932_v39, %v20931_v12  ;;  %v20933_v38 = vld [vmem:[#allocation146_spill] sm:$0xff]  ;;  %v20934_v62 = vld [vmem:[#allocation112_spill] sm:$0xff]  ;;  %v17766_v39 = vadd.f32 %v17348_v60, %v7329_v29  ;;  %v20936_v12 = vld [vmem:[#allocation151_spill] sm:$0xff]  ;;  %v17781_v60 = vadd.f32 %v17370_v20, %v7300_v46 }
 0x53e   : > { %v9587_v16 = vmul.f32 %v9586_v1, %v17703_v13  ;;  %v9598_v49 = vmul.f32 %v9597_v59, %v17703_v13  ;;  %v10969_v58 = vmul.f32 %v17727_v7, %v17727_v7  ;;  %v9408_v36 = vadd.f32 %v8710_v35, %v8352_v5  ;;  %v8687_v57 = vpop.f32.mrf.mxu1  ;;  %v20935_v35 = vld [vmem:[#allocation45_spill] sm:$0xff] }
 0x53f   : > { %20928 = vst [vmem:[#allocation80_spill] sm:$0xff] %v17738_v14  ;;  %v17754_v0 = vadd.f32 %v20934_v62, %v20933_v38  ;;  %v9407_v1 = vadd.f32 %v8687_v57, %v8351_v34  ;;  %v8756_v14 = vpop.f32.mrf.mxu0  ;;  %v17763_v30 = vadd.f32 %v17324_v6, %v20935_v35  ;;  %v20937_v57 = vld [vmem:[#allocation101_spill] sm:$0xff]  ;;  %v20938_v38 = vld [vmem:[#allocation111_spill] sm:$0xff] }
 0x540   : > { %v9588_v59 = vadd.f32 0.0036580483, %v9587_v16  ;;  %v9599_v43 = vadd.f32 0.014752088, %v9598_v49  ;;  %v17756_v4 = vmin.f32 %v10969_v58, 16.0  ;;  %v17759_v5 = vadd.f32 %v17670_v37, %v9408_v36  ;;  %v20939_v35 = vld [vmem:[#allocation53_spill] sm:$0xff] }
 0x541   : > { %v17769_v10 = vadd.f32 %v17670_v37, %v9407_v1  ;;  %v9410_v34 = vadd.f32 %v8756_v14, %v20936_v12  ;;  %v17778_v6 = vadd.f32 %v20938_v38, %v20937_v57  ;;  %v17794_v12 = vadd.f32 %v17372_v15, %v20939_v35 }
 0x542   : > { %v9589_v16 = vmul.f32 %v9588_v59, %v17703_v13  ;;  %v9600_v49 = vmul.f32 %v9599_v43, %v17703_v13  ;;  %v10971_v58 = vmul.f32 2.1237322e-06, %v17756_v4  ;;  %v10982_v36 = vmul.f32 3.8918573e-05, %v17756_v4 }
 0x543   : > { %v17784_v29 = vmul.f32 0.70710677, %v17759_v5  ;;  %v17787_v14 = vmul.f32 0.70710677, %v17769_v10  ;;  %v17790_v59 = vadd.f32 %v17670_v37, %v9410_v34 }
 0x544   : > { %v9590_v62 = vadd.f32 0.05243302, %v9589_v16  ;;  %v9601_v1 = vadd.f32 0.112945676, %v9600_v49  ;;  %v10972_v43 = vadd.f32 0.00028619796, %v10971_v58  ;;  %v17807_v58 = vadd.f32 %v17396_v55, %v7333_v17 }
 0x545   : > { %v10983_v57 = vadd.f32 0.001143296, %v10982_v36  ;;  %v9663_v20 = vmul.f32 %v17784_v29, %v17784_v29  ;;  %v9623_v46 = vmul.f32 %v17787_v14, %v17787_v14  ;;  %v17804_v34 = vmul.f32 0.70710677, %v17790_v59 }
 0x546   : > { %v9591_v38 = vmul.f32 %v9590_v62, %v17703_v13  ;;  %v9602_v16 = vmul.f32 %v9601_v1, %v17703_v13  ;;  %v10973_v49 = vmul.f32 %v10972_v43, %v17756_v4  ;;  %v17819_v43 = vadd.f32 %v17418_v40, %v7304_v51 }
 0x547   : > { %v10984_v15 = vmul.f32 %v10983_v57, %v17756_v4  ;;  %v17810_v36 = vmin.f32 %v9663_v20, 16.0  ;;  %v17812_v35 = vmin.f32 %v9623_v46, 16.0  ;;  %v9743_v44 = vmul.f32 %v17804_v34, %v17804_v34 }
 0x548   : > { %v9592_v62 = vadd.f32 0.18741608, %v9591_v38  ;;  %v9603_v1 = vadd.f32 0.4994258, %v9602_v16  ;;  %v10974_v54 = vadd.f32 0.0036580483, %v10973_v49 }
 0x549   : > { %v10985_v21 = vadd.f32 0.014752088, %v10984_v15  ;;  %v9665_v55 = vmul.f32 2.1237322e-06, %v17810_v36  ;;  %v9676_v17 = vmul.f32 3.8918573e-05, %v17810_v36 }
 0x54a   : > { %v9604_v57 = vmul.f32 %v9603_v1, %v17703_v13  ;;  %v10975_v20 = vmul.f32 %v10974_v54, %v17756_v4  ;;  %v9625_v46 = vmul.f32 2.1237322e-06, %v17812_v35  ;;  %v9593_v61 = vmul.f32 %v9592_v62, %v17703_v13  ;;  %v20941_v16 = vld [vmem:[#allocation55_spill] sm:$0xff]  ;;  %v8733_v62 = vpop.f32.mrf.mxu3 }
 0x54b   : > { %v10986_v38 = vmul.f32 %v10985_v21, %v17756_v4  ;;  %v9666_v40 = vadd.f32 0.00028619796, %v9665_v55  ;;  %v9677_v51 = vadd.f32 0.001143296, %v9676_v17  ;;  %v17832_v49 = vadd.f32 %v17420_v25, %v20941_v16  ;;  %v20942_v16 = vld [vmem:[#allocation152_spill] sm:$0xff] }
 0x54c   : > { %v17834_v15 = vadd.f32 1.0, %v9604_v57  ;;  %v10976_v1 = vadd.f32 0.05243302, %v10975_v20  ;;  %v9636_v54 = vmul.f32 3.8918573e-05, %v17812_v35  ;;  %v17841_v21 = vadd.f32 %v17444_v3, %v17733_v48 }
 0x54d   : > { %v10987_v45 = vadd.f32 0.112945676, %v10986_v38  ;;  %v9667_v33 = vmul.f32 %v9666_v40, %v17810_v36  ;;  %v9678_v31 = vmul.f32 %v9677_v51, %v17810_v36  ;;  %v9626_v11 = vadd.f32 0.00028619796, %v9625_v46  ;;  %v8713_v40 = vpop.f32.mrf.mxu2 }
 0x54e   : > { %13570 = vrcp.f32 %v17834_v15  ;;  %v17845_v25 = vmul.f32 0.5, %v17680_v22  ;;  %v17847_v13 = vmin.f32 %v9743_v44, 16.0  ;;  %v9594_v55 = vadd.f32 1.1283791, %v9593_v61 }
 0x54f   : > { %v10977_v17 = vmul.f32 %v10976_v1, %v17756_v4  ;;  %v10988_v57 = vmul.f32 %v10987_v45, %v17756_v4  ;;  %v9668_v20 = vadd.f32 0.0036580483, %v9667_v33  ;;  %v17852_v46 = vmul.f32 0.5, %v17715_v28 }
 0x550   : > { %v9679_v38 = vadd.f32 0.014752088, %v9678_v31  ;;  %v9627_v3 = vmul.f32 %v9626_v11, %v17812_v35  ;;  %v9637_v48 = vadd.f32 0.001143296, %v9636_v54  ;;  %v17857_v53 = vadd.f32 %v8733_v62, %v20942_v16 }
 0x551   : > { %v10978_v51 = vadd.f32 0.18741608, %v10977_v17  ;;  %v10989_v22 = vadd.f32 0.4994258, %v10988_v57  ;;  %v9669_v44 = vmul.f32 %v9668_v20, %v17810_v36  ;;  %v9745_v33 = vmul.f32 2.1237322e-06, %v17847_v13 }
 0x552   : > { %v9680_v61 = vmul.f32 %v9679_v38, %v17810_v36  ;;  %v9628_v1 = vadd.f32 0.0036580483, %v9627_v3  ;;  %v9638_v45 = vmul.f32 %v9637_v48, %v17812_v35  ;;  %v9595_v31 = vmul.f32 %v9594_v55, %v17688_v2 }
 0x553   : > { %v10990_v11 = vmul.f32 %v10989_v22, %v17756_v4  ;;  %v9670_v28 = vadd.f32 0.05243302, %v9669_v44  ;;  %v9441_v54 = vadd.f32 %v8713_v40, %v17766_v39  ;;  %v10979_v57 = vmul.f32 %v10978_v51, %v17756_v4 }
 0x554   : > { %v13571_v17 = vpop.eup %13570  ;;  %v9681_v20 = vadd.f32 0.112945676, %v9680_v61  ;;  %v9629_v62 = vmul.f32 %v9628_v1, %v17812_v35  ;;  %v9639_v16 = vadd.f32 0.014752088, %v9638_v45  ;;  %v9615_v3 = vand.u32 2147483647, %v17834_v15 }
 0x555   : > { %v9607_v38 = vmul.f32 %v13571_v17, %v17834_v15  ;;  %v17869_v48 = vadd.f32 1.0, %v10990_v11  ;;  %v9746_v41 = vadd.f32 0.00028619796, %v9745_v33  ;;  %v9671_v2 = vmul.f32 %v9670_v28, %v17810_v36 }
 0x556   : > { %v9682_v55 = vmul.f32 %v9681_v20, %v17810_v36  ;;  %v9630_v22 = vadd.f32 0.05243302, %v9629_v62  ;;  %v9640_v39 = vmul.f32 %v9639_v16, %v17812_v35  ;;  %v9617_v4 = vand.u32 2147483648, %v17834_v15 }
 0x557   : > { %v9608_v40 = vsub.f32 1.0, %v9607_v38  ;;  %13572 = vrcp.f32 %v17869_v48  ;;  %v9756_v51 = vmul.f32 3.8918573e-05, %v17847_v13  ;;  %vm9612_vm10 = vweird.f32 %v13571_v17 }
 0x558   : > { %v10980_v44 = vadd.f32 1.1283791, %v10979_v57  ;;  %v9672_v61 = vadd.f32 0.18741608, %v9671_v2  ;;  %v9631_v1 = vmul.f32 %v9630_v22, %v17812_v35  ;;  %v9683_v33 = vadd.f32 0.4994258, %v9682_v55 }
 0x559   : > { %v9609_v45 = vmul.f32 %v13571_v17, %v9608_v40  ;;  %v9641_v11 = vadd.f32 0.112945676, %v9640_v39  ;;  %v9747_v28 = vmul.f32 %v9746_v41, %v17847_v13  ;;  %vm9611_vm11 = vweird.f32 %v17834_v15 }
 0x55a   : > { %vm17880_vm12 = vcmp.eq.f32.partialorder %v9615_v3, 8.507059e+37  ;;  %v11001_v62 = vand.u32 2147483647, %v17869_v48  ;;  %v9673_v16 = vmul.f32 %v9672_v61, %v17810_v36  ;;  %v9684_v57 = vmul.f32 %v9683_v33, %v17810_v36  ;;  %vm9613_vm13 = vmor %vm9611_vm11, %vm9612_vm10 }
 0x55b   : > { %v9610_v38 = vadd.f32 %v13571_v17, %v9609_v45  ;;  %v9642_v2 = vmul.f32 %v9641_v11, %v17812_v35  ;;  %v9748_v22 = vadd.f32 0.0036580483, %v9747_v28  ;;  %v9618_v55 = vor.u32 1.1754944e-38, %v9617_v4 }
 0x55c   : > { %v10981_v41 = vmul.f32 %v10980_v44, %v17727_v7  ;;  %v9632_v15 = vadd.f32 0.18741608, %v9631_v1  ;;  %v9757_v3 = vadd.f32 0.001143296, %v9756_v51  ;;  %v17890_v47 = vadd.f32 1.0, %v9684_v57 }
 0x55d   : > { %v13573_v39 = vpop.eup %13572  ;;  %v9614_v40 = vsel %vm9613_vm13, %v13571_v17, %v9610_v38  ;;  %v9643_v27 = vadd.f32 0.4994258, %v9642_v2  ;;  %v9749_v61 = vmul.f32 %v9748_v22, %v17847_v13  ;;  %vm10997_vm14 = vweird.f32 %v17869_v48 }
 0x55e   : > { %v9619_v36 = vsel %vm17880_vm12, %v9618_v55, %v9614_v40  ;;  %v10993_v45 = vmul.f32 %v13573_v39, %v17869_v48  ;;  %v11003_v4 = vand.u32 2147483648, %v17869_v48  ;;  %vm17898_vm15 = vcmp.eq.f32.partialorder %v11001_v62, 8.507059e+37 }
 0x55f   : > { %v9620_v7 = vmul.f32 %v9619_v36, %v9595_v31  ;;  %v9674_v17 = vadd.f32 1.1283791, %v9673_v16  ;;  %13574 = vrcp.f32 %v17890_v47  ;;  %v9633_v1 = vmul.f32 %v9632_v15, %v17812_v35 }
 0x560   : > { %v10994_v51 = vsub.f32 1.0, %v10993_v45  ;;  %v9644_v33 = vmul.f32 %v9643_v27, %v17812_v35  ;;  %v17907_v11 = vadd.f32 %v17701_v23, %v9441_v54  ;;  %vm10998_vm0 = vweird.f32 %v13573_v39 }
 0x561   : > { %v13473_v28 = vclamps-f32 %v9620_v7, 1.0  ;;  %v9750_v20 = vadd.f32 0.05243302, %v9749_v61  ;;  %v9758_v31 = vmul.f32 %v9757_v3, %v17847_v13  ;;  %v9695_v38 = vand.u32 2147483647, %v17890_v47  ;;  %vm10999_vm1 = vmor %vm10997_vm14, %vm10998_vm0 }
 0x562   : > { %v10995_v62 = vmul.f32 %v13573_v39, %v10994_v51  ;;  %v9697_v16 = vand.u32 2147483648, %v17890_v47  ;;  %v17912_v57 = vadd.f32 1.0, %v9644_v33  ;;  %v11004_v22 = vor.u32 1.1754944e-38, %v11003_v4 }
 0x563   : > { %v10903_v2 = vadd.f32 1.0, %v13473_v28  ;;  %v9751_v55 = vmul.f32 %v9750_v20, %v17847_v13  ;;  %v9759_v27 = vadd.f32 0.014752088, %v9758_v31  ;;  %v9634_v54 = vadd.f32 1.1283791, %v9633_v1  ;;  %v8690_v20 = vpop.f32.mrf.mxu1 }
 0x564   : > { %v10996_v35 = vadd.f32 %v13573_v39, %v10995_v62  ;;  %13576 = vrcp.f32 %v17912_v57  ;;  %v17922_v15 = vmul.f32 0.70710677, %v17907_v11  ;;  %v9675_v61 = vmul.f32 %v9674_v17, %v17784_v29 }
 0x565   : > { %v13575_v3 = vpop.eup %13574  ;;  %v12355_v40 = vmul.f32 %v17852_v46, %v10903_v2  ;;  %vm9691_vm2 = vweird.f32 %v17890_v47  ;;  %v9760_v36 = vmul.f32 %v9759_v27, %v17847_v13  ;;  %vm17932_vm3 = vcmp.eq.f32.partialorder %v9695_v38, 8.507059e+37 }
 0x566   : > { %v11000_v45 = vsel %vm10999_vm1, %v13573_v39, %v10996_v35  ;;  %v9687_v4 = vmul.f32 %v13575_v3, %v17890_v47  ;;  %v9698_v51 = vor.u32 1.1754944e-38, %v9697_v16  ;;  %v9655_v46 = vand.u32 2147483647, %v17912_v57 }
 0x567   : > { %v11005_v48 = vsel %vm17898_vm15, %v11004_v22, %v11000_v45  ;;  %12388 = vst [vmem:[%s17918_s30] sm:$0xff] %v12355_v40  ;;  %v9752_v1 = vadd.f32 0.18741608, %v9751_v55  ;;  %v9761_v29 = vadd.f32 0.112945676, %v9760_v36  ;;  %v9635_v28 = vmul.f32 %v9634_v54, %v17787_v14 }
 0x568   : > { %v11006_v17 = vmul.f32 %v11005_v48, %v10981_v41  ;;  %v9688_v33 = vsub.f32 1.0, %v9687_v4  ;;  %v11049_v39 = vmul.f32 %v17922_v15, %v17922_v15  ;;  %vm9651_vm4 = vweird.f32 %v17912_v57 }
 0x569   : > { %v9657_v31 = vand.u32 2147483648, %v17912_v57  ;;  %v9762_v44 = vmul.f32 %v9761_v29, %v17847_v13  ;;  %v17948_v62 = vadd.f32 %v17670_v37, %v17857_v53  ;;  %vm9692_vm5 = vweird.f32 %v13575_v3 }
 0x56a   : > { %v13577_v38 = vpop.eup %13576  ;;  %v13506_v16 = vclamps-f32 %v11006_v17, 1.0  ;;  %v9689_v41 = vmul.f32 %v13575_v3, %v9688_v33  ;;  %v17950_v2 = vmin.f32 %v11049_v39, 16.0  ;;  %vm17953_vm6 = vcmp.eq.f32.partialorder %v9655_v46, 8.507059e+37  ;;  %vm9693_vm7 = vmor %vm9691_vm2, %vm9692_vm5 }
 0x56b   : > { %v9647_v14 = vmul.f32 %v13577_v38, %v17912_v57  ;;  %v9753_v55 = vmul.f32 %v9752_v1, %v17847_v13  ;;  %v9763_v27 = vadd.f32 0.4994258, %v9762_v44  ;;  %v9440_v35 = vadd.f32 %v8690_v20, %v17754_v0 }
 0x56c   : > { %v12289_v54 = vadd.f32 1.0, %v13506_v16  ;;  %v9690_v53 = vadd.f32 %v13575_v3, %v9689_v41  ;;  %v11051_v40 = vmul.f32 2.1237322e-06, %v17950_v2  ;;  %v11062_v36 = vmul.f32 3.8918573e-05, %v17950_v2 }
 0x56d   : > { %v9648_v45 = vsub.f32 1.0, %v9647_v14  ;;  %vm9652_vm8 = vweird.f32 %v13577_v38  ;;  %v9764_v4 = vmul.f32 %v9763_v27, %v17847_v13  ;;  %v17965_v48 = vmul.f32 0.70710677, %v17948_v62 }
 0x56e   : > { %v12454_v46 = vmul.f32 %v17845_v25, %v12289_v54  ;;  %v9694_v0 = vsel %vm9693_vm7, %v13575_v3, %v9690_v53  ;;  %v11052_v1 = vadd.f32 0.00028619796, %v11051_v40  ;;  %v11063_v29 = vadd.f32 0.001143296, %v11062_v36  ;;  %v8759_v3 = vpop.f32.mrf.mxu0  ;;  %vm9653_vm9 = vmor %vm9651_vm4, %vm9652_vm8  ;;  %v20951_v40 = vld [vmem:[#allocation64_spill] sm:$0xff] }
 0x56f   : > { %v9699_v17 = vsel %vm17932_vm3, %v9698_v51, %v9694_v0  ;;  %v9649_v33 = vmul.f32 %v13577_v38, %v9648_v45  ;;  %v17970_v39 = vadd.f32 1.0, %v9764_v4  ;;  %v9703_v47 = vmul.f32 %v17965_v48, %v17965_v48 }
 0x570   : > { %12487 = vst [vmem:[%s17918_s30 + $0x108] sm:$0xff] %v12454_v46  ;;  %v9700_v20 = vmul.f32 %v9699_v17, %v9675_v61  ;;  %v11053_v13 = vmul.f32 %v11052_v1, %v17950_v2  ;;  %v11064_v44 = vmul.f32 %v11063_v29, %v17950_v2  ;;  %v17978_v25 = vadd.f32 %v17701_v23, %v9440_v35 }
 0x571   : > { %v9650_v16 = vadd.f32 %v13577_v38, %v9649_v33  ;;  %v9658_v41 = vor.u32 1.1754944e-38, %v9657_v31  ;;  %v9754_v7 = vadd.f32 1.1283791, %v9753_v55  ;;  %13578 = vrcp.f32 %v17970_v39 }
 0x572   : > { %v13475_v51 = vclamps-f32 %v9700_v20, 1.0  ;;  %v11054_v14 = vadd.f32 0.0036580483, %v11053_v13  ;;  %v11065_v61 = vadd.f32 0.014752088, %v11064_v44  ;;  %v12324_v27 = vmul.f32 0.5, %v17907_v11 }
 0x573   : > { %v9654_v54 = vsel %vm9653_vm9, %v13577_v38, %v9650_v16  ;;  %v17985_v53 = vmin.f32 %v9703_v47, 16.0  ;;  %v17988_v35 = vmul.f32 0.70710677, %v17978_v25  ;;  %v9443_v31 = vadd.f32 %v8759_v3, %v20951_v40 }
 0x574   : > { %v9659_v55 = vsel %vm17953_vm6, %v9658_v41, %v9654_v54  ;;  %v9777_v36 = vand.u32 2147483648, %v17970_v39  ;;  %v10905_v57 = vadd.f32 1.0, %v13475_v51  ;;  %v11055_v45 = vmul.f32 %v11054_v14, %v17950_v2 }
 0x575   : > { %v9755_v4 = vmul.f32 %v9754_v7, %v17804_v34  ;;  %v11066_v11 = vmul.f32 %v11065_v61, %v17950_v2  ;;  %v9705_v38 = vmul.f32 2.1237322e-06, %v17985_v53  ;;  %v9716_v46 = vmul.f32 3.8918573e-05, %v17985_v53 }
 0x576   : > { %v9660_v0 = vmul.f32 %v9659_v55, %v9635_v28  ;;  %v11056_v1 = vadd.f32 0.05243302, %v11055_v45  ;;  %v12357_v29 = vmul.f32 %v12324_v27, %v10905_v57  ;;  %v11009_v22 = vmul.f32 %v17988_v35, %v17988_v35 }
 0x577   : > { %v13579_v17 = vpop.eup %13578  ;;  %v11067_v33 = vadd.f32 0.112945676, %v11066_v11  ;;  %v9706_v47 = vadd.f32 0.00028619796, %v9705_v38  ;;  %v9717_v20 = vadd.f32 0.001143296, %v9716_v46  ;;  %v18002_v13 = vadd.f32 %v17701_v23, %v9443_v31 }
 0x578   : > { %v9767_v34 = vmul.f32 %v13579_v17, %v17970_v39  ;;  %v9775_v44 = vand.u32 2147483647, %v17970_v39  ;;  %v9778_v3 = vor.u32 1.1754944e-38, %v9777_v36  ;;  %v11057_v16 = vmul.f32 %v11056_v1, %v17950_v2  ;;  %12390 = vst [vmem:[%s17918_s30 + $0x10] sm:$0xff] %v12357_v29 }
 0x579   : > { %v11068_v28 = vmul.f32 %v11067_v33, %v17950_v2  ;;  %v9707_v41 = vmul.f32 %v9706_v47, %v17985_v53  ;;  %v9718_v7 = vmul.f32 %v9717_v20, %v17985_v53  ;;  %v18011_v51 = vmin.f32 %v11009_v22, 16.0 }
 0x57a   : > { %v9768_v14 = vsub.f32 1.0, %v9767_v34  ;;  %v11058_v61 = vadd.f32 0.18741608, %v11057_v16  ;;  %v13474_v27 = vclamps-f32 %v9660_v0, 1.0  ;;  %v18014_v54 = vmul.f32 0.70710677, %v18002_v13 }
 0x57b   : > { %vm9771_vm10 = vweird.f32 %v17970_v39  ;;  %v11069_v40 = vadd.f32 0.4994258, %v11068_v28  ;;  %v9708_v31 = vadd.f32 0.0036580483, %v9707_v41  ;;  %v9719_v55 = vadd.f32 0.014752088, %v9718_v7  ;;  %v8736_v39 = vpop.f32.mrf.mxu3 }
 0x57c   : > { %v9769_v36 = vmul.f32 %v13579_v17, %v9768_v14  ;;  %vm9772_vm11 = vweird.f32 %v13579_v17  ;;  %v11011_v57 = vmul.f32 2.1237322e-06, %v18011_v51  ;;  %v11022_v45 = vmul.f32 3.8918573e-05, %v18011_v51 }
 0x57d   : > { %v11070_v11 = vmul.f32 %v11069_v40, %v17950_v2  ;;  %v9709_v38 = vmul.f32 %v9708_v31, %v17985_v53  ;;  %v9720_v46 = vmul.f32 %v9719_v55, %v17985_v53  ;;  %v11129_v0 = vmul.f32 %v18014_v54, %v18014_v54  ;;  %vm9773_vm12 = vmor %vm9771_vm10, %vm9772_vm11 }
 0x57e   : > { %v9770_v1 = vadd.f32 %v13579_v17, %v9769_v36  ;;  %v10904_v29 = vadd.f32 1.0, %v13474_v27  ;;  %v11012_v22 = vadd.f32 0.00028619796, %v11011_v57  ;;  %v11023_v33 = vadd.f32 0.001143296, %v11022_v45 }
 0x57f   : > { %v11059_v47 = vmul.f32 %v11058_v61, %v17950_v2  ;;  %v18027_v20 = vadd.f32 1.0, %v11070_v11  ;;  %v9710_v34 = vadd.f32 0.05243302, %v9709_v38  ;;  %v9721_v16 = vadd.f32 0.112945676, %v9720_v46  ;;  %v20952_v2 = vld [vmem:[#allocation56_spill] sm:$0xff] }
 0x580   : > { %v9774_v28 = vsel %vm9773_vm12, %v13579_v17, %v9770_v1  ;;  %vm9776_vm13 = vcmp.eq.f32.partialorder %v9775_v44, 8.507059e+37  ;;  %v11013_v41 = vmul.f32 %v11012_v22, %v18011_v51  ;;  %v11024_v7 = vmul.f32 %v11023_v33, %v18011_v51  ;;  %v20953_v38 = vld [vmem:[#allocation63_spill] sm:$0xff] }
 0x581   : > { %v9779_v14 = vsel %vm9776_vm13, %v9778_v3, %v9774_v28  ;;  %13580 = vrcp.f32 %v18027_v20  ;;  %v12323_v27 = vmul.f32 0.5, %v17978_v25  ;;  %v18033_v40 = vmin.f32 %v11129_v0, 16.0 }
 0x582   : > { %v18037_v61 = vadd.f32 %v17446_v8, %v20952_v2  ;;  %v9780_v31 = vmul.f32 %v9779_v14, %v9755_v4  ;;  %v9711_v17 = vmul.f32 %v9710_v34, %v17985_v53  ;;  %v9722_v44 = vmul.f32 %v9721_v16, %v17985_v53 }
 0x583   : > { %v11060_v55 = vadd.f32 1.1283791, %v11059_v47  ;;  %v11014_v36 = vadd.f32 0.0036580483, %v11013_v41  ;;  %v11025_v3 = vadd.f32 0.014752088, %v11024_v7  ;;  %v12356_v57 = vmul.f32 %v12323_v27, %v10904_v29 }
 0x584   : > { %v11081_v45 = vand.u32 2147483647, %v18027_v20  ;;  %v9712_v25 = vadd.f32 0.18741608, %v9711_v17  ;;  %v9723_v11 = vadd.f32 0.4994258, %v9722_v44  ;;  %v9442_v46 = vadd.f32 %v8736_v39, %v20953_v38 }
 0x585   : > { %v11015_v0 = vmul.f32 %v11014_v36, %v18011_v51  ;;  %v11026_v8 = vmul.f32 %v11025_v3, %v18011_v51  ;;  %12389 = vst [vmem:[%s17918_s30 + $0x8] sm:$0xff] %v12356_v57  ;;  %v11131_v4 = vmul.f32 2.1237322e-06, %v18033_v40  ;;  %v11142_v1 = vmul.f32 3.8918573e-05, %v18033_v40 }
 0x586   : > { %v18049_v22 = vmul.f32 0.5, %v17759_v5  ;;  %v11083_v29 = vand.u32 2147483648, %v18027_v20  ;;  %v9724_v33 = vmul.f32 %v9723_v11, %v17985_v53  ;;  %v13477_v47 = vclamps-f32 %v9780_v31, 1.0 }
 0x587   : > { %v13581_v34 = vpop.eup %13580  ;;  %v11061_v16 = vmul.f32 %v11060_v55, %v17922_v15  ;;  %v11016_v28 = vadd.f32 0.05243302, %v11015_v0  ;;  %v11027_v41 = vadd.f32 0.112945676, %v11026_v8  ;;  %v11132_v7 = vadd.f32 0.00028619796, %v11131_v4 }
 0x588   : > { %v11073_v14 = vmul.f32 %v13581_v34, %v18027_v20  ;;  %vm18055_vm14 = vcmp.eq.f32.partialorder %v11081_v45, 8.507059e+37  ;;  %v9713_v5 = vmul.f32 %v9712_v25, %v17985_v53  ;;  %v18060_v39 = vadd.f32 1.0, %v9724_v33 }
 0x589   : > { %v9520_v2 = vadd.f32 %v17701_v23, %v9442_v46  ;;  %v11017_v31 = vmul.f32 %v11016_v28, %v18011_v51  ;;  %v11028_v17 = vmul.f32 %v11027_v41, %v18011_v51  ;;  %v11133_v15 = vmul.f32 %v11132_v7, %v18033_v40 }
 0x58a   : > { %v11143_v44 = vadd.f32 0.001143296, %v11142_v1  ;;  %v11074_v55 = vsub.f32 1.0, %v11073_v14  ;;  %v11084_v36 = vor.u32 1.1754944e-38, %v11083_v29  ;;  %13582 = vrcp.f32 %v18060_v39 }
 0x58b   : > { %v10907_v3 = vadd.f32 1.0, %v13477_v47  ;;  %vm11078_vm15 = vweird.f32 %v13581_v34  ;;  %v11018_v57 = vadd.f32 0.18741608, %v11017_v31  ;;  %v12326_v45 = vmul.f32 0.5, %v18002_v13 }
 0x58c   : > { %v11144_v53 = vmul.f32 %v11143_v44, %v18033_v40  ;;  %v11075_v25 = vmul.f32 %v13581_v34, %v11074_v55  ;;  %v11029_v11 = vadd.f32 0.4994258, %v11028_v17  ;;  %v11134_v38 = vadd.f32 0.0036580483, %v11133_v15 }
 0x58d   : > { %v18069_v46 = vmul.f32 0.70710677, %v9520_v2  ;;  %vm11077_vm0 = vweird.f32 %v18027_v20  ;;  %v9714_v0 = vadd.f32 1.1283791, %v9713_v5  ;;  %v9735_v8 = vand.u32 2147483647, %v18060_v39 }
 0x58e   : > { %v11145_v4 = vadd.f32 0.014752088, %v11144_v53  ;;  %v11076_v1 = vadd.f32 %v13581_v34, %v11075_v25  ;;  %v11030_v29 = vmul.f32 %v11029_v11, %v18011_v51  ;;  %v11135_v33 = vmul.f32 %v11134_v38, %v18033_v40  ;;  %vm11079_vm1 = vmor %vm11077_vm0, %vm11078_vm15 }
 0x58f   : > { %v11089_v13 = vmul.f32 %v18069_v46, %v18069_v46  ;;  %v9737_v47 = vand.u32 2147483648, %v18060_v39  ;;  %v11019_v28 = vmul.f32 %v11018_v57, %v18011_v51  ;;  %v12359_v41 = vmul.f32 %v12326_v45, %v10907_v3 }
 0x590   : > { %v11146_v20 = vmul.f32 %v11145_v4, %v18033_v40  ;;  %v13583_v7 = vpop.eup %13582  ;;  %v11080_v14 = vsel %vm11079_vm1, %v13581_v34, %v11076_v1  ;;  %v18081_v5 = vadd.f32 1.0, %v11030_v29  ;;  %v11136_v31 = vadd.f32 0.05243302, %v11135_v33  ;;  %v8779_v33 = vpop.f32.mrf.mxu1 }
 0x591   : > { %v18083_v17 = vmin.f32 %v11089_v13, 16.0  ;;  %v18086_v15 = vmul.f32 0.5, %v17769_v10  ;;  %v11085_v44 = vsel %vm18055_vm14, %v11084_v36, %v11080_v14  ;;  %v9715_v55 = vmul.f32 %v9714_v0, %v17965_v48  ;;  %12392 = vst [vmem:[%s17918_s30 + $0x20] sm:$0xff] %v12359_v41  ;;  %v8802_v36 = vpop.f32.mrf.mxu2 }
 0x592   : > { %v9727_v51 = vmul.f32 %v13583_v7, %v18060_v39  ;;  %v11086_v57 = vmul.f32 %v11085_v44, %v11061_v16  ;;  %vm9731_vm2 = vweird.f32 %v18060_v39  ;;  %vm18094_vm3 = vcmp.eq.f32.partialorder %v9735_v8, 8.507059e+37 }
 0x593   : > { %13584 = vrcp.f32 %v18081_v5  ;;  %v11020_v10 = vadd.f32 1.1283791, %v11019_v28  ;;  %v11137_v53 = vmul.f32 %v11136_v31, %v18033_v40  ;;  %v11147_v27 = vadd.f32 0.112945676, %v11146_v20 }
 0x594   : > { %v9728_v3 = vsub.f32 1.0, %v9727_v51  ;;  %v13508_v45 = vclamps-f32 %v11086_v57, 1.0  ;;  %v9738_v48 = vor.u32 1.1754944e-38, %v9737_v47  ;;  %v11091_v25 = vmul.f32 2.1237322e-06, %v18083_v17 }
 0x595   : > { %v11102_v16 = vmul.f32 3.8918573e-05, %v18083_v17  ;;  %vm9732_vm4 = vweird.f32 %v13583_v7  ;;  %v11148_v38 = vmul.f32 %v11147_v27, %v18033_v40  ;;  %v12325_v0 = vmul.f32 0.5, %v9520_v2 }
 0x596   : > { %v9729_v11 = vmul.f32 %v13583_v7, %v9728_v3  ;;  %v12291_v8 = vadd.f32 1.0, %v13508_v45  ;;  %v11092_v4 = vadd.f32 0.00028619796, %v11091_v25  ;;  %v9412_v29 = vadd.f32 %v8802_v36, %v17781_v60  ;;  %vm9733_vm5 = vmor %vm9731_vm2, %vm9732_vm4 }
 0x597   : > { %v11103_v1 = vadd.f32 0.001143296, %v11102_v16  ;;  %v11041_v28 = vand.u32 2147483647, %v18081_v5  ;;  %v11138_v47 = vadd.f32 0.18741608, %v11137_v53  ;;  %v9411_v3 = vadd.f32 %v8779_v33, %v17763_v30 }
 0x598   : > { %v9730_v13 = vadd.f32 %v13583_v7, %v9729_v11  ;;  %v11149_v20 = vadd.f32 0.4994258, %v11148_v38  ;;  %v12456_v14 = vmul.f32 %v18049_v22, %v12291_v8  ;;  %v11093_v2 = vmul.f32 %v11092_v4, %v18083_v17 }
 0x599   : > { %v13585_v41 = vpop.eup %13584  ;;  %v11104_v31 = vmul.f32 %v11103_v1, %v18083_v17  ;;  %v18111_v44 = vadd.f32 %v17670_v37, %v9412_v29  ;;  %v11043_v57 = vand.u32 2147483648, %v18081_v5  ;;  %v11139_v25 = vmul.f32 %v11138_v47, %v18033_v40 }
 0x59a   : > { %v9734_v60 = vsel %vm9733_vm5, %v13583_v7, %v9730_v13  ;;  %v11033_v51 = vmul.f32 %v13585_v41, %v18081_v5  ;;  %12489 = vst [vmem:[%s17918_s30 + $0x118] sm:$0xff] %v12456_v14  ;;  %v11150_v39 = vmul.f32 %v11149_v20, %v18033_v40  ;;  %v11094_v53 = vadd.f32 0.0036580483, %v11093_v2  ;;  %v8848_v2 = vpop.f32.mrf.mxu0 }
 0x59b   : > { %v9739_v22 = vsel %vm18094_vm3, %v9738_v48, %v9734_v60  ;;  %v11105_v27 = vadd.f32 0.014752088, %v11104_v31  ;;  %v18122_v7 = vmul.f32 0.70710677, %v18111_v44  ;;  %vm11038_vm6 = vweird.f32 %v13585_v41 }
 0x59c   : > { %v9740_v36 = vmul.f32 %v9739_v22, %v9715_v55  ;;  %v11034_v45 = vsub.f32 1.0, %v11033_v51  ;;  %v18124_v16 = vadd.f32 1.0, %v11150_v39  ;;  %v11095_v30 = vmul.f32 %v11094_v53, %v18083_v17 }
 0x59d   : > { %v11106_v11 = vmul.f32 %v11105_v27, %v18083_v17  ;;  %v9823_v38 = vmul.f32 %v18122_v7, %v18122_v7  ;;  %v18131_v55 = vadd.f32 %v17670_v37, %v9411_v3  ;;  %v11021_v40 = vmul.f32 %v11020_v10, %v17988_v35 }
 0x59e   : > { %v11035_v34 = vmul.f32 %v13585_v41, %v11034_v45  ;;  %v13476_v48 = vclamps-f32 %v9740_v36, 1.0  ;;  %vm11037_vm7 = vweird.f32 %v18081_v5  ;;  %vm18135_vm8 = vcmp.eq.f32.partialorder %v11041_v28, 8.507059e+37  ;;  %v20960_v45 = vld [vmem:[#allocation153_spill] sm:$0xff] }
 0x59f   : > { %13586 = vrcp.f32 %v18124_v16  ;;  %v11096_v29 = vadd.f32 0.05243302, %v11095_v30  ;;  %v11107_v33 = vadd.f32 0.112945676, %v11106_v11  ;;  %vm11039_vm9 = vmor %vm11037_vm7, %vm11038_vm6  ;;  %v11044_v13 = vor.u32 1.1754944e-38, %v11043_v57 }
 0x5a0   : > { %v11036_v4 = vadd.f32 %v13585_v41, %v11035_v34  ;;  %v10906_v1 = vadd.f32 1.0, %v13476_v48  ;;  %v11140_v47 = vadd.f32 1.1283791, %v11139_v25  ;;  %v18141_v20 = vmin.f32 %v9823_v38, 16.0 }
 0x5a1   : > { %v18144_v35 = vmul.f32 0.70710677, %v18131_v55  ;;  %v11097_v10 = vmul.f32 %v11096_v29, %v18083_v17  ;;  %v11108_v28 = vmul.f32 %v11107_v33, %v18083_v17  ;;  %v18155_v3 = vmul.f32 0.5, %v17790_v59 }
 0x5a2   : > { %v11040_v5 = vsel %vm11039_vm9, %v13585_v41, %v11036_v4  ;;  %v12358_v14 = vmul.f32 %v12325_v0, %v10906_v1  ;;  %v9825_v60 = vmul.f32 2.1237322e-06, %v18141_v20  ;;  %v9836_v51 = vmul.f32 3.8918573e-05, %v18141_v20 }
 0x5a3   : > { %v11045_v31 = vsel %vm18135_vm8, %v11044_v13, %v11040_v5  ;;  %v9783_v57 = vmul.f32 %v18144_v35, %v18144_v35  ;;  %v11098_v22 = vadd.f32 0.18741608, %v11097_v10  ;;  %v11109_v39 = vadd.f32 0.4994258, %v11108_v28 }
 0x5a4   : > { %v11046_v41 = vmul.f32 %v11045_v31, %v11021_v40  ;;  %12391 = vst [vmem:[%s17918_s30 + $0x18] sm:$0xff] %v12358_v14  ;;  %v9826_v0 = vadd.f32 0.00028619796, %v9825_v60  ;;  %v9837_v27 = vadd.f32 0.001143296, %v9836_v51  ;;  %v9414_v25 = vadd.f32 %v8848_v2, %v20960_v45 }
 0x5a5   : > { %v13587_v53 = vpop.eup %13586  ;;  %v18158_v36 = vmin.f32 %v9783_v57, 16.0  ;;  %v11161_v34 = vand.u32 2147483647, %v18124_v16  ;;  %v11099_v48 = vmul.f32 %v11098_v22, %v18083_v17  ;;  %v11110_v59 = vmul.f32 %v11109_v39, %v18083_v17 }
 0x5a6   : > { %v13507_v30 = vclamps-f32 %v11046_v41, 1.0  ;;  %v11153_v11 = vmul.f32 %v13587_v53, %v18124_v16  ;;  %v9827_v38 = vmul.f32 %v9826_v0, %v18141_v20  ;;  %v9838_v40 = vmul.f32 %v9837_v27, %v18141_v20 }
 0x5a7   : > { %v9785_v8 = vmul.f32 2.1237322e-06, %v18158_v36  ;;  %v11163_v29 = vand.u32 2147483648, %v18124_v16  ;;  %v9796_v33 = vmul.f32 3.8918573e-05, %v18158_v36  ;;  %v18170_v13 = vadd.f32 1.0, %v11110_v59 }
 0x5a8   : > { %v12290_v4 = vadd.f32 1.0, %v13507_v30  ;;  %v11154_v1 = vsub.f32 1.0, %v11153_v11  ;;  %v9828_v5 = vadd.f32 0.0036580483, %v9827_v38  ;;  %v9839_v10 = vadd.f32 0.014752088, %v9838_v40 }
 0x5a9   : > { %v18173_v28 = vadd.f32 %v17670_v37, %v9414_v25  ;;  %vm11158_vm10 = vweird.f32 %v13587_v53  ;;  %v9786_v2 = vadd.f32 0.00028619796, %v9785_v8  ;;  %v11141_v31 = vmul.f32 %v11140_v47, %v18014_v54 }
 0x5aa   : > { %v12455_v17 = vmul.f32 %v18086_v15, %v12290_v4  ;;  %v11155_v14 = vmul.f32 %v13587_v53, %v11154_v1  ;;  %vm11157_vm11 = vweird.f32 %v18124_v16  ;;  %v11100_v60 = vadd.f32 1.1283791, %v11099_v48  ;;  %v8805_v48 = vpop.f32.mrf.mxu2 }
 0x5ab   : > { %13588 = vrcp.f32 %v18170_v13  ;;  %v9829_v57 = vmul.f32 %v9828_v5, %v18141_v20  ;;  %v9840_v41 = vmul.f32 %v9839_v10, %v18141_v20  ;;  %v9787_v22 = vmul.f32 %v9786_v2, %v18158_v36  ;;  %vm11159_vm12 = vmor %vm11157_vm11, %vm11158_vm10 }
 0x5ac   : > { %12488 = vst [vmem:[%s17918_s30 + $0x110] sm:$0xff] %v12455_v17  ;;  %v11156_v51 = vadd.f32 %v13587_v53, %v11155_v14  ;;  %vm11162_vm13 = vcmp.eq.f32.partialorder %v11161_v34, 8.507059e+37  ;;  %v11164_v15 = vor.u32 1.1754944e-38, %v11163_v29  ;;  %v9797_v39 = vadd.f32 0.001143296, %v9796_v33 }
 0x5ad   : > { %v18184_v0 = vmul.f32 0.70710677, %v18173_v28  ;;  %v9830_v16 = vadd.f32 0.05243302, %v9829_v57  ;;  %v9841_v47 = vadd.f32 0.112945676, %v9840_v41  ;;  %v11101_v25 = vmul.f32 %v11100_v60, %v18069_v46 }
 0x5ae   : > { %v11160_v54 = vsel %vm11159_vm12, %v13587_v53, %v11156_v51  ;;  %v9788_v27 = vadd.f32 0.0036580483, %v9787_v22  ;;  %v9798_v30 = vmul.f32 %v9797_v39, %v18158_v36  ;;  %v11121_v8 = vand.u32 2147483647, %v18170_v13 }
 0x5af   : > { %v11165_v45 = vsel %vm11162_vm13, %v11164_v15, %v11160_v54  ;;  %v9903_v11 = vmul.f32 %v18184_v0, %v18184_v0  ;;  %v9831_v34 = vmul.f32 %v9830_v16, %v18141_v20  ;;  %v9842_v38 = vmul.f32 %v9841_v47, %v18141_v20 }
 0x5b0   : > { %v11166_v59 = vmul.f32 %v11165_v45, %v11141_v31  ;;  %v9789_v40 = vmul.f32 %v9788_v27, %v18158_v36  ;;  %v11123_v4 = vand.u32 2147483648, %v18170_v13  ;;  %v9799_v1 = vadd.f32 0.014752088, %v9798_v30  ;;  %v8825_v27 = vpop.f32.mrf.mxu3 }
 0x5b1   : > { %v13589_v53 = vpop.eup %13588  ;;  %v18195_v46 = vmin.f32 %v9903_v11, 16.0  ;;  %v9832_v5 = vadd.f32 0.18741608, %v9831_v34  ;;  %v9445_v10 = vadd.f32 %v8805_v48, %v17807_v58  ;;  %v9843_v17 = vadd.f32 0.4994258, %v9842_v38  ;;  %v20961_v38 = vld [vmem:[#allocation115_spill] sm:$0xff] }
 0x5b2   : > { %v13510_v29 = vclamps-f32 %v11166_v59, 1.0  ;;  %v11113_v33 = vmul.f32 %v13589_v53, %v18170_v13  ;;  %v9790_v14 = vadd.f32 0.05243302, %v9789_v40  ;;  %v9800_v2 = vmul.f32 %v9799_v1, %v18158_v36 }
 0x5b3   : > { %v9905_v31 = vmul.f32 2.1237322e-06, %v18195_v46  ;;  %vm11118_vm14 = vweird.f32 %v13589_v53  ;;  %v9916_v57 = vmul.f32 3.8918573e-05, %v18195_v46  ;;  %v9844_v41 = vmul.f32 %v9843_v17, %v18141_v20 }
 0x5b4   : > { %v12293_v60 = vadd.f32 1.0, %v13510_v29  ;;  %v11114_v51 = vsub.f32 1.0, %v11113_v33  ;;  %v9791_v22 = vmul.f32 %v9790_v14, %v18158_v36  ;;  %v9801_v15 = vadd.f32 0.112945676, %v9800_v2 }
 0x5b5   : > { %v9906_v39 = vadd.f32 0.00028619796, %v9905_v31  ;;  %v9833_v16 = vmul.f32 %v9832_v5, %v18141_v20  ;;  %v9917_v47 = vadd.f32 0.001143296, %v9916_v57  ;;  %v18206_v45 = vadd.f32 1.0, %v9844_v41 }
 0x5b6   : > { %v12458_v58 = vmul.f32 %v18155_v3, %v12293_v60  ;;  %v11115_v54 = vmul.f32 %v13589_v53, %v11114_v51  ;;  %v9792_v30 = vadd.f32 0.18741608, %v9791_v22  ;;  %v9802_v11 = vmul.f32 %v9801_v15, %v18158_v36 }
 0x5b7   : > { %v9907_v48 = vmul.f32 %v9906_v39, %v18195_v46  ;;  %vm11117_vm15 = vweird.f32 %v18170_v13  ;;  %vm11122_vm0 = vcmp.eq.f32.partialorder %v11121_v8, 8.507059e+37  ;;  %v9918_v34 = vmul.f32 %v9917_v47, %v18195_v46 }
 0x5b8   : > { %12491 = vst [vmem:[%s17918_s30 + $0x128] sm:$0xff] %v12458_v58  ;;  %v11116_v59 = vadd.f32 %v13589_v53, %v11115_v54  ;;  %vm11119_vm1 = vmor %vm11117_vm15, %vm11118_vm14  ;;  %v11124_v3 = vor.u32 1.1754944e-38, %v11123_v4  ;;  %13590 = vrcp.f32 %v18206_v45  ;;  %v9523_v20 = vadd.f32 %v17701_v23, %v9445_v10 }
 0x5b9   : > { %v9413_v40 = vadd.f32 %v8825_v27, %v20961_v38  ;;  %v9834_v29 = vadd.f32 1.1283791, %v9833_v16  ;;  %v9803_v33 = vadd.f32 0.4994258, %v9802_v11  ;;  %v9908_v5 = vadd.f32 0.0036580483, %v9907_v48 }
 0x5ba   : > { %v11120_v1 = vsel %vm11119_vm1, %v13589_v53, %v11116_v59  ;;  %v12424_v17 = vmul.f32 0.5, %v17948_v62  ;;  %v9793_v13 = vmul.f32 %v9792_v30, %v18158_v36  ;;  %v9919_v8 = vadd.f32 0.014752088, %v9918_v34 }
 0x5bb   : > { %v11125_v14 = vsel %vm11122_vm0, %v11124_v3, %v11120_v1  ;;  %v9855_v31 = vand.u32 2147483647, %v18206_v45  ;;  %v9804_v4 = vmul.f32 %v9803_v33, %v18158_v36  ;;  %v9909_v60 = vmul.f32 %v9908_v5, %v18195_v46  ;;  %v8782_v33 = vpop.f32.mrf.mxu1 }
 0x5bc   : > { %v11126_v2 = vmul.f32 %v11125_v14, %v11101_v25  ;;  %v9857_v10 = vand.u32 2147483648, %v18206_v45  ;;  %v9920_v53 = vmul.f32 %v9919_v8, %v18195_v46  ;;  %v18224_v51 = vmul.f32 0.70710677, %v9523_v20 }
 0x5bd   : > { %v18227_v57 = vadd.f32 %v17670_v37, %v9413_v40  ;;  %v9835_v41 = vmul.f32 %v9834_v29, %v18122_v7  ;;  %v18230_v22 = vadd.f32 1.0, %v9804_v4  ;;  %v9910_v25 = vadd.f32 0.05243302, %v9909_v60 }
 0x5be   : > { %v13509_v62 = vclamps-f32 %v11126_v2, 1.0  ;;  %v13591_v15 = vpop.eup %13590  ;;  %v9794_v39 = vadd.f32 1.1283791, %v9793_v13  ;;  %v9921_v36 = vadd.f32 0.112945676, %v9920_v53  ;;  %v11209_v58 = vmul.f32 %v18224_v51, %v18224_v51 }
 0x5bf   : > { %v18235_v54 = vmul.f32 0.70710677, %v18227_v57  ;;  %v9847_v47 = vmul.f32 %v13591_v15, %v18206_v45  ;;  %vm9851_vm2 = vweird.f32 %v18206_v45  ;;  %13592 = vrcp.f32 %v18230_v22 }
 0x5c0   : > { %v12292_v16 = vadd.f32 1.0, %v13509_v62  ;;  %vm18240_vm3 = vcmp.eq.f32.partialorder %v9855_v31, 8.507059e+37  ;;  %v9858_v27 = vor.u32 1.1754944e-38, %v9857_v10  ;;  %v9911_v30 = vmul.f32 %v9910_v25, %v18195_v46 }
 0x5c1   : > { %v18245_v11 = vmul.f32 0.5, %v9523_v20  ;;  %v9848_v59 = vsub.f32 1.0, %v9847_v47  ;;  %v9922_v34 = vmul.f32 %v9921_v36, %v18195_v46  ;;  %v18248_v3 = vmin.f32 %v11209_v58, 16.0 }
 0x5c2   : > { %v12457_v48 = vmul.f32 %v12424_v17, %v12292_v16  ;;  %v18251_v38 = vmul.f32 %v9794_v39, %v18144_v35  ;;  %v9815_v40 = vand.u32 2147483647, %v18230_v22  ;;  %v9912_v1 = vadd.f32 0.18741608, %v9911_v30  ;;  %v8851_v30 = vpop.f32.mrf.mxu0 }
 0x5c3   : > { %v9863_v29 = vmul.f32 %v18235_v54, %v18235_v54  ;;  %v9849_v5 = vmul.f32 %v13591_v15, %v9848_v59  ;;  %vm9852_vm4 = vweird.f32 %v13591_v15  ;;  %v9923_v20 = vadd.f32 0.4994258, %v9922_v34 }
 0x5c4   : > { %12490 = vst [vmem:[%s17918_s30 + $0x120] sm:$0xff] %v12457_v48  ;;  %v11211_v17 = vmul.f32 2.1237322e-06, %v18248_v3  ;;  %v9817_v14 = vand.u32 2147483648, %v18230_v22  ;;  %v9913_v13 = vmul.f32 %v9912_v1, %v18195_v46  ;;  %v11222_v35 = vmul.f32 3.8918573e-05, %v18248_v3  ;;  %vm9853_vm5 = vmor %vm9851_vm2, %vm9852_vm4 }
 0x5c5   : > { %v18261_v8 = vmin.f32 %v9863_v29, 16.0  ;;  %v13593_v2 = vpop.eup %13592  ;;  %v9850_v31 = vadd.f32 %v13591_v15, %v9849_v5  ;;  %v9924_v4 = vmul.f32 %v9923_v20, %v18195_v46  ;;  %v9444_v10 = vadd.f32 %v8782_v33, %v17778_v6 }
 0x5c6   : > { %v11212_v60 = vadd.f32 0.00028619796, %v11211_v17  ;;  %v9807_v53 = vmul.f32 %v13593_v2, %v18230_v22  ;;  %vm9811_vm6 = vweird.f32 %v18230_v22  ;;  %vm18269_vm7 = vcmp.eq.f32.partialorder %v9815_v40, 8.507059e+37 }
 0x5c7   : > { %v11223_v25 = vadd.f32 0.001143296, %v11222_v35  ;;  %v9854_v39 = vsel %vm9853_vm5, %v13591_v15, %v9850_v31  ;;  %v18273_v36 = vadd.f32 1.0, %v9924_v4  ;;  %v9865_v58 = vmul.f32 2.1237322e-06, %v18261_v8 }
 0x5c8   : > { %v11213_v46 = vmul.f32 %v11212_v60, %v18248_v3  ;;  %v9859_v6 = vsel %vm18240_vm3, %v9858_v27, %v9854_v39  ;;  %v9808_v45 = vsub.f32 1.0, %v9807_v53  ;;  %v9914_v16 = vadd.f32 1.1283791, %v9913_v13  ;;  %v20966_v27 = vld [vmem:[#allocation154_spill] sm:$0xff] }
 0x5c9   : > { %v11224_v47 = vmul.f32 %v11223_v25, %v18248_v3  ;;  %v9860_v48 = vmul.f32 %v9859_v6, %v9835_v41  ;;  %v9818_v59 = vor.u32 1.1754944e-38, %v9817_v14  ;;  %13594 = vrcp.f32 %v18273_v36 }
 0x5ca   : > { %v18282_v15 = vadd.f32 %v17701_v23, %v9444_v10  ;;  %v9809_v34 = vmul.f32 %v13593_v2, %v9808_v45  ;;  %vm9812_vm8 = vweird.f32 %v13593_v2  ;;  %v11214_v40 = vadd.f32 0.0036580483, %v11213_v46 }
 0x5cb   : > { %v11225_v1 = vadd.f32 0.014752088, %v11224_v47  ;;  %v13479_v29 = vclamps-f32 %v9860_v48, 1.0  ;;  %v9866_v33 = vadd.f32 0.00028619796, %v9865_v58  ;;  %v9447_v5 = vadd.f32 %v8851_v30, %v20966_v27  ;;  %vm9813_vm9 = vmor %vm9811_vm6, %vm9812_vm8 }
 0x5cc   : > { %v9876_v7 = vmul.f32 3.8918573e-05, %v18261_v8  ;;  %v9810_v20 = vadd.f32 %v13593_v2, %v9809_v34  ;;  %v9915_v17 = vmul.f32 %v9914_v16, %v18184_v0  ;;  %v11215_v41 = vmul.f32 %v11214_v40, %v18248_v3 }
 0x5cd   : > { %v11226_v14 = vmul.f32 %v11225_v1, %v18248_v3  ;;  %v10909_v13 = vadd.f32 1.0, %v13479_v29  ;;  %v9867_v35 = vmul.f32 %v9866_v33, %v18261_v8  ;;  %v18293_v4 = vmul.f32 0.70710677, %v18282_v15 }
 0x5ce   : > { %v9877_v31 = vadd.f32 0.001143296, %v9876_v7  ;;  %v9814_v60 = vsel %vm9813_vm9, %v13593_v2, %v9810_v20  ;;  %vm9931_vm10 = vweird.f32 %v18273_v36  ;;  %v9935_v0 = vand.u32 2147483647, %v18273_v36 }
 0x5cf   : > { %v11216_v10 = vadd.f32 0.05243302, %v11215_v41  ;;  %v11227_v53 = vadd.f32 0.112945676, %v11226_v14  ;;  %v13595_v25 = vpop.eup %13594  ;;  %v9819_v22 = vsel %vm18269_vm7, %v9818_v59, %v9814_v60  ;;  %v12361_v39 = vmul.f32 %v18245_v11, %v10909_v13 }
 0x5d0   : > { %v9868_v46 = vadd.f32 0.0036580483, %v9867_v35  ;;  %v9878_v58 = vmul.f32 %v9877_v31, %v18261_v8  ;;  %v9820_v6 = vmul.f32 %v9819_v22, %v18251_v38  ;;  %v9927_v45 = vmul.f32 %v13595_v25, %v18273_v36 }
 0x5d1   : > { %v9937_v2 = vand.u32 2147483648, %v18273_v36  ;;  %v11217_v16 = vmul.f32 %v11216_v10, %v18248_v3  ;;  %v11228_v47 = vmul.f32 %v11227_v53, %v18248_v3  ;;  %12394 = vst [vmem:[%s17918_s30 + $0x30] sm:$0xff] %v12361_v39  ;;  %v11169_v11 = vmul.f32 %v18293_v4, %v18293_v4 }
 0x5d2   : > { %v9869_v30 = vmul.f32 %v9868_v46, %v18261_v8  ;;  %v9879_v62 = vadd.f32 0.014752088, %v9878_v58  ;;  %v9928_v48 = vsub.f32 1.0, %v9927_v45  ;;  %vm18310_vm11 = vcmp.eq.f32.partialorder %v9935_v0, 8.507059e+37 }
 0x5d3   : > { %v11218_v38 = vadd.f32 0.18741608, %v11217_v16  ;;  %v18315_v34 = vadd.f32 %v17701_v23, %v9447_v5  ;;  %v11229_v40 = vadd.f32 0.4994258, %v11228_v47  ;;  %v18318_v33 = vmin.f32 %v11169_v11, 16.0 }
 0x5d4   : > { %v9870_v1 = vadd.f32 0.05243302, %v9869_v30  ;;  %v9880_v29 = vmul.f32 %v9879_v62, %v18261_v8  ;;  %v9929_v7 = vmul.f32 %v13595_v25, %v9928_v48  ;;  %vm9932_vm12 = vweird.f32 %v13595_v25 }
 0x5d5   : > { %v13478_v27 = vclamps-f32 %v9820_v6, 1.0  ;;  %v18321_v20 = vmul.f32 0.70710677, %v18315_v34  ;;  %v11230_v41 = vmul.f32 %v11229_v40, %v18248_v3  ;;  %v11171_v5 = vmul.f32 2.1237322e-06, %v18318_v33  ;;  %vm9933_vm13 = vmor %vm9931_vm10, %vm9932_vm12 }
 0x5d6   : > { %v9871_v14 = vmul.f32 %v9870_v1, %v18261_v8  ;;  %v9881_v13 = vadd.f32 0.112945676, %v9880_v29  ;;  %v9930_v35 = vadd.f32 %v13595_v25, %v9929_v7  ;;  %v11219_v31 = vmul.f32 %v11218_v38, %v18248_v3  ;;  %v8828_v1 = vpop.f32.mrf.mxu3 }
 0x5d7   : > { %v11182_v60 = vmul.f32 3.8918573e-05, %v18318_v33  ;;  %v11289_v0 = vmul.f32 %v18321_v20, %v18321_v20  ;;  %v9938_v10 = vor.u32 1.1754944e-38, %v9937_v2  ;;  %v18332_v53 = vadd.f32 1.0, %v11230_v41 }
 0x5d8   : > { %v9882_v22 = vmul.f32 %v9881_v13, %v18261_v8  ;;  %v11172_v39 = vadd.f32 0.00028619796, %v11171_v5  ;;  %v9934_v46 = vsel %vm9933_vm13, %v13595_v25, %v9930_v35  ;;  %v10908_v58 = vadd.f32 1.0, %v13478_v27 }
 0x5d9   : > { %v11183_v6 = vadd.f32 0.001143296, %v11182_v60  ;;  %v18335_v45 = vmin.f32 %v11289_v0, 16.0  ;;  %v18338_v3 = vmul.f32 0.5, %v18111_v44  ;;  %v9939_v16 = vsel %vm18310_vm11, %v9938_v10, %v9934_v46  ;;  %v20969_v60 = vld [vmem:[#allocation116_spill] sm:$0xff] }
 0x5da   : > { %13596 = vrcp.f32 %v18332_v53  ;;  %v9872_v36 = vadd.f32 0.18741608, %v9871_v14  ;;  %v9940_v2 = vmul.f32 %v9939_v16, %v9915_v17  ;;  %v11220_v47 = vadd.f32 1.1283791, %v11219_v31 }
 0x5db   : > { %v9883_v30 = vadd.f32 0.4994258, %v9882_v22  ;;  %v12327_v62 = vmul.f32 0.5, %v18282_v15  ;;  %v18345_v25 = vmul.f32 0.5, %v18131_v55  ;;  %v11173_v11 = vmul.f32 %v11172_v39, %v18318_v33 }
 0x5dc   : > { %v11184_v44 = vmul.f32 %v11183_v6, %v18318_v33  ;;  %v11291_v48 = vmul.f32 2.1237322e-06, %v18335_v45  ;;  %v11241_v59 = vand.u32 2147483647, %v18332_v53  ;;  %v11243_v38 = vand.u32 2147483648, %v18332_v53 }
 0x5dd   : > { %v9884_v17 = vmul.f32 %v9883_v30, %v18261_v8  ;;  %v12360_v40 = vmul.f32 %v12327_v62, %v10908_v58  ;;  %v9873_v15 = vmul.f32 %v9872_v36, %v18261_v8  ;;  %v11174_v29 = vadd.f32 0.0036580483, %v11173_v11 }
 0x5de   : > { %v11185_v7 = vadd.f32 0.014752088, %v11184_v44  ;;  %v13481_v55 = vclamps-f32 %v9940_v2, 1.0  ;;  %v11221_v27 = vmul.f32 %v11220_v47, %v18224_v51  ;;  %v11292_v14 = vadd.f32 0.00028619796, %v11291_v48 }
 0x5df   : > { %v18355_v41 = vadd.f32 1.0, %v9884_v17  ;;  %12393 = vst [vmem:[%s17918_s30 + $0x28] sm:$0xff] %v12360_v40  ;;  %v11302_v13 = vmul.f32 3.8918573e-05, %v18335_v45  ;;  %vm11237_vm14 = vweird.f32 %v18332_v53  ;;  %v11175_v35 = vmul.f32 %v11174_v29, %v18318_v33 }
 0x5e0   : > { %v13597_v5 = vpop.eup %13596  ;;  %v11186_v31 = vmul.f32 %v11185_v7, %v18318_v33  ;;  %v9446_v8 = vadd.f32 %v8828_v1, %v20969_v60  ;;  %vm18364_vm15 = vcmp.eq.f32.partialorder %v11241_v59, 8.507059e+37  ;;  %v11244_v51 = vor.u32 1.1754944e-38, %v11243_v38 }
 0x5e1   : > { %v11233_v0 = vmul.f32 %v13597_v5, %v18332_v53  ;;  %13598 = vrcp.f32 %v18355_v41  ;;  %v9874_v22 = vadd.f32 1.1283791, %v9873_v15  ;;  %v11176_v39 = vadd.f32 0.05243302, %v11175_v35 }
 0x5e2   : > { %v10911_v46 = vadd.f32 1.0, %v13481_v55  ;;  %v11293_v58 = vmul.f32 %v11292_v14, %v18335_v45  ;;  %v11187_v16 = vadd.f32 0.112945676, %v11186_v31  ;;  %v11303_v36 = vadd.f32 0.001143296, %v11302_v13  ;;  %v8894_v14 = vpop.f32.mrf.mxu2 }
 0x5e3   : > { %v11234_v6 = vsub.f32 1.0, %v11233_v0  ;;  %v9524_v2 = vadd.f32 %v17701_v23, %v9446_v8  ;;  %vm11238_vm0 = vweird.f32 %v13597_v5  ;;  %v11177_v47 = vmul.f32 %v11176_v39, %v18318_v33 }
 0x5e4   : > { %v11294_v30 = vadd.f32 0.0036580483, %v11293_v58  ;;  %v12330_v62 = vmul.f32 0.5, %v18315_v34  ;;  %v11188_v44 = vmul.f32 %v11187_v16, %v18318_v33  ;;  %v11304_v48 = vmul.f32 %v11303_v36, %v18335_v45  ;;  %vm11239_vm1 = vmor %vm11237_vm14, %vm11238_vm0 }
 0x5e5   : > { %v11235_v11 = vmul.f32 %v13597_v5, %v11234_v6  ;;  %v18375_v59 = vmul.f32 0.70710677, %v9524_v2  ;;  %v9875_v38 = vmul.f32 %v9874_v22, %v18235_v54  ;;  %v9895_v17 = vand.u32 2147483647, %v18355_v41 }
 0x5e6   : > { %v11178_v40 = vadd.f32 0.18741608, %v11177_v47  ;;  %v11295_v1 = vmul.f32 %v11294_v30, %v18335_v45  ;;  %v11189_v7 = vadd.f32 0.4994258, %v11188_v44  ;;  %v11305_v55 = vadd.f32 0.014752088, %v11304_v48 }
 0x5e7   : > { %v13599_v15 = vpop.eup %13598  ;;  %v11236_v29 = vadd.f32 %v13597_v5, %v11235_v11  ;;  %v12363_v34 = vmul.f32 %v12330_v62, %v10911_v46  ;;  %v9897_v54 = vand.u32 2147483648, %v18355_v41  ;;  %v11249_v22 = vmul.f32 %v18375_v59, %v18375_v59 }
 0x5e8   : > { %v9887_v13 = vmul.f32 %v13599_v15, %v18355_v41  ;;  %v11179_v35 = vmul.f32 %v11178_v40, %v18318_v33  ;;  %v11296_v31 = vadd.f32 0.05243302, %v11295_v1  ;;  %v11190_v8 = vmul.f32 %v11189_v7, %v18318_v33 }
 0x5e9   : > { %v11240_v60 = vsel %vm11239_vm1, %v13597_v5, %v11236_v29  ;;  %v11306_v0 = vmul.f32 %v11305_v55, %v18335_v45  ;;  %12396 = vst [vmem:[%s17918_s30 + $0x40] sm:$0xff] %v12363_v34  ;;  %v9416_v58 = vadd.f32 %v8894_v14, %v17819_v43  ;;  %v18397_v36 = vmin.f32 %v11249_v22, 16.0  ;;  %v8871_v55 = vpop.f32.mrf.mxu1 }
 0x5ea   : > { %v11245_v53 = vsel %vm18364_vm15, %v11244_v51, %v11240_v60  ;;  %v9888_v39 = vsub.f32 1.0, %v9887_v13  ;;  %v11297_v46 = vmul.f32 %v11296_v31, %v18335_v45  ;;  %v18395_v16 = vadd.f32 1.0, %v11190_v8 }
 0x5eb   : > { %v11246_v6 = vmul.f32 %v11245_v53, %v11221_v27  ;;  %v11307_v5 = vadd.f32 0.112945676, %v11306_v0  ;;  %vm9892_vm2 = vweird.f32 %v13599_v15  ;;  %v11180_v47 = vadd.f32 1.1283791, %v11179_v35 }
 0x5ec   : > { %v9889_v33 = vmul.f32 %v13599_v15, %v9888_v39  ;;  %v11298_v30 = vadd.f32 0.18741608, %v11297_v46  ;;  %vm9891_vm3 = vweird.f32 %v18355_v41  ;;  %vm18400_vm4 = vcmp.eq.f32.partialorder %v9895_v17, 8.507059e+37 }
 0x5ed   : > { %v13512_v62 = vclamps-f32 %v11246_v6, 1.0  ;;  %13600 = vrcp.f32 %v18395_v16  ;;  %v9898_v27 = vor.u32 1.1754944e-38, %v9897_v54  ;;  %v11308_v51 = vmul.f32 %v11307_v5, %v18335_v45  ;;  %vm9893_vm5 = vmor %vm9891_vm3, %vm9892_vm2 }
 0x5ee   : > { %v9890_v43 = vadd.f32 %v13599_v15, %v9889_v33  ;;  %v18407_v11 = vadd.f32 %v17670_v37, %v9416_v58  ;;  %v11251_v48 = vmul.f32 2.1237322e-06, %v18397_v36  ;;  %v11262_v40 = vmul.f32 3.8918573e-05, %v18397_v36 }
 0x5ef   : > { %v12295_v44 = vadd.f32 1.0, %v13512_v62  ;;  %v12329_v41 = vmul.f32 0.5, %v9524_v2  ;;  %v11181_v1 = vmul.f32 %v11180_v47, %v18293_v4  ;;  %v11299_v29 = vmul.f32 %v11298_v30, %v18335_v45 }
 0x5f0   : > { %v9894_v17 = vsel %vm9893_vm5, %v13599_v15, %v9890_v43  ;;  %v11309_v7 = vadd.f32 0.4994258, %v11308_v51  ;;  %v11252_v13 = vadd.f32 0.00028619796, %v11251_v48  ;;  %v11263_v54 = vadd.f32 0.001143296, %v11262_v40 }
 0x5f1   : > { %v12460_v34 = vmul.f32 %v18338_v3, %v12295_v44  ;;  %v9899_v14 = vsel %vm18400_vm4, %v9898_v27, %v9894_v17  ;;  %v11201_v31 = vand.u32 2147483647, %v18395_v16  ;;  %v18419_v2 = vmul.f32 0.70710677, %v18407_v11 }
 0x5f2   : > { %v9900_v35 = vmul.f32 %v9899_v14, %v9875_v38  ;;  %v11310_v60 = vmul.f32 %v11309_v7, %v18335_v45  ;;  %v11203_v15 = vand.u32 2147483648, %v18395_v16  ;;  %v11253_v8 = vmul.f32 %v11252_v13, %v18397_v36 }
 0x5f3   : > { %v13601_v4 = vpop.eup %13600  ;;  %12493 = vst [vmem:[%s17918_s30 + $0x138] sm:$0xff] %v12460_v34  ;;  %v11264_v3 = vmul.f32 %v11263_v54, %v18397_v36  ;;  %v9415_v0 = vadd.f32 %v8871_v55, %v17794_v12  ;;  %v11300_v38 = vadd.f32 1.1283791, %v11299_v29  ;;  %v9983_v58 = vmul.f32 %v18419_v2, %v18419_v2 }
 0x5f4   : > { %v11193_v22 = vmul.f32 %v13601_v4, %v18395_v16  ;;  %v18427_v53 = vadd.f32 1.0, %v11310_v60  ;;  %v13480_v39 = vclamps-f32 %v9900_v35, 1.0  ;;  %v11254_v45 = vadd.f32 0.0036580483, %v11253_v8 }
 0x5f5   : > { %v11265_v46 = vadd.f32 0.014752088, %v11264_v3  ;;  %v18432_v6 = vadd.f32 %v17670_v37, %v9415_v0  ;;  %vm11197_vm6 = vweird.f32 %v18395_v16  ;;  %vm18435_vm7 = vcmp.eq.f32.partialorder %v11201_v31, 8.507059e+37 }
 0x5f6   : > { %v11194_v5 = vsub.f32 1.0, %v11193_v22  ;;  %13602 = vrcp.f32 %v18427_v53  ;;  %v11204_v12 = vor.u32 1.1754944e-38, %v11203_v15  ;;  %v10910_v47 = vadd.f32 1.0, %v13480_v39 }
 0x5f7   : > { %v11255_v30 = vmul.f32 %v11254_v45, %v18397_v36  ;;  %v11266_v62 = vmul.f32 %v11265_v46, %v18397_v36  ;;  %vm11198_vm8 = vweird.f32 %v13601_v4  ;;  %v18442_v43 = vmin.f32 %v9983_v58, 16.0 }
 0x5f8   : > { %v11195_v10 = vmul.f32 %v13601_v4, %v11194_v5  ;;  %v18445_v27 = vmul.f32 0.70710677, %v18432_v6  ;;  %v18448_v51 = vmul.f32 %v11300_v38, %v18321_v20  ;;  %v12362_v40 = vmul.f32 %v12329_v41, %v10910_v47  ;;  %vm11199_vm9 = vmor %vm11197_vm6, %vm11198_vm8 }
 0x5f9   : > { %v11256_v44 = vadd.f32 0.05243302, %v11255_v30  ;;  %v11267_v48 = vadd.f32 0.112945676, %v11266_v62  ;;  %v9985_v29 = vmul.f32 2.1237322e-06, %v18442_v43  ;;  %vm11317_vm10 = vweird.f32 %v18427_v53  ;;  %v8940_v62 = vpop.f32.mrf.mxu0 }
 0x5fa   : > { %v11196_v17 = vadd.f32 %v13601_v4, %v11195_v10  ;;  %v9996_v7 = vmul.f32 3.8918573e-05, %v18442_v43  ;;  %v9943_v55 = vmul.f32 %v18445_v27, %v18445_v27  ;;  %v11321_v34 = vand.u32 2147483647, %v18427_v53  ;;  %12395 = vst [vmem:[%s17918_s30 + $0x38] sm:$0xff] %v12362_v40 }
 0x5fb   : > { %v11257_v20 = vmul.f32 %v11256_v44, %v18397_v36  ;;  %v11268_v14 = vmul.f32 %v11267_v48, %v18397_v36  ;;  %v9986_v54 = vadd.f32 0.00028619796, %v9985_v29  ;;  %v11323_v15 = vand.u32 2147483648, %v18427_v53 }
 0x5fc   : > { %v13603_v41 = vpop.eup %13602  ;;  %v11200_v13 = vsel %vm11199_vm9, %v13601_v4, %v11196_v17  ;;  %v9997_v35 = vadd.f32 0.001143296, %v9996_v7  ;;  %v18461_v31 = vmin.f32 %v9943_v55, 16.0  ;;  %vm11322_vm12 = vcmp.eq.f32.partialorder %v11321_v34, 8.507059e+37  ;;  %v8897_v34 = vpop.f32.mrf.mxu2 }
 0x5fd   : > { %v11205_v60 = vsel %vm18435_vm7, %v11204_v12, %v11200_v13  ;;  %v11313_v16 = vmul.f32 %v13603_v41, %v18427_v53  ;;  %v11258_v8 = vadd.f32 0.18741608, %v11257_v20  ;;  %v11269_v0 = vadd.f32 0.4994258, %v11268_v14  ;;  %v20976_v20 = vld [vmem:[#allocation67_spill] sm:$0xff] }
 0x5fe   : > { %v11206_v3 = vmul.f32 %v11205_v60, %v11181_v1  ;;  %v9987_v22 = vmul.f32 %v9986_v54, %v18442_v43  ;;  %v9998_v38 = vmul.f32 %v9997_v35, %v18442_v43  ;;  %vm11318_vm11 = vweird.f32 %v13603_v41 }
 0x5ff   : > { %v11314_v39 = vsub.f32 1.0, %v11313_v16  ;;  %v9945_v4 = vmul.f32 2.1237322e-06, %v18461_v31  ;;  %v9956_v45 = vmul.f32 3.8918573e-05, %v18461_v31  ;;  %v11270_v58 = vmul.f32 %v11269_v0, %v18397_v36  ;;  %vm11319_vm13 = vmor %vm11317_vm10, %vm11318_vm11 }
 0x600   : > { %v13511_v46 = vclamps-f32 %v11206_v3, 1.0  ;;  %v9988_v5 = vadd.f32 0.0036580483, %v9987_v22  ;;  %v9999_v33 = vadd.f32 0.014752088, %v9998_v38  ;;  %v11259_v47 = vmul.f32 %v11258_v8, %v18397_v36 }
 0x601   : > { %v11315_v12 = vmul.f32 %v13603_v41, %v11314_v39  ;;  %v9946_v1 = vadd.f32 0.00028619796, %v9945_v4  ;;  %v9957_v30 = vadd.f32 0.001143296, %v9956_v45  ;;  %v18473_v44 = vadd.f32 1.0, %v11270_v58 }
 0x602   : > { %v12294_v10 = vadd.f32 1.0, %v13511_v46  ;;  %v9989_v48 = vmul.f32 %v9988_v5, %v18442_v43  ;;  %v10000_v40 = vmul.f32 %v9999_v33, %v18442_v43  ;;  %v11324_v36 = vor.u32 1.1754944e-38, %v11323_v15 }
 0x603   : > { %v11316_v17 = vadd.f32 %v13603_v41, %v11315_v12  ;;  %v9947_v29 = vmul.f32 %v9946_v1, %v18461_v31  ;;  %v9958_v7 = vmul.f32 %v9957_v30, %v18461_v31  ;;  %13604 = vrcp.f32 %v18473_v44 }
 0x604   : > { %v12459_v55 = vmul.f32 %v18345_v25, %v12294_v10  ;;  %v9418_v14 = vadd.f32 %v8940_v62, %v20976_v20  ;;  %v11260_v54 = vadd.f32 1.1283791, %v11259_v47  ;;  %v9990_v35 = vadd.f32 0.05243302, %v9989_v48 }
 0x605   : > { %v11320_v13 = vsel %vm11319_vm13, %v13603_v41, %v11316_v17  ;;  %v10001_v60 = vadd.f32 0.112945676, %v10000_v40  ;;  %v12429_v16 = vmul.f32 0.5, %v18173_v28  ;;  %v9948_v3 = vadd.f32 0.0036580483, %v9947_v29 }
 0x606   : > { %12492 = vst [vmem:[%s17918_s30 + $0x130] sm:$0xff] %v12459_v55  ;;  %v11325_v8 = vsel %vm11322_vm12, %v11324_v36, %v11320_v13  ;;  %v9959_v25 = vadd.f32 0.014752088, %v9958_v7  ;;  %v11281_v53 = vand.u32 2147483647, %v18473_v44  ;;  %v9991_v15 = vmul.f32 %v9990_v35, %v18442_v43 }
 0x607   : > { %v11326_v0 = vmul.f32 %v11325_v8, %v18448_v51  ;;  %v10002_v22 = vmul.f32 %v10001_v60, %v18442_v43  ;;  %v9949_v41 = vmul.f32 %v9948_v3, %v18461_v31  ;;  %v18494_v39 = vadd.f32 %v17670_v37, %v9418_v14 }
 0x608   : > { %v9960_v38 = vmul.f32 %v9959_v25, %v18461_v31  ;;  %v9449_v28 = vadd.f32 %v8897_v34, %v17841_v21  ;;  %v11283_v45 = vand.u32 2147483648, %v18473_v44  ;;  %v9992_v46 = vadd.f32 0.18741608, %v9991_v15 }
 0x609   : > { %v13514_v4 = vclamps-f32 %v11326_v0, 1.0  ;;  %v10003_v51 = vadd.f32 0.4994258, %v10002_v22  ;;  %v13605_v58 = vpop.eup %13604  ;;  %v18500_v5 = vadd.f32 %v17466_v19, %v17746_v50  ;;  %v9950_v33 = vadd.f32 0.05243302, %v9949_v41  ;;  %v20979_v0 = vld [vmem:[#allocation118_spill] sm:$0xff] }
 0x60a   : > { %v9961_v12 = vadd.f32 0.112945676, %v9960_v38  ;;  %v18503_v47 = vmul.f32 0.70710677, %v18494_v39  ;;  %v11273_v30 = vmul.f32 %v13605_v58, %v18473_v44  ;;  %v9993_v21 = vmul.f32 %v9992_v46, %v18442_v43 }
 0x60b   : > { %v12297_v1 = vadd.f32 1.0, %v13514_v4  ;;  %v18508_v62 = vadd.f32 %v17701_v23, %v9449_v28  ;;  %v10004_v10 = vmul.f32 %v10003_v51, %v18442_v43  ;;  %v9951_v48 = vmul.f32 %v9950_v33, %v18461_v31 }
 0x60c   : > { %v9962_v19 = vmul.f32 %v9961_v12, %v18461_v31  ;;  %v10063_v50 = vmul.f32 %v18503_v47, %v18503_v47  ;;  %v18516_v40 = vmul.f32 0.5, %v18227_v57  ;;  %v11261_v29 = vmul.f32 %v11260_v54, %v18375_v59  ;;  %v8917_v57 = vpop.f32.mrf.mxu3 }
 0x60d   : > { %v12462_v17 = vmul.f32 %v12429_v16, %v12297_v1  ;;  %v11274_v7 = vsub.f32 1.0, %v11273_v30  ;;  %v18519_v55 = vadd.f32 1.0, %v10004_v10  ;;  %v9952_v36 = vadd.f32 0.18741608, %v9951_v48 }
 0x60e   : > { %v9963_v20 = vadd.f32 0.4994258, %v9962_v19  ;;  %v18521_v14 = vmin.f32 %v10063_v50, 16.0  ;;  %vm11277_vm14 = vweird.f32 %v18473_v44  ;;  %vm11278_vm15 = vweird.f32 %v13605_v58 }
 0x60f   : > { %12495 = vst [vmem:[%s17918_s30 + $0x148] sm:$0xff] %v12462_v17  ;;  %v11275_v43 = vmul.f32 %v13605_v58, %v11274_v7  ;;  %v18526_v13 = vmul.f32 0.70710677, %v18508_v62  ;;  %vm18528_vm0 = vcmp.eq.f32.partialorder %v11281_v53, 8.507059e+37  ;;  %v11284_v59 = vor.u32 1.1754944e-38, %v11283_v45  ;;  %vm11279_vm1 = vmor %vm11277_vm14, %vm11278_vm15 }
 0x610   : > { %v9994_v54 = vadd.f32 1.1283791, %v9993_v21  ;;  %13606 = vrcp.f32 %v18519_v55  ;;  %v9953_v34 = vmul.f32 %v9952_v36, %v18461_v31  ;;  %v9964_v16 = vmul.f32 %v9963_v20, %v18461_v31 }
 0x611   : > { %v11276_v60 = vadd.f32 %v13605_v58, %v11275_v43  ;;  %v10065_v44 = vmul.f32 2.1237322e-06, %v18521_v14  ;;  %v10017_v8 = vand.u32 2147483648, %v18519_v55  ;;  %v10076_v3 = vmul.f32 3.8918573e-05, %v18521_v14 }
 0x612   : > { %v11369_v25 = vmul.f32 %v18526_v13, %v18526_v13  ;;  %v9417_v53 = vadd.f32 %v8917_v57, %v20979_v0  ;;  %v10015_v22 = vand.u32 2147483647, %v18519_v55  ;;  %v18542_v41 = vadd.f32 1.0, %v9964_v16 }
 0x613   : > { %v11280_v15 = vsel %vm11279_vm1, %v13605_v58, %v11276_v60  ;;  %v10066_v38 = vadd.f32 0.00028619796, %v10065_v44  ;;  %v9954_v28 = vadd.f32 1.1283791, %v9953_v34  ;;  %v10077_v4 = vadd.f32 0.001143296, %v10076_v3 }
 0x614   : > { %v11285_v31 = vsel %vm18528_vm0, %v11284_v59, %v11280_v15  ;;  %v18546_v45 = vmin.f32 %v11369_v25, 16.0  ;;  %v9995_v51 = vmul.f32 %v9994_v54, %v18419_v2  ;;  %vm10011_vm2 = vweird.f32 %v18519_v55 }
 0x615   : > { %v11286_v46 = vmul.f32 %v11285_v31, %v11261_v29  ;;  %13608 = vrcp.f32 %v18542_v41  ;;  %v10018_v33 = vor.u32 1.1754944e-38, %v10017_v8  ;;  %v10067_v12 = vmul.f32 %v10066_v38, %v18521_v14 }
 0x616   : > { %v13607_v58 = vpop.eup %13606  ;;  %v10078_v1 = vmul.f32 %v10077_v4, %v18521_v14  ;;  %v18554_v30 = vadd.f32 %v17670_v37, %v9417_v53  ;;  %vm18557_vm3 = vcmp.eq.f32.partialorder %v10015_v22, 8.507059e+37  ;;  %v9975_v2 = vand.u32 2147483647, %v18542_v41 }
 0x617   : > { %v13513_v21 = vclamps-f32 %v11286_v46, 1.0  ;;  %v10007_v10 = vmul.f32 %v13607_v58, %v18519_v55  ;;  %v11371_v19 = vmul.f32 2.1237322e-06, %v18546_v45  ;;  %v18564_v50 = vmul.f32 %v9954_v28, %v18445_v27 }
 0x618   : > { %v9977_v17 = vand.u32 2147483648, %v18542_v41  ;;  %v10068_v29 = vadd.f32 0.0036580483, %v10067_v12  ;;  %v10079_v7 = vadd.f32 0.014752088, %v10078_v1  ;;  %vm10012_vm4 = vweird.f32 %v13607_v58 }
 0x619   : > { %v12296_v36 = vadd.f32 1.0, %v13513_v21  ;;  %v10008_v20 = vsub.f32 1.0, %v10007_v10  ;;  %v11372_v43 = vadd.f32 0.00028619796, %v11371_v19  ;;  %v11382_v57 = vmul.f32 3.8918573e-05, %v18546_v45  ;;  %vm10013_vm7 = vmor %vm10011_vm2, %vm10012_vm4  ;;  %v8874_v10 = vpop.f32.mrf.mxu1 }
 0x61a   : > { %vm9971_vm5 = vweird.f32 %v18542_v41  ;;  %v10069_v35 = vmul.f32 %v10068_v29, %v18521_v14  ;;  %v10080_v59 = vmul.f32 %v10079_v7, %v18521_v14  ;;  %v18572_v27 = vmul.f32 0.70710677, %v18554_v30 }
 0x61b   : > { %v13609_v54 = vpop.eup %13608  ;;  %v12461_v60 = vmul.f32 %v18516_v40, %v12296_v36  ;;  %v10009_v34 = vmul.f32 %v13607_v58, %v10008_v20  ;;  %v11373_v16 = vmul.f32 %v11372_v43, %v18546_v45  ;;  %v11383_v44 = vadd.f32 0.001143296, %v11382_v57 }
 0x61c   : > { %v9967_v8 = vmul.f32 %v13609_v54, %v18542_v41  ;;  %vm18577_vm6 = vcmp.eq.f32.partialorder %v9975_v2, 8.507059e+37  ;;  %v9978_v25 = vor.u32 1.1754944e-38, %v9977_v17  ;;  %v10070_v0 = vadd.f32 0.05243302, %v10069_v35 }
 0x61d   : > { %v10081_v53 = vadd.f32 0.112945676, %v10080_v59  ;;  %12494 = vst [vmem:[%s17918_s30 + $0x140] sm:$0xff] %v12461_v60  ;;  %v10010_v15 = vadd.f32 %v13607_v58, %v10009_v34  ;;  %v11374_v22 = vadd.f32 0.0036580483, %v11373_v16  ;;  %v11384_v38 = vmul.f32 %v11383_v44, %v18546_v45 }
 0x61e   : > { %v10023_v40 = vmul.f32 %v18572_v27, %v18572_v27  ;;  %v9968_v31 = vsub.f32 1.0, %v9967_v8  ;;  %vm9972_vm8 = vweird.f32 %v13609_v54  ;;  %v10071_v28 = vmul.f32 %v10070_v0, %v18521_v14 }
 0x61f   : > { %v10082_v4 = vmul.f32 %v10081_v53, %v18521_v14  ;;  %v10014_v46 = vsel %vm10013_vm7, %v13607_v58, %v10010_v15  ;;  %v11375_v12 = vmul.f32 %v11374_v22, %v18546_v45  ;;  %v11385_v1 = vadd.f32 0.014752088, %v11384_v38  ;;  %vm9973_vm9 = vmor %vm9971_vm5, %vm9972_vm8  ;;  %v8943_v38 = vpop.f32.mrf.mxu0 }
 0x620   : > { %v18591_v21 = vmin.f32 %v10023_v40, 16.0  ;;  %v10019_v2 = vsel %vm18557_vm3, %v10018_v33, %v10014_v46  ;;  %v9969_v19 = vmul.f32 %v13609_v54, %v9968_v31  ;;  %v10072_v17 = vadd.f32 0.18741608, %v10071_v28 }
 0x621   : > { %v10083_v55 = vadd.f32 0.4994258, %v10082_v4  ;;  %v10020_v29 = vmul.f32 %v10019_v2, %v9995_v51  ;;  %v11376_v7 = vadd.f32 0.05243302, %v11375_v12  ;;  %v11386_v36 = vmul.f32 %v11385_v1, %v18546_v45 }
 0x622   : > { %v10025_v20 = vmul.f32 2.1237322e-06, %v18591_v21  ;;  %v9970_v43 = vadd.f32 %v13609_v54, %v9969_v19  ;;  %v10036_v57 = vmul.f32 3.8918573e-05, %v18591_v21  ;;  %v9448_v35 = vadd.f32 %v8874_v10, %v17816_v42 }
 0x623   : > { %v10084_v58 = vmul.f32 %v10083_v55, %v18521_v14  ;;  %v10073_v33 = vmul.f32 %v10072_v17, %v18521_v14  ;;  %v13483_v48 = vclamps-f32 %v10020_v29, 1.0  ;;  %v11377_v51 = vmul.f32 %v11376_v7, %v18546_v45 }
 0x624   : > { %v11387_v59 = vadd.f32 0.112945676, %v11386_v36  ;;  %v9974_v60 = vsel %vm9973_vm9, %v13609_v54, %v9970_v43  ;;  %v10026_v16 = vadd.f32 0.00028619796, %v10025_v20  ;;  %v10037_v44 = vadd.f32 0.001143296, %v10036_v57 }
 0x625   : > { %v18605_v34 = vadd.f32 1.0, %v10084_v58  ;;  %v9979_v8 = vsel %vm18577_vm6, %v9978_v25, %v9974_v60  ;;  %v10913_v0 = vadd.f32 1.0, %v13483_v48  ;;  %v11378_v42 = vadd.f32 0.18741608, %v11377_v51 }
 0x626   : > { %v11388_v53 = vmul.f32 %v11387_v59, %v18546_v45  ;;  %v18612_v41 = vadd.f32 %v17492_v32, %v17750_v24  ;;  %v18615_v14 = vmul.f32 0.5, %v18407_v11  ;;  %v12332_v54 = vmul.f32 0.5, %v18508_v62 }
 0x627   : > { %13610 = vrcp.f32 %v18605_v34  ;;  %v9980_v15 = vmul.f32 %v9979_v8, %v18564_v50  ;;  %v10074_v3 = vadd.f32 1.1283791, %v10073_v33  ;;  %v11379_v25 = vmul.f32 %v11378_v42, %v18546_v45 }
 0x628   : > { %v11389_v22 = vadd.f32 0.4994258, %v11388_v53  ;;  %v12365_v40 = vmul.f32 %v12332_v54, %v10913_v0  ;;  %v10027_v31 = vmul.f32 %v10026_v16, %v18591_v21  ;;  %v10038_v32 = vmul.f32 %v10037_v44, %v18591_v21  ;;  %v8920_v0 = vpop.f32.mrf.mxu3 }
 0x629   : > { %v9526_v24 = vadd.f32 %v17701_v23, %v9448_v35  ;;  %v10095_v11 = vand.u32 2147483647, %v18605_v34  ;;  %v10097_v28 = vand.u32 2147483648, %v18605_v34  ;;  %v11380_v4 = vadd.f32 1.1283791, %v11379_v25 }
 0x62a   : > { %v11390_v62 = vmul.f32 %v11389_v22, %v18546_v45  ;;  %v18628_v50 = vmul.f32 0.5, %v18432_v6  ;;  %12398 = vst [vmem:[%s17918_s30 + $0x50] sm:$0xff] %v12365_v40  ;;  %v10028_v46 = vadd.f32 0.0036580483, %v10027_v31  ;;  %v10039_v12 = vadd.f32 0.014752088, %v10038_v32 }
 0x62b   : > { %v9451_v1 = vadd.f32 %v8943_v38, %v17462_v9  ;;  %v10075_v10 = vmul.f32 %v10074_v3, %v18503_v47  ;;  %v13482_v19 = vclamps-f32 %v9980_v15, 1.0  ;;  %v18635_v17 = vmul.f32 0.70710677, %v9526_v24 }
 0x62c   : > { %v18633_v2 = vadd.f32 1.0, %v11390_v62  ;;  %vm10091_vm10 = vweird.f32 %v18605_v34  ;;  %v10029_v45 = vmul.f32 %v10028_v46, %v18591_v21  ;;  %v10040_v6 = vmul.f32 %v10039_v12, %v18591_v21 }
 0x62d   : > { %v13611_v55 = vpop.eup %13610  ;;  %v9529_v29 = vadd.f32 %v17701_v23, %v9451_v1  ;;  %vm18642_vm11 = vcmp.eq.f32.partialorder %v10095_v11, 8.507059e+37  ;;  %v10098_v47 = vor.u32 1.1754944e-38, %v10097_v28  ;;  %v18648_v36 = vmul.f32 %v11380_v4, %v18526_v13 }
 0x62e   : > { %v10087_v7 = vmul.f32 %v13611_v55, %v18605_v34  ;;  %13612 = vrcp.f32 %v18633_v2  ;;  %v10030_v20 = vadd.f32 0.05243302, %v10029_v45  ;;  %v11329_v43 = vmul.f32 %v18635_v17, %v18635_v17 }
 0x62f   : > { %v12331_v58 = vmul.f32 0.5, %v9526_v24  ;;  %v10041_v35 = vadd.f32 0.112945676, %v10040_v6  ;;  %v10912_v33 = vadd.f32 1.0, %v13482_v19  ;;  %v18652_v48 = vmul.f32 0.70710677, %v9529_v29 }
 0x630   : > { %v10088_v57 = vsub.f32 1.0, %v10087_v7  ;;  %vm10092_vm12 = vweird.f32 %v13611_v55  ;;  %v11401_v51 = vand.u32 2147483647, %v18633_v2  ;;  %v10031_v59 = vmul.f32 %v10030_v20, %v18591_v21  ;;  %v20986_v24 = vld [vmem:[#allocation121_spill] sm:$0xff] }
 0x631   : > { %v18656_v60 = vmin.f32 %v11329_v43, 16.0  ;;  %v11403_v13 = vand.u32 2147483648, %v18633_v2  ;;  %v10042_v44 = vmul.f32 %v10041_v35, %v18591_v21  ;;  %v11449_v8 = vmul.f32 %v18652_v48, %v18652_v48  ;;  %vm10093_vm14 = vmor %vm10091_vm10, %vm10092_vm12  ;;  %v8986_v43 = vpop.f32.mrf.mxu2 }
 0x632   : > { %v10089_v16 = vmul.f32 %v13611_v55, %v10088_v57  ;;  %vm11397_vm13 = vweird.f32 %v18633_v2  ;;  %v10032_v42 = vadd.f32 0.18741608, %v10031_v59  ;;  %v12334_v38 = vmul.f32 0.5, %v9529_v29 }
 0x633   : > { %v11331_v53 = vmul.f32 2.1237322e-06, %v18656_v60  ;;  %v11342_v54 = vmul.f32 3.8918573e-05, %v18656_v60  ;;  %v10043_v25 = vadd.f32 0.4994258, %v10042_v44  ;;  %v9450_v11 = vadd.f32 %v8920_v0, %v20986_v24 }
 0x634   : > { %v13613_v15 = vpop.eup %13612  ;;  %v10090_v3 = vadd.f32 %v13611_v55, %v10089_v16  ;;  %v18665_v22 = vmin.f32 %v11449_v8, 16.0  ;;  %v10033_v31 = vmul.f32 %v10032_v42, %v18591_v21  ;;  %vm18682_vm0 = vcmp.eq.f32.partialorder %v11401_v51, 8.507059e+37 }
 0x635   : > { %v11393_v40 = vmul.f32 %v13613_v15, %v18633_v2  ;;  %v11332_v32 = vadd.f32 0.00028619796, %v11331_v53  ;;  %v10044_v4 = vmul.f32 %v10043_v25, %v18591_v21  ;;  %v11343_v62 = vadd.f32 0.001143296, %v11342_v54 }
 0x636   : > { %v10094_v28 = vsel %vm10093_vm14, %v13611_v55, %v10090_v3  ;;  %v11451_v46 = vmul.f32 2.1237322e-06, %v18665_v22  ;;  %v10034_v19 = vadd.f32 1.1283791, %v10033_v31  ;;  %vm11398_vm15 = vweird.f32 %v13613_v15 }
 0x637   : > { %v10099_v12 = vsel %vm18642_vm11, %v10098_v47, %v10094_v28  ;;  %v11394_v1 = vsub.f32 1.0, %v11393_v40  ;;  %v11333_v34 = vmul.f32 %v11332_v32, %v18656_v60  ;;  %v18678_v6 = vadd.f32 1.0, %v10044_v4  ;;  %vm11399_vm1 = vmor %vm11397_vm13, %vm11398_vm15 }
 0x638   : > { %v10100_v45 = vmul.f32 %v10099_v12, %v10075_v10  ;;  %v11344_v29 = vmul.f32 %v11343_v62, %v18656_v60  ;;  %v11452_v7 = vadd.f32 0.00028619796, %v11451_v46  ;;  %v11462_v21 = vmul.f32 3.8918573e-05, %v18665_v22 }
 0x639   : > { %v11395_v20 = vmul.f32 %v13613_v15, %v11394_v1  ;;  %v11334_v55 = vadd.f32 0.0036580483, %v11333_v34  ;;  %v11404_v9 = vor.u32 1.1754944e-38, %v11403_v13  ;;  %13614 = vrcp.f32 %v18678_v6 }
 0x63a   : > { %v18688_v10 = vadd.f32 %v17701_v23, %v9450_v11  ;;  %v11345_v59 = vadd.f32 0.014752088, %v11344_v29  ;;  %v12364_v16 = vmul.f32 %v12331_v58, %v10912_v33  ;;  %v18694_v51 = vmul.f32 %v10034_v19, %v18572_v27 }
 0x63b   : > { %v11396_v47 = vadd.f32 %v13613_v15, %v11395_v20  ;;  %v11335_v35 = vmul.f32 %v11334_v55, %v18656_v60  ;;  %v13485_v44 = vclamps-f32 %v10100_v45, 1.0  ;;  %v11453_v8 = vmul.f32 %v11452_v7, %v18665_v22 }
 0x63c   : > { %v9420_v13 = vadd.f32 %v8986_v43, %v18500_v5  ;;  %v11346_v53 = vmul.f32 %v11345_v59, %v18656_v60  ;;  %12397 = vst [vmem:[%s17918_s30 + $0x48] sm:$0xff] %v12364_v16  ;;  %v11463_v54 = vadd.f32 0.001143296, %v11462_v21  ;;  %v18703_v3 = vmul.f32 0.70710677, %v18688_v10 }
 0x63d   : > { %v11400_v0 = vsel %vm11399_vm1, %v13613_v15, %v11396_v47  ;;  %v11336_v42 = vadd.f32 0.05243302, %v11335_v35  ;;  %v10915_v33 = vadd.f32 1.0, %v13485_v44  ;;  %v11454_v2 = vadd.f32 0.0036580483, %v11453_v8 }
 0x63e   : > { %v11405_v58 = vsel %vm18682_vm0, %v11404_v9, %v11400_v0  ;;  %v11347_v40 = vadd.f32 0.112945676, %v11346_v53  ;;  %v11464_v5 = vmul.f32 %v11463_v54, %v18665_v22  ;;  %vm10051_vm2 = vweird.f32 %v18678_v6 }
 0x63f   : > { %v11406_v27 = vmul.f32 %v11405_v58, %v18648_v36  ;;  %v11337_v25 = vmul.f32 %v11336_v42, %v18656_v60  ;;  %v13615_v15 = vpop.eup %13614  ;;  %v11455_v31 = vmul.f32 %v11454_v2, %v18665_v22  ;;  %v11409_v32 = vmul.f32 %v18703_v3, %v18703_v3 }
 0x640   : > { %v18713_v24 = vadd.f32 %v17670_v37, %v9420_v13  ;;  %v10047_v36 = vmul.f32 %v13615_v15, %v18678_v6  ;;  %v10055_v28 = vand.u32 2147483647, %v18678_v6  ;;  %v11348_v62 = vmul.f32 %v11347_v40, %v18656_v60 }
 0x641   : > { %v13516_v11 = vclamps-f32 %v11406_v27, 1.0  ;;  %v11338_v4 = vadd.f32 0.18741608, %v11337_v25  ;;  %v11456_v46 = vadd.f32 0.05243302, %v11455_v31  ;;  %v12367_v1 = vmul.f32 %v12334_v38, %v10915_v33 }
 0x642   : > { %v11465_v12 = vadd.f32 0.014752088, %v11464_v5  ;;  %v10048_v34 = vsub.f32 1.0, %v10047_v36  ;;  %v10057_v45 = vand.u32 2147483648, %v18678_v6  ;;  %v18719_v29 = vmin.f32 %v11409_v32, 16.0 }
 0x643   : > { %v12299_v19 = vadd.f32 1.0, %v13516_v11  ;;  %v11349_v7 = vadd.f32 0.4994258, %v11348_v62  ;;  %v11457_v20 = vmul.f32 %v11456_v46, %v18665_v22  ;;  %12400 = vst [vmem:[%s17918_s30 + $0x60] sm:$0xff] %v12367_v1  ;;  %v18725_v21 = vmul.f32 0.70710677, %v18713_v24 }
 0x644   : > { %v11466_v55 = vmul.f32 %v11465_v12, %v18665_v22  ;;  %v10049_v57 = vmul.f32 %v13615_v15, %v10048_v34  ;;  %vm10052_vm3 = vweird.f32 %v13615_v15  ;;  %v11411_v38 = vmul.f32 2.1237322e-06, %v18719_v29  ;;  %v8963_v12 = vpop.f32.mrf.mxu1 }
 0x645   : > { %v12464_v43 = vmul.f32 %v18615_v14, %v12299_v19  ;;  %v11339_v9 = vmul.f32 %v11338_v4, %v18656_v60  ;;  %v11350_v47 = vmul.f32 %v11349_v7, %v18656_v60  ;;  %v11422_v59 = vmul.f32 3.8918573e-05, %v18719_v29  ;;  %vm10053_vm4 = vmor %vm10051_vm2, %vm10052_vm3 }
 0x646   : > { %v11467_v35 = vadd.f32 0.112945676, %v11466_v55  ;;  %v10050_v16 = vadd.f32 %v13615_v15, %v10049_v57  ;;  %v11458_v44 = vadd.f32 0.18741608, %v11457_v20  ;;  %v11412_v8 = vadd.f32 0.00028619796, %v11411_v38 }
 0x647   : > { %12497 = vst [vmem:[%s17918_s30 + $0x158] sm:$0xff] %v12464_v43  ;;  %v10143_v13 = vmul.f32 %v18725_v21, %v18725_v21  ;;  %v10058_v14 = vor.u32 1.1754944e-38, %v10057_v45  ;;  %v18737_v0 = vadd.f32 1.0, %v11350_v47  ;;  %v11423_v53 = vadd.f32 0.001143296, %v11422_v59 }
 0x648   : > { %v11468_v42 = vmul.f32 %v11467_v35, %v18665_v22  ;;  %v10054_v60 = vsel %vm10053_vm4, %v13615_v15, %v10050_v16  ;;  %vm10056_vm5 = vcmp.eq.f32.partialorder %v10055_v28, 8.507059e+37  ;;  %v11413_v54 = vmul.f32 %v11412_v8, %v18719_v29  ;;  %v9032_v8 = vpop.f32.mrf.mxu0 }
 0x649   : > { %v18741_v58 = vmin.f32 %v10143_v13, 16.0  ;;  %v18744_v33 = vmul.f32 0.5, %v18494_v39  ;;  %v10059_v2 = vsel %vm10056_vm5, %v10058_v14, %v10054_v60  ;;  %v18747_v27 = vmul.f32 0.5, %v18554_v30 }
 0x64a   : > { %13616 = vrcp.f32 %v18737_v0  ;;  %v10060_v6 = vmul.f32 %v10059_v2, %v18694_v51  ;;  %v11340_v25 = vadd.f32 1.1283791, %v11339_v9  ;;  %v11459_v40 = vmul.f32 %v11458_v44, %v18665_v22 }
 0x64b   : > { %v11469_v5 = vadd.f32 0.4994258, %v11468_v42  ;;  %v11414_v15 = vadd.f32 0.0036580483, %v11413_v54  ;;  %v11424_v31 = vmul.f32 %v11423_v53, %v18719_v29  ;;  %v12333_v32 = vmul.f32 0.5, %v18688_v10 }
 0x64c   : > { %v10145_v39 = vmul.f32 2.1237322e-06, %v18741_v58  ;;  %v11361_v11 = vand.u32 2147483647, %v18737_v0  ;;  %v11363_v30 = vand.u32 2147483648, %v18737_v0  ;;  %v13484_v28 = vclamps-f32 %v10060_v6, 1.0 }
 0x64d   : > { %v11470_v36 = vmul.f32 %v11469_v5, %v18665_v22  ;;  %v11415_v51 = vmul.f32 %v11414_v15, %v18719_v29  ;;  %v11425_v4 = vadd.f32 0.014752088, %v11424_v31  ;;  %v10156_v46 = vmul.f32 3.8918573e-05, %v18741_v58 }
 0x64e   : > { %v10146_v62 = vadd.f32 0.00028619796, %v10145_v39  ;;  %v11341_v1 = vmul.f32 %v11340_v25, %v18635_v17  ;;  %v11460_v19 = vadd.f32 1.1283791, %v11459_v40  ;;  %v10914_v34 = vadd.f32 1.0, %v13484_v28  ;;  %v20991_v25 = vld [vmem:[#allocation73_spill] sm:$0xff] }
 0x64f   : > { %v18761_v10 = vadd.f32 1.0, %v11470_v36  ;;  %v11416_v7 = vadd.f32 0.05243302, %v11415_v51  ;;  %v11426_v20 = vmul.f32 %v11425_v4, %v18719_v29  ;;  %v10157_v55 = vadd.f32 0.001143296, %v10156_v46 }
 0x650   : > { %v13617_v45 = vpop.eup %13616  ;;  %v10147_v22 = vmul.f32 %v10146_v62, %v18741_v58  ;;  %vm11357_vm6 = vweird.f32 %v18737_v0  ;;  %v9419_v17 = vadd.f32 %v8963_v12, %v17832_v49  ;;  %vm18769_vm7 = vcmp.eq.f32.partialorder %v11361_v11, 8.507059e+37 }
 0x651   : > { %v11353_v43 = vmul.f32 %v13617_v45, %v18737_v0  ;;  %13618 = vrcp.f32 %v18761_v10  ;;  %v11364_v38 = vor.u32 1.1754944e-38, %v11363_v30  ;;  %v11417_v9 = vmul.f32 %v11416_v7, %v18719_v29 }
 0x652   : > { %v11427_v47 = vadd.f32 0.112945676, %v11426_v20  ;;  %v12366_v59 = vmul.f32 %v12333_v32, %v10914_v34  ;;  %v10148_v16 = vadd.f32 0.0036580483, %v10147_v22  ;;  %v10158_v44 = vmul.f32 %v10157_v55, %v18741_v58 }
 0x653   : > { %v11354_v35 = vsub.f32 1.0, %v11353_v43  ;;  %vm11358_vm8 = vweird.f32 %v13617_v45  ;;  %v11461_v13 = vmul.f32 %v11460_v19, %v18652_v48  ;;  %v11481_v14 = vand.u32 2147483647, %v18761_v10 }
 0x654   : > { %v11428_v49 = vmul.f32 %v11427_v47, %v18719_v29  ;;  %12399 = vst [vmem:[%s17918_s30 + $0x58] sm:$0xff] %v12366_v59  ;;  %v10149_v53 = vmul.f32 %v10148_v16, %v18741_v58  ;;  %v10159_v60 = vadd.f32 0.014752088, %v10158_v44  ;;  %v18781_v54 = vadd.f32 %v17670_v37, %v9419_v17  ;;  %vm11359_vm10 = vmor %vm11357_vm6, %vm11358_vm8 }
 0x655   : > { %v11355_v42 = vmul.f32 %v13617_v45, %v11354_v35  ;;  %vm11477_vm9 = vweird.f32 %v18761_v10  ;;  %v11418_v2 = vadd.f32 0.18741608, %v11417_v9  ;;  %v9422_v40 = vadd.f32 %v9032_v8, %v20991_v25 }
 0x656   : > { %v11429_v6 = vadd.f32 0.4994258, %v11428_v49  ;;  %v10150_v15 = vadd.f32 0.05243302, %v10149_v53  ;;  %v10160_v31 = vmul.f32 %v10159_v60, %v18741_v58  ;;  %v18787_v32 = vmul.f32 0.70710677, %v18781_v54 }
 0x657   : > { %v13619_v5 = vpop.eup %13618  ;;  %v11356_v48 = vadd.f32 %v13617_v45, %v11355_v42  ;;  %vm18793_vm11 = vcmp.eq.f32.partialorder %v11481_v14, 8.507059e+37  ;;  %v11483_v30 = vand.u32 2147483648, %v18761_v10  ;;  %v11419_v12 = vmul.f32 %v11418_v2, %v18719_v29 }
 0x658   : > { %v11473_v39 = vmul.f32 %v13619_v5, %v18761_v10  ;;  %v11430_v36 = vmul.f32 %v11429_v6, %v18719_v29  ;;  %v10151_v51 = vmul.f32 %v10150_v15, %v18741_v58  ;;  %v10161_v4 = vadd.f32 0.112945676, %v10160_v31 }
 0x659   : > { %v11360_v28 = vsel %vm11359_vm10, %v13617_v45, %v11356_v48  ;;  %v10103_v62 = vmul.f32 %v18787_v32, %v18787_v32  ;;  %v8989_v45 = vpop.f32.mrf.mxu2  ;;  %vm11478_vm12 = vweird.f32 %v13619_v5  ;;  %v11484_v43 = vor.u32 1.1754944e-38, %v11483_v30 }
 0x65a   : > { %v11365_v0 = vsel %vm18769_vm7, %v11364_v38, %v11360_v28  ;;  %v11474_v46 = vsub.f32 1.0, %v11473_v39  ;;  %v18805_v19 = vadd.f32 1.0, %v11430_v36  ;;  %v10152_v7 = vadd.f32 0.18741608, %v10151_v51  ;;  %vm11479_vm13 = vmor %vm11477_vm9, %vm11478_vm12 }
 0x65b   : > { %v11366_v34 = vmul.f32 %v11365_v0, %v11341_v1  ;;  %v10162_v20 = vmul.f32 %v10161_v4, %v18741_v58  ;;  %v18808_v22 = vmin.f32 %v10103_v62, 16.0  ;;  %v18813_v29 = vadd.f32 %v17670_v37, %v9422_v40 }
 0x65c   : > { %v11475_v55 = vmul.f32 %v13619_v5, %v11474_v46  ;;  %13620 = vrcp.f32 %v18805_v19  ;;  %v10153_v57 = vmul.f32 %v10152_v7, %v18741_v58  ;;  %v9453_v35 = vadd.f32 %v8989_v45, %v18612_v41 }
 0x65d   : > { %v13515_v17 = vclamps-f32 %v11366_v34, 1.0  ;;  %v10163_v38 = vadd.f32 0.4994258, %v10162_v20  ;;  %v10105_v1 = vmul.f32 2.1237322e-06, %v18808_v22  ;;  %v11443_v49 = vand.u32 2147483648, %v18805_v19 }
 0x65e   : > { %v11476_v9 = vadd.f32 %v13619_v5, %v11475_v55  ;;  %v10116_v47 = vmul.f32 3.8918573e-05, %v18808_v22  ;;  %v11420_v16 = vadd.f32 1.1283791, %v11419_v12  ;;  %v11441_v44 = vand.u32 2147483647, %v18805_v19 }
 0x65f   : > { %v12298_v59 = vadd.f32 1.0, %v13515_v17  ;;  %v10164_v8 = vmul.f32 %v10163_v38, %v18741_v58  ;;  %v10106_v42 = vadd.f32 0.00028619796, %v10105_v1  ;;  %v10154_v2 = vadd.f32 1.1283791, %v10153_v57 }
 0x660   : > { %v11480_v14 = vsel %vm11479_vm13, %v13619_v5, %v11476_v9  ;;  %v10117_v53 = vadd.f32 0.001143296, %v10116_v47  ;;  %v18831_v58 = vmul.f32 0.70710677, %v18813_v29  ;;  %v11421_v5 = vmul.f32 %v11420_v16, %v18703_v3 }
 0x661   : > { %v12463_v60 = vmul.f32 %v18628_v50, %v12298_v59  ;;  %v11485_v41 = vsel %vm18793_vm11, %v11484_v43, %v11480_v14  ;;  %v18826_v6 = vadd.f32 1.0, %v10164_v8  ;;  %v10107_v40 = vmul.f32 %v10106_v42, %v18808_v22 }
 0x662   : > { %v13621_v10 = vpop.eup %13620  ;;  %v11486_v25 = vmul.f32 %v11485_v41, %v11461_v13  ;;  %v10118_v48 = vmul.f32 %v10117_v53, %v18808_v22  ;;  %vm11437_vm14 = vweird.f32 %v18805_v19  ;;  %vm18838_vm15 = vcmp.eq.f32.partialorder %v11441_v44, 8.507059e+37 }
 0x663   : > { %12496 = vst [vmem:[%s17918_s30 + $0x150] sm:$0xff] %v12463_v60  ;;  %v11433_v50 = vmul.f32 %v13621_v10, %v18805_v19  ;;  %13622 = vrcp.f32 %v18826_v6  ;;  %v11444_v13 = vor.u32 1.1754944e-38, %v11443_v49  ;;  %v10108_v39 = vadd.f32 0.0036580483, %v10107_v40  ;;  %v9009_v60 = vpop.f32.mrf.mxu3 }
 0x664   : > { %v13518_v15 = vclamps-f32 %v11486_v25, 1.0  ;;  %v18843_v30 = vmul.f32 %v10154_v2, %v18725_v21  ;;  %v10119_v36 = vadd.f32 0.014752088, %v10118_v48  ;;  %v10223_v3 = vmul.f32 %v18831_v58, %v18831_v58 }
 0x665   : > { %v11434_v11 = vsub.f32 1.0, %v11433_v50  ;;  %vm11438_vm0 = vweird.f32 %v13621_v10  ;;  %v10175_v51 = vand.u32 2147483647, %v18826_v6  ;;  %v10109_v4 = vmul.f32 %v10108_v39, %v18808_v22 }
 0x666   : > { %v12301_v28 = vadd.f32 1.0, %v13518_v15  ;;  %v10120_v0 = vmul.f32 %v10119_v36, %v18808_v22  ;;  %v18850_v46 = vmin.f32 %v10223_v3, 16.0  ;;  %v18853_v12 = vadd.f32 %v17701_v23, %v9453_v35  ;;  %vm11439_vm2 = vmor %vm11437_vm14, %vm11438_vm0 }
 0x667   : > { %v11435_v62 = vmul.f32 %v13621_v10, %v11434_v11  ;;  %vm10171_vm1 = vweird.f32 %v18826_v6  ;;  %v10177_v34 = vand.u32 2147483648, %v18826_v6  ;;  %v10110_v7 = vadd.f32 0.05243302, %v10109_v4 }
 0x668   : > { %v12466_v21 = vmul.f32 %v18744_v33, %v12301_v28  ;;  %v10121_v55 = vadd.f32 0.112945676, %v10120_v0  ;;  %v10225_v43 = vmul.f32 2.1237322e-06, %v18850_v46  ;;  %v10236_v17 = vmul.f32 3.8918573e-05, %v18850_v46 }
 0x669   : > { %v13623_v20 = vpop.eup %13622  ;;  %v11436_v45 = vadd.f32 %v13621_v10, %v11435_v62  ;;  %vm18865_vm3 = vcmp.eq.f32.partialorder %v10175_v51, 8.507059e+37  ;;  %v10111_v38 = vmul.f32 %v10110_v7, %v18808_v22  ;;  %v18871_v9 = vmul.f32 0.70710677, %v18853_v12  ;;  %v8966_v51 = vpop.f32.mrf.mxu1 }
 0x66a   : > { %12499 = vst [vmem:[%s17918_s30 + $0x168] sm:$0xff] %v12466_v21  ;;  %v10167_v57 = vmul.f32 %v13623_v20, %v18826_v6  ;;  %v10122_v47 = vmul.f32 %v10121_v55, %v18808_v22  ;;  %v10226_v35 = vadd.f32 0.00028619796, %v10225_v43  ;;  %v10237_v59 = vadd.f32 0.001143296, %v10236_v17  ;;  %v20999_v6 = vld [vmem:[#allocation109_spill] sm:$0xff] }
 0x66b   : > { %v11440_v1 = vsel %vm11439_vm2, %v13621_v10, %v11436_v45  ;;  %v10178_v44 = vor.u32 1.1754944e-38, %v10177_v34  ;;  %v11529_v8 = vmul.f32 %v18871_v9, %v18871_v9  ;;  %vm10172_vm4 = vweird.f32 %v13623_v20  ;;  %v21000_v45 = vld [vmem:[#allocation122_spill] sm:$0xff] }
 0x66c   : > { %v11445_v19 = vsel %vm18838_vm15, %v11444_v13, %v11440_v1  ;;  %v10168_v16 = vsub.f32 1.0, %v10167_v57  ;;  %v10123_v49 = vadd.f32 0.4994258, %v10122_v47  ;;  %v10227_v42 = vmul.f32 %v10226_v35, %v18850_v46  ;;  %v20998_v13 = vld [vmem:[#allocation70_spill] sm:$0xff]  ;;  %vm10173_vm5 = vmor %vm10171_vm1, %vm10172_vm4 }
 0x66d   : > { %v11446_v14 = vmul.f32 %v11445_v19, %v11421_v5  ;;  %v10238_v53 = vmul.f32 %v10237_v59, %v18850_v46  ;;  %v10112_v2 = vadd.f32 0.18741608, %v10111_v38  ;;  %v18880_v10 = vmin.f32 %v11529_v8, 16.0 }
 0x66e   : > { %v10169_v41 = vmul.f32 %v13623_v20, %v10168_v16  ;;  %v10124_v40 = vmul.f32 %v10123_v49, %v18808_v22  ;;  %v10228_v48 = vadd.f32 0.0036580483, %v10227_v42  ;;  %v9421_v39 = vadd.f32 %v9009_v60, %v20998_v13 }
 0x66f   : > { %v13517_v25 = vclamps-f32 %v11446_v14, 1.0  ;;  %v10239_v50 = vadd.f32 0.014752088, %v10238_v53  ;;  %v11531_v31 = vmul.f32 2.1237322e-06, %v18880_v10  ;;  %v10113_v62 = vmul.f32 %v10112_v2, %v18808_v22 }
 0x670   : > { %v10170_v15 = vadd.f32 %v13623_v20, %v10169_v41  ;;  %v11542_v5 = vmul.f32 3.8918573e-05, %v18880_v10  ;;  %v18888_v36 = vadd.f32 1.0, %v10124_v40  ;;  %v10229_v3 = vmul.f32 %v10228_v48, %v18850_v46 }
 0x671   : > { %v12300_v11 = vadd.f32 1.0, %v13517_v25  ;;  %v10240_v28 = vmul.f32 %v10239_v50, %v18850_v46  ;;  %v11532_v0 = vadd.f32 0.00028619796, %v11531_v31  ;;  %v18899_v55 = vadd.f32 %v21000_v45, %v20999_v6 }
 0x672   : > { %v10174_v4 = vsel %vm10173_vm5, %v13623_v20, %v10170_v15  ;;  %v11543_v21 = vadd.f32 0.001143296, %v11542_v5  ;;  %13624 = vrcp.f32 %v18888_v36  ;;  %v10230_v17 = vadd.f32 0.05243302, %v10229_v3 }
 0x673   : > { %v12465_v34 = vmul.f32 %v18747_v27, %v12300_v11  ;;  %v10179_v7 = vsel %vm18865_vm3, %v10178_v44, %v10174_v4  ;;  %v9452_v20 = vadd.f32 %v8966_v51, %v18037_v61  ;;  %v10241_v22 = vadd.f32 0.112945676, %v10240_v28 }
 0x674   : > { %v10180_v43 = vmul.f32 %v10179_v7, %v18843_v30  ;;  %v11533_v57 = vmul.f32 %v11532_v0, %v18880_v10  ;;  %v11544_v27 = vmul.f32 %v11543_v21, %v18880_v10  ;;  %v18907_v33 = vadd.f32 %v17670_v37, %v9421_v39 }
 0x675   : > { %12498 = vst [vmem:[%s17918_s30 + $0x160] sm:$0xff] %v12465_v34  ;;  %v10114_v38 = vadd.f32 1.1283791, %v10113_v62  ;;  %v10231_v1 = vmul.f32 %v10230_v17, %v18850_v46  ;;  %v12336_v35 = vmul.f32 0.5, %v18853_v12  ;;  %v10242_v30 = vmul.f32 %v10241_v22, %v18850_v46  ;;  %v9035_v62 = vpop.f32.mrf.mxu0 }
 0x676   : > { %v13487_v47 = vclamps-f32 %v10180_v43, 1.0  ;;  %v11534_v59 = vadd.f32 0.0036580483, %v11533_v57  ;;  %v11545_v19 = vadd.f32 0.014752088, %v11544_v27  ;;  %v18917_v14 = vadd.f32 %v17701_v23, %v9452_v20 }
 0x677   : > { %v18913_v61 = vmul.f32 0.70710677, %v18907_v33  ;;  %v10135_v16 = vand.u32 2147483647, %v18888_v36  ;;  %v10232_v44 = vadd.f32 0.18741608, %v10231_v1  ;;  %v10115_v5 = vmul.f32 %v10114_v38, %v18787_v32 }
 0x678   : > { %v10917_v8 = vadd.f32 1.0, %v13487_v47  ;;  %v13625_v49 = vpop.eup %13624  ;;  %v10243_v42 = vadd.f32 0.4994258, %v10242_v30  ;;  %v11535_v53 = vmul.f32 %v11534_v59, %v18880_v10  ;;  %v11546_v12 = vmul.f32 %v11545_v19, %v18880_v10 }
 0x679   : > { %v10183_v60 = vmul.f32 %v18913_v61, %v18913_v61  ;;  %v10127_v41 = vmul.f32 %v13625_v49, %v18888_v36  ;;  %v10137_v2 = vand.u32 2147483648, %v18888_v36  ;;  %v10233_v25 = vmul.f32 %v10232_v44, %v18850_v46 }
 0x67a   : > { %v12369_v40 = vmul.f32 %v12336_v35, %v10917_v8  ;;  %v10244_v48 = vmul.f32 %v10243_v42, %v18850_v46  ;;  %v11536_v50 = vadd.f32 0.05243302, %v11535_v53  ;;  %v11547_v15 = vadd.f32 0.112945676, %v11546_v12 }
 0x67b   : > { %v18927_v31 = vmin.f32 %v10183_v60, 16.0  ;;  %v10128_v13 = vsub.f32 1.0, %v10127_v41  ;;  %vm10131_vm6 = vweird.f32 %v18888_v36  ;;  %v18933_v39 = vmul.f32 0.70710677, %v18917_v14 }
 0x67c   : > { %12402 = vst [vmem:[%s17918_s30 + $0x70] sm:$0xff] %v12369_v40  ;;  %v18935_v11 = vadd.f32 1.0, %v10244_v48  ;;  %v11537_v3 = vmul.f32 %v11536_v50, %v18880_v10  ;;  %v11548_v28 = vmul.f32 %v11547_v15, %v18880_v10  ;;  %vm10132_vm7 = vweird.f32 %v13625_v49 }
 0x67d   : > { %v10185_v46 = vmul.f32 2.1237322e-06, %v18927_v31  ;;  %v10129_v51 = vmul.f32 %v13625_v49, %v10128_v13  ;;  %v10196_v4 = vmul.f32 3.8918573e-05, %v18927_v31  ;;  %v11489_v32 = vmul.f32 %v18933_v39, %v18933_v39  ;;  %vm10133_vm9 = vmor %vm10131_vm6, %vm10132_vm7 }
 0x67e   : > { %vm18943_vm8 = vcmp.eq.f32.partialorder %v10135_v16, 8.507059e+37  ;;  %v10138_v21 = vor.u32 1.1754944e-38, %v10137_v2  ;;  %v10234_v34 = vadd.f32 1.1283791, %v10233_v25  ;;  %13626 = vrcp.f32 %v18935_v11 }
 0x67f   : > { %v10130_v7 = vadd.f32 %v13625_v49, %v10129_v51  ;;  %v10255_v6 = vand.u32 2147483647, %v18935_v11  ;;  %v11549_v45 = vadd.f32 0.4994258, %v11548_v28  ;;  %v10186_v43 = vadd.f32 0.00028619796, %v10185_v46 }
 0x680   : > { %v11538_v17 = vadd.f32 0.18741608, %v11537_v3  ;;  %v10197_v20 = vadd.f32 0.001143296, %v10196_v4  ;;  %v18951_v22 = vmin.f32 %v11489_v32, 16.0  ;;  %v9455_v57 = vadd.f32 %v9035_v62, %v17512_v52 }
 0x681   : > { %v10134_v27 = vsel %vm10133_vm9, %v13625_v49, %v10130_v7  ;;  %v10257_v38 = vand.u32 2147483648, %v18935_v11  ;;  %v11550_v1 = vmul.f32 %v11549_v45, %v18880_v10  ;;  %v10187_v47 = vmul.f32 %v10186_v43, %v18927_v31 }
 0x682   : > { %v10139_v35 = vsel %vm18943_vm8, %v10138_v21, %v10134_v27  ;;  %v10198_v30 = vmul.f32 %v10197_v20, %v18927_v31  ;;  %v11491_v36 = vmul.f32 2.1237322e-06, %v18951_v22  ;;  %v11502_v59 = vmul.f32 3.8918573e-05, %v18951_v22 }
 0x683   : > { %v18963_v19 = vmul.f32 0.5, %v18713_v24  ;;  %v10140_v52 = vmul.f32 %v10139_v35, %v10115_v5  ;;  %v18965_v16 = vadd.f32 1.0, %v11550_v1  ;;  %v10188_v44 = vadd.f32 0.0036580483, %v10187_v47  ;;  %v9012_v47 = vpop.f32.mrf.mxu3 }
 0x684   : > { %v13627_v8 = vpop.eup %13626  ;;  %v11539_v49 = vmul.f32 %v11538_v17, %v18880_v10  ;;  %v10199_v42 = vadd.f32 0.014752088, %v10198_v30  ;;  %v11492_v53 = vadd.f32 0.00028619796, %v11491_v36  ;;  %v11503_v12 = vadd.f32 0.001143296, %v11502_v59 }
 0x685   : > { %v10235_v60 = vmul.f32 %v10234_v34, %v18831_v58  ;;  %v10247_v41 = vmul.f32 %v13627_v8, %v18935_v11  ;;  %vm10251_vm10 = vweird.f32 %v18935_v11  ;;  %13628 = vrcp.f32 %v18965_v16 }
 0x686   : > { %vm18972_vm11 = vcmp.eq.f32.partialorder %v10255_v6, 8.507059e+37  ;;  %v10258_v2 = vor.u32 1.1754944e-38, %v10257_v38  ;;  %v10189_v25 = vmul.f32 %v10188_v44, %v18927_v31  ;;  %v18978_v10 = vadd.f32 %v17701_v23, %v9455_v57 }
 0x687   : > { %v10248_v40 = vsub.f32 1.0, %v10247_v41  ;;  %v10200_v48 = vmul.f32 %v10199_v42, %v18927_v31  ;;  %v13486_v58 = vclamps-f32 %v10140_v52, 1.0  ;;  %v11493_v50 = vmul.f32 %v11492_v53, %v18951_v22  ;;  %v21005_v53 = vld [vmem:[#allocation124_spill] sm:$0xff] }
 0x688   : > { %vm10252_vm12 = vweird.f32 %v13627_v8  ;;  %v11540_v15 = vadd.f32 1.1283791, %v11539_v49  ;;  %v10190_v5 = vadd.f32 0.05243302, %v10189_v25  ;;  %v11504_v13 = vmul.f32 %v11503_v12, %v18951_v22 }
 0x689   : > { %v10249_v3 = vmul.f32 %v13627_v8, %v10248_v40  ;;  %v10201_v28 = vadd.f32 0.112945676, %v10200_v48  ;;  %v10916_v46 = vadd.f32 1.0, %v13486_v58  ;;  %v11494_v51 = vadd.f32 0.0036580483, %v11493_v50  ;;  %vm10253_vm13 = vmor %vm10251_vm10, %vm10252_vm12 }
 0x68a   : > { %v11561_v4 = vand.u32 2147483647, %v18965_v16  ;;  %v10191_v32 = vmul.f32 %v10190_v5, %v18927_v31  ;;  %v11505_v62 = vadd.f32 0.014752088, %v11504_v13  ;;  %v12335_v0 = vmul.f32 0.5, %v18917_v14 }
 0x68b   : > { %v13629_v21 = vpop.eup %13628  ;;  %v10250_v34 = vadd.f32 %v13627_v8, %v10249_v3  ;;  %v10202_v7 = vmul.f32 %v10201_v28, %v18927_v31  ;;  %v11495_v6 = vmul.f32 %v11494_v51, %v18951_v22  ;;  %v18989_v45 = vmul.f32 0.70710677, %v18978_v10 }
 0x68c   : > { %v11553_v43 = vmul.f32 %v13629_v21, %v18965_v16  ;;  %v11563_v17 = vand.u32 2147483648, %v18965_v16  ;;  %v10192_v20 = vadd.f32 0.18741608, %v10191_v32  ;;  %v11506_v14 = vmul.f32 %v11505_v62, %v18951_v22  ;;  %v9078_v62 = vpop.f32.mrf.mxu2 }
 0x68d   : > { %v10254_v57 = vsel %vm10253_vm13, %v13627_v8, %v10250_v34  ;;  %v10203_v27 = vadd.f32 0.4994258, %v10202_v7  ;;  %v11496_v38 = vadd.f32 0.05243302, %v11495_v6  ;;  %v12368_v1 = vmul.f32 %v12335_v0, %v10916_v46 }
 0x68e   : > { %v10259_v35 = vsel %vm18972_vm11, %v10258_v2, %v10254_v57  ;;  %v11554_v30 = vsub.f32 1.0, %v11553_v43  ;;  %vm11558_vm14 = vweird.f32 %v13629_v21  ;;  %v11507_v11 = vadd.f32 0.112945676, %v11506_v14 }
 0x68f   : > { %v10193_v36 = vmul.f32 %v10192_v20, %v18927_v31  ;;  %v10204_v59 = vmul.f32 %v10203_v27, %v18927_v31  ;;  %v11497_v52 = vmul.f32 %v11496_v38, %v18951_v22  ;;  %12401 = vst [vmem:[%s17918_s30 + $0x68] sm:$0xff] %v12368_v1  ;;  %v11609_v44 = vmul.f32 %v18989_v45, %v18989_v45 }
 0x690   : > { %v10260_v8 = vmul.f32 %v10259_v35, %v10235_v60  ;;  %v11555_v49 = vmul.f32 %v13629_v21, %v11554_v30  ;;  %v11508_v42 = vmul.f32 %v11507_v11, %v18951_v22  ;;  %v9454_v12 = vadd.f32 %v9012_v47, %v21005_v53 }
 0x691   : > { %v11541_v41 = vmul.f32 %v11540_v15, %v18871_v9  ;;  %v19008_v24 = vadd.f32 1.0, %v10204_v59  ;;  %v11498_v2 = vadd.f32 0.18741608, %v11497_v52  ;;  %v19010_v25 = vmin.f32 %v11609_v44, 16.0 }
 0x692   : > { %v11556_v31 = vadd.f32 %v13629_v21, %v11555_v49  ;;  %vm11557_vm15 = vweird.f32 %v18965_v16  ;;  %vm11562_vm0 = vcmp.eq.f32.partialorder %v11561_v4, 8.507059e+37  ;;  %v11509_v40 = vadd.f32 0.4994258, %v11508_v42 }
 0x693   : > { %vm11559_vm1 = vmor %vm11557_vm15, %vm11558_vm14  ;;  %v11564_v60 = vor.u32 1.1754944e-38, %v11563_v17  ;;  %v10194_v48 = vadd.f32 1.1283791, %v10193_v36  ;;  %13630 = vrcp.f32 %v19008_v24  ;;  %v9532_v58 = vadd.f32 %v17701_v23, %v9454_v12 }
 0x694   : > { %v11560_v50 = vsel %vm11559_vm1, %v13629_v21, %v11556_v31  ;;  %v11499_v9 = vmul.f32 %v11498_v2, %v18951_v22  ;;  %v11510_v15 = vmul.f32 %v11509_v40, %v18951_v22  ;;  %v13489_v5 = vclamps-f32 %v10260_v8, 1.0 }
 0x695   : > { %v11565_v13 = vsel %vm11562_vm0, %v11564_v60, %v11560_v50  ;;  %v10217_v3 = vand.u32 2147483648, %v19008_v24  ;;  %v11611_v16 = vmul.f32 2.1237322e-06, %v19010_v25  ;;  %v12338_v28 = vmul.f32 0.5, %v18978_v10 }
 0x696   : > { %v11566_v46 = vmul.f32 %v11565_v13, %v11541_v41  ;;  %v10215_v51 = vand.u32 2147483647, %v19008_v24  ;;  %v19022_v4 = vadd.f32 1.0, %v11510_v15  ;;  %v11622_v32 = vmul.f32 3.8918573e-05, %v19010_v25 }
 0x697   : > { %v10195_v0 = vmul.f32 %v10194_v48, %v18913_v61  ;;  %v11500_v21 = vadd.f32 1.1283791, %v11499_v9  ;;  %v11612_v22 = vadd.f32 0.00028619796, %v11611_v16  ;;  %v19026_v34 = vmul.f32 0.70710677, %v9532_v58 }
 0x698   : > { %v13520_v7 = vclamps-f32 %v11566_v46, 1.0  ;;  %vm10211_vm2 = vweird.f32 %v19008_v24  ;;  %13632 = vrcp.f32 %v19022_v4  ;;  %v10919_v10 = vadd.f32 1.0, %v13489_v5  ;;  %v9055_v46 = vpop.f32.mrf.mxu1 }
 0x699   : > { %v13631_v6 = vpop.eup %13630  ;;  %v10218_v43 = vor.u32 1.1754944e-38, %v10217_v3  ;;  %v11613_v17 = vmul.f32 %v11612_v22, %v19010_v25  ;;  %v11623_v20 = vadd.f32 0.001143296, %v11622_v32  ;;  %v9424_v14 = vadd.f32 %v9078_v62, %v17516_v63 }
 0x69a   : > { %v12303_v57 = vadd.f32 1.0, %v13520_v7  ;;  %v10207_v61 = vmul.f32 %v13631_v6, %v19008_v24  ;;  %vm19033_vm3 = vcmp.eq.f32.partialorder %v10215_v51, 8.507059e+37  ;;  %v11569_v38 = vmul.f32 %v19026_v34, %v19026_v34 }
 0x69b   : > { %v19039_v1 = vmul.f32 0.5, %v9532_v58  ;;  %v19042_v47 = vmul.f32 %v11500_v21, %v18933_v39  ;;  %v11521_v35 = vand.u32 2147483647, %v19022_v4  ;;  %v11614_v30 = vadd.f32 0.0036580483, %v11613_v17 }
 0x69c   : > { %v11624_v63 = vmul.f32 %v11623_v20, %v19010_v25  ;;  %v12468_v11 = vmul.f32 %v18963_v19, %v12303_v57  ;;  %v10208_v36 = vsub.f32 1.0, %v10207_v61  ;;  %v12371_v59 = vmul.f32 %v12338_v28, %v10919_v10 }
 0x69d   : > { %v19047_v52 = vmin.f32 %v11569_v38, 16.0  ;;  %vm11517_vm4 = vweird.f32 %v19022_v4  ;;  %v11523_v44 = vand.u32 2147483648, %v19022_v4  ;;  %v11615_v8 = vmul.f32 %v11614_v30, %v19010_v25 }
 0x69e   : > { %v11625_v39 = vadd.f32 0.014752088, %v11624_v63  ;;  %v19053_v49 = vadd.f32 %v17670_v37, %v9424_v14  ;;  %v13633_v42 = vpop.eup %13632  ;;  %12501 = vst [vmem:[%s17918_s30 + $0x178] sm:$0xff] %v12468_v11  ;;  %v10209_v53 = vmul.f32 %v13631_v6, %v10208_v36  ;;  %vm10212_vm5 = vweird.f32 %v13631_v6 }
 0x69f   : > { %v11571_v19 = vmul.f32 2.1237322e-06, %v19047_v52  ;;  %v11582_v12 = vmul.f32 3.8918573e-05, %v19047_v52  ;;  %v11513_v41 = vmul.f32 %v13633_v42, %v19022_v4  ;;  %vm19059_vm6 = vcmp.eq.f32.partialorder %v11521_v35, 8.507059e+37  ;;  %12404 = vst [vmem:[%s17918_s30 + $0x80] sm:$0xff] %v12371_v59  ;;  %vm10213_vm7 = vmor %vm10211_vm2, %vm10212_vm5 }
 0x6a0   : > { %v11616_v31 = vadd.f32 0.05243302, %v11615_v8  ;;  %v11626_v40 = vmul.f32 %v11625_v39, %v19010_v25  ;;  %v10210_v60 = vadd.f32 %v13631_v6, %v10209_v53  ;;  %v19066_v50 = vmul.f32 0.70710677, %v19053_v49  ;;  %v9124_v39 = vpop.f32.mrf.mxu0 }
 0x6a1   : > { %v11572_v48 = vadd.f32 0.00028619796, %v11571_v19  ;;  %v11583_v58 = vadd.f32 0.001143296, %v11582_v12  ;;  %v11514_v9 = vsub.f32 1.0, %v11513_v41  ;;  %vm11518_vm8 = vweird.f32 %v13633_v42 }
 0x6a2   : > { %v11617_v15 = vmul.f32 %v11616_v31, %v19010_v25  ;;  %v11627_v5 = vadd.f32 0.112945676, %v11626_v40  ;;  %v10214_v13 = vsel %vm10213_vm7, %v13631_v6, %v10210_v60  ;;  %v10303_v28 = vmul.f32 %v19066_v50, %v19066_v50  ;;  %vm11519_vm9 = vmor %vm11517_vm4, %vm11518_vm8 }
 0x6a3   : > { %v11573_v3 = vmul.f32 %v11572_v48, %v19047_v52  ;;  %v11584_v16 = vmul.f32 %v11583_v58, %v19047_v52  ;;  %v10219_v51 = vsel %vm19033_vm3, %v10218_v43, %v10214_v13  ;;  %v11515_v32 = vmul.f32 %v13633_v42, %v11514_v9 }
 0x6a4   : > { %v11618_v24 = vadd.f32 0.18741608, %v11617_v15  ;;  %v11628_v62 = vmul.f32 %v11627_v5, %v19010_v25  ;;  %v10220_v21 = vmul.f32 %v10219_v51, %v10195_v0  ;;  %v19078_v10 = vmin.f32 %v10303_v28, 16.0  ;;  %v21010_v28 = vld [vmem:[#allocation150_spill] sm:$0xff] }
 0x6a5   : > { %v11574_v22 = vadd.f32 0.0036580483, %v11573_v3  ;;  %v11585_v7 = vadd.f32 0.014752088, %v11584_v16  ;;  %v11516_v6 = vadd.f32 %v13633_v42, %v11515_v32  ;;  %v11524_v17 = vor.u32 1.1754944e-38, %v11523_v44 }
 0x6a6   : > { %v11629_v20 = vadd.f32 0.4994258, %v11628_v62  ;;  %v9423_v14 = vadd.f32 %v9055_v46, %v18899_v55  ;;  %v13488_v57 = vclamps-f32 %v10220_v21, 1.0  ;;  %v10305_v0 = vmul.f32 2.1237322e-06, %v19078_v10  ;;  %v21011_v46 = vld [vmem:[#allocation76_spill] sm:$0xff] }
 0x6a7   : > { %v11575_v43 = vmul.f32 %v11574_v22, %v19047_v52  ;;  %v11586_v61 = vmul.f32 %v11585_v7, %v19047_v52  ;;  %v11520_v27 = vsel %vm11519_vm9, %v13633_v42, %v11516_v6  ;;  %v11619_v38 = vmul.f32 %v11618_v24, %v19010_v25  ;;  %v9081_v6 = vpop.f32.mrf.mxu2 }
 0x6a8   : > { %v11630_v35 = vmul.f32 %v11629_v20, %v19010_v25  ;;  %v10316_v30 = vmul.f32 3.8918573e-05, %v19078_v10  ;;  %v11525_v55 = vsel %vm19059_vm6, %v11524_v17, %v11520_v27  ;;  %v10918_v63 = vadd.f32 1.0, %v13488_v57 }
 0x6a9   : > { %v11576_v4 = vadd.f32 0.05243302, %v11575_v43  ;;  %v11587_v11 = vadd.f32 0.112945676, %v11586_v61  ;;  %v11526_v36 = vmul.f32 %v11525_v55, %v19042_v47  ;;  %v10306_v44 = vadd.f32 0.00028619796, %v10305_v0 }
 0x6aa   : > { %v19093_v59 = vadd.f32 1.0, %v11630_v35  ;;  %v19096_v8 = vadd.f32 %v17670_v37, %v9423_v14  ;;  %v12370_v53 = vmul.f32 %v19039_v1, %v10918_v63  ;;  %v10317_v19 = vadd.f32 0.001143296, %v10316_v30  ;;  %v9101_v14 = vpop.f32.mrf.mxu3 }
 0x6ab   : > { %v11577_v25 = vmul.f32 %v11576_v4, %v19047_v52  ;;  %v11588_v42 = vmul.f32 %v11587_v11, %v19047_v52  ;;  %v12434_v12 = vmul.f32 0.5, %v18781_v54  ;;  %v13519_v41 = vclamps-f32 %v11526_v36, 1.0 }
 0x6ac   : > { %13634 = vrcp.f32 %v19093_v59  ;;  %12403 = vst [vmem:[%s17918_s30 + $0x78] sm:$0xff] %v12370_v53  ;;  %v10307_v31 = vmul.f32 %v10306_v44, %v19078_v10  ;;  %v9426_v40 = vadd.f32 %v9124_v39, %v17541_v18  ;;  %v11620_v48 = vadd.f32 1.1283791, %v11619_v38 }
 0x6ad   : > { %v11578_v47 = vadd.f32 0.18741608, %v11577_v25  ;;  %v11589_v2 = vadd.f32 0.4994258, %v11588_v42  ;;  %v12302_v60 = vadd.f32 1.0, %v13519_v41  ;;  %v10318_v58 = vmul.f32 %v10317_v19, %v19078_v10 }
 0x6ae   : > { %v19108_v1 = vmul.f32 0.70710677, %v19096_v8  ;;  %v11641_v54 = vand.u32 2147483647, %v19093_v59  ;;  %v11643_v9 = vand.u32 2147483648, %v19093_v59  ;;  %v19118_v51 = vadd.f32 %v21011_v46, %v21010_v28 }
 0x6af   : > { %v11590_v15 = vmul.f32 %v11589_v2, %v19047_v52  ;;  %v10308_v5 = vadd.f32 0.0036580483, %v10307_v31  ;;  %v12467_v13 = vmul.f32 %v12434_v12, %v12302_v60  ;;  %v11579_v3 = vmul.f32 %v11578_v47, %v19047_v52 }
 0x6b0   : > { %v10319_v16 = vadd.f32 0.014752088, %v10318_v58  ;;  %v10263_v18 = vmul.f32 %v19108_v1, %v19108_v1  ;;  %v19124_v21 = vmul.f32 0.5, %v18813_v29  ;;  %v11621_v22 = vmul.f32 %v11620_v48, %v18989_v45 }
 0x6b1   : > { %v19120_v32 = vadd.f32 1.0, %v11590_v15  ;;  %v10309_v24 = vmul.f32 %v10308_v5, %v19078_v10  ;;  %12500 = vst [vmem:[%s17918_s30 + $0x170] sm:$0xff] %v12467_v13  ;;  %vm11637_vm10 = vweird.f32 %v19093_v59  ;;  %v19135_v20 = vadd.f32 %v17670_v37, %v9426_v40 }
 0x6b2   : > { %v13635_v62 = vpop.eup %13634  ;;  %v10320_v52 = vmul.f32 %v10319_v16, %v19078_v10  ;;  %v19129_v7 = vmin.f32 %v10263_v18, 16.0  ;;  %vm19137_vm11 = vcmp.eq.f32.partialorder %v11641_v54, 8.507059e+37  ;;  %v11644_v45 = vor.u32 1.1754944e-38, %v11643_v9 }
 0x6b3   : > { %v11633_v17 = vmul.f32 %v13635_v62, %v19093_v59  ;;  %13636 = vrcp.f32 %v19120_v32  ;;  %v11580_v57 = vadd.f32 1.1283791, %v11579_v3  ;;  %v10310_v43 = vadd.f32 0.05243302, %v10309_v24 }
 0x6b4   : > { %v10321_v0 = vadd.f32 0.112945676, %v10320_v52  ;;  %v10265_v27 = vmul.f32 2.1237322e-06, %v19129_v7  ;;  %v9457_v38 = vadd.f32 %v9081_v6, %v17545_v56  ;;  %vm11638_vm12 = vweird.f32 %v13635_v62 }
 0x6b5   : > { %v11634_v61 = vsub.f32 1.0, %v11633_v17  ;;  %v10311_v35 = vmul.f32 %v10310_v43, %v19078_v10  ;;  %v10276_v30 = vmul.f32 3.8918573e-05, %v19129_v7  ;;  %v9425_v55 = vadd.f32 %v9101_v14, %v17514_v26  ;;  %vm11639_vm14 = vmor %vm11637_vm10, %vm11638_vm12 }
 0x6b6   : > { %v10322_v4 = vmul.f32 %v10321_v0, %v19078_v10  ;;  %v10266_v11 = vadd.f32 0.00028619796, %v10265_v27  ;;  %v19148_v36 = vmul.f32 0.70710677, %v19135_v20  ;;  %v11581_v44 = vmul.f32 %v11580_v57, %v19026_v34 }
 0x6b7   : > { %v11635_v63 = vmul.f32 %v13635_v62, %v11634_v61  ;;  %vm11597_vm13 = vweird.f32 %v19120_v32  ;;  %v10312_v39 = vadd.f32 0.18741608, %v10311_v35  ;;  %v10277_v56 = vadd.f32 0.001143296, %v10276_v30 }
 0x6b8   : > { %v10323_v53 = vadd.f32 0.4994258, %v10322_v4  ;;  %v10267_v19 = vmul.f32 %v10266_v11, %v19129_v7  ;;  %v10383_v26 = vmul.f32 %v19148_v36, %v19148_v36  ;;  %v11601_v34 = vand.u32 2147483647, %v19120_v32 }
 0x6b9   : > { %v13637_v25 = vpop.eup %13636  ;;  %v11636_v42 = vadd.f32 %v13635_v62, %v11635_v63  ;;  %v11603_v41 = vand.u32 2147483648, %v19120_v32  ;;  %v10278_v47 = vmul.f32 %v10277_v56, %v19129_v7  ;;  %v10313_v59 = vmul.f32 %v10312_v39, %v19078_v10 }
 0x6ba   : > { %v11593_v12 = vmul.f32 %v13637_v25, %v19120_v32  ;;  %v10324_v31 = vmul.f32 %v10323_v53, %v19078_v10  ;;  %v10268_v40 = vadd.f32 0.0036580483, %v10267_v19  ;;  %v19163_v60 = vmin.f32 %v10383_v26, 16.0 }
 0x6bb   : > { %v11640_v2 = vsel %vm11639_vm14, %v13635_v62, %v11636_v42  ;;  %v10279_v54 = vadd.f32 0.014752088, %v10278_v47  ;;  %vm11598_vm15 = vweird.f32 %v13637_v25  ;;  %vm19174_vm0 = vcmp.eq.f32.partialorder %v11601_v34, 8.507059e+37 }
 0x6bc   : > { %v11645_v48 = vsel %vm19137_vm11, %v11644_v45, %v11640_v2  ;;  %v11594_v58 = vsub.f32 1.0, %v11593_v12  ;;  %v19168_v15 = vadd.f32 1.0, %v10324_v31  ;;  %v10269_v5 = vmul.f32 %v10268_v40, %v19129_v7  ;;  %vm11599_vm1 = vmor %vm11597_vm13, %vm11598_vm15 }
 0x6bd   : > { %v11646_v9 = vmul.f32 %v11645_v48, %v11621_v22  ;;  %v10385_v13 = vmul.f32 2.1237322e-06, %v19163_v60  ;;  %v10280_v16 = vmul.f32 %v10279_v54, %v19129_v7  ;;  %v10396_v18 = vmul.f32 3.8918573e-05, %v19163_v60  ;;  %v9058_v54 = vpop.f32.mrf.mxu1 }
 0x6be   : > { %v11595_v3 = vmul.f32 %v13637_v25, %v11594_v58  ;;  %13638 = vrcp.f32 %v19168_v15  ;;  %v9535_v10 = vadd.f32 %v17701_v23, %v9457_v38  ;;  %v10314_v62 = vadd.f32 1.1283791, %v10313_v59 }
 0x6bf   : > { %v13522_v28 = vclamps-f32 %v11646_v9, 1.0  ;;  %v10270_v22 = vadd.f32 0.05243302, %v10269_v5  ;;  %v10281_v52 = vadd.f32 0.112945676, %v10280_v16  ;;  %v11604_v17 = vor.u32 1.1754944e-38, %v11603_v41  ;;  %v9127_v9 = vpop.f32.mrf.mxu0 }
 0x6c0   : > { %v11596_v24 = vadd.f32 %v13637_v25, %v11595_v3  ;;  %v10386_v14 = vadd.f32 0.00028619796, %v10385_v13  ;;  %v10397_v29 = vadd.f32 0.001143296, %v10396_v18  ;;  %v19185_v61 = vadd.f32 %v17670_v37, %v9425_v55 }
 0x6c1   : > { %v12305_v6 = vadd.f32 1.0, %v13522_v28  ;;  %v10271_v57 = vmul.f32 %v10270_v22, %v19129_v7  ;;  %v10282_v43 = vmul.f32 %v10281_v52, %v19129_v7  ;;  %v10335_v30 = vand.u32 2147483647, %v19168_v15 }
 0x6c2   : > { %v11600_v45 = vsel %vm11599_vm1, %v13637_v25, %v11596_v24  ;;  %v10387_v32 = vmul.f32 %v10386_v14, %v19163_v60  ;;  %v10398_v38 = vmul.f32 %v10397_v29, %v19163_v60  ;;  %v19193_v4 = vmul.f32 0.70710677, %v9535_v10 }
 0x6c3   : > { %v12470_v0 = vmul.f32 %v19124_v21, %v12305_v6  ;;  %v11605_v27 = vsel %vm19174_vm0, %v11604_v17, %v11600_v45  ;;  %v10283_v63 = vadd.f32 0.4994258, %v10282_v43  ;;  %v12436_v39 = vmul.f32 0.5, %v18907_v33 }
 0x6c4   : > { %v11606_v35 = vmul.f32 %v11605_v27, %v11581_v44  ;;  %v13639_v11 = vpop.eup %13638  ;;  %v10315_v55 = vmul.f32 %v10314_v62, %v19066_v50  ;;  %v10388_v21 = vadd.f32 0.0036580483, %v10387_v32  ;;  %v10399_v56 = vadd.f32 0.014752088, %v10398_v38 }
 0x6c5   : > { %12503 = vst [vmem:[%s17918_s30 + $0x188] sm:$0xff] %v12470_v0  ;;  %v10327_v42 = vmul.f32 %v13639_v11, %v19168_v15  ;;  %v10337_v53 = vand.u32 2147483648, %v19168_v15  ;;  %v10272_v19 = vadd.f32 0.18741608, %v10271_v57  ;;  %v10284_v44 = vmul.f32 %v10283_v63, %v19129_v7 }
 0x6c6   : > { %v13521_v25 = vclamps-f32 %v11606_v35, 1.0  ;;  %v10389_v26 = vmul.f32 %v10388_v21, %v19163_v60  ;;  %v10400_v12 = vmul.f32 %v10399_v56, %v19163_v60  ;;  %v11689_v33 = vmul.f32 %v19193_v4, %v19193_v4 }
 0x6c7   : > { %v10328_v41 = vsub.f32 1.0, %v10327_v42  ;;  %vm10331_vm2 = vweird.f32 %v19168_v15  ;;  %v19207_v50 = vmul.f32 0.70710677, %v19185_v61  ;;  %v19209_v47 = vadd.f32 1.0, %v10284_v44 }
 0x6c8   : > { %v12304_v34 = vadd.f32 1.0, %v13521_v25  ;;  %v10390_v2 = vadd.f32 0.05243302, %v10389_v26  ;;  %v10401_v31 = vadd.f32 0.112945676, %v10400_v12  ;;  %v19211_v40 = vmin.f32 %v11689_v33, 16.0 }
 0x6c9   : > { %v10329_v58 = vmul.f32 %v13639_v11, %v10328_v41  ;;  %vm10332_vm3 = vweird.f32 %v13639_v11  ;;  %v10343_v59 = vmul.f32 %v19207_v50, %v19207_v50  ;;  %vm19215_vm4 = vcmp.eq.f32.partialorder %v10335_v30, 8.507059e+37 }
 0x6ca   : > { %v12469_v48 = vmul.f32 %v12436_v39, %v12304_v34  ;;  %v10338_v5 = vor.u32 1.1754944e-38, %v10337_v53  ;;  %v10273_v13 = vmul.f32 %v10272_v19, %v19129_v7  ;;  %13640 = vrcp.f32 %v19209_v47  ;;  %vm10333_vm5 = vmor %vm10331_vm2, %vm10332_vm3 }
 0x6cb   : > { %v10330_v3 = vadd.f32 %v13639_v11, %v10329_v58  ;;  %v10391_v16 = vmul.f32 %v10390_v2, %v19163_v60  ;;  %v10402_v18 = vmul.f32 %v10401_v31, %v19163_v60  ;;  %v11691_v28 = vmul.f32 2.1237322e-06, %v19211_v40 }
 0x6cc   : > { %12502 = vst [vmem:[%s17918_s30 + $0x180] sm:$0xff] %v12469_v48  ;;  %v11702_v46 = vmul.f32 3.8918573e-05, %v19211_v40  ;;  %v12340_v24 = vmul.f32 0.5, %v9535_v10  ;;  %v19228_v62 = vmin.f32 %v10343_v59, 16.0  ;;  %v9456_v7 = vadd.f32 %v9058_v54, %v19118_v51 }
 0x6cd   : > { %v10334_v22 = vsel %vm10333_vm5, %v13639_v11, %v10330_v3  ;;  %v10392_v52 = vadd.f32 0.18741608, %v10391_v16  ;;  %v10403_v6 = vadd.f32 0.4994258, %v10402_v18  ;;  %v11692_v17 = vadd.f32 0.00028619796, %v11691_v28 }
 0x6ce   : > { %v10339_v14 = vsel %vm19215_vm4, %v10338_v5, %v10334_v22  ;;  %v11703_v29 = vadd.f32 0.001143296, %v11702_v46  ;;  %v10345_v45 = vmul.f32 2.1237322e-06, %v19228_v62  ;;  %v10356_v15 = vmul.f32 3.8918573e-05, %v19228_v62 }
 0x6cf   : > { %v10340_v57 = vmul.f32 %v10339_v14, %v10315_v55  ;;  %v10274_v43 = vadd.f32 1.1283791, %v10273_v13  ;;  %v10404_v10 = vmul.f32 %v10403_v6, %v19163_v60  ;;  %v11693_v0 = vmul.f32 %v11692_v17, %v19211_v40  ;;  %v21020_v6 = vld [vmem:[#allocation155_spill] sm:$0xff] }
 0x6d0   : > { %v13641_v27 = vpop.eup %13640  ;;  %v10295_v51 = vand.u32 2147483647, %v19209_v47  ;;  %v10393_v32 = vmul.f32 %v10392_v52, %v19163_v60  ;;  %v11704_v38 = vmul.f32 %v11703_v29, %v19211_v40  ;;  %v10346_v35 = vadd.f32 0.00028619796, %v10345_v45 }
 0x6d1   : > { %v10287_v30 = vmul.f32 %v13641_v27, %v19209_v47  ;;  %v10297_v63 = vand.u32 2147483648, %v19209_v47  ;;  %v19242_v11 = vadd.f32 1.0, %v10404_v10  ;;  %v10357_v39 = vadd.f32 0.001143296, %v10356_v15 }
 0x6d2   : > { %v13491_v55 = vclamps-f32 %v10340_v57, 1.0  ;;  %v11694_v21 = vadd.f32 0.0036580483, %v11693_v0  ;;  %v11705_v56 = vadd.f32 0.014752088, %v11704_v38  ;;  %v10347_v25 = vmul.f32 %v10346_v35, %v19228_v62 }
 0x6d3   : > { %v10275_v42 = vmul.f32 %v10274_v43, %v19108_v1  ;;  %v10288_v53 = vsub.f32 1.0, %v10287_v30  ;;  %vm10291_vm6 = vweird.f32 %v19209_v47  ;;  %13642 = vrcp.f32 %v19242_v11  ;;  %v9104_v30 = vpop.f32.mrf.mxu3 }
 0x6d4   : > { %vm10292_vm7 = vweird.f32 %v13641_v27  ;;  %v10394_v60 = vadd.f32 1.1283791, %v10393_v32  ;;  %v10921_v19 = vadd.f32 1.0, %v13491_v55  ;;  %v11695_v44 = vmul.f32 %v11694_v21, %v19211_v40 }
 0x6d5   : > { %v10289_v26 = vmul.f32 %v13641_v27, %v10288_v53  ;;  %v11706_v12 = vmul.f32 %v11705_v56, %v19211_v40  ;;  %v10348_v33 = vadd.f32 0.0036580483, %v10347_v25  ;;  %v10358_v34 = vmul.f32 %v10357_v39, %v19228_v62  ;;  %vm10293_vm9 = vmor %vm10291_vm6, %vm10292_vm7 }
 0x6d6   : > { %vm19251_vm8 = vcmp.eq.f32.partialorder %v10295_v51, 8.507059e+37  ;;  %v10298_v1 = vor.u32 1.1754944e-38, %v10297_v63  ;;  %v11696_v2 = vadd.f32 0.05243302, %v11695_v44  ;;  %v12373_v31 = vmul.f32 %v12340_v24, %v10921_v19  ;;  %v21023_v19 = vld [vmem:[#allocation79_spill] sm:$0xff] }
 0x6d7   : > { %v10290_v48 = vadd.f32 %v13641_v27, %v10289_v26  ;;  %v11707_v58 = vadd.f32 0.112945676, %v11706_v12  ;;  %v10349_v59 = vmul.f32 %v10348_v33, %v19228_v62  ;;  %v10359_v54 = vadd.f32 0.014752088, %v10358_v34 }
 0x6d8   : > { %v10395_v5 = vmul.f32 %v10394_v60, %v19148_v36  ;;  %v10415_v13 = vand.u32 2147483647, %v19242_v11  ;;  %v11697_v3 = vmul.f32 %v11696_v2, %v19211_v40  ;;  %12406 = vst [vmem:[%s17918_s30 + $0x90] sm:$0xff] %v12373_v31  ;;  %v9534_v16 = vadd.f32 %v17701_v23, %v9456_v7 }
 0x6d9   : > { %v13643_v18 = vpop.eup %13642  ;;  %v10294_v28 = vsel %vm10293_vm9, %v13641_v27, %v10290_v48  ;;  %v11708_v46 = vmul.f32 %v11707_v58, %v19211_v40  ;;  %v10350_v24 = vadd.f32 0.05243302, %v10349_v59  ;;  %v10360_v22 = vmul.f32 %v10359_v54, %v19228_v62 }
 0x6da   : > { %v10299_v47 = vsel %vm19251_vm8, %v10298_v1, %v10294_v28  ;;  %v10407_v52 = vmul.f32 %v13643_v18, %v19242_v11  ;;  %v11698_v36 = vadd.f32 0.18741608, %v11697_v3  ;;  %v9459_v17 = vadd.f32 %v9127_v9, %v21020_v6  ;;  %v9170_v28 = vpop.f32.mrf.mxu2 }
 0x6db   : > { %v10300_v14 = vmul.f32 %v10299_v47, %v10275_v42  ;;  %v11709_v29 = vadd.f32 0.4994258, %v11708_v46  ;;  %v10351_v45 = vmul.f32 %v10350_v24, %v19228_v62  ;;  %v10361_v7 = vadd.f32 0.112945676, %v10360_v22 }
 0x6dc   : > { %v10408_v15 = vsub.f32 1.0, %v10407_v52  ;;  %vm10411_vm10 = vweird.f32 %v19242_v11  ;;  %v10417_v57 = vand.u32 2147483648, %v19242_v11  ;;  %v19273_v43 = vmul.f32 0.70710677, %v9534_v16 }
 0x6dd   : > { %v11699_v10 = vmul.f32 %v11698_v36, %v19211_v40  ;;  %v11710_v0 = vmul.f32 %v11709_v29, %v19211_v40  ;;  %v10352_v27 = vadd.f32 0.18741608, %v10351_v45  ;;  %v10362_v51 = vmul.f32 %v10361_v7, %v19228_v62  ;;  %v21026_v45 = vld [vmem:[#allocation85_spill] sm:$0xff] }
 0x6de   : > { %v10409_v32 = vmul.f32 %v13643_v18, %v10408_v15  ;;  %vm10412_vm11 = vweird.f32 %v13643_v18  ;;  %v11649_v38 = vmul.f32 %v19273_v43, %v19273_v43  ;;  %v9537_v35 = vadd.f32 %v17701_v23, %v9459_v17 }
 0x6df   : > { %vm19281_vm12 = vcmp.eq.f32.partialorder %v10415_v13, 8.507059e+37  ;;  %v19285_v39 = vadd.f32 1.0, %v11710_v0  ;;  %v10363_v55 = vadd.f32 0.4994258, %v10362_v51  ;;  %v13490_v21 = vclamps-f32 %v10300_v14, 1.0  ;;  %vm10413_vm13 = vmor %vm10411_vm10, %vm10412_vm11 }
 0x6e0   : > { %v10410_v40 = vadd.f32 %v13643_v18, %v10409_v32  ;;  %v10418_v56 = vor.u32 1.1754944e-38, %v10417_v57  ;;  %v10353_v25 = vmul.f32 %v10352_v27, %v19228_v62  ;;  %v19288_v42 = vmin.f32 %v11649_v38, 16.0 }
 0x6e1   : > { %v11700_v53 = vadd.f32 1.1283791, %v11699_v10  ;;  %13644 = vrcp.f32 %v19285_v39  ;;  %v19293_v60 = vmul.f32 0.70710677, %v9537_v35  ;;  %v9458_v44 = vadd.f32 %v9104_v30, %v21023_v19 }
 0x6e2   : > { %v10414_v26 = vsel %vm10413_vm13, %v13643_v18, %v10410_v40  ;;  %v11723_v12 = vand.u32 2147483648, %v19285_v39  ;;  %v10364_v33 = vmul.f32 %v10363_v55, %v19228_v62  ;;  %v11651_v34 = vmul.f32 2.1237322e-06, %v19288_v42 }
 0x6e3   : > { %v10419_v41 = vsel %vm19281_vm12, %v10418_v56, %v10414_v26  ;;  %v11721_v11 = vand.u32 2147483647, %v19285_v39  ;;  %v10920_v1 = vadd.f32 1.0, %v13490_v21  ;;  %v11662_v2 = vmul.f32 3.8918573e-05, %v19288_v42 }
 0x6e4   : > { %v10420_v31 = vmul.f32 %v10419_v41, %v10395_v5  ;;  %v10354_v48 = vadd.f32 1.1283791, %v10353_v25  ;;  %v19303_v58 = vadd.f32 1.0, %v10364_v33  ;;  %v11652_v59 = vadd.f32 0.00028619796, %v11651_v34 }
 0x6e5   : > { %v19306_v54 = vmul.f32 0.5, %v19053_v49  ;;  %v11701_v62 = vmul.f32 %v11700_v53, %v19193_v4  ;;  %v11663_v9 = vadd.f32 0.001143296, %v11662_v2  ;;  %v12339_v13 = vmul.f32 0.5, %v9534_v16 }
 0x6e6   : > { %vm11717_vm14 = vweird.f32 %v19285_v39  ;;  %v11724_v3 = vor.u32 1.1754944e-38, %v11723_v12  ;;  %13646 = vrcp.f32 %v19303_v58  ;;  %v11769_v18 = vmul.f32 %v19293_v60, %v19293_v60 }
 0x6e7   : > { %v19314_v5 = vadd.f32 %v17701_v23, %v9458_v44  ;;  %v13645_v46 = vpop.eup %13644  ;;  %v11653_v49 = vmul.f32 %v11652_v59, %v19288_v42  ;;  %v11664_v4 = vmul.f32 %v11663_v9, %v19288_v42  ;;  %v12372_v24 = vmul.f32 %v12339_v13, %v10920_v1 }
 0x6e8   : > { %v13493_v16 = vclamps-f32 %v10420_v31, 1.0  ;;  %v11713_v22 = vmul.f32 %v13645_v46, %v19285_v39  ;;  %vm19319_vm15 = vcmp.eq.f32.partialorder %v11721_v11, 8.507059e+37  ;;  %v19324_v52 = vmul.f32 %v10354_v48, %v19207_v50 }
 0x6e9   : > { %v10375_v36 = vand.u32 2147483647, %v19303_v58  ;;  %v12342_v6 = vmul.f32 0.5, %v9537_v35  ;;  %v10377_v17 = vand.u32 2147483648, %v19303_v58  ;;  %v11654_v14 = vadd.f32 0.0036580483, %v11653_v49 }
 0x6ea   : > { %v11665_v29 = vadd.f32 0.014752088, %v11664_v4  ;;  %12405 = vst [vmem:[%s17918_s30 + $0x88] sm:$0xff] %v12372_v24  ;;  %v9428_v7 = vadd.f32 %v9170_v28, %v21026_v45  ;;  %v11714_v15 = vsub.f32 1.0, %v11713_v22  ;;  %vm11718_vm0 = vweird.f32 %v13645_v46 }
 0x6eb   : > { %v19330_v57 = vmin.f32 %v11769_v18, 16.0  ;;  %v19333_v10 = vmul.f32 0.70710677, %v19314_v5  ;;  %vm10371_vm1 = vweird.f32 %v19303_v58  ;;  %v11655_v50 = vmul.f32 %v11654_v14, %v19288_v42  ;;  %vm11719_vm4 = vmor %vm11717_vm14, %vm11718_vm0 }
 0x6ec   : > { %v11666_v0 = vmul.f32 %v11665_v29, %v19288_v42  ;;  %v10923_v27 = vadd.f32 1.0, %v13493_v16  ;;  %v19339_v51 = vadd.f32 %v17670_v37, %v9428_v7  ;;  %v13647_v32 = vpop.eup %13646  ;;  %v11715_v38 = vmul.f32 %v13645_v46, %v11714_v15 }
 0x6ed   : > { %v11771_v35 = vmul.f32 2.1237322e-06, %v19330_v57  ;;  %v11782_v30 = vmul.f32 3.8918573e-05, %v19330_v57  ;;  %v11729_v63 = vmul.f32 %v19333_v10, %v19333_v10  ;;  %v10367_v55 = vmul.f32 %v13647_v32, %v19303_v58 }
 0x6ee   : > { %vm10372_vm2 = vweird.f32 %v13647_v32  ;;  %vm19346_vm3 = vcmp.eq.f32.partialorder %v10375_v36, 8.507059e+37  ;;  %v11656_v40 = vadd.f32 0.05243302, %v11655_v50  ;;  %v11667_v56 = vadd.f32 0.112945676, %v11666_v0 }
 0x6ef   : > { %v11716_v25 = vadd.f32 %v13645_v46, %v11715_v38  ;;  %v11772_v53 = vadd.f32 0.00028619796, %v11771_v35  ;;  %v11783_v19 = vadd.f32 0.001143296, %v11782_v30  ;;  %v19350_v44 = vmin.f32 %v11729_v63, 16.0  ;;  %vm10373_vm5 = vmor %vm10371_vm1, %vm10372_vm2  ;;  %v9147_v35 = vpop.f32.mrf.mxu1 }
 0x6f0   : > { %v10368_v26 = vsub.f32 1.0, %v10367_v55  ;;  %v11657_v12 = vmul.f32 %v11656_v40, %v19288_v42  ;;  %v11668_v33 = vmul.f32 %v11667_v56, %v19288_v42  ;;  %v19358_v34 = vmul.f32 0.70710677, %v19339_v51 }
 0x6f1   : > { %v11720_v41 = vsel %vm11719_vm4, %v13645_v46, %v11716_v25  ;;  %v11773_v11 = vmul.f32 %v11772_v53, %v19330_v57  ;;  %v11784_v1 = vmul.f32 %v11783_v19, %v19330_v57  ;;  %v12375_v2 = vmul.f32 %v12342_v6, %v10923_v27  ;;  %v21029_v19 = vld [vmem:[#allocation127_spill] sm:$0xff] }
 0x6f2   : > { %v11725_v31 = vsel %vm19319_vm15, %v11724_v3, %v11720_v41  ;;  %v10369_v39 = vmul.f32 %v13647_v32, %v10368_v26  ;;  %v11658_v48 = vadd.f32 0.18741608, %v11657_v12  ;;  %v11669_v59 = vadd.f32 0.4994258, %v11668_v33 }
 0x6f3   : > { %v11726_v9 = vmul.f32 %v11725_v31, %v11701_v62  ;;  %v10378_v13 = vor.u32 1.1754944e-38, %v10377_v17  ;;  %v11774_v18 = vadd.f32 0.0036580483, %v11773_v11  ;;  %v11785_v28 = vadd.f32 0.014752088, %v11784_v1  ;;  %12408 = vst [vmem:[%s17918_s30 + $0xa0] sm:$0xff] %v12375_v2 }
 0x6f4   : > { %v10370_v49 = vadd.f32 %v13647_v32, %v10369_v39  ;;  %v11670_v4 = vmul.f32 %v11669_v59, %v19288_v42  ;;  %v11731_v46 = vmul.f32 2.1237322e-06, %v19350_v44  ;;  %v10463_v24 = vmul.f32 %v19358_v34, %v19358_v34 }
 0x6f5   : > { %v13524_v16 = vclamps-f32 %v11726_v9, 1.0  ;;  %v11659_v3 = vmul.f32 %v11658_v48, %v19288_v42  ;;  %v11775_v62 = vmul.f32 %v11774_v18, %v19330_v57  ;;  %v11786_v22 = vmul.f32 %v11785_v28, %v19330_v57 }
 0x6f6   : > { %v10374_v47 = vsel %vm10373_vm5, %v13647_v32, %v10370_v49  ;;  %v19375_v36 = vadd.f32 1.0, %v11670_v4  ;;  %v11732_v6 = vadd.f32 0.00028619796, %v11731_v46  ;;  %v11742_v17 = vmul.f32 3.8918573e-05, %v19350_v44 }
 0x6f7   : > { %v12307_v14 = vadd.f32 1.0, %v13524_v16  ;;  %v10379_v29 = vsel %vm19346_vm3, %v10378_v13, %v10374_v47  ;;  %v11776_v45 = vadd.f32 0.05243302, %v11775_v62  ;;  %v11787_v58 = vadd.f32 0.112945676, %v11786_v22  ;;  %v9216_v62 = vpop.f32.mrf.mxu0 }
 0x6f8   : > { %v10380_v7 = vmul.f32 %v10379_v29, %v19324_v52  ;;  %13648 = vrcp.f32 %v19375_v36  ;;  %v19383_v42 = vmul.f32 0.5, %v19096_v8  ;;  %v11733_v32 = vmul.f32 %v11732_v6, %v19350_v44 }
 0x6f9   : > { %v12472_v15 = vmul.f32 %v19306_v54, %v12307_v14  ;;  %v11777_v50 = vmul.f32 %v11776_v45, %v19330_v57  ;;  %v11788_v0 = vmul.f32 %v11787_v58, %v19330_v57  ;;  %v11743_v38 = vadd.f32 0.001143296, %v11742_v17  ;;  %v21032_v58 = vld [vmem:[#allocation156_spill] sm:$0xff] }
 0x6fa   : > { %v13492_v27 = vclamps-f32 %v10380_v7, 1.0  ;;  %v19390_v30 = vmul.f32 0.5, %v19135_v20  ;;  %v11660_v52 = vadd.f32 1.1283791, %v11659_v3  ;;  %v12341_v63 = vmul.f32 0.5, %v19314_v5 }
 0x6fb   : > { %12505 = vst [vmem:[%s17918_s30 + $0x198] sm:$0xff] %v12472_v15  ;;  %v19394_v8 = vmin.f32 %v10463_v24, 16.0  ;;  %v11789_v55 = vadd.f32 0.4994258, %v11788_v0  ;;  %v11734_v21 = vadd.f32 0.0036580483, %v11733_v32  ;;  %v11744_v40 = vmul.f32 %v11743_v38, %v19350_v44 }
 0x6fc   : > { %v10922_v54 = vadd.f32 1.0, %v13492_v27  ;;  %v11778_v56 = vadd.f32 0.18741608, %v11777_v50  ;;  %v9427_v20 = vadd.f32 %v9147_v35, %v21029_v19  ;;  %v19403_v11 = vmul.f32 0.5, %v19185_v61 }
 0x6fd   : > { %v10465_v25 = vmul.f32 2.1237322e-06, %v19394_v8  ;;  %v10476_v53 = vmul.f32 3.8918573e-05, %v19394_v8  ;;  %v11790_v12 = vmul.f32 %v11789_v55, %v19330_v57  ;;  %v11735_v5 = vmul.f32 %v11734_v21, %v19350_v44 }
 0x6fe   : > { %v13649_v26 = vpop.eup %13648  ;;  %v11745_v33 = vadd.f32 0.014752088, %v11744_v40  ;;  %v12374_v41 = vmul.f32 %v12341_v63, %v10922_v54  ;;  %v11681_v2 = vand.u32 2147483647, %v19375_v36  ;;  %v11683_v18 = vand.u32 2147483648, %v19375_v36 }
 0x6ff   : > { %v11673_v1 = vmul.f32 %v13649_v26, %v19375_v36  ;;  %v10466_v31 = vadd.f32 0.00028619796, %v10465_v25  ;;  %v19407_v39 = vadd.f32 1.0, %v11790_v12  ;;  %v11736_v48 = vadd.f32 0.05243302, %v11735_v5 }
 0x700   : > { %v11746_v59 = vmul.f32 %v11745_v33, %v19350_v44  ;;  %12407 = vst [vmem:[%s17918_s30 + $0x98] sm:$0xff] %v12374_v41  ;;  %v10477_v9 = vadd.f32 0.001143296, %v10476_v53  ;;  %v19414_v61 = vadd.f32 %v17670_v37, %v9427_v20  ;;  %v11661_v49 = vmul.f32 %v11660_v52, %v19273_v43 }
 0x701   : > { %v11674_v13 = vsub.f32 1.0, %v11673_v1  ;;  %v10467_v28 = vmul.f32 %v10466_v31, %v19394_v8  ;;  %vm11678_vm6 = vweird.f32 %v13649_v26  ;;  %v11779_v4 = vmul.f32 %v11778_v56, %v19330_v57 }
 0x702   : > { %13650 = vrcp.f32 %v19407_v39  ;;  %v11737_v24 = vmul.f32 %v11736_v48, %v19350_v44  ;;  %v11747_v16 = vadd.f32 0.112945676, %v11746_v59  ;;  %vm11677_vm7 = vweird.f32 %v19375_v36 }
 0x703   : > { %v11675_v46 = vmul.f32 %v13649_v26, %v11674_v13  ;;  %v10468_v3 = vadd.f32 0.0036580483, %v10467_v28  ;;  %vm19421_vm8 = vcmp.eq.f32.partialorder %v11681_v2, 8.507059e+37  ;;  %v10478_v47 = vmul.f32 %v10477_v9, %v19394_v8  ;;  %vm11679_vm9 = vmor %vm11677_vm7, %vm11678_vm6 }
 0x704   : > { %v19427_v43 = vmul.f32 0.70710677, %v19414_v61  ;;  %v11684_v6 = vor.u32 1.1754944e-38, %v11683_v18  ;;  %v11748_v17 = vmul.f32 %v11747_v16, %v19350_v44  ;;  %v11780_v29 = vadd.f32 1.1283791, %v11779_v4 }
 0x705   : > { %v11676_v57 = vadd.f32 %v13649_v26, %v11675_v46  ;;  %v10469_v14 = vmul.f32 %v10468_v3, %v19394_v8  ;;  %v10479_v45 = vadd.f32 0.014752088, %v10478_v47  ;;  %v9430_v7 = vadd.f32 %v9216_v62, %v21032_v58 }
 0x706   : > { %v10423_v36 = vmul.f32 %v19427_v43, %v19427_v43  ;;  %v11738_v50 = vadd.f32 0.18741608, %v11737_v24  ;;  %v11749_v0 = vadd.f32 0.4994258, %v11748_v17  ;;  %v11801_v35 = vand.u32 2147483647, %v19407_v39 }
 0x707   : > { %v11680_v15 = vsel %vm11679_vm9, %v13649_v26, %v11676_v57  ;;  %v10470_v27 = vadd.f32 0.05243302, %v10469_v14  ;;  %v10480_v52 = vmul.f32 %v10479_v45, %v19394_v8  ;;  %v11803_v21 = vand.u32 2147483648, %v19407_v39 }
 0x708   : > { %v13651_v32 = vpop.eup %13650  ;;  %v11685_v38 = vsel %vm19421_vm8, %v11684_v6, %v11680_v15  ;;  %v19439_v63 = vmin.f32 %v10423_v36, 16.0  ;;  %v19444_v40 = vadd.f32 %v17670_v37, %v9430_v7  ;;  %v11750_v56 = vmul.f32 %v11749_v0, %v19350_v44 }
 0x709   : > { %v11686_v55 = vmul.f32 %v11685_v38, %v11661_v49  ;;  %v11793_v54 = vmul.f32 %v13651_v32, %v19407_v39  ;;  %v10471_v25 = vmul.f32 %v10470_v27, %v19394_v8  ;;  %v10481_v53 = vadd.f32 0.112945676, %v10480_v52 }
 0x70a   : > { %v10425_v19 = vmul.f32 2.1237322e-06, %v19439_v63  ;;  %v11739_v12 = vmul.f32 %v11738_v50, %v19350_v44  ;;  %v10436_v5 = vmul.f32 3.8918573e-05, %v19439_v63  ;;  %vm11798_vm10 = vweird.f32 %v13651_v32 }
 0x70b   : > { %v13523_v20 = vclamps-f32 %v11686_v55, 1.0  ;;  %v11794_v26 = vsub.f32 1.0, %v11793_v54  ;;  %v19451_v33 = vadd.f32 1.0, %v11750_v56  ;;  %v10482_v41 = vmul.f32 %v10481_v53, %v19394_v8  ;;  %v9193_v54 = vpop.f32.mrf.mxu3 }
 0x70c   : > { %v10426_v1 = vadd.f32 0.00028619796, %v10425_v19  ;;  %v10437_v48 = vadd.f32 0.001143296, %v10436_v5  ;;  %v19455_v59 = vmul.f32 0.70710677, %v19444_v40  ;;  %v11781_v9 = vmul.f32 %v11780_v29, %v19293_v60  ;;  %v9173_v29 = vpop.f32.mrf.mxu2 }
 0x70d   : > { %v12306_v2 = vadd.f32 1.0, %v13523_v20  ;;  %v11795_v31 = vmul.f32 %v13651_v32, %v11794_v26  ;;  %vm11797_vm11 = vweird.f32 %v19407_v39  ;;  %13652 = vrcp.f32 %v19451_v33 }
 0x70e   : > { %v10472_v44 = vadd.f32 0.18741608, %v10471_v25  ;;  %vm11802_vm12 = vcmp.eq.f32.partialorder %v11801_v35, 8.507059e+37  ;;  %v10483_v28 = vadd.f32 0.4994258, %v10482_v41  ;;  %vm11799_vm13 = vmor %vm11797_vm11, %vm11798_vm10  ;;  %v11804_v49 = vor.u32 1.1754944e-38, %v11803_v21 }
 0x70f   : > { %v12471_v13 = vmul.f32 %v19383_v42, %v12306_v2  ;;  %v11796_v18 = vadd.f32 %v13651_v32, %v11795_v31  ;;  %v11740_v4 = vadd.f32 1.1283791, %v11739_v12  ;;  %v10427_v46 = vmul.f32 %v10426_v1, %v19439_v63  ;;  %v21036_v1 = vld [vmem:[#allocation133_spill] sm:$0xff] }
 0x710   : > { %v10438_v24 = vmul.f32 %v10437_v48, %v19439_v63  ;;  %v11761_v39 = vand.u32 2147483647, %v19451_v33  ;;  %v10484_v16 = vmul.f32 %v10483_v28, %v19394_v8  ;;  %v10543_v42 = vmul.f32 %v19455_v59, %v19455_v59 }
 0x711   : > { %12504 = vst [vmem:[%s17918_s30 + $0x190] sm:$0xff] %v12471_v13  ;;  %v11800_v60 = vsel %vm11799_vm13, %v13651_v32, %v11796_v18  ;;  %v10473_v62 = vmul.f32 %v10472_v44, %v19394_v8  ;;  %v10428_v22 = vadd.f32 0.0036580483, %v10427_v46  ;;  %v19473_v17 = vmul.f32 0.5, %v19339_v51 }
 0x712   : > { %v11805_v3 = vsel %vm11802_vm12, %v11804_v49, %v11800_v60  ;;  %v10439_v47 = vadd.f32 0.014752088, %v10438_v24  ;;  %v19470_v6 = vadd.f32 1.0, %v10484_v16  ;;  %v19475_v14 = vmin.f32 %v10543_v42, 16.0 }
 0x713   : > { %v11806_v57 = vmul.f32 %v11805_v3, %v11781_v9  ;;  %v13653_v45 = vpop.eup %13652  ;;  %v11741_v36 = vmul.f32 %v11740_v4, %v19333_v10  ;;  %v11763_v58 = vand.u32 2147483648, %v19451_v33  ;;  %v10429_v7 = vmul.f32 %v10428_v22, %v19439_v63  ;;  %v21035_v10 = vld [vmem:[#allocation91_spill] sm:$0xff] }
 0x714   : > { %v10440_v8 = vmul.f32 %v10439_v47, %v19439_v63  ;;  %v11753_v50 = vmul.f32 %v13653_v45, %v19451_v33  ;;  %vm11757_vm14 = vweird.f32 %v19451_v33  ;;  %13654 = vrcp.f32 %v19470_v6 }
 0x715   : > { %v13526_v15 = vclamps-f32 %v11806_v57, 1.0  ;;  %vm19484_vm15 = vcmp.eq.f32.partialorder %v11761_v39, 8.507059e+37  ;;  %v10474_v0 = vadd.f32 1.1283791, %v10473_v62  ;;  %v10430_v27 = vadd.f32 0.05243302, %v10429_v7 }
 0x716   : > { %v9461_v32 = vadd.f32 %v9173_v29, %v21035_v10  ;;  %v11754_v35 = vsub.f32 1.0, %v11753_v50  ;;  %v10441_v52 = vadd.f32 0.112945676, %v10440_v8  ;;  %v10545_v55 = vmul.f32 2.1237322e-06, %v19475_v14 }
 0x717   : > { %v12309_v38 = vadd.f32 1.0, %v13526_v15  ;;  %vm11758_vm0 = vweird.f32 %v13653_v45  ;;  %v11764_v21 = vor.u32 1.1754944e-38, %v11763_v58  ;;  %v10431_v56 = vmul.f32 %v10430_v27, %v19439_v63  ;;  %v21039_v27 = vld [vmem:[#allocation130_spill] sm:$0xff] }
 0x718   : > { %v10556_v25 = vmul.f32 3.8918573e-05, %v19475_v14  ;;  %v11755_v19 = vmul.f32 %v13653_v45, %v11754_v35  ;;  %v10442_v20 = vmul.f32 %v10441_v52, %v19439_v63  ;;  %v10546_v26 = vadd.f32 0.00028619796, %v10545_v55  ;;  %vm11759_vm1 = vmor %vm11757_vm14, %vm11758_vm0 }
 0x719   : > { %v12474_v53 = vmul.f32 %v19390_v30, %v12309_v38  ;;  %v10475_v12 = vmul.f32 %v10474_v0, %v19358_v34  ;;  %v9539_v41 = vadd.f32 %v17701_v23, %v9461_v32  ;;  %v9429_v2 = vadd.f32 %v9193_v54, %v21036_v1 }
 0x71a   : > { %v10557_v5 = vadd.f32 0.001143296, %v10556_v25  ;;  %v13655_v31 = vpop.eup %13654  ;;  %v11756_v48 = vadd.f32 %v13653_v45, %v11755_v19  ;;  %v10495_v9 = vand.u32 2147483647, %v19470_v6  ;;  %v10443_v44 = vadd.f32 0.4994258, %v10442_v20 }
 0x71b   : > { %12507 = vst [vmem:[%s17918_s30 + $0x1a8] sm:$0xff] %v12474_v53  ;;  %v10547_v13 = vmul.f32 %v10546_v26, %v19475_v14  ;;  %v10487_v30 = vmul.f32 %v13655_v31, %v19470_v6  ;;  %v10497_v34 = vand.u32 2147483648, %v19470_v6  ;;  %v10432_v18 = vadd.f32 0.18741608, %v10431_v56 }
 0x71c   : > { %v10558_v28 = vmul.f32 %v10557_v5, %v19475_v14  ;;  %v11760_v49 = vsel %vm11759_vm1, %v13653_v45, %v11756_v48  ;;  %v10444_v4 = vmul.f32 %v10443_v44, %v19439_v63  ;;  %v19507_v24 = vmul.f32 0.70710677, %v9539_v41  ;;  %v9150_v45 = vpop.f32.mrf.mxu1 }
 0x71d   : > { %v10548_v46 = vadd.f32 0.0036580483, %v10547_v13  ;;  %v11765_v60 = vsel %vm19484_vm15, %v11764_v21, %v11760_v49  ;;  %v10488_v39 = vsub.f32 1.0, %v10487_v30  ;;  %v19512_v33 = vadd.f32 %v17670_v37, %v9429_v2 }
 0x71e   : > { %v10559_v16 = vadd.f32 0.014752088, %v10558_v28  ;;  %v11766_v42 = vmul.f32 %v11765_v60, %v11741_v36  ;;  %v19514_v3 = vadd.f32 1.0, %v10444_v4  ;;  %v11849_v22 = vmul.f32 %v19507_v24, %v19507_v24 }
 0x71f   : > { %v10549_v62 = vmul.f32 %v10548_v46, %v19475_v14  ;;  %v10489_v47 = vmul.f32 %v13655_v31, %v10488_v39  ;;  %vm10492_vm2 = vweird.f32 %v13655_v31  ;;  %v10433_v57 = vmul.f32 %v10432_v18, %v19439_v63 }
 0x720   : > { %v10560_v29 = vmul.f32 %v10559_v16, %v19475_v14  ;;  %v13525_v58 = vclamps-f32 %v11766_v42, 1.0  ;;  %vm10491_vm3 = vweird.f32 %v19470_v6  ;;  %vm19522_vm4 = vcmp.eq.f32.partialorder %v10495_v9, 8.507059e+37 }
 0x721   : > { %13656 = vrcp.f32 %v19514_v3  ;;  %v10490_v36 = vadd.f32 %v13655_v31, %v10489_v47  ;;  %v10498_v8 = vor.u32 1.1754944e-38, %v10497_v34  ;;  %v10550_v15 = vadd.f32 0.05243302, %v10549_v62  ;;  %vm10493_vm5 = vmor %vm10491_vm3, %vm10492_vm2 }
 0x722   : > { %v10561_v50 = vadd.f32 0.112945676, %v10560_v29  ;;  %v12308_v51 = vadd.f32 1.0, %v13525_v58  ;;  %v19527_v0 = vmin.f32 %v11849_v22, 16.0  ;;  %v19530_v63 = vmul.f32 0.70710677, %v19512_v33 }
 0x723   : > { %v9460_v6 = vadd.f32 %v9150_v45, %v21039_v27  ;;  %v10494_v10 = vsel %vm10493_vm5, %v13655_v31, %v10490_v36  ;;  %v10434_v32 = vadd.f32 1.1283791, %v10433_v57  ;;  %v10551_v38 = vmul.f32 %v10550_v15, %v19475_v14 }
 0x724   : > { %v10562_v35 = vmul.f32 %v10561_v50, %v19475_v14  ;;  %v12473_v52 = vmul.f32 %v19403_v11, %v12308_v51  ;;  %v10499_v55 = vsel %vm19522_vm4, %v10498_v8, %v10494_v10  ;;  %v11851_v54 = vmul.f32 2.1237322e-06, %v19527_v0  ;;  %v9219_v51 = vpop.f32.mrf.mxu0 }
 0x725   : > { %v11862_v21 = vmul.f32 3.8918573e-05, %v19527_v0  ;;  %v10500_v56 = vmul.f32 %v10499_v55, %v10475_v12  ;;  %v10552_v25 = vadd.f32 0.18741608, %v10551_v38  ;;  %v10503_v19 = vmul.f32 %v19530_v63, %v19530_v63 }
 0x726   : > { %v10563_v53 = vadd.f32 0.4994258, %v10562_v35  ;;  %12506 = vst [vmem:[%s17918_s30 + $0x1a0] sm:$0xff] %v12473_v52  ;;  %v11852_v26 = vadd.f32 0.00028619796, %v11851_v54  ;;  %v12344_v1 = vmul.f32 0.5, %v9539_v41  ;;  %v19547_v48 = vadd.f32 %v17701_v23, %v9460_v6 }
 0x727   : > { %v13657_v20 = vpop.eup %13656  ;;  %v11863_v5 = vadd.f32 0.001143296, %v11862_v21  ;;  %v10455_v2 = vand.u32 2147483647, %v19514_v3  ;;  %v10457_v12 = vand.u32 2147483648, %v19514_v3  ;;  %v13495_v9 = vclamps-f32 %v10500_v56, 1.0 }
 0x728   : > { %v10447_v11 = vmul.f32 %v13657_v20, %v19514_v3  ;;  %v10564_v31 = vmul.f32 %v10563_v53, %v19475_v14  ;;  %v11853_v44 = vmul.f32 %v11852_v26, %v19527_v0  ;;  %vm10451_vm6 = vweird.f32 %v19514_v3  ;;  %v21042_v56 = vld [vmem:[#allocation10_spill] sm:$0xff] }
 0x729   : > { %v11864_v13 = vmul.f32 %v11863_v5, %v19527_v0  ;;  %v19555_v34 = vmin.f32 %v10503_v19, 16.0  ;;  %v10553_v18 = vmul.f32 %v10552_v25, %v19475_v14  ;;  %v10925_v28 = vadd.f32 1.0, %v13495_v9 }
 0x72a   : > { %v10448_v30 = vsub.f32 1.0, %v10447_v11  ;;  %v19553_v41 = vadd.f32 1.0, %v10564_v31  ;;  %v11854_v49 = vadd.f32 0.0036580483, %v11853_v44  ;;  %vm10452_vm7 = vweird.f32 %v13657_v20 }
 0x72b   : > { %v11865_v4 = vadd.f32 0.014752088, %v11864_v13  ;;  %v19560_v60 = vmul.f32 0.70710677, %v19547_v48  ;;  %vm19562_vm8 = vcmp.eq.f32.partialorder %v10455_v2, 8.507059e+37  ;;  %v10458_v16 = vor.u32 1.1754944e-38, %v10457_v12  ;;  %vm10453_vm9 = vmor %vm10451_vm6, %vm10452_vm7 }
 0x72c   : > { %v10449_v46 = vmul.f32 %v13657_v20, %v10448_v30  ;;  %13658 = vrcp.f32 %v19553_v41  ;;  %v11855_v42 = vmul.f32 %v11854_v49, %v19527_v0  ;;  %v12377_v22 = vmul.f32 %v12344_v1, %v10925_v28 }
 0x72d   : > { %v11866_v14 = vmul.f32 %v11865_v4, %v19527_v0  ;;  %v10505_v47 = vmul.f32 2.1237322e-06, %v19555_v34  ;;  %v10516_v57 = vmul.f32 3.8918573e-05, %v19555_v34  ;;  %v10435_v29 = vmul.f32 %v10434_v32, %v19427_v43 }
 0x72e   : > { %v10450_v62 = vadd.f32 %v13657_v20, %v10449_v46  ;;  %v10554_v45 = vadd.f32 1.1283791, %v10553_v18  ;;  %v11856_v58 = vadd.f32 0.05243302, %v11855_v42  ;;  %12410 = vst [vmem:[%s17918_s30 + $0xb0] sm:$0xff] %v12377_v22  ;;  %v11809_v50 = vmul.f32 %v19560_v60, %v19560_v60 }
 0x72f   : > { %v11867_v7 = vadd.f32 0.112945676, %v11866_v14  ;;  %v10506_v8 = vadd.f32 0.00028619796, %v10505_v47  ;;  %v10517_v15 = vadd.f32 0.001143296, %v10516_v57  ;;  %v9463_v25 = vadd.f32 %v9219_v51, %v21042_v56 }
 0x730   : > { %v10454_v36 = vsel %vm10453_vm9, %v13657_v20, %v10450_v62  ;;  %v10575_v6 = vand.u32 2147483647, %v19553_v41  ;;  %v11857_v43 = vmul.f32 %v11856_v58, %v19527_v0  ;;  %v19583_v52 = vmin.f32 %v11809_v50, 16.0 }
 0x731   : > { %v10459_v27 = vsel %vm19562_vm8, %v10458_v16, %v10454_v36  ;;  %v11868_v3 = vmul.f32 %v11867_v7, %v19527_v0  ;;  %v10507_v38 = vmul.f32 %v10506_v8, %v19555_v34  ;;  %v10518_v35 = vmul.f32 %v10517_v15, %v19555_v34 }
 0x732   : > { %v13659_v10 = vpop.eup %13658  ;;  %v10460_v32 = vmul.f32 %v10459_v27, %v10435_v29  ;;  %v10577_v54 = vand.u32 2147483648, %v19553_v41  ;;  %v11858_v53 = vadd.f32 0.18741608, %v11857_v43  ;;  %v11811_v1 = vmul.f32 2.1237322e-06, %v19583_v52  ;;  %v21043_v27 = vld [vmem:[#allocation139_spill] sm:$0xff] }
 0x733   : > { %v10567_v55 = vmul.f32 %v13659_v10, %v19553_v41  ;;  %v11869_v21 = vadd.f32 0.4994258, %v11868_v3  ;;  %v10508_v19 = vadd.f32 0.0036580483, %v10507_v38  ;;  %v10519_v20 = vadd.f32 0.014752088, %v10518_v35 }
 0x734   : > { %vm10572_vm10 = vweird.f32 %v13659_v10  ;;  %v13494_v31 = vclamps-f32 %v10460_v32, 1.0  ;;  %v11822_v12 = vmul.f32 3.8918573e-05, %v19583_v52  ;;  %v11812_v13 = vadd.f32 0.00028619796, %v11811_v1 }
 0x735   : > { %v10568_v26 = vsub.f32 1.0, %v10567_v55  ;;  %v11870_v5 = vmul.f32 %v11869_v21, %v19527_v0  ;;  %v10509_v11 = vmul.f32 %v10508_v19, %v19555_v34  ;;  %v10520_v2 = vmul.f32 %v10519_v20, %v19555_v34 }
 0x736   : > { %v19596_v30 = vadd.f32 %v17701_v23, %v9463_v25  ;;  %v11859_v18 = vmul.f32 %v11858_v53, %v19527_v0  ;;  %v11823_v4 = vadd.f32 0.001143296, %v11822_v12  ;;  %v10555_v46 = vmul.f32 %v10554_v45, %v19455_v59  ;;  %v9196_v59 = vpop.f32.mrf.mxu3 }
 0x737   : > { %v10569_v9 = vmul.f32 %v13659_v10, %v10568_v26  ;;  %v19593_v44 = vadd.f32 1.0, %v11870_v5  ;;  %v10510_v28 = vadd.f32 0.05243302, %v10509_v11  ;;  %v10521_v49 = vadd.f32 0.112945676, %v10520_v2 }
 0x738   : > { %vm10571_vm11 = vweird.f32 %v19553_v41  ;;  %vm10576_vm13 = vcmp.eq.f32.partialorder %v10575_v6, 8.507059e+37  ;;  %v10578_v16 = vor.u32 1.1754944e-38, %v10577_v54  ;;  %v10924_v14 = vadd.f32 1.0, %v13494_v31 }
 0x739   : > { %v10570_v39 = vadd.f32 %v13659_v10, %v10569_v9  ;;  %13660 = vrcp.f32 %v19593_v44  ;;  %vm10573_vm12 = vmor %vm10571_vm11, %vm10572_vm10  ;;  %v10522_v42 = vmul.f32 %v10521_v49, %v19555_v34  ;;  %v11813_v0 = vmul.f32 %v11812_v13, %v19583_v52 }
 0x73a   : > { %v11824_v22 = vmul.f32 %v11823_v4, %v19583_v52  ;;  %v19607_v47 = vmul.f32 0.70710677, %v19596_v30  ;;  %v11860_v41 = vadd.f32 1.1283791, %v11859_v18  ;;  %v10511_v29 = vmul.f32 %v10510_v28, %v19555_v34  ;;  %v9262_v28 = vpop.f32.mrf.mxu2 }
 0x73b   : > { %v10574_v62 = vsel %vm10573_vm12, %v13659_v10, %v10570_v39  ;;  %v12343_v45 = vmul.f32 0.5, %v19547_v48  ;;  %v10523_v7 = vadd.f32 0.4994258, %v10522_v42  ;;  %v11814_v36 = vadd.f32 0.0036580483, %v11813_v0 }
 0x73c   : > { %v10579_v57 = vsel %vm10576_vm13, %v10578_v16, %v10574_v62  ;;  %v11825_v8 = vadd.f32 0.014752088, %v11824_v22  ;;  %v11881_v15 = vand.u32 2147483647, %v19593_v44  ;;  %v11929_v51 = vmul.f32 %v19607_v47, %v19607_v47 }
 0x73d   : > { %v10580_v58 = vmul.f32 %v10579_v57, %v10555_v46  ;;  %v12376_v50 = vmul.f32 %v12343_v45, %v10924_v14  ;;  %v9462_v6 = vadd.f32 %v9196_v59, %v21043_v27  ;;  %v11883_v3 = vand.u32 2147483648, %v19593_v44  ;;  %v21046_v59 = vld [vmem:[#allocation157_spill] sm:$0xff] }
 0x73e   : > { %v10524_v10 = vmul.f32 %v10523_v7, %v19555_v34  ;;  %v11815_v48 = vmul.f32 %v11814_v36, %v19583_v52  ;;  %v11826_v32 = vmul.f32 %v11825_v8, %v19583_v52  ;;  %v11861_v38 = vmul.f32 %v11860_v41, %v19507_v24 }
 0x73f   : > { %v13661_v43 = vpop.eup %13660  ;;  %v10512_v55 = vadd.f32 0.18741608, %v10511_v29  ;;  %12409 = vst [vmem:[%s17918_s30 + $0xa8] sm:$0xff] %v12376_v50  ;;  %v19622_v54 = vmin.f32 %v11929_v51, 16.0  ;;  %v13497_v53 = vclamps-f32 %v10580_v58, 1.0  ;;  %vm11877_vm14 = vweird.f32 %v19593_v44 }
 0x740   : > { %v11873_v35 = vmul.f32 %v13661_v43, %v19593_v44  ;;  %v19624_v21 = vadd.f32 1.0, %v10524_v10  ;;  %v11816_v56 = vadd.f32 0.05243302, %v11815_v48  ;;  %v11827_v25 = vadd.f32 0.112945676, %v11826_v32 }
 0x741   : > { %v11931_v20 = vmul.f32 2.1237322e-06, %v19622_v54  ;;  %v11942_v26 = vmul.f32 3.8918573e-05, %v19622_v54  ;;  %vm11878_vm15 = vweird.f32 %v13661_v43  ;;  %vm19629_vm0 = vcmp.eq.f32.partialorder %v11881_v15, 8.507059e+37 }
 0x742   : > { %v11874_v19 = vsub.f32 1.0, %v11873_v35  ;;  %v11884_v5 = vor.u32 1.1754944e-38, %v11883_v3  ;;  %13662 = vrcp.f32 %v19624_v21  ;;  %v11817_v11 = vmul.f32 %v11816_v56, %v19583_v52  ;;  %vm11879_vm1 = vmor %vm11877_vm14, %vm11878_vm15 }
 0x743   : > { %v11828_v2 = vmul.f32 %v11827_v25, %v19583_v52  ;;  %v11932_v31 = vadd.f32 0.00028619796, %v11931_v20  ;;  %v10513_v12 = vmul.f32 %v10512_v55, %v19555_v34  ;;  %v10927_v9 = vadd.f32 1.0, %v13497_v53 }
 0x744   : > { %v11875_v1 = vmul.f32 %v13661_v43, %v11874_v19  ;;  %v11943_v13 = vadd.f32 0.001143296, %v11942_v26  ;;  %v9540_v18 = vadd.f32 %v17701_v23, %v9462_v6  ;;  %v12346_v39 = vmul.f32 0.5, %v19596_v30 }
 0x745   : > { %v11829_v4 = vadd.f32 0.4994258, %v11828_v2  ;;  %v11933_v46 = vmul.f32 %v11932_v31, %v19622_v54  ;;  %v10535_v16 = vand.u32 2147483647, %v19624_v21  ;;  %v11818_v42 = vadd.f32 0.18741608, %v11817_v11  ;;  %v9239_v31 = vpop.f32.mrf.mxu1 }
 0x746   : > { %v11876_v49 = vadd.f32 %v13661_v43, %v11875_v1  ;;  %v11944_v34 = vmul.f32 %v11943_v13, %v19622_v54  ;;  %v19645_v14 = vmul.f32 0.70710677, %v9540_v18  ;;  %v9432_v57 = vadd.f32 %v9262_v28, %v21046_v59 }
 0x747   : > { %v11830_v0 = vmul.f32 %v11829_v4, %v19583_v52  ;;  %v11934_v22 = vadd.f32 0.0036580483, %v11933_v46  ;;  %v12379_v29 = vmul.f32 %v12346_v39, %v10927_v9  ;;  %v10514_v7 = vadd.f32 1.1283791, %v10513_v12 }
 0x748   : > { %v11880_v62 = vsel %vm11879_vm1, %v13661_v43, %v11876_v49  ;;  %v13663_v41 = vpop.eup %13662  ;;  %v11945_v44 = vadd.f32 0.014752088, %v11944_v34  ;;  %v11889_v45 = vmul.f32 %v19645_v14, %v19645_v14  ;;  %v10537_v8 = vand.u32 2147483648, %v19624_v21 }
 0x749   : > { %v11885_v30 = vsel %vm19629_vm0, %v11884_v5, %v11880_v62  ;;  %v10527_v36 = vmul.f32 %v13663_v41, %v19624_v21  ;;  %v19655_v15 = vadd.f32 1.0, %v11830_v0  ;;  %v11935_v50 = vmul.f32 %v11934_v22, %v19622_v54  ;;  %12412 = vst [vmem:[%s17918_s30 + $0xc0] sm:$0xff] %v12379_v29 }
 0x74a   : > { %v11886_v58 = vmul.f32 %v11885_v30, %v11861_v38  ;;  %v11946_v51 = vmul.f32 %v11945_v44, %v19622_v54  ;;  %v19660_v27 = vmin.f32 %v11889_v45, 16.0  ;;  %vm10531_vm2 = vweird.f32 %v19624_v21 }
 0x74b   : > { %v10528_v43 = vsub.f32 1.0, %v10527_v36  ;;  %v11819_v3 = vmul.f32 %v11818_v42, %v19583_v52  ;;  %vm10532_vm3 = vweird.f32 %v13663_v41  ;;  %vm19664_vm4 = vcmp.eq.f32.partialorder %v10535_v16, 8.507059e+37  ;;  %v21049_v16 = vld [vmem:[#allocation136_spill] sm:$0xff] }
 0x74c   : > { %v13528_v6 = vclamps-f32 %v11886_v58, 1.0  ;;  %13664 = vrcp.f32 %v19655_v15  ;;  %v19670_v48 = vadd.f32 %v17670_v37, %v9432_v57  ;;  %v11936_v35 = vadd.f32 0.05243302, %v11935_v50  ;;  %vm10533_vm5 = vmor %vm10531_vm2, %vm10532_vm3 }
 0x74d   : > { %v10529_v38 = vmul.f32 %v13663_v41, %v10528_v43  ;;  %v11947_v55 = vadd.f32 0.112945676, %v11946_v51  ;;  %v10538_v56 = vor.u32 1.1754944e-38, %v10537_v8  ;;  %v11891_v25 = vmul.f32 2.1237322e-06, %v19660_v27 }
 0x74e   : > { %v12311_v32 = vadd.f32 1.0, %v13528_v6  ;;  %v11902_v52 = vmul.f32 3.8918573e-05, %v19660_v27  ;;  %v12345_v53 = vmul.f32 0.5, %v9540_v18  ;;  %v11820_v26 = vadd.f32 1.1283791, %v11819_v3 }
 0x74f   : > { %v10530_v20 = vadd.f32 %v13663_v41, %v10529_v38  ;;  %v11948_v24 = vmul.f32 %v11947_v55, %v19622_v54  ;;  %v10515_v5 = vmul.f32 %v10514_v7, %v19530_v63  ;;  %v11892_v1 = vadd.f32 0.00028619796, %v11891_v25 }
 0x750   : > { %v12476_v19 = vmul.f32 %v19473_v17, %v12311_v32  ;;  %v11903_v11 = vadd.f32 0.001143296, %v11902_v52  ;;  %v19681_v2 = vmul.f32 0.70710677, %v19670_v48  ;;  %v11841_v17 = vand.u32 2147483647, %v19655_v15  ;;  %v9308_v52 = vpop.f32.mrf.mxu0 }
 0x751   : > { %v10534_v12 = vsel %vm10533_vm5, %v13663_v41, %v10530_v20  ;;  %v11937_v9 = vmul.f32 %v11936_v35, %v19622_v54  ;;  %v11949_v13 = vadd.f32 0.4994258, %v11948_v24  ;;  %v11893_v21 = vmul.f32 %v11892_v1, %v19660_v27 }
 0x752   : > { %12509 = vst [vmem:[%s17918_s30 + $0x1b8] sm:$0xff] %v12476_v19  ;;  %v13665_v18 = vpop.eup %13664  ;;  %v10539_v63 = vsel %vm19664_vm4, %v10538_v56, %v10534_v12  ;;  %v11904_v28 = vmul.f32 %v11903_v11, %v19660_v27  ;;  %v10623_v49 = vmul.f32 %v19681_v2, %v19681_v2  ;;  %v11843_v39 = vand.u32 2147483648, %v19655_v15 }
 0x753   : > { %v10540_v4 = vmul.f32 %v10539_v63, %v10515_v5  ;;  %v11833_v46 = vmul.f32 %v13665_v18, %v19655_v15  ;;  %v9431_v42 = vadd.f32 %v9239_v31, %v21049_v16  ;;  %v11950_v34 = vmul.f32 %v11949_v13, %v19622_v54 }
 0x754   : > { %v11894_v62 = vadd.f32 0.0036580483, %v11893_v21  ;;  %v11905_v0 = vadd.f32 0.014752088, %v11904_v28  ;;  %v19696_v22 = vmin.f32 %v10623_v49, 16.0  ;;  %vm11838_vm6 = vweird.f32 %v13665_v18 }
 0x755   : > { %v11834_v59 = vsub.f32 1.0, %v11833_v46  ;;  %v11938_v57 = vadd.f32 0.18741608, %v11937_v9  ;;  %v13496_v41 = vclamps-f32 %v10540_v4, 1.0  ;;  %v19698_v30 = vadd.f32 1.0, %v11950_v34 }
 0x756   : > { %v11895_v44 = vmul.f32 %v11894_v62, %v19660_v27  ;;  %v11906_v29 = vmul.f32 %v11905_v0, %v19660_v27  ;;  %v10625_v45 = vmul.f32 2.1237322e-06, %v19696_v22  ;;  %v10636_v36 = vmul.f32 3.8918573e-05, %v19696_v22 }
 0x757   : > { %v11835_v58 = vmul.f32 %v13665_v18, %v11834_v59  ;;  %v10926_v7 = vadd.f32 1.0, %v13496_v41  ;;  %v19705_v8 = vadd.f32 %v17670_v37, %v9431_v42  ;;  %v11821_v50 = vmul.f32 %v11820_v26, %v19560_v60 }
 0x758   : > { %vm11837_vm7 = vweird.f32 %v19655_v15  ;;  %vm19709_vm8 = vcmp.eq.f32.partialorder %v11841_v17, 8.507059e+37  ;;  %13666 = vrcp.f32 %v19698_v30  ;;  %v11896_v43 = vadd.f32 0.05243302, %v11895_v44 }
 0x759   : > { %v11836_v6 = vadd.f32 %v13665_v18, %v11835_v58  ;;  %v11907_v3 = vadd.f32 0.112945676, %v11906_v29  ;;  %v12378_v10 = vmul.f32 %v12345_v53, %v10926_v7  ;;  %vm11839_vm9 = vmor %vm11837_vm7, %vm11838_vm6  ;;  %v11844_v32 = vor.u32 1.1754944e-38, %v11843_v39 }
 0x75a   : > { %v11939_v38 = vmul.f32 %v11938_v57, %v19622_v54  ;;  %v10626_v35 = vadd.f32 0.00028619796, %v10625_v45  ;;  %v10637_v60 = vadd.f32 0.001143296, %v10636_v36  ;;  %v11897_v15 = vmul.f32 %v11896_v43, %v19660_v27  ;;  %v9265_v57 = vpop.f32.mrf.mxu2 }
 0x75b   : > { %v11840_v55 = vsel %vm11839_vm9, %v13665_v18, %v11836_v6  ;;  %v11908_v56 = vmul.f32 %v11907_v3, %v19660_v27  ;;  %12411 = vst [vmem:[%s17918_s30 + $0xb8] sm:$0xff] %v12378_v10  ;;  %v19720_v25 = vmul.f32 0.70710677, %v19705_v8  ;;  %v12442_v19 = vmul.f32 0.5, %v19414_v61  ;;  %v21052_v61 = vld [vmem:[#allocation145_spill] sm:$0xff] }
 0x75c   : > { %v11845_v53 = vsel %vm19709_vm8, %v11844_v32, %v11840_v55  ;;  %v10627_v20 = vmul.f32 %v10626_v35, %v19696_v22  ;;  %v10638_v54 = vmul.f32 %v10637_v60, %v19696_v22  ;;  %v11898_v24 = vadd.f32 0.18741608, %v11897_v15 }
 0x75d   : > { %v11846_v26 = vmul.f32 %v11845_v53, %v11821_v50  ;;  %v11909_v5 = vadd.f32 0.4994258, %v11908_v56  ;;  %v10583_v1 = vmul.f32 %v19720_v25, %v19720_v25  ;;  %v19730_v31 = vmul.f32 0.5, %v19444_v40  ;;  %v21053_v50 = vld [vmem:[#allocation29_spill] sm:$0xff] }
 0x75e   : > { %v13667_v11 = vpop.eup %13666  ;;  %v10628_v12 = vadd.f32 0.0036580483, %v10627_v20  ;;  %v10639_v17 = vadd.f32 0.014752088, %v10638_v54  ;;  %v9434_v9 = vadd.f32 %v9308_v52, %v21052_v61  ;;  %v11940_v18 = vadd.f32 1.1283791, %v11939_v38 }
 0x75f   : > { %v13527_v13 = vclamps-f32 %v11846_v26, 1.0  ;;  %v11953_v63 = vmul.f32 %v13667_v11, %v19698_v30  ;;  %v11963_v21 = vand.u32 2147483648, %v19698_v30  ;;  %v11910_v28 = vmul.f32 %v11909_v5, %v19660_v27 }
 0x760   : > { %v10629_v49 = vmul.f32 %v10628_v12, %v19696_v22  ;;  %v10640_v4 = vmul.f32 %v10639_v17, %v19696_v22  ;;  %v19738_v46 = vmin.f32 %v10583_v1, 16.0  ;;  %v11961_v16 = vand.u32 2147483647, %v19698_v30 }
 0x761   : > { %v12310_v40 = vadd.f32 1.0, %v13527_v13  ;;  %v11954_v39 = vsub.f32 1.0, %v11953_v63  ;;  %v11899_v42 = vmul.f32 %v11898_v24, %v19660_v27  ;;  %v19742_v34 = vadd.f32 1.0, %v11910_v28 }
 0x762   : > { %v10630_v62 = vadd.f32 0.05243302, %v10629_v49  ;;  %v10641_v0 = vadd.f32 0.112945676, %v10640_v4  ;;  %v19745_v59 = vadd.f32 %v17670_v37, %v9434_v9  ;;  %vm11958_vm10 = vweird.f32 %v13667_v11 }
 0x763   : > { %v12475_v41 = vmul.f32 %v12442_v19, %v12310_v40  ;;  %v11955_v44 = vmul.f32 %v13667_v11, %v11954_v39  ;;  %v10585_v29 = vmul.f32 2.1237322e-06, %v19738_v46  ;;  %v11941_v45 = vmul.f32 %v11940_v18, %v19607_v47  ;;  %v9285_v39 = vpop.f32.mrf.mxu3 }
 0x764   : > { %vm11957_vm11 = vweird.f32 %v19698_v30  ;;  %v11964_v58 = vor.u32 1.1754944e-38, %v11963_v21  ;;  %13668 = vrcp.f32 %v19742_v34  ;;  %v10642_v7 = vmul.f32 %v10641_v0, %v19696_v22 }
 0x765   : > { %12508 = vst [vmem:[%s17918_s30 + $0x1b0] sm:$0xff] %v12475_v41  ;;  %v11956_v27 = vadd.f32 %v13667_v11, %v11955_v44  ;;  %v10586_v36 = vadd.f32 0.00028619796, %v10585_v29  ;;  %v9465_v51 = vadd.f32 %v9265_v57, %v21053_v50  ;;  %vm11959_vm12 = vmor %vm11957_vm11, %vm11958_vm10  ;;  %v11900_v6 = vadd.f32 1.1283791, %v11899_v42 }
 0x766   : > { %v10631_v43 = vmul.f32 %v10630_v62, %v19696_v22  ;;  %v10596_v3 = vmul.f32 3.8918573e-05, %v19738_v46  ;;  %v19757_v47 = vmul.f32 0.70710677, %v19745_v59  ;;  %vm11962_vm13 = vcmp.eq.f32.partialorder %v11961_v16, 8.507059e+37 }
 0x767   : > { %v11960_v30 = vsel %vm11959_vm12, %v13667_v11, %v11956_v27  ;;  %v10643_v10 = vadd.f32 0.4994258, %v10642_v7  ;;  %v10587_v32 = vmul.f32 %v10586_v36, %v19738_v46  ;;  %v19761_v38 = vmul.f32 0.5, %v19512_v33 }
 0x768   : > { %v11965_v35 = vsel %vm11962_vm13, %v11964_v58, %v11960_v30  ;;  %v10597_v60 = vadd.f32 0.001143296, %v10596_v3  ;;  %v10703_v55 = vmul.f32 %v19757_v47, %v19757_v47  ;;  %v19767_v19 = vadd.f32 %v17701_v23, %v9465_v51  ;;  %v21056_v58 = vld [vmem:[#allocation142_spill] sm:$0xff] }
 0x769   : > { %v11966_v15 = vmul.f32 %v11965_v35, %v11941_v45  ;;  %v10644_v56 = vmul.f32 %v10643_v10, %v19696_v22  ;;  %v10588_v52 = vadd.f32 0.0036580483, %v10587_v32  ;;  %v11901_v20 = vmul.f32 %v11900_v6, %v19645_v14 }
 0x76a   : > { %v13669_v53 = vpop.eup %13668  ;;  %v10632_v54 = vadd.f32 0.18741608, %v10631_v43  ;;  %v10598_v26 = vmul.f32 %v10597_v60, %v19738_v46  ;;  %v19771_v33 = vmin.f32 %v10703_v55, 16.0  ;;  %v11921_v1 = vand.u32 2147483647, %v19742_v34 }
 0x76b   : > { %v13530_v24 = vclamps-f32 %v11966_v15, 1.0  ;;  %v11913_v5 = vmul.f32 %v13669_v53, %v19742_v34  ;;  %v11923_v11 = vand.u32 2147483648, %v19742_v34  ;;  %v19776_v12 = vadd.f32 1.0, %v10644_v56 }
 0x76c   : > { %v10589_v17 = vmul.f32 %v10588_v52, %v19738_v46  ;;  %v10599_v61 = vadd.f32 0.014752088, %v10598_v26  ;;  %v10705_v9 = vmul.f32 2.1237322e-06, %v19771_v33  ;;  %v10716_v18 = vmul.f32 3.8918573e-05, %v19771_v33 }
 0x76d   : > { %v12313_v14 = vadd.f32 1.0, %v13530_v24  ;;  %v11914_v13 = vsub.f32 1.0, %v11913_v5  ;;  %v19782_v63 = vmul.f32 0.70710677, %v19767_v19  ;;  %vm11917_vm14 = vweird.f32 %v19742_v34 }
 0x76e   : > { %vm11918_vm15 = vweird.f32 %v13669_v53  ;;  %v10633_v21 = vmul.f32 %v10632_v54, %v19696_v22  ;;  %13670 = vrcp.f32 %v19776_v12  ;;  %v10590_v4 = vadd.f32 0.05243302, %v10589_v17 }
 0x76f   : > { %v12478_v28 = vmul.f32 %v19730_v31, %v12313_v14  ;;  %v11915_v49 = vmul.f32 %v13669_v53, %v11914_v13  ;;  %v10600_v40 = vmul.f32 %v10599_v61, %v19738_v46  ;;  %vm19789_vm0 = vcmp.eq.f32.partialorder %v11921_v1, 8.507059e+37  ;;  %vm11919_vm1 = vmor %vm11917_vm14, %vm11918_vm15 }
 0x770   : > { %v11924_v42 = vor.u32 1.1754944e-38, %v11923_v11  ;;  %v10706_v62 = vadd.f32 0.00028619796, %v10705_v9  ;;  %v10717_v0 = vadd.f32 0.001143296, %v10716_v18  ;;  %v10591_v22 = vmul.f32 %v10590_v4, %v19738_v46 }
 0x771   : > { %12511 = vst [vmem:[%s17918_s30 + $0x1c8] sm:$0xff] %v12478_v28  ;;  %v11916_v57 = vadd.f32 %v13669_v53, %v11915_v49  ;;  %v10601_v41 = vadd.f32 0.112945676, %v10600_v40  ;;  %v12009_v31 = vmul.f32 %v19782_v63, %v19782_v63  ;;  %v10634_v44 = vadd.f32 1.1283791, %v10633_v21 }
 0x772   : > { %v10707_v29 = vmul.f32 %v10706_v62, %v19771_v33  ;;  %v10718_v45 = vmul.f32 %v10717_v0, %v19771_v33  ;;  %v9433_v27 = vadd.f32 %v9285_v39, %v21056_v58  ;;  %vm10651_vm2 = vweird.f32 %v19776_v12  ;;  %v9242_v39 = vpop.f32.mrf.mxu1 }
 0x773   : > { %v11920_v7 = vsel %vm11919_vm1, %v13669_v53, %v11916_v57  ;;  %v10655_v36 = vand.u32 2147483647, %v19776_v12  ;;  %v10602_v50 = vmul.f32 %v10601_v41, %v19738_v46  ;;  %v19806_v51 = vmin.f32 %v12009_v31, 16.0  ;;  %v21057_v31 = vld [vmem:[#allocation25_spill] sm:$0xff] }
 0x774   : > { %v13671_v6 = vpop.eup %13670  ;;  %v11925_v34 = vsel %vm19789_vm0, %v11924_v42, %v11920_v7  ;;  %v10657_v43 = vand.u32 2147483648, %v19776_v12  ;;  %v10708_v3 = vadd.f32 0.0036580483, %v10707_v29  ;;  %v10719_v30 = vadd.f32 0.014752088, %v10718_v45 }
 0x775   : > { %v11926_v10 = vmul.f32 %v11925_v34, %v11901_v20  ;;  %v10647_v32 = vmul.f32 %v13671_v6, %v19776_v12  ;;  %v10592_v35 = vadd.f32 0.18741608, %v10591_v22  ;;  %v19813_v60 = vadd.f32 %v17670_v37, %v9433_v27 }
 0x776   : > { %v10603_v55 = vadd.f32 0.4994258, %v10602_v50  ;;  %v10709_v15 = vmul.f32 %v10708_v3, %v19771_v33  ;;  %v10720_v56 = vmul.f32 %v10719_v30, %v19771_v33  ;;  %v12011_v52 = vmul.f32 2.1237322e-06, %v19806_v51 }
 0x777   : > { %v13529_v53 = vclamps-f32 %v11926_v10, 1.0  ;;  %v10648_v54 = vsub.f32 1.0, %v10647_v32  ;;  %vm10652_vm3 = vweird.f32 %v13671_v6  ;;  %v12022_v26 = vmul.f32 3.8918573e-05, %v19806_v51 }
 0x778   : > { %v10604_v20 = vmul.f32 %v10603_v55, %v19738_v46  ;;  %v10710_v24 = vadd.f32 0.05243302, %v10709_v15  ;;  %v10721_v5 = vadd.f32 0.112945676, %v10720_v56  ;;  %v12012_v1 = vadd.f32 0.00028619796, %v12011_v52  ;;  %vm10653_vm4 = vmor %vm10651_vm2, %vm10652_vm3 }
 0x779   : > { %v12312_v11 = vadd.f32 1.0, %v13529_v53  ;;  %v10649_v17 = vmul.f32 %v13671_v6, %v10648_v54  ;;  %v10593_v61 = vmul.f32 %v10592_v35, %v19738_v46  ;;  %v12023_v9 = vadd.f32 0.001143296, %v12022_v26 }
 0x77a   : > { %v19821_v14 = vadd.f32 1.0, %v10604_v20  ;;  %v10711_v13 = vmul.f32 %v10710_v24, %v19771_v33  ;;  %v10722_v18 = vmul.f32 %v10721_v5, %v19771_v33  ;;  %v12013_v21 = vmul.f32 %v12012_v1, %v19806_v51  ;;  %v9311_v20 = vpop.f32.mrf.mxu0 }
 0x77b   : > { %v12477_v28 = vmul.f32 %v19761_v38, %v12312_v11  ;;  %v10650_v49 = vadd.f32 %v13671_v6, %v10649_v17  ;;  %v12024_v4 = vmul.f32 %v12023_v9, %v19806_v51  ;;  %v19829_v40 = vmul.f32 0.70710677, %v19813_v60 }
 0x77c   : > { %v10635_v46 = vmul.f32 %v10634_v44, %v19681_v2  ;;  %vm10656_vm5 = vcmp.eq.f32.partialorder %v10655_v36, 8.507059e+37  ;;  %v10658_v16 = vor.u32 1.1754944e-38, %v10657_v43  ;;  %13672 = vrcp.f32 %v19821_v14 }
 0x77d   : > { %12510 = vst [vmem:[%s17918_s30 + $0x1c0] sm:$0xff] %v12477_v28  ;;  %v10654_v42 = vsel %vm10653_vm4, %v13671_v6, %v10650_v49  ;;  %v10712_v38 = vadd.f32 0.18741608, %v10711_v13  ;;  %v10723_v62 = vadd.f32 0.4994258, %v10722_v18  ;;  %v10663_v0 = vmul.f32 %v19829_v40, %v19829_v40 }
 0x77e   : > { %v10659_v57 = vsel %vm10656_vm5, %v10658_v16, %v10654_v42  ;;  %v10594_v22 = vadd.f32 1.1283791, %v10593_v61  ;;  %v12014_v41 = vadd.f32 0.0036580483, %v12013_v21  ;;  %v9464_v2 = vadd.f32 %v9242_v39, %v21057_v31  ;;  %v21060_v21 = vld [vmem:[#allocation158_spill] sm:$0xff] }
 0x77f   : > { %v10660_v44 = vmul.f32 %v10659_v57, %v10635_v46  ;;  %v10615_v12 = vand.u32 2147483647, %v19821_v14  ;;  %v10724_v29 = vmul.f32 %v10723_v62, %v19771_v33  ;;  %v12025_v45 = vadd.f32 0.014752088, %v12024_v4 }
 0x780   : > { %v10617_v58 = vand.u32 2147483648, %v19821_v14  ;;  %v10713_v27 = vmul.f32 %v10712_v38, %v19771_v33  ;;  %v12015_v7 = vmul.f32 %v12014_v41, %v19806_v51  ;;  %v19845_v36 = vmin.f32 %v10663_v0, 16.0 }
 0x781   : > { %v19847_v50 = vadd.f32 1.0, %v10724_v29  ;;  %v13499_v6 = vclamps-f32 %v10660_v44, 1.0  ;;  %v12026_v34 = vmul.f32 %v12025_v45, %v19806_v51  ;;  %v12348_v43 = vmul.f32 0.5, %v19767_v19 }
 0x782   : > { %v13673_v3 = vpop.eup %13672  ;;  %v10595_v30 = vmul.f32 %v10594_v22, %v19720_v25  ;;  %v12016_v10 = vadd.f32 0.05243302, %v12015_v7  ;;  %v10665_v32 = vmul.f32 2.1237322e-06, %v19845_v36  ;;  %v10676_v35 = vmul.f32 3.8918573e-05, %v19845_v36 }
 0x783   : > { %v10607_v33 = vmul.f32 %v13673_v3, %v19821_v14  ;;  %vm10611_vm6 = vweird.f32 %v19821_v14  ;;  %vm19856_vm7 = vcmp.eq.f32.partialorder %v10615_v12, 8.507059e+37  ;;  %13674 = vrcp.f32 %v19847_v50 }
 0x784   : > { %v10618_v15 = vor.u32 1.1754944e-38, %v10617_v58  ;;  %v10714_v19 = vadd.f32 1.1283791, %v10713_v27  ;;  %v10929_v56 = vadd.f32 1.0, %v13499_v6  ;;  %v9542_v25 = vadd.f32 %v17701_v23, %v9464_v2 }
 0x785   : > { %v10608_v52 = vsub.f32 1.0, %v10607_v33  ;;  %v12017_v53 = vmul.f32 %v12016_v10, %v19806_v51  ;;  %v12027_v54 = vadd.f32 0.112945676, %v12026_v34  ;;  %v10666_v26 = vadd.f32 0.00028619796, %v10665_v32 }
 0x786   : > { %vm10612_vm8 = vweird.f32 %v13673_v3  ;;  %v10735_v24 = vand.u32 2147483647, %v19847_v50  ;;  %v12381_v5 = vmul.f32 %v12348_v43, %v10929_v56  ;;  %v10677_v1 = vadd.f32 0.001143296, %v10676_v35 }
 0x787   : > { %v10609_v11 = vmul.f32 %v13673_v3, %v10608_v52  ;;  %v12018_v17 = vadd.f32 0.18741608, %v12017_v53  ;;  %v12028_v61 = vmul.f32 %v12027_v54, %v19806_v51  ;;  %v10667_v9 = vmul.f32 %v10666_v26, %v19845_v36  ;;  %vm10613_vm10 = vmor %vm10611_vm6, %vm10612_vm8 }
 0x788   : > { %vm10731_vm9 = vweird.f32 %v19847_v50  ;;  %12414 = vst [vmem:[%s17918_s30 + $0xd0] sm:$0xff] %v12381_v5  ;;  %v10678_v13 = vmul.f32 %v10677_v1, %v19845_v36  ;;  %v19869_v18 = vmul.f32 0.70710677, %v9542_v25  ;;  %v9467_v28 = vadd.f32 %v9311_v20, %v21060_v21 }
 0x789   : > { %v13675_v49 = vpop.eup %13674  ;;  %v10610_v4 = vadd.f32 %v13673_v3, %v10609_v11  ;;  %v10737_v39 = vand.u32 2147483648, %v19847_v50  ;;  %v12029_v46 = vadd.f32 0.4994258, %v12028_v61  ;;  %v10668_v16 = vadd.f32 0.0036580483, %v10667_v9 }
 0x78a   : > { %v10727_v42 = vmul.f32 %v13675_v49, %v19847_v50  ;;  %vm19877_vm11 = vcmp.eq.f32.partialorder %v10735_v24, 8.507059e+37  ;;  %v10679_v62 = vadd.f32 0.014752088, %v10678_v13  ;;  %v11969_v0 = vmul.f32 %v19869_v18, %v19869_v18 }
 0x78b   : > { %v10614_v57 = vsel %vm10613_vm10, %v13673_v3, %v10610_v4  ;;  %v12019_v22 = vmul.f32 %v12018_v17, %v19806_v51  ;;  %v12030_v41 = vmul.f32 %v12029_v46, %v19806_v51  ;;  %v10669_v31 = vmul.f32 %v10668_v16, %v19845_v36 }
 0x78c   : > { %v10619_v14 = vsel %vm19856_vm7, %v10618_v15, %v10614_v57  ;;  %v10728_v2 = vsub.f32 1.0, %v10727_v42  ;;  %v10680_v44 = vmul.f32 %v10679_v62, %v19845_v36  ;;  %v19889_v12 = vmin.f32 %v11969_v0, 16.0 }
 0x78d   : > { %v10620_v29 = vmul.f32 %v10619_v14, %v10595_v30  ;;  %vm10732_vm12 = vweird.f32 %v13675_v49  ;;  %v19891_v45 = vadd.f32 1.0, %v12030_v41  ;;  %v10670_v58 = vadd.f32 0.05243302, %v10669_v31 }
 0x78e   : > { %v10729_v27 = vmul.f32 %v13675_v49, %v10728_v2  ;;  %v10681_v7 = vadd.f32 0.112945676, %v10680_v44  ;;  %v11971_v6 = vmul.f32 2.1237322e-06, %v19889_v12  ;;  %v11982_v51 = vmul.f32 3.8918573e-05, %v19889_v12  ;;  %vm10733_vm13 = vmor %vm10731_vm9, %vm10732_vm12 }
 0x78f   : > { %v10738_v34 = vor.u32 1.1754944e-38, %v10737_v39  ;;  %13676 = vrcp.f32 %v19891_v45  ;;  %v12347_v43 = vmul.f32 0.5, %v9542_v25  ;;  %v9545_v3 = vadd.f32 %v17701_v23, %v9467_v28 }
 0x790   : > { %v10730_v10 = vadd.f32 %v13675_v49, %v10729_v27  ;;  %v10671_v32 = vmul.f32 %v10670_v58, %v19845_v36  ;;  %v10682_v30 = vmul.f32 %v10681_v7, %v19845_v36  ;;  %v13498_v35 = vclamps-f32 %v10620_v29, 1.0  ;;  %v21065_v29 = vld [vmem:[#allocation97_spill] sm:$0xff] }
 0x791   : > { %v10715_v33 = vmul.f32 %v10714_v19, %v19757_v47  ;;  %v12020_v55 = vadd.f32 1.1283791, %v12019_v22  ;;  %v11972_v15 = vadd.f32 0.00028619796, %v11971_v6  ;;  %v11983_v56 = vadd.f32 0.001143296, %v11982_v51 }
 0x792   : > { %v10734_v52 = vsel %vm10733_vm13, %v13675_v49, %v10730_v10  ;;  %v10672_v53 = vadd.f32 0.18741608, %v10671_v32  ;;  %v10683_v25 = vadd.f32 0.4994258, %v10682_v30  ;;  %v10928_v54 = vadd.f32 1.0, %v13498_v35 }
 0x793   : > { %v10739_v26 = vsel %vm19877_vm11, %v10738_v34, %v10734_v52  ;;  %v11973_v20 = vmul.f32 %v11972_v15, %v19889_v12  ;;  %v11984_v24 = vmul.f32 %v11983_v56, %v19889_v12  ;;  %v19907_v47 = vmul.f32 0.70710677, %v9545_v3  ;;  %v9354_v34 = vpop.f32.mrf.mxu2 }
 0x794   : > { %v12041_v50 = vand.u32 2147483647, %v19891_v45  ;;  %v12043_v19 = vand.u32 2147483648, %v19891_v45  ;;  %v10684_v5 = vmul.f32 %v10683_v25, %v19845_v36  ;;  %v12380_v1 = vmul.f32 %v12347_v43, %v10928_v54 }
 0x795   : > { %v13677_v11 = vpop.eup %13676  ;;  %v10740_v17 = vmul.f32 %v10739_v26, %v10715_v33  ;;  %v11974_v61 = vadd.f32 0.0036580483, %v11973_v20  ;;  %v11985_v9 = vadd.f32 0.014752088, %v11984_v24  ;;  %v12089_v13 = vmul.f32 %v19907_v47, %v19907_v47 }
 0x796   : > { %v19915_v21 = vmul.f32 0.5, %v19670_v48  ;;  %v12021_v28 = vmul.f32 %v12020_v55, %v19782_v63  ;;  %v12033_v49 = vmul.f32 %v13677_v11, %v19891_v45  ;;  %v19919_v4 = vadd.f32 1.0, %v10684_v5  ;;  %12413 = vst [vmem:[%s17918_s30 + $0xc8] sm:$0xff] %v12380_v1  ;;  %v9288_v63 = vpop.f32.mrf.mxu3 }
 0x797   : > { %v10673_v39 = vmul.f32 %v10672_v53, %v19845_v36  ;;  %v11975_v46 = vmul.f32 %v11974_v61, %v19889_v12  ;;  %v11986_v16 = vmul.f32 %v11985_v9, %v19889_v12  ;;  %v19925_v42 = vmin.f32 %v12089_v13, 16.0  ;;  %v21066_v53 = vld [vmem:[#allocation57_spill] sm:$0xff] }
 0x798   : > { %v12034_v38 = vsub.f32 1.0, %v12033_v49  ;;  %vm12037_vm14 = vweird.f32 %v19891_v45  ;;  %vm19928_vm15 = vcmp.eq.f32.partialorder %v12041_v50, 8.507059e+37  ;;  %13678 = vrcp.f32 %v19919_v4 }
 0x799   : > { %vm12038_vm0 = vweird.f32 %v13677_v11  ;;  %v12044_v62 = vor.u32 1.1754944e-38, %v12043_v19  ;;  %v11976_v0 = vadd.f32 0.05243302, %v11975_v46  ;;  %v13501_v36 = vclamps-f32 %v10740_v17, 1.0  ;;  %v9331_v46 = vpop.f32.mrf.mxu1 }
 0x79a   : > { %v12035_v57 = vmul.f32 %v13677_v11, %v12034_v38  ;;  %v11987_v22 = vadd.f32 0.112945676, %v11986_v16  ;;  %v12091_v41 = vmul.f32 2.1237322e-06, %v19925_v42  ;;  %v12102_v31 = vmul.f32 3.8918573e-05, %v19925_v42  ;;  %vm12039_vm1 = vmor %vm12037_vm14, %vm12038_vm0 }
 0x79b   : > { %v10674_v14 = vadd.f32 1.1283791, %v10673_v39  ;;  %v11977_v2 = vmul.f32 %v11976_v0, %v19889_v12  ;;  %v12350_v44 = vmul.f32 0.5, %v9545_v3  ;;  %v9466_v58 = vadd.f32 %v9288_v63, %v21065_v29 }
 0x79c   : > { %v12036_v27 = vadd.f32 %v13677_v11, %v12035_v57  ;;  %v11988_v7 = vmul.f32 %v11987_v22, %v19889_v12  ;;  %v12092_v6 = vadd.f32 0.00028619796, %v12091_v41  ;;  %v12103_v51 = vadd.f32 0.001143296, %v12102_v31  ;;  %v21069_v41 = vld [vmem:[#allocation78_spill] sm:$0xff] }
 0x79d   : > { %v10695_v43 = vand.u32 2147483647, %v19919_v4  ;;  %v11978_v10 = vadd.f32 0.18741608, %v11977_v2  ;;  %v10931_v32 = vadd.f32 1.0, %v13501_v36  ;;  %v9544_v30 = vadd.f32 %v17701_v23, %v9466_v58 }
 0x79e   : > { %v13679_v35 = vpop.eup %13678  ;;  %v12040_v3 = vsel %vm12039_vm1, %v13677_v11, %v12036_v27  ;;  %v11989_v33 = vadd.f32 0.4994258, %v11988_v7  ;;  %v12093_v55 = vmul.f32 %v12092_v6, %v19925_v42  ;;  %v12104_v15 = vmul.f32 %v12103_v51, %v19925_v42 }
 0x79f   : > { %v12045_v56 = vsel %vm19928_vm15, %v12044_v62, %v12040_v3  ;;  %v10687_v52 = vmul.f32 %v13679_v35, %v19919_v4  ;;  %v10697_v45 = vand.u32 2147483648, %v19919_v4  ;;  %v9436_v25 = vadd.f32 %v9354_v34, %v21066_v53 }
 0x7a0   : > { %v12046_v54 = vmul.f32 %v12045_v56, %v12021_v28  ;;  %v11990_v26 = vmul.f32 %v11989_v33, %v19889_v12  ;;  %v12094_v20 = vadd.f32 0.0036580483, %v12093_v55  ;;  %v12105_v24 = vadd.f32 0.014752088, %v12104_v15 }
 0x7a1   : > { %v10688_v50 = vsub.f32 1.0, %v10687_v52  ;;  %v11979_v19 = vmul.f32 %v11978_v10, %v19889_v12  ;;  %v12383_v5 = vmul.f32 %v12350_v44, %v10931_v32  ;;  %v19952_v1 = vmul.f32 0.70710677, %v9544_v30 }
 0x7a2   : > { %v13532_v11 = vclamps-f32 %v12046_v54, 1.0  ;;  %v19954_v17 = vadd.f32 1.0, %v11990_v26  ;;  %v12095_v61 = vmul.f32 %v12094_v20, %v19925_v42  ;;  %v12106_v9 = vmul.f32 %v12105_v24, %v19925_v42  ;;  %v9400_v24 = vpop.f32.mrf.mxu0 }
 0x7a3   : > { %v10675_v13 = vmul.f32 %v10674_v14, %v19829_v40  ;;  %v10689_v28 = vmul.f32 %v13679_v35, %v10688_v50  ;;  %vm10692_vm2 = vweird.f32 %v13679_v35  ;;  %12416 = vst [vmem:[%s17918_s30 + $0xe0] sm:$0xff] %v12383_v5  ;;  %v12049_v49 = vmul.f32 %v19952_v1, %v19952_v1 }
 0x7a4   : > { %v12315_v39 = vadd.f32 1.0, %v13532_v11  ;;  %vm10691_vm3 = vweird.f32 %v19919_v4  ;;  %vm19963_vm4 = vcmp.eq.f32.partialorder %v10695_v43, 8.507059e+37  ;;  %13680 = vrcp.f32 %v19954_v17 }
 0x7a5   : > { %v10690_v16 = vadd.f32 %v13679_v35, %v10689_v28  ;;  %v10698_v38 = vor.u32 1.1754944e-38, %v10697_v45  ;;  %v12096_v40 = vadd.f32 0.05243302, %v12095_v61  ;;  %v12107_v48 = vadd.f32 0.112945676, %v12106_v9  ;;  %vm10693_vm5 = vmor %vm10691_vm3, %vm10692_vm2 }
 0x7a6   : > { %v12480_v63 = vmul.f32 %v19915_v21, %v12315_v39  ;;  %v11980_v62 = vadd.f32 1.1283791, %v11979_v19  ;;  %v19969_v0 = vmin.f32 %v12049_v49, 16.0  ;;  %v19972_v4 = vadd.f32 %v17670_v37, %v9436_v25 }
 0x7a7   : > { %v10694_v36 = vsel %vm10693_vm5, %v13679_v35, %v10690_v16  ;;  %v12097_v57 = vmul.f32 %v12096_v40, %v19925_v42  ;;  %v12108_v22 = vmul.f32 %v12107_v48, %v19925_v42  ;;  %v9435_v31 = vadd.f32 %v9331_v46, %v21069_v41  ;;  %v21072_v46 = vld [vmem:[#allocation104_spill] sm:$0xff] }
 0x7a8   : > { %v19978_v14 = vmul.f32 0.5, %v19705_v8  ;;  %12513 = vst [vmem:[%s17918_s30 + $0x1d8] sm:$0xff] %v12480_v63  ;;  %v10699_v21 = vsel %vm19963_vm4, %v10698_v38, %v10694_v36  ;;  %v12051_v2 = vmul.f32 2.1237322e-06, %v19969_v0  ;;  %v12062_v44 = vmul.f32 3.8918573e-05, %v19969_v0 }
 0x7a9   : > { %v10700_v29 = vmul.f32 %v10699_v21, %v10675_v13  ;;  %v12109_v58 = vadd.f32 0.4994258, %v12108_v22  ;;  %v12349_v27 = vmul.f32 0.5, %v9544_v30  ;;  %v19986_v7 = vmul.f32 0.70710677, %v19972_v4 }
 0x7aa   : > { %v13681_v6 = vpop.eup %13680  ;;  %v11981_v51 = vmul.f32 %v11980_v62, %v19869_v18  ;;  %v12001_v8 = vand.u32 2147483647, %v19954_v17  ;;  %v12052_v34 = vadd.f32 0.00028619796, %v12051_v2  ;;  %v12063_v43 = vadd.f32 0.001143296, %v12062_v44 }
 0x7ab   : > { %v11993_v10 = vmul.f32 %v13681_v6, %v19954_v17  ;;  %v12098_v32 = vadd.f32 0.18741608, %v12097_v57  ;;  %v12110_v35 = vmul.f32 %v12109_v58, %v19925_v42  ;;  %v19993_v3 = vadd.f32 %v17670_v37, %v9435_v31 }
 0x7ac   : > { %v13500_v33 = vclamps-f32 %v10700_v29, 1.0  ;;  %v12053_v30 = vmul.f32 %v12052_v34, %v19969_v0  ;;  %v12064_v55 = vmul.f32 %v12063_v43, %v19969_v0  ;;  %v10783_v18 = vmul.f32 %v19986_v7, %v19986_v7 }
 0x7ad   : > { %v11994_v15 = vsub.f32 1.0, %v11993_v10  ;;  %vm11997_vm6 = vweird.f32 %v19954_v17  ;;  %v12003_v56 = vand.u32 2147483648, %v19954_v17  ;;  %v20001_v52 = vadd.f32 1.0, %v12110_v35 }
 0x7ae   : > { %v10930_v45 = vadd.f32 1.0, %v13500_v33  ;;  %v12054_v53 = vadd.f32 0.0036580483, %v12053_v30  ;;  %v12065_v25 = vadd.f32 0.014752088, %v12064_v55  ;;  %v20003_v54 = vmin.f32 %v10783_v18, 16.0 }
 0x7af   : > { %v11995_v26 = vmul.f32 %v13681_v6, %v11994_v15  ;;  %vm11998_vm7 = vweird.f32 %v13681_v6  ;;  %13682 = vrcp.f32 %v20001_v52  ;;  %v20007_v20 = vmul.f32 0.70710677, %v19993_v3 }
 0x7b0   : > { %vm20009_vm8 = vcmp.eq.f32.partialorder %v12001_v8, 8.507059e+37  ;;  %v12099_v19 = vmul.f32 %v12098_v32, %v19925_v42  ;;  %v12055_v5 = vmul.f32 %v12054_v53, %v19969_v0  ;;  %v12066_v11 = vmul.f32 %v12065_v25, %v19969_v0  ;;  %vm11999_vm9 = vmor %vm11997_vm6, %vm11998_vm7 }
 0x7b1   : > { %v11996_v61 = vadd.f32 %v13681_v6, %v11995_v26  ;;  %v12382_v9 = vmul.f32 %v12349_v27, %v10930_v45  ;;  %v10785_v13 = vmul.f32 2.1237322e-06, %v20003_v54  ;;  %v10796_v28 = vmul.f32 3.8918573e-05, %v20003_v54 }
 0x7b2   : > { %v12004_v49 = vor.u32 1.1754944e-38, %v12003_v56  ;;  %v12056_v39 = vadd.f32 0.05243302, %v12055_v5  ;;  %v12067_v12 = vadd.f32 0.112945676, %v12066_v11  ;;  %v9438_v16 = vadd.f32 %v9400_v24, %v21072_v46 }
 0x7b3   : > { %v12000_v38 = vsel %vm11999_vm9, %v13681_v6, %v11996_v61  ;;  %12415 = vst [vmem:[%s17918_s30 + $0xd8] sm:$0xff] %v12382_v9  ;;  %v10786_v42 = vadd.f32 0.00028619796, %v10785_v13  ;;  %v10797_v40 = vadd.f32 0.001143296, %v10796_v28  ;;  %v10743_v48 = vmul.f32 %v20007_v20, %v20007_v20 }
 0x7b4   : > { %v12005_v63 = vsel %vm20009_vm8, %v12004_v49, %v12000_v38  ;;  %v12100_v62 = vadd.f32 1.1283791, %v12099_v19  ;;  %v12057_v36 = vmul.f32 %v12056_v39, %v19969_v0  ;;  %v12068_v17 = vmul.f32 %v12067_v12, %v19969_v0 }
 0x7b5   : > { %v13683_v57 = vpop.eup %13682  ;;  %v12006_v22 = vmul.f32 %v12005_v63, %v11981_v51  ;;  %v10787_v41 = vmul.f32 %v10786_v42, %v20003_v54  ;;  %v10798_v31 = vmul.f32 %v10797_v40, %v20003_v54  ;;  %v20030_v21 = vmin.f32 %v10743_v48, 16.0 }
 0x7b6   : > { %v12113_v2 = vmul.f32 %v13683_v57, %v20001_v52  ;;  %v12121_v44 = vand.u32 2147483647, %v20001_v52  ;;  %v12123_v29 = vand.u32 2147483648, %v20001_v52  ;;  %v12069_v58 = vadd.f32 0.4994258, %v12068_v17 }
 0x7b7   : > { %v13531_v27 = vclamps-f32 %v12006_v22, 1.0  ;;  %vm12118_vm10 = vweird.f32 %v13683_v57  ;;  %v10788_v6 = vadd.f32 0.0036580483, %v10787_v41  ;;  %v10799_v8 = vadd.f32 0.014752088, %v10798_v31 }
 0x7b8   : > { %v12114_v34 = vsub.f32 1.0, %v12113_v2  ;;  %v12058_v43 = vadd.f32 0.18741608, %v12057_v36  ;;  %v12070_v51 = vmul.f32 %v12069_v58, %v19969_v0  ;;  %v10745_v10 = vmul.f32 2.1237322e-06, %v20030_v21 }
 0x7b9   : > { %v12314_v32 = vadd.f32 1.0, %v13531_v27  ;;  %v10789_v35 = vmul.f32 %v10788_v6, %v20003_v54  ;;  %v10800_v33 = vmul.f32 %v10799_v8, %v20003_v54  ;;  %v10756_v30 = vmul.f32 3.8918573e-05, %v20030_v21 }
 0x7ba   : > { %v12115_v55 = vmul.f32 %v13683_v57, %v12114_v34  ;;  %v20040_v18 = vadd.f32 1.0, %v12070_v51  ;;  %v10746_v15 = vadd.f32 0.00028619796, %v10745_v10  ;;  %v20043_v56 = vadd.f32 %v17670_v37, %v9438_v16 }
 0x7bb   : > { %v12479_v45 = vmul.f32 %v19978_v14, %v12314_v32  ;;  %v10790_v53 = vadd.f32 0.05243302, %v10789_v35  ;;  %v10801_v25 = vadd.f32 0.112945676, %v10800_v33  ;;  %v10757_v26 = vadd.f32 0.001143296, %v10756_v30 }
 0x7bc   : > { %v12101_v24 = vmul.f32 %v12100_v62, %v19907_v47  ;;  %v12116_v50 = vadd.f32 %v13683_v57, %v12115_v55  ;;  %vm12117_vm11 = vweird.f32 %v20001_v52  ;;  %13684 = vrcp.f32 %v20040_v18 }
 0x7bd   : > { %12512 = vst [vmem:[%s17918_s30 + $0x1d0] sm:$0xff] %v12479_v45  ;;  %vm12119_vm12 = vmor %vm12117_vm11, %vm12118_vm10  ;;  %vm12122_vm13 = vcmp.eq.f32.partialorder %v12121_v44, 8.507059e+37  ;;  %v12124_v19 = vor.u32 1.1754944e-38, %v12123_v29  ;;  %v12059_v5 = vmul.f32 %v12058_v43, %v19969_v0  ;;  %v10802_v11 = vmul.f32 %v10801_v25, %v20003_v54  ;;  %v9357_v0 = vpop.f32.mrf.mxu2 }
 0x7be   : > { %v12120_v14 = vsel %vm12119_vm12, %v13683_v57, %v12116_v50  ;;  %v10747_v61 = vmul.f32 %v10746_v15, %v20030_v21  ;;  %v10758_v9 = vmul.f32 %v10757_v26, %v20030_v21  ;;  %v20056_v47 = vmul.f32 0.70710677, %v20043_v56 }
 0x7bf   : > { %v12449_v52 = vmul.f32 0.5, %v19745_v59  ;;  %v12125_v13 = vsel %vm12122_vm13, %v12124_v19, %v12120_v14  ;;  %v10791_v28 = vmul.f32 %v10790_v53, %v20003_v54  ;;  %v10803_v39 = vadd.f32 0.4994258, %v10802_v11 }
 0x7c0   : > { %v12126_v49 = vmul.f32 %v12125_v13, %v12101_v24  ;;  %v10748_v12 = vadd.f32 0.0036580483, %v10747_v61  ;;  %v10759_v46 = vadd.f32 0.014752088, %v10758_v9  ;;  %v20061_v16 = vmul.f32 0.5, %v19813_v60  ;;  %v21073_v60 = vld [vmem:[#allocation7_spill] sm:$0xff] }
 0x7c1   : > { %v12060_v38 = vadd.f32 1.1283791, %v12059_v5  ;;  %v12081_v42 = vand.u32 2147483647, %v20040_v18  ;;  %v10863_v40 = vmul.f32 %v20056_v47, %v20056_v47  ;;  %v10804_v59 = vmul.f32 %v10803_v39, %v20003_v54  ;;  %v21076_v61 = vld [vmem:[#allocation2_spill] sm:$0xff] }
 0x7c2   : > { %v13685_v48 = vpop.eup %13684  ;;  %v13534_v63 = vclamps-f32 %v12126_v49, 1.0  ;;  %v10749_v62 = vmul.f32 %v10748_v12, %v20030_v21  ;;  %v10760_v36 = vmul.f32 %v10759_v46, %v20030_v21  ;;  %v10792_v57 = vadd.f32 0.18741608, %v10791_v28 }
 0x7c3   : > { %v12073_v17 = vmul.f32 %v13685_v48, %v20040_v18  ;;  %v20070_v22 = vmin.f32 %v10863_v40, 16.0  ;;  %v9469_v41 = vadd.f32 %v9357_v0, %v21073_v60  ;;  %v20073_v2 = vadd.f32 1.0, %v10804_v59 }
 0x7c4   : > { %v12317_v31 = vadd.f32 1.0, %v13534_v63  ;;  %v10750_v44 = vadd.f32 0.05243302, %v10749_v62  ;;  %v10761_v29 = vadd.f32 0.112945676, %v10760_v36  ;;  %v12083_v27 = vand.u32 2147483648, %v20040_v18 }
 0x7c5   : > { %v12074_v58 = vsub.f32 1.0, %v12073_v17  ;;  %v10865_v6 = vmul.f32 2.1237322e-06, %v20070_v22  ;;  %v10876_v8 = vmul.f32 3.8918573e-05, %v20070_v22  ;;  %v12061_v43 = vmul.f32 %v12060_v38, %v19952_v1  ;;  %v9377_v1 = vpop.f32.mrf.mxu3 }
 0x7c6   : > { %v12482_v34 = vmul.f32 %v12449_v52, %v12317_v31  ;;  %vm12077_vm14 = vweird.f32 %v20040_v18  ;;  %13686 = vrcp.f32 %v20073_v2  ;;  %vm12078_vm15 = vweird.f32 %v13685_v48 }
 0x7c7   : > { %v12075_v51 = vmul.f32 %v13685_v48, %v12074_v58  ;;  %v10751_v10 = vmul.f32 %v10750_v44, %v20030_v21  ;;  %v10762_v32 = vmul.f32 %v10761_v29, %v20030_v21  ;;  %vm20084_vm0 = vcmp.eq.f32.partialorder %v12081_v42, 8.507059e+37  ;;  %vm12079_vm1 = vmor %vm12077_vm14, %vm12078_vm15 }
 0x7c8   : > { %12515 = vst [vmem:[%s17918_s30 + $0x1e8] sm:$0xff] %v12482_v34  ;;  %v10866_v33 = vadd.f32 0.00028619796, %v10865_v6  ;;  %v10877_v30 = vadd.f32 0.001143296, %v10876_v8  ;;  %v9547_v55 = vadd.f32 %v17701_v23, %v9469_v41  ;;  %v12084_v45 = vor.u32 1.1754944e-38, %v12083_v27 }
 0x7c9   : > { %v12076_v15 = vadd.f32 %v13685_v48, %v12075_v51  ;;  %v10793_v53 = vmul.f32 %v10792_v57, %v20003_v54  ;;  %v10763_v25 = vadd.f32 0.4994258, %v10762_v32  ;;  %v10815_v26 = vand.u32 2147483647, %v20073_v2 }
 0x7ca   : > { %v10867_v24 = vmul.f32 %v10866_v33, %v20070_v22  ;;  %v10878_v50 = vmul.f32 %v10877_v30, %v20070_v22  ;;  %v20095_v19 = vmul.f32 0.70710677, %v9547_v55  ;;  %v10752_v11 = vadd.f32 0.18741608, %v10751_v10  ;;  %v9334_v10 = vpop.f32.mrf.mxu1 }
 0x7cb   : > { %v12080_v5 = vsel %vm12079_vm1, %v13685_v48, %v12076_v15  ;;  %v10764_v14 = vmul.f32 %v10763_v25, %v20030_v21  ;;  %v9437_v9 = vadd.f32 %v9377_v1, %v21076_v61  ;;  %v10794_v39 = vadd.f32 1.1283791, %v10793_v53  ;;  %v21079_v25 = vld [vmem:[#allocation103_spill] sm:$0xff] }
 0x7cc   : > { %v13687_v52 = vpop.eup %13686  ;;  %v12085_v54 = vsel %vm20084_vm0, %v12084_v45, %v12080_v5  ;;  %v10868_v18 = vadd.f32 0.0036580483, %v10867_v24  ;;  %v10879_v13 = vadd.f32 0.014752088, %v10878_v50  ;;  %v12169_v28 = vmul.f32 %v20095_v19, %v20095_v19 }
 0x7cd   : > { %v12086_v49 = vmul.f32 %v12085_v54, %v12061_v43  ;;  %v10807_v12 = vmul.f32 %v13687_v52, %v20073_v2  ;;  %v10817_v46 = vand.u32 2147483648, %v20073_v2  ;;  %v20105_v0 = vadd.f32 1.0, %v10764_v14 }
 0x7ce   : > { %v10869_v38 = vmul.f32 %v10868_v18, %v20070_v22  ;;  %v10880_v42 = vmul.f32 %v10879_v13, %v20070_v22  ;;  %v20109_v40 = vmin.f32 %v12169_v28, 16.0  ;;  %vm10811_vm2 = vweird.f32 %v20073_v2 }
 0x7cf   : > { %v13533_v48 = vclamps-f32 %v12086_v49, 1.0  ;;  %v10808_v63 = vsub.f32 1.0, %v10807_v12  ;;  %v10753_v59 = vmul.f32 %v10752_v11, %v20030_v21  ;;  %vm10812_vm3 = vweird.f32 %v13687_v52 }
 0x7d0   : > { %vm20113_vm4 = vcmp.eq.f32.partialorder %v10815_v26, 8.507059e+37  ;;  %13688 = vrcp.f32 %v20105_v0  ;;  %v20119_v36 = vadd.f32 %v17670_v37, %v9437_v9  ;;  %v10870_v60 = vadd.f32 0.05243302, %v10869_v38  ;;  %vm10813_vm5 = vmor %vm10811_vm2, %vm10812_vm3 }
 0x7d1   : > { %v12316_v17 = vadd.f32 1.0, %v13533_v48  ;;  %v10809_v57 = vmul.f32 %v13687_v52, %v10808_v63  ;;  %v10881_v41 = vadd.f32 0.112945676, %v10880_v42  ;;  %v10818_v31 = vor.u32 1.1754944e-38, %v10817_v46 }
 0x7d2   : > { %v12171_v44 = vmul.f32 2.1237322e-06, %v20109_v40  ;;  %v12182_v21 = vmul.f32 3.8918573e-05, %v20109_v40  ;;  %v12352_v29 = vmul.f32 0.5, %v9547_v55  ;;  %v10795_v37 = vmul.f32 %v10794_v39, %v19986_v7 }
 0x7d3   : > { %v12481_v58 = vmul.f32 %v20061_v16, %v12316_v17  ;;  %v10810_v27 = vadd.f32 %v13687_v52, %v10809_v57  ;;  %v10754_v6 = vadd.f32 1.1283791, %v10753_v59  ;;  %v10882_v8 = vmul.f32 %v10881_v41, %v20070_v22 }
 0x7d4   : > { %v12172_v34 = vadd.f32 0.00028619796, %v12171_v44  ;;  %v12183_v43 = vadd.f32 0.001143296, %v12182_v21  ;;  %v20130_v51 = vmul.f32 0.70710677, %v20119_v36  ;;  %v10871_v35 = vmul.f32 %v10870_v60, %v20070_v22 }
 0x7d5   : > { %12514 = vst [vmem:[%s17918_s30 + $0x1e0] sm:$0xff] %v12481_v58  ;;  %v10814_v32 = vsel %vm10813_vm5, %v13687_v52, %v10810_v27  ;;  %v10775_v16 = vand.u32 2147483647, %v20105_v0  ;;  %v10883_v33 = vadd.f32 0.4994258, %v10882_v8  ;;  %v10777_v53 = vand.u32 2147483648, %v20105_v0 }
 0x7d6   : > { %v13689_v30 = vpop.eup %13688  ;;  %v10819_v7 = vsel %vm20113_vm4, %v10818_v31, %v10814_v32  ;;  %v12173_v2 = vmul.f32 %v12172_v34, %v20109_v40  ;;  %v12184_v55 = vmul.f32 %v12183_v43, %v20109_v40  ;;  %v10823_v1 = vmul.f32 %v20130_v51, %v20130_v51  ;;  %v21080_v34 = vld [vmem:[#allocation80_spill] sm:$0xff] }
 0x7d7   : > { %v10820_v15 = vmul.f32 %v10819_v7, %v10795_v37  ;;  %v10767_v45 = vmul.f32 %v13689_v30, %v20105_v0  ;;  %v9468_v26 = vadd.f32 %v9334_v10, %v21079_v25  ;;  %v10884_v24 = vmul.f32 %v10883_v33, %v20070_v22 }
 0x7d8   : > { %v12174_v50 = vadd.f32 0.0036580483, %v12173_v2  ;;  %v12185_v5 = vadd.f32 0.014752088, %v12184_v55  ;;  %v20145_v11 = vmin.f32 %v10823_v1, 16.0  ;;  %vm10772_vm6 = vweird.f32 %v13689_v30 }
 0x7d9   : > { %v10768_v14 = vsub.f32 1.0, %v10767_v45  ;;  %v10872_v61 = vadd.f32 0.18741608, %v10871_v35  ;;  %v13503_v9 = vclamps-f32 %v10820_v15, 1.0  ;;  %v20147_v52 = vadd.f32 1.0, %v10884_v24 }
 0x7da   : > { %v12175_v54 = vmul.f32 %v12174_v50, %v20109_v40  ;;  %v12186_v18 = vmul.f32 %v12185_v5, %v20109_v40  ;;  %v10825_v13 = vmul.f32 2.1237322e-06, %v20145_v11  ;;  %v10836_v39 = vmul.f32 3.8918573e-05, %v20145_v11 }
 0x7db   : > { %v10769_v28 = vmul.f32 %v13689_v30, %v10768_v14  ;;  %v10933_v49 = vadd.f32 1.0, %v13503_v9  ;;  %v20154_v12 = vadd.f32 %v17701_v23, %v9468_v26  ;;  %v10755_v46 = vmul.f32 %v10754_v6, %v20007_v20 }
 0x7dc   : > { %vm10771_vm7 = vweird.f32 %v20105_v0  ;;  %13690 = vrcp.f32 %v20147_v52  ;;  %v12176_v42 = vadd.f32 0.05243302, %v12175_v54  ;;  %v12187_v48 = vadd.f32 0.112945676, %v12186_v18  ;;  %v9403_v0 = vpop.f32.mrf.mxu0 }
 0x7dd   : > { %v10770_v38 = vadd.f32 %v13689_v30, %v10769_v28  ;;  %v12385_v63 = vmul.f32 %v12352_v29, %v10933_v49  ;;  %vm10773_vm8 = vmor %vm10771_vm7, %vm10772_vm6  ;;  %vm10776_vm9 = vcmp.eq.f32.partialorder %v10775_v16, 8.507059e+37  ;;  %v10778_v59 = vor.u32 1.1754944e-38, %v10777_v53 }
 0x7de   : > { %v10826_v62 = vadd.f32 0.00028619796, %v10825_v13  ;;  %v10837_v17 = vadd.f32 0.001143296, %v10836_v39  ;;  %v10873_v60 = vmul.f32 %v10872_v61, %v20070_v22  ;;  %v12188_v41 = vmul.f32 %v12187_v48, %v20109_v40  ;;  %v9380_v13 = vpop.f32.mrf.mxu3 }
 0x7df   : > { %v10774_v57 = vsel %vm10773_vm8, %v13689_v30, %v10770_v38  ;;  %12418 = vst [vmem:[%s17918_s30 + $0xf0] sm:$0xff] %v12385_v63  ;;  %v20164_v20 = vmul.f32 0.70710677, %v20154_v12  ;;  %v12177_v44 = vmul.f32 %v12176_v42, %v20109_v40  ;;  %v9471_v43 = vadd.f32 %v9403_v0, %v21080_v34 }
 0x7e0   : > { %v10779_v31 = vsel %vm10776_vm9, %v10778_v59, %v10774_v57  ;;  %v10827_v21 = vmul.f32 %v10826_v62, %v20145_v11  ;;  %v10838_v29 = vmul.f32 %v10837_v17, %v20145_v11  ;;  %v12189_v58 = vadd.f32 0.4994258, %v12188_v41  ;;  %v21083_v62 = vld [vmem:[#allocation6_spill] sm:$0xff] }
 0x7e1   : > { %v12129_v27 = vmul.f32 %v20164_v20, %v20164_v20  ;;  %v10780_v22 = vmul.f32 %v10779_v31, %v10755_v46  ;;  %v20173_v10 = vmul.f32 0.5, %v19972_v4  ;;  %v10874_v32 = vadd.f32 1.1283791, %v10873_v60 }
 0x7e2   : > { %v13691_v6 = vpop.eup %13690  ;;  %v10828_v8 = vadd.f32 0.0036580483, %v10827_v21  ;;  %v10839_v37 = vadd.f32 0.014752088, %v10838_v29  ;;  %v12190_v35 = vmul.f32 %v12189_v58, %v20109_v40  ;;  %v10895_v33 = vand.u32 2147483647, %v20147_v52 }
 0x7e3   : > { %v10887_v16 = vmul.f32 %v13691_v6, %v20147_v52  ;;  %v12178_v30 = vadd.f32 0.18741608, %v12177_v44  ;;  %v20182_v15 = vmin.f32 %v12129_v27, 16.0  ;;  %v20185_v4 = vadd.f32 %v17701_v23, %v9471_v43 }
 0x7e4   : > { %v10829_v7 = vmul.f32 %v10828_v8, %v20145_v11  ;;  %v10840_v2 = vmul.f32 %v10839_v37, %v20145_v11  ;;  %v20180_v1 = vadd.f32 1.0, %v12190_v35  ;;  %v10897_v45 = vand.u32 2147483648, %v20147_v52 }
 0x7e5   : > { %v10888_v55 = vsub.f32 1.0, %v10887_v16  ;;  %v13502_v26 = vclamps-f32 %v10780_v22, 1.0  ;;  %v10875_v24 = vmul.f32 %v10874_v32, %v20056_v47  ;;  %vm10892_vm10 = vweird.f32 %v13691_v6 }
 0x7e6   : > { %v10830_v53 = vadd.f32 0.05243302, %v10829_v7  ;;  %v10841_v25 = vadd.f32 0.112945676, %v10840_v2  ;;  %13692 = vrcp.f32 %v20180_v1  ;;  %vm10891_vm11 = vweird.f32 %v20147_v52 }
 0x7e7   : > { %v10889_v50 = vmul.f32 %v13691_v6, %v10888_v55  ;;  %vm20191_vm12 = vcmp.eq.f32.partialorder %v10895_v33, 8.507059e+37  ;;  %v12179_v14 = vmul.f32 %v12178_v30, %v20109_v40  ;;  %v12131_v54 = vmul.f32 2.1237322e-06, %v20182_v15  ;;  %vm10893_vm13 = vmor %vm10891_vm11, %vm10892_vm10 }
 0x7e8   : > { %v10842_v61 = vmul.f32 %v10841_v25, %v20145_v11  ;;  %v12142_v18 = vmul.f32 3.8918573e-05, %v20182_v15  ;;  %v20200_v47 = vmul.f32 0.70710677, %v20185_v4  ;;  %v10898_v28 = vor.u32 1.1754944e-38, %v10897_v45 }
 0x7e9   : > { %v10890_v9 = vadd.f32 %v13691_v6, %v10889_v50  ;;  %v10831_v52 = vmul.f32 %v10830_v53, %v20145_v11  ;;  %v10932_v39 = vadd.f32 1.0, %v13502_v26  ;;  %v12132_v38 = vadd.f32 0.00028619796, %v12131_v54 }
 0x7ea   : > { %v10843_v49 = vadd.f32 0.4994258, %v10842_v61  ;;  %v12143_v40 = vadd.f32 0.001143296, %v12142_v18  ;;  %v12249_v42 = vmul.f32 %v20200_v47, %v20200_v47  ;;  %v12180_v63 = vadd.f32 1.1283791, %v12179_v14 }
 0x7eb   : > { %v10894_v46 = vsel %vm10893_vm13, %v13691_v6, %v10890_v9  ;;  %v9470_v17 = vadd.f32 %v9380_v13, %v21083_v62  ;;  %v12133_v41 = vmul.f32 %v12132_v38, %v20182_v15  ;;  %v12351_v31 = vmul.f32 0.5, %v20154_v12 }
 0x7ec   : > { %v10899_v48 = vsel %vm20191_vm12, %v10898_v28, %v10894_v46  ;;  %v10844_v59 = vmul.f32 %v10843_v49, %v20145_v11  ;;  %v13693_v57 = vpop.eup %13692  ;;  %v12144_v0 = vmul.f32 %v12143_v40, %v20182_v15  ;;  %v12201_v21 = vand.u32 2147483647, %v20180_v1 }
 0x7ed   : > { %v10900_v60 = vmul.f32 %v10899_v48, %v10875_v24  ;;  %v12193_v44 = vmul.f32 %v13693_v57, %v20180_v1  ;;  %v20216_v58 = vmin.f32 %v12249_v42, 16.0  ;;  %v10832_v27 = vadd.f32 0.18741608, %v10831_v52 }
 0x7ee   : > { %v20214_v29 = vadd.f32 1.0, %v10844_v59  ;;  %v12134_v6 = vadd.f32 0.0036580483, %v12133_v41  ;;  %v12145_v22 = vadd.f32 0.014752088, %v12144_v0  ;;  %v12384_v8 = vmul.f32 %v12351_v31, %v10932_v39 }
 0x7ef   : > { %v12181_v37 = vmul.f32 %v12180_v63, %v20095_v19  ;;  %v12194_v34 = vsub.f32 1.0, %v12193_v44  ;;  %v20221_v12 = vadd.f32 %v17701_v23, %v9470_v17  ;;  %vm12197_vm14 = vweird.f32 %v20180_v1 }
 0x7f0   : > { %13694 = vrcp.f32 %v20214_v29  ;;  %v12203_v43 = vand.u32 2147483648, %v20180_v1  ;;  %v12146_v32 = vmul.f32 %v12145_v22, %v20182_v15  ;;  %12417 = vst [vmem:[%s17918_s30 + $0xe8] sm:$0xff] %v12384_v8  ;;  %v13505_v16 = vclamps-f32 %v10900_v60, 1.0 }
 0x7f1   : > { %v12195_v35 = vmul.f32 %v13693_v57, %v12194_v34  ;;  %vm12198_vm15 = vweird.f32 %v13693_v57  ;;  %v12251_v33 = vmul.f32 2.1237322e-06, %v20216_v58  ;;  %v12262_v19 = vmul.f32 3.8918573e-05, %v20216_v58 }
 0x7f2   : > { %vm20229_vm0 = vcmp.eq.f32.partialorder %v12201_v21, 8.507059e+37  ;;  %v10833_v23 = vmul.f32 %v10832_v27, %v20145_v11  ;;  %v12135_v7 = vmul.f32 %v12134_v6, %v20182_v15  ;;  %v12147_v2 = vadd.f32 0.112945676, %v12146_v32  ;;  %vm12199_vm1 = vmor %vm12197_vm14, %vm12198_vm15 }
 0x7f3   : > { %v12196_v55 = vadd.f32 %v13693_v57, %v12195_v35  ;;  %v12252_v45 = vadd.f32 0.00028619796, %v12251_v33  ;;  %v12263_v53 = vadd.f32 0.001143296, %v12262_v19  ;;  %v20236_v25 = vmul.f32 0.70710677, %v20221_v12 }
 0x7f4   : > { %v12204_v26 = vor.u32 1.1754944e-38, %v12203_v43  ;;  %v12148_v24 = vmul.f32 %v12147_v2, %v20182_v15  ;;  %v10935_v50 = vadd.f32 1.0, %v13505_v16  ;;  %v12354_v5 = vmul.f32 0.5, %v20185_v4 }
 0x7f5   : > { %v12200_v11 = vsel %vm12199_vm1, %v13693_v57, %v12196_v55  ;;  %v12253_v61 = vmul.f32 %v12252_v45, %v20216_v58  ;;  %v12264_v9 = vmul.f32 %v12263_v53, %v20216_v58  ;;  %v12209_v54 = vmul.f32 %v20236_v25, %v20236_v25 }
 0x7f6   : > { %v13695_v14 = vpop.eup %13694  ;;  %v12205_v18 = vsel %vm20229_vm0, %v12204_v26, %v12200_v11  ;;  %v10834_v1 = vadd.f32 1.1283791, %v10833_v23  ;;  %v12136_v28 = vadd.f32 0.05243302, %v12135_v7  ;;  %v10855_v4 = vand.u32 2147483647, %v20214_v29 }
 0x7f7   : > { %v10847_v13 = vmul.f32 %v13695_v14, %v20214_v29  ;;  %v12206_v52 = vmul.f32 %v12205_v18, %v12181_v37  ;;  %v12149_v49 = vadd.f32 0.4994258, %v12148_v24  ;;  %v12265_v39 = vadd.f32 0.014752088, %v12264_v9 }
 0x7f8   : > { %v10857_v38 = vand.u32 2147483648, %v20214_v29  ;;  %v12387_v40 = vmul.f32 %v12354_v5, %v10935_v50  ;;  %v20251_v42 = vmin.f32 %v12209_v54, 16.0  ;;  %v12254_v59 = vadd.f32 0.0036580483, %v12253_v61 }
 0x7f9   : > { %v10848_v46 = vsub.f32 1.0, %v10847_v13  ;;  %v13536_v48 = vclamps-f32 %v12206_v52, 1.0  ;;  %v12150_v63 = vmul.f32 %v12149_v49, %v20182_v15  ;;  %v12266_v62 = vmul.f32 %v12265_v39, %v20216_v58 }
 0x7fa   : > { %vm10852_vm2 = vweird.f32 %v13695_v14  ;;  %v12137_v57 = vmul.f32 %v12136_v28, %v20182_v15  ;;  %12420 = vst [vmem:[%s17918_s30 + $0x100] sm:$0xff] %v12387_v40  ;;  %v12211_v60 = vmul.f32 2.1237322e-06, %v20251_v42  ;;  %v10835_v0 = vmul.f32 %v10834_v1, %v20130_v51 }
 0x7fb   : > { %v10849_v17 = vmul.f32 %v13695_v14, %v10848_v46  ;;  %v12319_v41 = vadd.f32 1.0, %v13536_v48  ;;  %v12151_v31 = vadd.f32 1.0, %v12150_v63  ;;  %v12267_v44 = vadd.f32 0.112945676, %v12266_v62 }
 0x7fc   : > { %vm10851_vm3 = vweird.f32 %v20214_v29  ;;  %v12212_v27 = vadd.f32 0.00028619796, %v12211_v60  ;;  %v12222_v6 = vmul.f32 3.8918573e-05, %v20251_v42  ;;  %v10858_v8 = vor.u32 1.1754944e-38, %v10857_v38 }
 0x7fd   : > { %v10850_v21 = vadd.f32 %v13695_v14, %v10849_v17  ;;  %v12484_v22 = vmul.f32 %v20173_v10, %v12319_v41  ;;  %vm10853_vm4 = vmor %vm10851_vm3, %vm10852_vm2  ;;  %13696 = vrcp.f32 %v12151_v31  ;;  %v12255_v37 = vmul.f32 %v12254_v59, %v20216_v58 }
 0x7fe   : > { %vm10856_vm5 = vcmp.eq.f32.partialorder %v10855_v4, 8.507059e+37  ;;  %v12138_v43 = vadd.f32 0.18741608, %v12137_v57  ;;  %v12268_v51 = vmul.f32 %v12267_v44, %v20216_v58  ;;  %v12223_v16 = vadd.f32 0.001143296, %v12222_v6 }
 0x7ff   : > { %v10854_v34 = vsel %vm10853_vm4, %v13695_v14, %v10850_v21  ;;  %12517 = vst [vmem:[%s17918_s30 + $0x1f8] sm:$0xff] %v12484_v22  ;;  %v12213_v33 = vmul.f32 %v12212_v27, %v20251_v42  ;;  %v12256_v19 = vadd.f32 0.05243302, %v12255_v37  ;;  %v12353_v61 = vmul.f32 0.5, %v20221_v12 }
 0x800   : > { %v10859_v32 = vsel %vm10856_vm5, %v10858_v8, %v10854_v34  ;;  %v12269_v29 = vadd.f32 0.4994258, %v12268_v51  ;;  %v12224_v10 = vmul.f32 %v12223_v16, %v20251_v42  ;;  %v12139_v30 = vmul.f32 %v12138_v43, %v20182_v15 }
 0x801   : > { %v10860_v35 = vmul.f32 %v10859_v32, %v10835_v0  ;;  %v12214_v26 = vadd.f32 0.0036580483, %v12213_v33  ;;  %v12257_v24 = vmul.f32 %v12256_v19, %v20216_v58  ;;  %v12161_v15 = vand.u32 2147483647, %v12151_v31 }
 0x802   : > { %v12270_v23 = vmul.f32 %v12269_v29, %v20216_v58  ;;  %v12225_v55 = vadd.f32 0.014752088, %v12224_v10  ;;  %v12140_v14 = vadd.f32 1.1283791, %v12139_v30  ;;  %v12163_v9 = vand.u32 2147483648, %v12151_v31 }
 0x803   : > { %v13504_v7 = vclamps-f32 %v10860_v35, 1.0  ;;  %v13697_v2 = vpop.eup %13696  ;;  %v12215_v1 = vmul.f32 %v12214_v26, %v20251_v42  ;;  %v12258_v28 = vadd.f32 0.18741608, %v12257_v24  ;;  %vm12157_vm7 = vweird.f32 %v12151_v31 }
 0x804   : > { %v12153_v45 = vmul.f32 %v13697_v2, %v12151_v31  ;;  %v12271_v53 = vadd.f32 1.0, %v12270_v23  ;;  %v12226_v5 = vmul.f32 %v12225_v55, %v20251_v42  ;;  %vm12158_vm6 = vweird.f32 %v13697_v2 }
 0x805   : > { %v10934_v50 = vadd.f32 1.0, %v13504_v7  ;;  %vm12159_vm8 = vmor %vm12157_vm7, %vm12158_vm6  ;;  %v12164_v49 = vor.u32 1.1754944e-38, %v12163_v9  ;;  %v12141_v12 = vmul.f32 %v12140_v14, %v20164_v20  ;;  %vm12162_vm9 = vcmp.eq.f32.partialorder %v12161_v15, 8.507059e+37 }
 0x806   : > { %v12154_v11 = vsub.f32 1.0, %v12153_v45  ;;  %13698 = vrcp.f32 %v12271_v53  ;;  %v12227_v54 = vadd.f32 0.112945676, %v12226_v5  ;;  %v12216_v40 = vadd.f32 0.05243302, %v12215_v1 }
 0x807   : > { %v12386_v13 = vmul.f32 %v12353_v61, %v10934_v50  ;;  %v12259_v63 = vmul.f32 %v12258_v28, %v20216_v58  ;;  %v12283_v41 = vand.u32 2147483648, %v12271_v53  ;;  %v12281_v20 = vand.u32 2147483647, %v12271_v53 }
 0x808   : > { %v12155_v18 = vmul.f32 %v13697_v2, %v12154_v11  ;;  %v12228_v52 = vmul.f32 %v12227_v54, %v20251_v42  ;;  %v12217_v0 = vmul.f32 %v12216_v40, %v20251_v42  ;;  %v12450_v27 = vmul.f32 0.5, %v19993_v3 }
 0x809   : > { %12419 = vst [vmem:[%s17918_s30 + $0xf8] sm:$0xff] %v12386_v13  ;;  %v12260_v44 = vadd.f32 1.1283791, %v12259_v63  ;;  %vm12277_vm11 = vweird.f32 %v12271_v53  ;;  %v12284_v8 = vor.u32 1.1754944e-38, %v12283_v41  ;;  %vm12282_vm13 = vcmp.eq.f32.partialorder %v12281_v20, 8.507059e+37 }
 0x80a   : > { %v12156_v4 = vadd.f32 %v13697_v2, %v12155_v18  ;;  %v12229_v39 = vadd.f32 0.4994258, %v12228_v52  ;;  %v12218_v37 = vadd.f32 0.18741608, %v12217_v0  ;;  %v12453_v33 = vmul.f32 0.5, %v20043_v56 }
 0x80b   : > { %v12261_v34 = vmul.f32 %v12260_v44, %v20200_v47  ;;  %v12452_v50 = vmul.f32 0.5, %v20119_v36 }
 0x80c   : > { %v13699_v46 = vpop.eup %13698  ;;  %v12160_v38 = vsel %vm12159_vm8, %v13697_v2, %v12156_v4  ;;  %v12230_v17 = vmul.f32 %v12229_v39, %v20251_v42  ;;  %v12219_v35 = vmul.f32 %v12218_v37, %v20251_v42 }
 0x80d   : > { %v12165_v48 = vsel %vm12162_vm9, %v12164_v49, %v12160_v38  ;;  %v12273_v59 = vmul.f32 %v13699_v46, %v12271_v53  ;;  %vm12278_vm10 = vweird.f32 %v13699_v46 }
 0x80e   : > { %v12166_v62 = vmul.f32 %v12165_v48, %v12141_v12  ;;  %v12231_v31 = vadd.f32 1.0, %v12230_v17  ;;  %vm12279_vm12 = vmor %vm12277_vm11, %vm12278_vm10  ;;  %v12220_v30 = vadd.f32 1.1283791, %v12219_v35 }
 0x80f   : > { %v12274_v57 = vsub.f32 1.0, %v12273_v59 }
 0x810   : > { %v13535_v60 = vclamps-f32 %v12166_v62, 1.0  ;;  %13700 = vrcp.f32 %v12231_v31  ;;  %v12243_v23 = vand.u32 2147483648, %v12231_v31  ;;  %v12241_v47 = vand.u32 2147483647, %v12231_v31 }
 0x811   : > { %v12275_v21 = vmul.f32 %v13699_v46, %v12274_v57  ;;  %vm12237_vm15 = vweird.f32 %v12231_v31  ;;  %v12221_v42 = vmul.f32 %v12220_v30, %v20236_v25 }
 0x812   : > { %v12318_v6 = vadd.f32 1.0, %v13535_v60  ;;  %v12244_v45 = vor.u32 1.1754944e-38, %v12243_v23  ;;  %vm12242_vm1 = vcmp.eq.f32.partialorder %v12241_v47, 8.507059e+37 }
 0x813   : > { %v12276_v58 = vadd.f32 %v13699_v46, %v12275_v21 }
 0x814   : > { %v12483_v22 = vmul.f32 %v12450_v27, %v12318_v6 }
 0x815   : > { %v12280_v43 = vsel %vm12279_vm12, %v13699_v46, %v12276_v58 }
 0x816   : > { %12516 = vst [vmem:[%s17918_s30 + $0x1f0] sm:$0xff] %v12483_v22  ;;  %v12285_v51 = vsel %vm12282_vm13, %v12284_v8, %v12280_v43  ;;  %v13701_v16 = vpop.eup %13700 }
 0x817   : > { %v12286_v32 = vmul.f32 %v12285_v51, %v12261_v34  ;;  %v12233_v29 = vmul.f32 %v13701_v16, %v12231_v31  ;;  %vm12238_vm14 = vweird.f32 %v13701_v16 }
 0x818   : > { %vm12239_vm0 = vmor %vm12237_vm15, %vm12238_vm14 }
 0x819   : > { %v13538_v3 = vclamps-f32 %v12286_v32, 1.0  ;;  %v12234_v10 = vsub.f32 1.0, %v12233_v29 }
 0x81b   : > { %v12321_v19 = vadd.f32 1.0, %v13538_v3  ;;  %v12235_v2 = vmul.f32 %v13701_v16, %v12234_v10 }
 0x81d   : > { %v12486_v7 = vmul.f32 %v12453_v33, %v12321_v19  ;;  %v12236_v55 = vadd.f32 %v13701_v16, %v12235_v2 }
 0x81f   : > { %12519 = vst [vmem:[%s17918_s30 + $0x208] sm:$0xff] %v12486_v7  ;;  %v12240_v53 = vsel %vm12239_vm0, %v13701_v16, %v12236_v55 }
 0x820   : > { %v12245_v26 = vsel %vm12242_vm1, %v12244_v45, %v12240_v53 }
 0x821   : > { %v12246_v56 = vmul.f32 %v12245_v26, %v12221_v42 }
 0x823   : > { %v13537_v24 = vclamps-f32 %v12246_v56, 1.0 }
 0x825   : > { %v12320_v5 = vadd.f32 1.0, %v13537_v24 }
 0x827   : > { %v12485_v14 = vmul.f32 %v12452_v50, %v12320_v5 }
 0x829   : > { %12518 = vst [vmem:[%s17918_s30 + $0x200] sm:$0xff] %v12485_v14 }
 0x82a PF: > { %s13_s12 = sadd.s32 1, %s13714_s12  }
 0x82b   : > { %p10_p4 = scmp.ge.s32.totalorder %s13_s12, 4  }
 0x82d   :  { %12 = sbr.rel (!%p10_p4) target bundleno = 1 (0x1), region = 89 }

</bundles_post_ra>
